<compile_context>
chip_gen: v6e
topology: v6e:2x2x1
jax: 0.10.0
libtpu: 0.0.40
codegen_flags: <defaults>
</compile_context>

<pallas_src>
import functools

import jax
import jax.numpy as jnp
from jax import lax
from jax.experimental import pallas as pl
from jax.experimental.pallas import tpu as pltpu


def _ode_euler_kernel(y0_ref, w_ref, y_out_ref, *, dt, nt, unroll, num_chains):
    """Integrate dy/dt = tanh(y_aug @ W_aug) with explicit Euler for nt steps.

    The state lives entirely in vregs as the fori_loop carry (f32); the bf16
    augmented weight is loaded once and reused for all nt steps — zero VMEM
    traffic inside the loop. The bias is already folded into W_aug, so the
    per-step dependent chain is just cast -> MXU (single bf16 pass) ->
    EUP(tanh) -> VPU(axpy). With num_chains > 1 the carry is split into
    independent sublane-aligned sub-tiles whose updates interleave so their
    latencies hide each other.
    """
    w = w_ref[...]                       # (H+1, H+1) bf16, resident all steps
    tb = y0_ref.shape[0]
    rows = tb // num_chains

    def step(_, ys):
        new = []
        for y in ys:                     # independent chains -> interleavable
            dy = jnp.tanh(
                jnp.dot(y.astype(jnp.bfloat16), w,
                        preferred_element_type=jnp.float32))
            new.append(y + dt * dy)      # f32 carry / accumulation
        return tuple(new)

    if num_chains == 1:
        y0 = (y0_ref[...],)
    else:
        y0 = tuple(y0_ref[c * rows:(c + 1) * rows, :] for c in range(num_chains))

    yf = lax.fori_loop(0, nt, step, y0, unroll=unroll)

    if num_chains == 1:
        y_out_ref[...] = yf[0]
    else:
        for c in range(num_chains):
            y_out_ref[c * rows:(c + 1) * rows, :] = yf[c]


def general_ode_forward(t0, y0, w, b, *, dt=0.01, nt=200, unroll=None,
                        batch_tile=None):
    """Pallas implementation of the GeneralODE forward (Euler + tanh field).

    Args:
      t0: scalar float32 initial time. The field here is autonomous, so t0 is
          accepted for interface fidelity but not used by the kernel.
      y0: (batch, hidden) float32 initial state.
      w:  (hidden, hidden) float32 vector-field weight.
      b:  (1, hidden) float32 vector-field bias.
      unroll: time-loop unroll factor; None = full unroll when nt <= 256.
      batch_tile: optional batch tile. Only used when batch >= 16,
          batch_tile % 8 == 0 and it divides batch — i.e. only worth it for a
          2-TensorCore split on v7x. Leave None on v5e/v6e and for small
          batches (a grid is just a sequential loop + per-step overhead there).
    Returns:
      yhat: (batch, hidden, 1) float32 == ys[-1].reshape(batch, -1, 1).
    """
    del t0  # autonomous field; kept in the signature for module fidelity
    batch, hidden = y0.shape
    ha = hidden + 1

    # Fold the bias into an augmented weight matrix: the state gets a
    # constant-1 column, W_aug's last row carries b, and its last column is
    # exactly zero so tanh(0) = 0 keeps the ones column fixed over all steps.
    y0_aug = jnp.concatenate(
        [y0.astype(jnp.float32), jnp.ones((batch, 1), jnp.float32)], axis=1)
    w_aug = jnp.zeros((ha, ha), jnp.float32)
    w_aug = w_aug.at[:hidden, :hidden].set(w)
    w_aug = w_aug.at[hidden, :hidden].set(b.reshape(-1))
    w_aug = w_aug.astype(jnp.bfloat16)    # single-pass MXU operand

    # Batch tiling: only for sublane-aligned tiles of a reasonably large batch
    # (v7x 2-TC split); otherwise keep the whole batch in one block (grid of 1).
    if (batch_tile is not None and batch >= 16 and batch_tile % 8 == 0
            and batch % batch_tile == 0 and batch_tile < batch):
        tb = int(batch_tile)
    else:
        tb = batch
    grid = (batch // tb,)

    # Independent latency-hiding chains inside one block (sublane-aligned).
    num_chains = 1
    if tb % 8 == 0:
        for k in (4, 2):
            if tb % (8 * k) == 0:
                num_chains = k
                break

    if unroll is None:
        unroll = nt if nt <= 256 else 32   # full unroll for short integrations

    kernel = functools.partial(
        _ode_euler_kernel, dt=float(dt), nt=int(nt), unroll=int(unroll),
        num_chains=int(num_chains))

    y_final = pl.pallas_call(
        kernel,
        out_shape=jax.ShapeDtypeStruct((batch, ha), jnp.float32),
        grid=grid,
        in_specs=[
            pl.BlockSpec((tb, ha), lambda i: (i, 0)),     # augmented y0 tile
            pl.BlockSpec((ha, ha), lambda i: (0, 0)),     # W_aug (shared, bf16)
        ],
        out_specs=pl.BlockSpec((tb, ha), lambda i: (i, 0)),
        compiler_params=pltpu.CompilerParams(
            dimension_semantics=("parallel",),   # batch tiles are independent
        ),
    )(y0_aug, w_aug)

    # yhat = ys[-1].reshape(batch_size, -1, 1) (drop the constant-1 column)
    return y_final[:, :hidden].reshape(batch, -1, 1)


if __name__ == "__main__":
    key = jax.random.PRNGKey(0)
    k_y, k_w, k_b = jax.random.split(key, 3)

    batch, hidden = 2, 32
    dt, nt = 0.01, 200

    y0 = jax.random.normal(k_y, (batch, hidden), dtype=jnp.float32)
    # Small deterministic weights so the Euler integration stays well-behaved.
    w = 0.1 * jax.random.normal(k_w, (hidden, hidden), dtype=jnp.float32)
    b = 0.1 * jax.random.normal(k_b, (1, hidden), dtype=jnp.float32)
    t0 = jnp.float32(0.0)

    yhat = general_ode_forward(t0, y0, w, b, dt=dt, nt=nt)
    yhat = jax.block_until_ready(yhat)
    assert yhat.shape == (batch, hidden, 1)

    # Matched reference: identical augmented-W Euler recurrence with the same
    # single-pass bf16 products and f32 carry (apples-to-apples strict check).
    w_aug_ref = jnp.zeros((hidden + 1, hidden + 1), jnp.float32)
    w_aug_ref = w_aug_ref.at[:hidden, :hidden].set(w)
    w_aug_ref = w_aug_ref.at[hidden, :hidden].set(b.reshape(-1))
    w_aug_bf16 = w_aug_ref.astype(jnp.bfloat16)
    ones_col = jnp.ones((batch, 1), jnp.float32)

    def ref_matched(y):
        def step(_, yk):
            ya = jnp.concatenate([yk, ones_col], axis=1)
            dy = jnp.tanh(jnp.dot(ya.astype(jnp.bfloat16), w_aug_bf16,
                                  preferred_element_type=jnp.float32))
            return yk + dt * dy[:, :hidden]
        return lax.fori_loop(0, nt, step, y).reshape(batch, -1, 1)

    ref_bf16 = jax.block_until_ready(ref_matched(y0))
    assert jnp.allclose(yhat, ref_bf16, atol=1e-4, rtol=1e-4)

    # Loose sanity check against the pure-f32 Euler recurrence: 200 contractive
    # steps of bf16 products drift only by a few 1e-3 at these weight scales.
    def ref_f32(y):
        def step(_, yk):
            return yk + dt * jnp.tanh(yk @ w + b)
        return lax.fori_loop(0, nt, step, y).reshape(batch, -1, 1)

    ref32 = jax.block_until_ready(ref_f32(y0))
    assert jnp.allclose(yhat, ref32, atol=5e-2, rtol=5e-2)

    print("KERNEL_OK")
</pallas_src>

<mosaic_0001>
module attributes {stable_mosaic.version = 11 : i64} {
  func.func @_ode_euler_kernel(%arg0: i32, %arg1: memref<2x33xf32, #tpu.memory_space<vmem>>, %arg2: memref<33x33xbf16, #tpu.memory_space<vmem>>, %arg3: memref<2x33xf32, #tpu.memory_space<vmem>>) attributes {dimension_semantics = [#tpu.dimension_semantics<parallel>], iteration_bounds = array<i64: 1>, scalar_prefetch = 0 : i64, scratch_operands = 0 : i64, tpu.core_type = #tpu.core_type<tc>, window_params = [{transform_indices = @transform_0, window_bounds = array<i64: 2, 33>}, {pipeline_mode = #tpu.pipeline_mode<synchronous>, transform_indices = @transform_1, window_bounds = array<i64: 33, 33>}, {transform_indices = @transform_2, window_bounds = array<i64: 2, 33>}]} {
    %c0 = arith.constant 0 : index
    %c0_0 = arith.constant 0 : index
    %0 = vector.load %arg2[%c0, %c0_0] : memref<33x33xbf16, #tpu.memory_space<vmem>>, vector<33x33xbf16>
    %c0_1 = arith.constant 0 : index
    %c0_2 = arith.constant 0 : index
    %1 = vector.load %arg1[%c0_1, %c0_2] : memref<2x33xf32, #tpu.memory_space<vmem>>, vector<2x33xf32>
    %c0_i32 = arith.constant 0 : i32
    %2 = arith.truncf %1 : vector<2x33xf32> to vector<2x33xbf16>
    %cst = arith.constant dense<0.000000e+00> : vector<2x33xf32>
    %3 = tpu.matmul %2, %0, %cst {dimension_numbers = #tpu.dot_dimension_numbers<[1], [0], [0], [1], [0, 0, 1, 1], [], []>} : vector<2x33xbf16>, vector<33x33xbf16>, vector<2x33xf32> -> vector<2x33xf32>
    %4 = math.tanh %3 : vector<2x33xf32>
    %cst_3 = arith.constant 0.00999999977 : f32
    %5 = vector.broadcast %cst_3 : f32 to vector<2x33xf32>
    %6 = arith.mulf %5, %4 : vector<2x33xf32>
    %7 = arith.addf %1, %6 : vector<2x33xf32>
    %c1_i32 = arith.constant 1 : i32
    %8 = arith.truncf %7 : vector<2x33xf32> to vector<2x33xbf16>
    %cst_4 = arith.constant dense<0.000000e+00> : vector<2x33xf32>
    %9 = tpu.matmul %8, %0, %cst_4 {dimension_numbers = #tpu.dot_dimension_numbers<[1], [0], [0], [1], [0, 0, 1, 1], [], []>} : vector<2x33xbf16>, vector<33x33xbf16>, vector<2x33xf32> -> vector<2x33xf32>
    %10 = math.tanh %9 : vector<2x33xf32>
    %cst_5 = arith.constant 0.00999999977 : f32
    %11 = vector.broadcast %cst_5 : f32 to vector<2x33xf32>
    %12 = arith.mulf %11, %10 : vector<2x33xf32>
    %13 = arith.addf %7, %12 : vector<2x33xf32>
    %c2_i32 = arith.constant 2 : i32
    %14 = arith.truncf %13 : vector<2x33xf32> to vector<2x33xbf16>
    %cst_6 = arith.constant dense<0.000000e+00> : vector<2x33xf32>
    %15 = tpu.matmul %14, %0, %cst_6 {dimension_numbers = #tpu.dot_dimension_numbers<[1], [0], [0], [1], [0, 0, 1, 1], [], []>} : vector<2x33xbf16>, vector<33x33xbf16>, vector<2x33xf32> -> vector<2x33xf32>
    %16 = math.tanh %15 : vector<2x33xf32>
    %cst_7 = arith.constant 0.00999999977 : f32
    %17 = vector.broadcast %cst_7 : f32 to vector<2x33xf32>
    %18 = arith.mulf %17, %16 : vector<2x33xf32>
    %19 = arith.addf %13, %18 : vector<2x33xf32>
    %c3_i32 = arith.constant 3 : i32
    %20 = arith.truncf %19 : vector<2x33xf32> to vector<2x33xbf16>
    %cst_8 = arith.constant dense<0.000000e+00> : vector<2x33xf32>
    %21 = tpu.matmul %20, %0, %cst_8 {dimension_numbers = #tpu.dot_dimension_numbers<[1], [0], [0], [1], [0, 0, 1, 1], [], []>} : vector<2x33xbf16>, vector<33x33xbf16>, vector<2x33xf32> -> vector<2x33xf32>
    %22 = math.tanh %21 : vector<2x33xf32>
    %cst_9 = arith.constant 0.00999999977 : f32
    %23 = vector.broadcast %cst_9 : f32 to vector<2x33xf32>
    %24 = arith.mulf %23, %22 : vector<2x33xf32>
    %25 = arith.addf %19, %24 : vector<2x33xf32>
    %c4_i32 = arith.constant 4 : i32
    %26 = arith.truncf %25 : vector<2x33xf32> to vector<2x33xbf16>
    %cst_10 = arith.constant dense<0.000000e+00> : vector<2x33xf32>
    %27 = tpu.matmul %26, %0, %cst_10 {dimension_numbers = #tpu.dot_dimension_numbers<[1], [0], [0], [1], [0, 0, 1, 1], [], []>} : vector<2x33xbf16>, vector<33x33xbf16>, vector<2x33xf32> -> vector<2x33xf32>
    %28 = math.tanh %27 : vector<2x33xf32>
    %cst_11 = arith.constant 0.00999999977 : f32
    %29 = vector.broadcast %cst_11 : f32 to vector<2x33xf32>
    %30 = arith.mulf %29, %28 : vector<2x33xf32>
    %31 = arith.addf %25, %30 : vector<2x33xf32>
    %c5_i32 = arith.constant 5 : i32
    %32 = arith.truncf %31 : vector<2x33xf32> to vector<2x33xbf16>
    %cst_12 = arith.constant dense<0.000000e+00> : vector<2x33xf32>
    %33 = tpu.matmul %32, %0, %cst_12 {dimension_numbers = #tpu.dot_dimension_numbers<[1], [0], [0], [1], [0, 0, 1, 1], [], []>} : vector<2x33xbf16>, vector<33x33xbf16>, vector<2x33xf32> -> vector<2x33xf32>
    %34 = math.tanh %33 : vector<2x33xf32>
    %cst_13 = arith.constant 0.00999999977 : f32
    %35 = vector.broadcast %cst_13 : f32 to vector<2x33xf32>
    %36 = arith.mulf %35, %34 : vector<2x33xf32>
    %37 = arith.addf %31, %36 : vector<2x33xf32>
    %c6_i32 = arith.constant 6 : i32
    %38 = arith.truncf %37 : vector<2x33xf32> to vector<2x33xbf16>
    %cst_14 = arith.constant dense<0.000000e+00> : vector<2x33xf32>
    %39 = tpu.matmul %38, %0, %cst_14 {dimension_numbers = #tpu.dot_dimension_numbers<[1], [0], [0], [1], [0, 0, 1, 1], [], []>} : vector<2x33xbf16>, vector<33x33xbf16>, vector<2x33xf32> -> vector<2x33xf32>
    %40 = math.tanh %39 : vector<2x33xf32>
    %cst_15 = arith.constant 0.00999999977 : f32
    %41 = vector.broadcast %cst_15 : f32 to vector<2x33xf32>
    %42 = arith.mulf %41, %40 : vector<2x33xf32>
    %43 = arith.addf %37, %42 : vector<2x33xf32>
    %c7_i32 = arith.constant 7 : i32
    %44 = arith.truncf %43 : vector<2x33xf32> to vector<2x33xbf16>
    %cst_16 = arith.constant dense<0.000000e+00> : vector<2x33xf32>
    %45 = tpu.matmul %44, %0, %cst_16 {dimension_numbers = #tpu.dot_dimension_numbers<[1], [0], [0], [1], [0, 0, 1, 1], [], []>} : vector<2x33xbf16>, vector<33x33xbf16>, vector<2x33xf32> -> vector<2x33xf32>
    %46 = math.tanh %45 : vector<2x33xf32>
    %cst_17 = arith.constant 0.00999999977 : f32
    %47 = vector.broadcast %cst_17 : f32 to vector<2x33xf32>
    %48 = arith.mulf %47, %46 : vector<2x33xf32>
    %49 = arith.addf %43, %48 : vector<2x33xf32>
    %c8_i32 = arith.constant 8 : i32
    %50 = arith.truncf %49 : vector<2x33xf32> to vector<2x33xbf16>
    %cst_18 = arith.constant dense<0.000000e+00> : vector<2x33xf32>
    %51 = tpu.matmul %50, %0, %cst_18 {dimension_numbers = #tpu.dot_dimension_numbers<[1], [0], [0], [1], [0, 0, 1, 1], [], []>} : vector<2x33xbf16>, vector<33x33xbf16>, vector<2x33xf32> -> vector<2x33xf32>
    %52 = math.tanh %51 : vector<2x33xf32>
    %cst_19 = arith.constant 0.00999999977 : f32
    %53 = vector.broadcast %cst_19 : f32 to vector<2x33xf32>
    %54 = arith.mulf %53, %52 : vector<2x33xf32>
    %55 = arith.addf %49, %54 : vector<2x33xf32>
    %c9_i32 = arith.constant 9 : i32
    %56 = arith.truncf %55 : vector<2x33xf32> to vector<2x33xbf16>
    %cst_20 = arith.constant dense<0.000000e+00> : vector<2x33xf32>
    %57 = tpu.matmul %56, %0, %cst_20 {dimension_numbers = #tpu.dot_dimension_numbers<[1], [0], [0], [1], [0, 0, 1, 1], [], []>} : vector<2x33xbf16>, vector<33x33xbf16>, vector<2x33xf32> -> vector<2x33xf32>
    %58 = math.tanh %57 : vector<2x33xf32>
    %cst_21 = arith.constant 0.00999999977 : f32
    %59 = vector.broadcast %cst_21 : f32 to vector<2x33xf32>
    %60 = arith.mulf %59, %58 : vector<2x33xf32>
    %61 = arith.addf %55, %60 : vector<2x33xf32>
    %c10_i32 = arith.constant 10 : i32
    %62 = arith.truncf %61 : vector<2x33xf32> to vector<2x33xbf16>
    %cst_22 = arith.constant dense<0.000000e+00> : vector<2x33xf32>
    %63 = tpu.matmul %62, %0, %cst_22 {dimension_numbers = #tpu.dot_dimension_numbers<[1], [0], [0], [1], [0, 0, 1, 1], [], []>} : vector<2x33xbf16>, vector<33x33xbf16>, vector<2x33xf32> -> vector<2x33xf32>
    %64 = math.tanh %63 : vector<2x33xf32>
    %cst_23 = arith.constant 0.00999999977 : f32
    %65 = vector.broadcast %cst_23 : f32 to vector<2x33xf32>
    %66 = arith.mulf %65, %64 : vector<2x33xf32>
    %67 = arith.addf %61, %66 : vector<2x33xf32>
    %c11_i32 = arith.constant 11 : i32
    %68 = arith.truncf %67 : vector<2x33xf32> to vector<2x33xbf16>
    %cst_24 = arith.constant dense<0.000000e+00> : vector<2x33xf32>
    %69 = tpu.matmul %68, %0, %cst_24 {dimension_numbers = #tpu.dot_dimension_numbers<[1], [0], [0], [1], [0, 0, 1, 1], [], []>} : vector<2x33xbf16>, vector<33x33xbf16>, vector<2x33xf32> -> vector<2x33xf32>
    %70 = math.tanh %69 : vector<2x33xf32>
    %cst_25 = arith.constant 0.00999999977 : f32
    %71 = vector.broadcast %cst_25 : f32 to vector<2x33xf32>
    %72 = arith.mulf %71, %70 : vector<2x33xf32>
    %73 = arith.addf %67, %72 : vector<2x33xf32>
    %c12_i32 = arith.constant 12 : i32
    %74 = arith.truncf %73 : vector<2x33xf32> to vector<2x33xbf16>
    %cst_26 = arith.constant dense<0.000000e+00> : vector<2x33xf32>
    %75 = tpu.matmul %74, %0, %cst_26 {dimension_numbers = #tpu.dot_dimension_numbers<[1], [0], [0], [1], [0, 0, 1, 1], [], []>} : vector<2x33xbf16>, vector<33x33xbf16>, vector<2x33xf32> -> vector<2x33xf32>
    %76 = math.tanh %75 : vector<2x33xf32>
    %cst_27 = arith.constant 0.00999999977 : f32
    %77 = vector.broadcast %cst_27 : f32 to vector<2x33xf32>
    %78 = arith.mulf %77, %76 : vector<2x33xf32>
    %79 = arith.addf %73, %78 : vector<2x33xf32>
    %c13_i32 = arith.constant 13 : i32
    %80 = arith.truncf %79 : vector<2x33xf32> to vector<2x33xbf16>
    %cst_28 = arith.constant dense<0.000000e+00> : vector<2x33xf32>
    %81 = tpu.matmul %80, %0, %cst_28 {dimension_numbers = #tpu.dot_dimension_numbers<[1], [0], [0], [1], [0, 0, 1, 1], [], []>} : vector<2x33xbf16>, vector<33x33xbf16>, vector<2x33xf32> -> vector<2x33xf32>
    %82 = math.tanh %81 : vector<2x33xf32>
    %cst_29 = arith.constant 0.00999999977 : f32
    %83 = vector.broadcast %cst_29 : f32 to vector<2x33xf32>
    %84 = arith.mulf %83, %82 : vector<2x33xf32>
    %85 = arith.addf %79, %84 : vector<2x33xf32>
    %c14_i32 = arith.constant 14 : i32
    %86 = arith.truncf %85 : vector<2x33xf32> to vector<2x33xbf16>
    %cst_30 = arith.constant dense<0.000000e+00> : vector<2x33xf32>
    %87 = tpu.matmul %86, %0, %cst_30 {dimension_numbers = #tpu.dot_dimension_numbers<[1], [0], [0], [1], [0, 0, 1, 1], [], []>} : vector<2x33xbf16>, vector<33x33xbf16>, vector<2x33xf32> -> vector<2x33xf32>
    %88 = math.tanh %87 : vector<2x33xf32>
    %cst_31 = arith.constant 0.00999999977 : f32
    %89 = vector.broadcast %cst_31 : f32 to vector<2x33xf32>
    %90 = arith.mulf %89, %88 : vector<2x33xf32>
    %91 = arith.addf %85, %90 : vector<2x33xf32>
    %c15_i32 = arith.constant 15 : i32
    %92 = arith.truncf %91 : vector<2x33xf32> to vector<2x33xbf16>
    %cst_32 = arith.constant dense<0.000000e+00> : vector<2x33xf32>
    %93 = tpu.matmul %92, %0, %cst_32 {dimension_numbers = #tpu.dot_dimension_numbers<[1], [0], [0], [1], [0, 0, 1, 1], [], []>} : vector<2x33xbf16>, vector<33x33xbf16>, vector<2x33xf32> -> vector<2x33xf32>
    %94 = math.tanh %93 : vector<2x33xf32>
    %cst_33 = arith.constant 0.00999999977 : f32
    %95 = vector.broadcast %cst_33 : f32 to vector<2x33xf32>
    %96 = arith.mulf %95, %94 : vector<2x33xf32>
    %97 = arith.addf %91, %96 : vector<2x33xf32>
    %c16_i32 = arith.constant 16 : i32
    %98 = arith.truncf %97 : vector<2x33xf32> to vector<2x33xbf16>
    %cst_34 = arith.constant dense<0.000000e+00> : vector<2x33xf32>
    %99 = tpu.matmul %98, %0, %cst_34 {dimension_numbers = #tpu.dot_dimension_numbers<[1], [0], [0], [1], [0, 0, 1, 1], [], []>} : vector<2x33xbf16>, vector<33x33xbf16>, vector<2x33xf32> -> vector<2x33xf32>
    %100 = math.tanh %99 : vector<2x33xf32>
    %cst_35 = arith.constant 0.00999999977 : f32
    %101 = vector.broadcast %cst_35 : f32 to vector<2x33xf32>
    %102 = arith.mulf %101, %100 : vector<2x33xf32>
    %103 = arith.addf %97, %102 : vector<2x33xf32>
    %c17_i32 = arith.constant 17 : i32
    %104 = arith.truncf %103 : vector<2x33xf32> to vector<2x33xbf16>
    %cst_36 = arith.constant dense<0.000000e+00> : vector<2x33xf32>
    %105 = tpu.matmul %104, %0, %cst_36 {dimension_numbers = #tpu.dot_dimension_numbers<[1], [0], [0], [1], [0, 0, 1, 1], [], []>} : vector<2x33xbf16>, vector<33x33xbf16>, vector<2x33xf32> -> vector<2x33xf32>
    %106 = math.tanh %105 : vector<2x33xf32>
    %cst_37 = arith.constant 0.00999999977 : f32
    %107 = vector.broadcast %cst_37 : f32 to vector<2x33xf32>
    %108 = arith.mulf %107, %106 : vector<2x33xf32>
    %109 = arith.addf %103, %108 : vector<2x33xf32>
    %c18_i32 = arith.constant 18 : i32
    %110 = arith.truncf %109 : vector<2x33xf32> to vector<2x33xbf16>
    %cst_38 = arith.constant dense<0.000000e+00> : vector<2x33xf32>
    %111 = tpu.matmul %110, %0, %cst_38 {dimension_numbers = #tpu.dot_dimension_numbers<[1], [0], [0], [1], [0, 0, 1, 1], [], []>} : vector<2x33xbf16>, vector<33x33xbf16>, vector<2x33xf32> -> vector<2x33xf32>
    %112 = math.tanh %111 : vector<2x33xf32>
    %cst_39 = arith.constant 0.00999999977 : f32
    %113 = vector.broadcast %cst_39 : f32 to vector<2x33xf32>
    %114 = arith.mulf %113, %112 : vector<2x33xf32>
    %115 = arith.addf %109, %114 : vector<2x33xf32>
    %c19_i32 = arith.constant 19 : i32
    %116 = arith.truncf %115 : vector<2x33xf32> to vector<2x33xbf16>
    %cst_40 = arith.constant dense<0.000000e+00> : vector<2x33xf32>
    %117 = tpu.matmul %116, %0, %cst_40 {dimension_numbers = #tpu.dot_dimension_numbers<[1], [0], [0], [1], [0, 0, 1, 1], [], []>} : vector<2x33xbf16>, vector<33x33xbf16>, vector<2x33xf32> -> vector<2x33xf32>
    %118 = math.tanh %117 : vector<2x33xf32>
    %cst_41 = arith.constant 0.00999999977 : f32
    %119 = vector.broadcast %cst_41 : f32 to vector<2x33xf32>
    %120 = arith.mulf %119, %118 : vector<2x33xf32>
    %121 = arith.addf %115, %120 : vector<2x33xf32>
    %c20_i32 = arith.constant 20 : i32
    %122 = arith.truncf %121 : vector<2x33xf32> to vector<2x33xbf16>
    %cst_42 = arith.constant dense<0.000000e+00> : vector<2x33xf32>
    %123 = tpu.matmul %122, %0, %cst_42 {dimension_numbers = #tpu.dot_dimension_numbers<[1], [0], [0], [1], [0, 0, 1, 1], [], []>} : vector<2x33xbf16>, vector<33x33xbf16>, vector<2x33xf32> -> vector<2x33xf32>
    %124 = math.tanh %123 : vector<2x33xf32>
    %cst_43 = arith.constant 0.00999999977 : f32
    %125 = vector.broadcast %cst_43 : f32 to vector<2x33xf32>
    %126 = arith.mulf %125, %124 : vector<2x33xf32>
    %127 = arith.addf %121, %126 : vector<2x33xf32>
    %c21_i32 = arith.constant 21 : i32
    %128 = arith.truncf %127 : vector<2x33xf32> to vector<2x33xbf16>
    %cst_44 = arith.constant dense<0.000000e+00> : vector<2x33xf32>
    %129 = tpu.matmul %128, %0, %cst_44 {dimension_numbers = #tpu.dot_dimension_numbers<[1], [0], [0], [1], [0, 0, 1, 1], [], []>} : vector<2x33xbf16>, vector<33x33xbf16>, vector<2x33xf32> -> vector<2x33xf32>
    %130 = math.tanh %129 : vector<2x33xf32>
    %cst_45 = arith.constant 0.00999999977 : f32
    %131 = vector.broadcast %cst_45 : f32 to vector<2x33xf32>
    %132 = arith.mulf %131, %130 : vector<2x33xf32>
    %133 = arith.addf %127, %132 : vector<2x33xf32>
    %c22_i32 = arith.constant 22 : i32
    %134 = arith.truncf %133 : vector<2x33xf32> to vector<2x33xbf16>
    %cst_46 = arith.constant dense<0.000000e+00> : vector<2x33xf32>
    %135 = tpu.matmul %134, %0, %cst_46 {dimension_numbers = #tpu.dot_dimension_numbers<[1], [0], [0], [1], [0, 0, 1, 1], [], []>} : vector<2x33xbf16>, vector<33x33xbf16>, vector<2x33xf32> -> vector<2x33xf32>
    %136 = math.tanh %135 : vector<2x33xf32>
    %cst_47 = arith.constant 0.00999999977 : f32
    %137 = vector.broadcast %cst_47 : f32 to vector<2x33xf32>
    %138 = arith.mulf %137, %136 : vector<2x33xf32>
    %139 = arith.addf %133, %138 : vector<2x33xf32>
    %c23_i32 = arith.constant 23 : i32
    %140 = arith.truncf %139 : vector<2x33xf32> to vector<2x33xbf16>
    %cst_48 = arith.constant dense<0.000000e+00> : vector<2x33xf32>
    %141 = tpu.matmul %140, %0, %cst_48 {dimension_numbers = #tpu.dot_dimension_numbers<[1], [0], [0], [1], [0, 0, 1, 1], [], []>} : vector<2x33xbf16>, vector<33x33xbf16>, vector<2x33xf32> -> vector<2x33xf32>
    %142 = math.tanh %141 : vector<2x33xf32>
    %cst_49 = arith.constant 0.00999999977 : f32
    %143 = vector.broadcast %cst_49 : f32 to vector<2x33xf32>
    %144 = arith.mulf %143, %142 : vector<2x33xf32>
    %145 = arith.addf %139, %144 : vector<2x33xf32>
    %c24_i32 = arith.constant 24 : i32
    %146 = arith.truncf %145 : vector<2x33xf32> to vector<2x33xbf16>
    %cst_50 = arith.constant dense<0.000000e+00> : vector<2x33xf32>
    %147 = tpu.matmul %146, %0, %cst_50 {dimension_numbers = #tpu.dot_dimension_numbers<[1], [0], [0], [1], [0, 0, 1, 1], [], []>} : vector<2x33xbf16>, vector<33x33xbf16>, vector<2x33xf32> -> vector<2x33xf32>
    %148 = math.tanh %147 : vector<2x33xf32>
    %cst_51 = arith.constant 0.00999999977 : f32
    %149 = vector.broadcast %cst_51 : f32 to vector<2x33xf32>
    %150 = arith.mulf %149, %148 : vector<2x33xf32>
    %151 = arith.addf %145, %150 : vector<2x33xf32>
    %c25_i32 = arith.constant 25 : i32
    %152 = arith.truncf %151 : vector<2x33xf32> to vector<2x33xbf16>
    %cst_52 = arith.constant dense<0.000000e+00> : vector<2x33xf32>
    %153 = tpu.matmul %152, %0, %cst_52 {dimension_numbers = #tpu.dot_dimension_numbers<[1], [0], [0], [1], [0, 0, 1, 1], [], []>} : vector<2x33xbf16>, vector<33x33xbf16>, vector<2x33xf32> -> vector<2x33xf32>
    %154 = math.tanh %153 : vector<2x33xf32>
    %cst_53 = arith.constant 0.00999999977 : f32
    %155 = vector.broadcast %cst_53 : f32 to vector<2x33xf32>
    %156 = arith.mulf %155, %154 : vector<2x33xf32>
    %157 = arith.addf %151, %156 : vector<2x33xf32>
    %c26_i32 = arith.constant 26 : i32
    %158 = arith.truncf %157 : vector<2x33xf32> to vector<2x33xbf16>
    %cst_54 = arith.constant dense<0.000000e+00> : vector<2x33xf32>
    %159 = tpu.matmul %158, %0, %cst_54 {dimension_numbers = #tpu.dot_dimension_numbers<[1], [0], [0], [1], [0, 0, 1, 1], [], []>} : vector<2x33xbf16>, vector<33x33xbf16>, vector<2x33xf32> -> vector<2x33xf32>
    %160 = math.tanh %159 : vector<2x33xf32>
    %cst_55 = arith.constant 0.00999999977 : f32
    %161 = vector.broadcast %cst_55 : f32 to vector<2x33xf32>
    %162 = arith.mulf %161, %160 : vector<2x33xf32>
    %163 = arith.addf %157, %162 : vector<2x33xf32>
    %c27_i32 = arith.constant 27 : i32
    %164 = arith.truncf %163 : vector<2x33xf32> to vector<2x33xbf16>
    %cst_56 = arith.constant dense<0.000000e+00> : vector<2x33xf32>
    %165 = tpu.matmul %164, %0, %cst_56 {dimension_numbers = #tpu.dot_dimension_numbers<[1], [0], [0], [1], [0, 0, 1, 1], [], []>} : vector<2x33xbf16>, vector<33x33xbf16>, vector<2x33xf32> -> vector<2x33xf32>
    %166 = math.tanh %165 : vector<2x33xf32>
    %cst_57 = arith.constant 0.00999999977 : f32
    %167 = vector.broadcast %cst_57 : f32 to vector<2x33xf32>
    %168 = arith.mulf %167, %166 : vector<2x33xf32>
    %169 = arith.addf %163, %168 : vector<2x33xf32>
    %c28_i32 = arith.constant 28 : i32
    %170 = arith.truncf %169 : vector<2x33xf32> to vector<2x33xbf16>
    %cst_58 = arith.constant dense<0.000000e+00> : vector<2x33xf32>
    %171 = tpu.matmul %170, %0, %cst_58 {dimension_numbers = #tpu.dot_dimension_numbers<[1], [0], [0], [1], [0, 0, 1, 1], [], []>} : vector<2x33xbf16>, vector<33x33xbf16>, vector<2x33xf32> -> vector<2x33xf32>
    %172 = math.tanh %171 : vector<2x33xf32>
    %cst_59 = arith.constant 0.00999999977 : f32
    %173 = vector.broadcast %cst_59 : f32 to vector<2x33xf32>
    %174 = arith.mulf %173, %172 : vector<2x33xf32>
    %175 = arith.addf %169, %174 : vector<2x33xf32>
    %c29_i32 = arith.constant 29 : i32
    %176 = arith.truncf %175 : vector<2x33xf32> to vector<2x33xbf16>
    %cst_60 = arith.constant dense<0.000000e+00> : vector<2x33xf32>
    %177 = tpu.matmul %176, %0, %cst_60 {dimension_numbers = #tpu.dot_dimension_numbers<[1], [0], [0], [1], [0, 0, 1, 1], [], []>} : vector<2x33xbf16>, vector<33x33xbf16>, vector<2x33xf32> -> vector<2x33xf32>
    %178 = math.tanh %177 : vector<2x33xf32>
    %cst_61 = arith.constant 0.00999999977 : f32
    %179 = vector.broadcast %cst_61 : f32 to vector<2x33xf32>
    %180 = arith.mulf %179, %178 : vector<2x33xf32>
    %181 = arith.addf %175, %180 : vector<2x33xf32>
    %c30_i32 = arith.constant 30 : i32
    %182 = arith.truncf %181 : vector<2x33xf32> to vector<2x33xbf16>
    %cst_62 = arith.constant dense<0.000000e+00> : vector<2x33xf32>
    %183 = tpu.matmul %182, %0, %cst_62 {dimension_numbers = #tpu.dot_dimension_numbers<[1], [0], [0], [1], [0, 0, 1, 1], [], []>} : vector<2x33xbf16>, vector<33x33xbf16>, vector<2x33xf32> -> vector<2x33xf32>
    %184 = math.tanh %183 : vector<2x33xf32>
    %cst_63 = arith.constant 0.00999999977 : f32
    %185 = vector.broadcast %cst_63 : f32 to vector<2x33xf32>
    %186 = arith.mulf %185, %184 : vector<2x33xf32>
    %187 = arith.addf %181, %186 : vector<2x33xf32>
    %c31_i32 = arith.constant 31 : i32
    %188 = arith.truncf %187 : vector<2x33xf32> to vector<2x33xbf16>
    %cst_64 = arith.constant dense<0.000000e+00> : vector<2x33xf32>
    %189 = tpu.matmul %188, %0, %cst_64 {dimension_numbers = #tpu.dot_dimension_numbers<[1], [0], [0], [1], [0, 0, 1, 1], [], []>} : vector<2x33xbf16>, vector<33x33xbf16>, vector<2x33xf32> -> vector<2x33xf32>
    %190 = math.tanh %189 : vector<2x33xf32>
    %cst_65 = arith.constant 0.00999999977 : f32
    %191 = vector.broadcast %cst_65 : f32 to vector<2x33xf32>
    %192 = arith.mulf %191, %190 : vector<2x33xf32>
    %193 = arith.addf %187, %192 : vector<2x33xf32>
    %c32_i32 = arith.constant 32 : i32
    %194 = arith.truncf %193 : vector<2x33xf32> to vector<2x33xbf16>
    %cst_66 = arith.constant dense<0.000000e+00> : vector<2x33xf32>
    %195 = tpu.matmul %194, %0, %cst_66 {dimension_numbers = #tpu.dot_dimension_numbers<[1], [0], [0], [1], [0, 0, 1, 1], [], []>} : vector<2x33xbf16>, vector<33x33xbf16>, vector<2x33xf32> -> vector<2x33xf32>
    %196 = math.tanh %195 : vector<2x33xf32>
    %cst_67 = arith.constant 0.00999999977 : f32
    %197 = vector.broadcast %cst_67 : f32 to vector<2x33xf32>
    %198 = arith.mulf %197, %196 : vector<2x33xf32>
    %199 = arith.addf %193, %198 : vector<2x33xf32>
    %c33_i32 = arith.constant 33 : i32
    %200 = arith.truncf %199 : vector<2x33xf32> to vector<2x33xbf16>
    %cst_68 = arith.constant dense<0.000000e+00> : vector<2x33xf32>
    %201 = tpu.matmul %200, %0, %cst_68 {dimension_numbers = #tpu.dot_dimension_numbers<[1], [0], [0], [1], [0, 0, 1, 1], [], []>} : vector<2x33xbf16>, vector<33x33xbf16>, vector<2x33xf32> -> vector<2x33xf32>
    %202 = math.tanh %201 : vector<2x33xf32>
    %cst_69 = arith.constant 0.00999999977 : f32
    %203 = vector.broadcast %cst_69 : f32 to vector<2x33xf32>
    %204 = arith.mulf %203, %202 : vector<2x33xf32>
    %205 = arith.addf %199, %204 : vector<2x33xf32>
    %c34_i32 = arith.constant 34 : i32
    %206 = arith.truncf %205 : vector<2x33xf32> to vector<2x33xbf16>
    %cst_70 = arith.constant dense<0.000000e+00> : vector<2x33xf32>
    %207 = tpu.matmul %206, %0, %cst_70 {dimension_numbers = #tpu.dot_dimension_numbers<[1], [0], [0], [1], [0, 0, 1, 1], [], []>} : vector<2x33xbf16>, vector<33x33xbf16>, vector<2x33xf32> -> vector<2x33xf32>
    %208 = math.tanh %207 : vector<2x33xf32>
    %cst_71 = arith.constant 0.00999999977 : f32
    %209 = vector.broadcast %cst_71 : f32 to vector<2x33xf32>
    %210 = arith.mulf %209, %208 : vector<2x33xf32>
    %211 = arith.addf %205, %210 : vector<2x33xf32>
    %c35_i32 = arith.constant 35 : i32
    %212 = arith.truncf %211 : vector<2x33xf32> to vector<2x33xbf16>
    %cst_72 = arith.constant dense<0.000000e+00> : vector<2x33xf32>
    %213 = tpu.matmul %212, %0, %cst_72 {dimension_numbers = #tpu.dot_dimension_numbers<[1], [0], [0], [1], [0, 0, 1, 1], [], []>} : vector<2x33xbf16>, vector<33x33xbf16>, vector<2x33xf32> -> vector<2x33xf32>
    %214 = math.tanh %213 : vector<2x33xf32>
    %cst_73 = arith.constant 0.00999999977 : f32
    %215 = vector.broadcast %cst_73 : f32 to vector<2x33xf32>
    %216 = arith.mulf %215, %214 : vector<2x33xf32>
    %217 = arith.addf %211, %216 : vector<2x33xf32>
    %c36_i32 = arith.constant 36 : i32
    %218 = arith.truncf %217 : vector<2x33xf32> to vector<2x33xbf16>
    %cst_74 = arith.constant dense<0.000000e+00> : vector<2x33xf32>
    %219 = tpu.matmul %218, %0, %cst_74 {dimension_numbers = #tpu.dot_dimension_numbers<[1], [0], [0], [1], [0, 0, 1, 1], [], []>} : vector<2x33xbf16>, vector<33x33xbf16>, vector<2x33xf32> -> vector<2x33xf32>
    %220 = math.tanh %219 : vector<2x33xf32>
    %cst_75 = arith.constant 0.00999999977 : f32
    %221 = vector.broadcast %cst_75 : f32 to vector<2x33xf32>
    %222 = arith.mulf %221, %220 : vector<2x33xf32>
    %223 = arith.addf %217, %222 : vector<2x33xf32>
    %c37_i32 = arith.constant 37 : i32
    %224 = arith.truncf %223 : vector<2x33xf32> to vector<2x33xbf16>
    %cst_76 = arith.constant dense<0.000000e+00> : vector<2x33xf32>
    %225 = tpu.matmul %224, %0, %cst_76 {dimension_numbers = #tpu.dot_dimension_numbers<[1], [0], [0], [1], [0, 0, 1, 1], [], []>} : vector<2x33xbf16>, vector<33x33xbf16>, vector<2x33xf32> -> vector<2x33xf32>
    %226 = math.tanh %225 : vector<2x33xf32>
    %cst_77 = arith.constant 0.00999999977 : f32
    %227 = vector.broadcast %cst_77 : f32 to vector<2x33xf32>
    %228 = arith.mulf %227, %226 : vector<2x33xf32>
    %229 = arith.addf %223, %228 : vector<2x33xf32>
    %c38_i32 = arith.constant 38 : i32
    %230 = arith.truncf %229 : vector<2x33xf32> to vector<2x33xbf16>
    %cst_78 = arith.constant dense<0.000000e+00> : vector<2x33xf32>
    %231 = tpu.matmul %230, %0, %cst_78 {dimension_numbers = #tpu.dot_dimension_numbers<[1], [0], [0], [1], [0, 0, 1, 1], [], []>} : vector<2x33xbf16>, vector<33x33xbf16>, vector<2x33xf32> -> vector<2x33xf32>
    %232 = math.tanh %231 : vector<2x33xf32>
    %cst_79 = arith.constant 0.00999999977 : f32
    %233 = vector.broadcast %cst_79 : f32 to vector<2x33xf32>
    %234 = arith.mulf %233, %232 : vector<2x33xf32>
    %235 = arith.addf %229, %234 : vector<2x33xf32>
    %c39_i32 = arith.constant 39 : i32
    %236 = arith.truncf %235 : vector<2x33xf32> to vector<2x33xbf16>
    %cst_80 = arith.constant dense<0.000000e+00> : vector<2x33xf32>
    %237 = tpu.matmul %236, %0, %cst_80 {dimension_numbers = #tpu.dot_dimension_numbers<[1], [0], [0], [1], [0, 0, 1, 1], [], []>} : vector<2x33xbf16>, vector<33x33xbf16>, vector<2x33xf32> -> vector<2x33xf32>
    %238 = math.tanh %237 : vector<2x33xf32>
    %cst_81 = arith.constant 0.00999999977 : f32
    %239 = vector.broadcast %cst_81 : f32 to vector<2x33xf32>
    %240 = arith.mulf %239, %238 : vector<2x33xf32>
    %241 = arith.addf %235, %240 : vector<2x33xf32>
    %c40_i32 = arith.constant 40 : i32
    %242 = arith.truncf %241 : vector<2x33xf32> to vector<2x33xbf16>
    %cst_82 = arith.constant dense<0.000000e+00> : vector<2x33xf32>
    %243 = tpu.matmul %242, %0, %cst_82 {dimension_numbers = #tpu.dot_dimension_numbers<[1], [0], [0], [1], [0, 0, 1, 1], [], []>} : vector<2x33xbf16>, vector<33x33xbf16>, vector<2x33xf32> -> vector<2x33xf32>
    %244 = math.tanh %243 : vector<2x33xf32>
    %cst_83 = arith.constant 0.00999999977 : f32
    %245 = vector.broadcast %cst_83 : f32 to vector<2x33xf32>
    %246 = arith.mulf %245, %244 : vector<2x33xf32>
    %247 = arith.addf %241, %246 : vector<2x33xf32>
    %c41_i32 = arith.constant 41 : i32
    %248 = arith.truncf %247 : vector<2x33xf32> to vector<2x33xbf16>
    %cst_84 = arith.constant dense<0.000000e+00> : vector<2x33xf32>
    %249 = tpu.matmul %248, %0, %cst_84 {dimension_numbers = #tpu.dot_dimension_numbers<[1], [0], [0], [1], [0, 0, 1, 1], [], []>} : vector<2x33xbf16>, vector<33x33xbf16>, vector<2x33xf32> -> vector<2x33xf32>
    %250 = math.tanh %249 : vector<2x33xf32>
    %cst_85 = arith.constant 0.00999999977 : f32
    %251 = vector.broadcast %cst_85 : f32 to vector<2x33xf32>
    %252 = arith.mulf %251, %250 : vector<2x33xf32>
    %253 = arith.addf %247, %252 : vector<2x33xf32>
    %c42_i32 = arith.constant 42 : i32
    %254 = arith.truncf %253 : vector<2x33xf32> to vector<2x33xbf16>
    %cst_86 = arith.constant dense<0.000000e+00> : vector<2x33xf32>
    %255 = tpu.matmul %254, %0, %cst_86 {dimension_numbers = #tpu.dot_dimension_numbers<[1], [0], [0], [1], [0, 0, 1, 1], [], []>} : vector<2x33xbf16>, vector<33x33xbf16>, vector<2x33xf32> -> vector<2x33xf32>
    %256 = math.tanh %255 : vector<2x33xf32>
    %cst_87 = arith.constant 0.00999999977 : f32
    %257 = vector.broadcast %cst_87 : f32 to vector<2x33xf32>
    %258 = arith.mulf %257, %256 : vector<2x33xf32>
    %259 = arith.addf %253, %258 : vector<2x33xf32>
    %c43_i32 = arith.constant 43 : i32
    %260 = arith.truncf %259 : vector<2x33xf32> to vector<2x33xbf16>
    %cst_88 = arith.constant dense<0.000000e+00> : vector<2x33xf32>
    %261 = tpu.matmul %260, %0, %cst_88 {dimension_numbers = #tpu.dot_dimension_numbers<[1], [0], [0], [1], [0, 0, 1, 1], [], []>} : vector<2x33xbf16>, vector<33x33xbf16>, vector<2x33xf32> -> vector<2x33xf32>
    %262 = math.tanh %261 : vector<2x33xf32>
    %cst_89 = arith.constant 0.00999999977 : f32
    %263 = vector.broadcast %cst_89 : f32 to vector<2x33xf32>
    %264 = arith.mulf %263, %262 : vector<2x33xf32>
    %265 = arith.addf %259, %264 : vector<2x33xf32>
    %c44_i32 = arith.constant 44 : i32
    %266 = arith.truncf %265 : vector<2x33xf32> to vector<2x33xbf16>
    %cst_90 = arith.constant dense<0.000000e+00> : vector<2x33xf32>
    %267 = tpu.matmul %266, %0, %cst_90 {dimension_numbers = #tpu.dot_dimension_numbers<[1], [0], [0], [1], [0, 0, 1, 1], [], []>} : vector<2x33xbf16>, vector<33x33xbf16>, vector<2x33xf32> -> vector<2x33xf32>
    %268 = math.tanh %267 : vector<2x33xf32>
    %cst_91 = arith.constant 0.00999999977 : f32
    %269 = vector.broadcast %cst_91 : f32 to vector<2x33xf32>
    %270 = arith.mulf %269, %268 : vector<2x33xf32>
    %271 = arith.addf %265, %270 : vector<2x33xf32>
    %c45_i32 = arith.constant 45 : i32
    %272 = arith.truncf %271 : vector<2x33xf32> to vector<2x33xbf16>
    %cst_92 = arith.constant dense<0.000000e+00> : vector<2x33xf32>
    %273 = tpu.matmul %272, %0, %cst_92 {dimension_numbers = #tpu.dot_dimension_numbers<[1], [0], [0], [1], [0, 0, 1, 1], [], []>} : vector<2x33xbf16>, vector<33x33xbf16>, vector<2x33xf32> -> vector<2x33xf32>
    %274 = math.tanh %273 : vector<2x33xf32>
    %cst_93 = arith.constant 0.00999999977 : f32
    %275 = vector.broadcast %cst_93 : f32 to vector<2x33xf32>
    %276 = arith.mulf %275, %274 : vector<2x33xf32>
    %277 = arith.addf %271, %276 : vector<2x33xf32>
    %c46_i32 = arith.constant 46 : i32
    %278 = arith.truncf %277 : vector<2x33xf32> to vector<2x33xbf16>
    %cst_94 = arith.constant dense<0.000000e+00> : vector<2x33xf32>
    %279 = tpu.matmul %278, %0, %cst_94 {dimension_numbers = #tpu.dot_dimension_numbers<[1], [0], [0], [1], [0, 0, 1, 1], [], []>} : vector<2x33xbf16>, vector<33x33xbf16>, vector<2x33xf32> -> vector<2x33xf32>
    %280 = math.tanh %279 : vector<2x33xf32>
    %cst_95 = arith.constant 0.00999999977 : f32
    %281 = vector.broadcast %cst_95 : f32 to vector<2x33xf32>
    %282 = arith.mulf %281, %280 : vector<2x33xf32>
    %283 = arith.addf %277, %282 : vector<2x33xf32>
    %c47_i32 = arith.constant 47 : i32
    %284 = arith.truncf %283 : vector<2x33xf32> to vector<2x33xbf16>
    %cst_96 = arith.constant dense<0.000000e+00> : vector<2x33xf32>
    %285 = tpu.matmul %284, %0, %cst_96 {dimension_numbers = #tpu.dot_dimension_numbers<[1], [0], [0], [1], [0, 0, 1, 1], [], []>} : vector<2x33xbf16>, vector<33x33xbf16>, vector<2x33xf32> -> vector<2x33xf32>
    %286 = math.tanh %285 : vector<2x33xf32>
    %cst_97 = arith.constant 0.00999999977 : f32
    %287 = vector.broadcast %cst_97 : f32 to vector<2x33xf32>
    %288 = arith.mulf %287, %286 : vector<2x33xf32>
    %289 = arith.addf %283, %288 : vector<2x33xf32>
    %c48_i32 = arith.constant 48 : i32
    %290 = arith.truncf %289 : vector<2x33xf32> to vector<2x33xbf16>
    %cst_98 = arith.constant dense<0.000000e+00> : vector<2x33xf32>
    %291 = tpu.matmul %290, %0, %cst_98 {dimension_numbers = #tpu.dot_dimension_numbers<[1], [0], [0], [1], [0, 0, 1, 1], [], []>} : vector<2x33xbf16>, vector<33x33xbf16>, vector<2x33xf32> -> vector<2x33xf32>
    %292 = math.tanh %291 : vector<2x33xf32>
    %cst_99 = arith.constant 0.00999999977 : f32
    %293 = vector.broadcast %cst_99 : f32 to vector<2x33xf32>
    %294 = arith.mulf %293, %292 : vector<2x33xf32>
    %295 = arith.addf %289, %294 : vector<2x33xf32>
    %c49_i32 = arith.constant 49 : i32
    %296 = arith.truncf %295 : vector<2x33xf32> to vector<2x33xbf16>
    %cst_100 = arith.constant dense<0.000000e+00> : vector<2x33xf32>
    %297 = tpu.matmul %296, %0, %cst_100 {dimension_numbers = #tpu.dot_dimension_numbers<[1], [0], [0], [1], [0, 0, 1, 1], [], []>} : vector<2x33xbf16>, vector<33x33xbf16>, vector<2x33xf32> -> vector<2x33xf32>
    %298 = math.tanh %297 : vector<2x33xf32>
    %cst_101 = arith.constant 0.00999999977 : f32
    %299 = vector.broadcast %cst_101 : f32 to vector<2x33xf32>
    %300 = arith.mulf %299, %298 : vector<2x33xf32>
    %301 = arith.addf %295, %300 : vector<2x33xf32>
    %c50_i32 = arith.constant 50 : i32
    %302 = arith.truncf %301 : vector<2x33xf32> to vector<2x33xbf16>
    %cst_102 = arith.constant dense<0.000000e+00> : vector<2x33xf32>
    %303 = tpu.matmul %302, %0, %cst_102 {dimension_numbers = #tpu.dot_dimension_numbers<[1], [0], [0], [1], [0, 0, 1, 1], [], []>} : vector<2x33xbf16>, vector<33x33xbf16>, vector<2x33xf32> -> vector<2x33xf32>
    %304 = math.tanh %303 : vector<2x33xf32>
    %cst_103 = arith.constant 0.00999999977 : f32
    %305 = vector.broadcast %cst_103 : f32 to vector<2x33xf32>
    %306 = arith.mulf %305, %304 : vector<2x33xf32>
    %307 = arith.addf %301, %306 : vector<2x33xf32>
    %c51_i32 = arith.constant 51 : i32
    %308 = arith.truncf %307 : vector<2x33xf32> to vector<2x33xbf16>
    %cst_104 = arith.constant dense<0.000000e+00> : vector<2x33xf32>
    %309 = tpu.matmul %308, %0, %cst_104 {dimension_numbers = #tpu.dot_dimension_numbers<[1], [0], [0], [1], [0, 0, 1, 1], [], []>} : vector<2x33xbf16>, vector<33x33xbf16>, vector<2x33xf32> -> vector<2x33xf32>
    %310 = math.tanh %309 : vector<2x33xf32>
    %cst_105 = arith.constant 0.00999999977 : f32
    %311 = vector.broadcast %cst_105 : f32 to vector<2x33xf32>
    %312 = arith.mulf %311, %310 : vector<2x33xf32>
    %313 = arith.addf %307, %312 : vector<2x33xf32>
    %c52_i32 = arith.constant 52 : i32
    %314 = arith.truncf %313 : vector<2x33xf32> to vector<2x33xbf16>
    %cst_106 = arith.constant dense<0.000000e+00> : vector<2x33xf32>
    %315 = tpu.matmul %314, %0, %cst_106 {dimension_numbers = #tpu.dot_dimension_numbers<[1], [0], [0], [1], [0, 0, 1, 1], [], []>} : vector<2x33xbf16>, vector<33x33xbf16>, vector<2x33xf32> -> vector<2x33xf32>
    %316 = math.tanh %315 : vector<2x33xf32>
    %cst_107 = arith.constant 0.00999999977 : f32
    %317 = vector.broadcast %cst_107 : f32 to vector<2x33xf32>
    %318 = arith.mulf %317, %316 : vector<2x33xf32>
    %319 = arith.addf %313, %318 : vector<2x33xf32>
    %c53_i32 = arith.constant 53 : i32
    %320 = arith.truncf %319 : vector<2x33xf32> to vector<2x33xbf16>
    %cst_108 = arith.constant dense<0.000000e+00> : vector<2x33xf32>
    %321 = tpu.matmul %320, %0, %cst_108 {dimension_numbers = #tpu.dot_dimension_numbers<[1], [0], [0], [1], [0, 0, 1, 1], [], []>} : vector<2x33xbf16>, vector<33x33xbf16>, vector<2x33xf32> -> vector<2x33xf32>
    %322 = math.tanh %321 : vector<2x33xf32>
    %cst_109 = arith.constant 0.00999999977 : f32
    %323 = vector.broadcast %cst_109 : f32 to vector<2x33xf32>
    %324 = arith.mulf %323, %322 : vector<2x33xf32>
    %325 = arith.addf %319, %324 : vector<2x33xf32>
    %c54_i32 = arith.constant 54 : i32
    %326 = arith.truncf %325 : vector<2x33xf32> to vector<2x33xbf16>
    %cst_110 = arith.constant dense<0.000000e+00> : vector<2x33xf32>
    %327 = tpu.matmul %326, %0, %cst_110 {dimension_numbers = #tpu.dot_dimension_numbers<[1], [0], [0], [1], [0, 0, 1, 1], [], []>} : vector<2x33xbf16>, vector<33x33xbf16>, vector<2x33xf32> -> vector<2x33xf32>
    %328 = math.tanh %327 : vector<2x33xf32>
    %cst_111 = arith.constant 0.00999999977 : f32
    %329 = vector.broadcast %cst_111 : f32 to vector<2x33xf32>
    %330 = arith.mulf %329, %328 : vector<2x33xf32>
    %331 = arith.addf %325, %330 : vector<2x33xf32>
    %c55_i32 = arith.constant 55 : i32
    %332 = arith.truncf %331 : vector<2x33xf32> to vector<2x33xbf16>
    %cst_112 = arith.constant dense<0.000000e+00> : vector<2x33xf32>
    %333 = tpu.matmul %332, %0, %cst_112 {dimension_numbers = #tpu.dot_dimension_numbers<[1], [0], [0], [1], [0, 0, 1, 1], [], []>} : vector<2x33xbf16>, vector<33x33xbf16>, vector<2x33xf32> -> vector<2x33xf32>
    %334 = math.tanh %333 : vector<2x33xf32>
    %cst_113 = arith.constant 0.00999999977 : f32
    %335 = vector.broadcast %cst_113 : f32 to vector<2x33xf32>
    %336 = arith.mulf %335, %334 : vector<2x33xf32>
    %337 = arith.addf %331, %336 : vector<2x33xf32>
    %c56_i32 = arith.constant 56 : i32
    %338 = arith.truncf %337 : vector<2x33xf32> to vector<2x33xbf16>
    %cst_114 = arith.constant dense<0.000000e+00> : vector<2x33xf32>
    %339 = tpu.matmul %338, %0, %cst_114 {dimension_numbers = #tpu.dot_dimension_numbers<[1], [0], [0], [1], [0, 0, 1, 1], [], []>} : vector<2x33xbf16>, vector<33x33xbf16>, vector<2x33xf32> -> vector<2x33xf32>
    %340 = math.tanh %339 : vector<2x33xf32>
    %cst_115 = arith.constant 0.00999999977 : f32
    %341 = vector.broadcast %cst_115 : f32 to vector<2x33xf32>
    %342 = arith.mulf %341, %340 : vector<2x33xf32>
    %343 = arith.addf %337, %342 : vector<2x33xf32>
    %c57_i32 = arith.constant 57 : i32
    %344 = arith.truncf %343 : vector<2x33xf32> to vector<2x33xbf16>
    %cst_116 = arith.constant dense<0.000000e+00> : vector<2x33xf32>
    %345 = tpu.matmul %344, %0, %cst_116 {dimension_numbers = #tpu.dot_dimension_numbers<[1], [0], [0], [1], [0, 0, 1, 1], [], []>} : vector<2x33xbf16>, vector<33x33xbf16>, vector<2x33xf32> -> vector<2x33xf32>
    %346 = math.tanh %345 : vector<2x33xf32>
    %cst_117 = arith.constant 0.00999999977 : f32
    %347 = vector.broadcast %cst_117 : f32 to vector<2x33xf32>
    %348 = arith.mulf %347, %346 : vector<2x33xf32>
    %349 = arith.addf %343, %348 : vector<2x33xf32>
    %c58_i32 = arith.constant 58 : i32
    %350 = arith.truncf %349 : vector<2x33xf32> to vector<2x33xbf16>
    %cst_118 = arith.constant dense<0.000000e+00> : vector<2x33xf32>
    %351 = tpu.matmul %350, %0, %cst_118 {dimension_numbers = #tpu.dot_dimension_numbers<[1], [0], [0], [1], [0, 0, 1, 1], [], []>} : vector<2x33xbf16>, vector<33x33xbf16>, vector<2x33xf32> -> vector<2x33xf32>
    %352 = math.tanh %351 : vector<2x33xf32>
    %cst_119 = arith.constant 0.00999999977 : f32
    %353 = vector.broadcast %cst_119 : f32 to vector<2x33xf32>
    %354 = arith.mulf %353, %352 : vector<2x33xf32>
    %355 = arith.addf %349, %354 : vector<2x33xf32>
    %c59_i32 = arith.constant 59 : i32
    %356 = arith.truncf %355 : vector<2x33xf32> to vector<2x33xbf16>
    %cst_120 = arith.constant dense<0.000000e+00> : vector<2x33xf32>
    %357 = tpu.matmul %356, %0, %cst_120 {dimension_numbers = #tpu.dot_dimension_numbers<[1], [0], [0], [1], [0, 0, 1, 1], [], []>} : vector<2x33xbf16>, vector<33x33xbf16>, vector<2x33xf32> -> vector<2x33xf32>
    %358 = math.tanh %357 : vector<2x33xf32>
    %cst_121 = arith.constant 0.00999999977 : f32
    %359 = vector.broadcast %cst_121 : f32 to vector<2x33xf32>
    %360 = arith.mulf %359, %358 : vector<2x33xf32>
    %361 = arith.addf %355, %360 : vector<2x33xf32>
    %c60_i32 = arith.constant 60 : i32
    %362 = arith.truncf %361 : vector<2x33xf32> to vector<2x33xbf16>
    %cst_122 = arith.constant dense<0.000000e+00> : vector<2x33xf32>
    %363 = tpu.matmul %362, %0, %cst_122 {dimension_numbers = #tpu.dot_dimension_numbers<[1], [0], [0], [1], [0, 0, 1, 1], [], []>} : vector<2x33xbf16>, vector<33x33xbf16>, vector<2x33xf32> -> vector<2x33xf32>
    %364 = math.tanh %363 : vector<2x33xf32>
    %cst_123 = arith.constant 0.00999999977 : f32
    %365 = vector.broadcast %cst_123 : f32 to vector<2x33xf32>
    %366 = arith.mulf %365, %364 : vector<2x33xf32>
    %367 = arith.addf %361, %366 : vector<2x33xf32>
    %c61_i32 = arith.constant 61 : i32
    %368 = arith.truncf %367 : vector<2x33xf32> to vector<2x33xbf16>
    %cst_124 = arith.constant dense<0.000000e+00> : vector<2x33xf32>
    %369 = tpu.matmul %368, %0, %cst_124 {dimension_numbers = #tpu.dot_dimension_numbers<[1], [0], [0], [1], [0, 0, 1, 1], [], []>} : vector<2x33xbf16>, vector<33x33xbf16>, vector<2x33xf32> -> vector<2x33xf32>
    %370 = math.tanh %369 : vector<2x33xf32>
    %cst_125 = arith.constant 0.00999999977 : f32
    %371 = vector.broadcast %cst_125 : f32 to vector<2x33xf32>
    %372 = arith.mulf %371, %370 : vector<2x33xf32>
    %373 = arith.addf %367, %372 : vector<2x33xf32>
    %c62_i32 = arith.constant 62 : i32
    %374 = arith.truncf %373 : vector<2x33xf32> to vector<2x33xbf16>
    %cst_126 = arith.constant dense<0.000000e+00> : vector<2x33xf32>
    %375 = tpu.matmul %374, %0, %cst_126 {dimension_numbers = #tpu.dot_dimension_numbers<[1], [0], [0], [1], [0, 0, 1, 1], [], []>} : vector<2x33xbf16>, vector<33x33xbf16>, vector<2x33xf32> -> vector<2x33xf32>
    %376 = math.tanh %375 : vector<2x33xf32>
    %cst_127 = arith.constant 0.00999999977 : f32
    %377 = vector.broadcast %cst_127 : f32 to vector<2x33xf32>
    %378 = arith.mulf %377, %376 : vector<2x33xf32>
    %379 = arith.addf %373, %378 : vector<2x33xf32>
    %c63_i32 = arith.constant 63 : i32
    %380 = arith.truncf %379 : vector<2x33xf32> to vector<2x33xbf16>
    %cst_128 = arith.constant dense<0.000000e+00> : vector<2x33xf32>
    %381 = tpu.matmul %380, %0, %cst_128 {dimension_numbers = #tpu.dot_dimension_numbers<[1], [0], [0], [1], [0, 0, 1, 1], [], []>} : vector<2x33xbf16>, vector<33x33xbf16>, vector<2x33xf32> -> vector<2x33xf32>
    %382 = math.tanh %381 : vector<2x33xf32>
    %cst_129 = arith.constant 0.00999999977 : f32
    %383 = vector.broadcast %cst_129 : f32 to vector<2x33xf32>
    %384 = arith.mulf %383, %382 : vector<2x33xf32>
    %385 = arith.addf %379, %384 : vector<2x33xf32>
    %c64_i32 = arith.constant 64 : i32
    %386 = arith.truncf %385 : vector<2x33xf32> to vector<2x33xbf16>
    %cst_130 = arith.constant dense<0.000000e+00> : vector<2x33xf32>
    %387 = tpu.matmul %386, %0, %cst_130 {dimension_numbers = #tpu.dot_dimension_numbers<[1], [0], [0], [1], [0, 0, 1, 1], [], []>} : vector<2x33xbf16>, vector<33x33xbf16>, vector<2x33xf32> -> vector<2x33xf32>
    %388 = math.tanh %387 : vector<2x33xf32>
    %cst_131 = arith.constant 0.00999999977 : f32
    %389 = vector.broadcast %cst_131 : f32 to vector<2x33xf32>
    %390 = arith.mulf %389, %388 : vector<2x33xf32>
    %391 = arith.addf %385, %390 : vector<2x33xf32>
    %c65_i32 = arith.constant 65 : i32
    %392 = arith.truncf %391 : vector<2x33xf32> to vector<2x33xbf16>
    %cst_132 = arith.constant dense<0.000000e+00> : vector<2x33xf32>
    %393 = tpu.matmul %392, %0, %cst_132 {dimension_numbers = #tpu.dot_dimension_numbers<[1], [0], [0], [1], [0, 0, 1, 1], [], []>} : vector<2x33xbf16>, vector<33x33xbf16>, vector<2x33xf32> -> vector<2x33xf32>
    %394 = math.tanh %393 : vector<2x33xf32>
    %cst_133 = arith.constant 0.00999999977 : f32
    %395 = vector.broadcast %cst_133 : f32 to vector<2x33xf32>
    %396 = arith.mulf %395, %394 : vector<2x33xf32>
    %397 = arith.addf %391, %396 : vector<2x33xf32>
    %c66_i32 = arith.constant 66 : i32
    %398 = arith.truncf %397 : vector<2x33xf32> to vector<2x33xbf16>
    %cst_134 = arith.constant dense<0.000000e+00> : vector<2x33xf32>
    %399 = tpu.matmul %398, %0, %cst_134 {dimension_numbers = #tpu.dot_dimension_numbers<[1], [0], [0], [1], [0, 0, 1, 1], [], []>} : vector<2x33xbf16>, vector<33x33xbf16>, vector<2x33xf32> -> vector<2x33xf32>
    %400 = math.tanh %399 : vector<2x33xf32>
    %cst_135 = arith.constant 0.00999999977 : f32
    %401 = vector.broadcast %cst_135 : f32 to vector<2x33xf32>
    %402 = arith.mulf %401, %400 : vector<2x33xf32>
    %403 = arith.addf %397, %402 : vector<2x33xf32>
    %c67_i32 = arith.constant 67 : i32
    %404 = arith.truncf %403 : vector<2x33xf32> to vector<2x33xbf16>
    %cst_136 = arith.constant dense<0.000000e+00> : vector<2x33xf32>
    %405 = tpu.matmul %404, %0, %cst_136 {dimension_numbers = #tpu.dot_dimension_numbers<[1], [0], [0], [1], [0, 0, 1, 1], [], []>} : vector<2x33xbf16>, vector<33x33xbf16>, vector<2x33xf32> -> vector<2x33xf32>
    %406 = math.tanh %405 : vector<2x33xf32>
    %cst_137 = arith.constant 0.00999999977 : f32
    %407 = vector.broadcast %cst_137 : f32 to vector<2x33xf32>
    %408 = arith.mulf %407, %406 : vector<2x33xf32>
    %409 = arith.addf %403, %408 : vector<2x33xf32>
    %c68_i32 = arith.constant 68 : i32
    %410 = arith.truncf %409 : vector<2x33xf32> to vector<2x33xbf16>
    %cst_138 = arith.constant dense<0.000000e+00> : vector<2x33xf32>
    %411 = tpu.matmul %410, %0, %cst_138 {dimension_numbers = #tpu.dot_dimension_numbers<[1], [0], [0], [1], [0, 0, 1, 1], [], []>} : vector<2x33xbf16>, vector<33x33xbf16>, vector<2x33xf32> -> vector<2x33xf32>
    %412 = math.tanh %411 : vector<2x33xf32>
    %cst_139 = arith.constant 0.00999999977 : f32
    %413 = vector.broadcast %cst_139 : f32 to vector<2x33xf32>
    %414 = arith.mulf %413, %412 : vector<2x33xf32>
    %415 = arith.addf %409, %414 : vector<2x33xf32>
    %c69_i32 = arith.constant 69 : i32
    %416 = arith.truncf %415 : vector<2x33xf32> to vector<2x33xbf16>
    %cst_140 = arith.constant dense<0.000000e+00> : vector<2x33xf32>
    %417 = tpu.matmul %416, %0, %cst_140 {dimension_numbers = #tpu.dot_dimension_numbers<[1], [0], [0], [1], [0, 0, 1, 1], [], []>} : vector<2x33xbf16>, vector<33x33xbf16>, vector<2x33xf32> -> vector<2x33xf32>
    %418 = math.tanh %417 : vector<2x33xf32>
    %cst_141 = arith.constant 0.00999999977 : f32
    %419 = vector.broadcast %cst_141 : f32 to vector<2x33xf32>
    %420 = arith.mulf %419, %418 : vector<2x33xf32>
    %421 = arith.addf %415, %420 : vector<2x33xf32>
    %c70_i32 = arith.constant 70 : i32
    %422 = arith.truncf %421 : vector<2x33xf32> to vector<2x33xbf16>
    %cst_142 = arith.constant dense<0.000000e+00> : vector<2x33xf32>
    %423 = tpu.matmul %422, %0, %cst_142 {dimension_numbers = #tpu.dot_dimension_numbers<[1], [0], [0], [1], [0, 0, 1, 1], [], []>} : vector<2x33xbf16>, vector<33x33xbf16>, vector<2x33xf32> -> vector<2x33xf32>
    %424 = math.tanh %423 : vector<2x33xf32>
    %cst_143 = arith.constant 0.00999999977 : f32
    %425 = vector.broadcast %cst_143 : f32 to vector<2x33xf32>
    %426 = arith.mulf %425, %424 : vector<2x33xf32>
    %427 = arith.addf %421, %426 : vector<2x33xf32>
    %c71_i32 = arith.constant 71 : i32
    %428 = arith.truncf %427 : vector<2x33xf32> to vector<2x33xbf16>
    %cst_144 = arith.constant dense<0.000000e+00> : vector<2x33xf32>
    %429 = tpu.matmul %428, %0, %cst_144 {dimension_numbers = #tpu.dot_dimension_numbers<[1], [0], [0], [1], [0, 0, 1, 1], [], []>} : vector<2x33xbf16>, vector<33x33xbf16>, vector<2x33xf32> -> vector<2x33xf32>
    %430 = math.tanh %429 : vector<2x33xf32>
    %cst_145 = arith.constant 0.00999999977 : f32
    %431 = vector.broadcast %cst_145 : f32 to vector<2x33xf32>
    %432 = arith.mulf %431, %430 : vector<2x33xf32>
    %433 = arith.addf %427, %432 : vector<2x33xf32>
    %c72_i32 = arith.constant 72 : i32
    %434 = arith.truncf %433 : vector<2x33xf32> to vector<2x33xbf16>
    %cst_146 = arith.constant dense<0.000000e+00> : vector<2x33xf32>
    %435 = tpu.matmul %434, %0, %cst_146 {dimension_numbers = #tpu.dot_dimension_numbers<[1], [0], [0], [1], [0, 0, 1, 1], [], []>} : vector<2x33xbf16>, vector<33x33xbf16>, vector<2x33xf32> -> vector<2x33xf32>
    %436 = math.tanh %435 : vector<2x33xf32>
    %cst_147 = arith.constant 0.00999999977 : f32
    %437 = vector.broadcast %cst_147 : f32 to vector<2x33xf32>
    %438 = arith.mulf %437, %436 : vector<2x33xf32>
    %439 = arith.addf %433, %438 : vector<2x33xf32>
    %c73_i32 = arith.constant 73 : i32
    %440 = arith.truncf %439 : vector<2x33xf32> to vector<2x33xbf16>
    %cst_148 = arith.constant dense<0.000000e+00> : vector<2x33xf32>
    %441 = tpu.matmul %440, %0, %cst_148 {dimension_numbers = #tpu.dot_dimension_numbers<[1], [0], [0], [1], [0, 0, 1, 1], [], []>} : vector<2x33xbf16>, vector<33x33xbf16>, vector<2x33xf32> -> vector<2x33xf32>
    %442 = math.tanh %441 : vector<2x33xf32>
    %cst_149 = arith.constant 0.00999999977 : f32
    %443 = vector.broadcast %cst_149 : f32 to vector<2x33xf32>
    %444 = arith.mulf %443, %442 : vector<2x33xf32>
    %445 = arith.addf %439, %444 : vector<2x33xf32>
    %c74_i32 = arith.constant 74 : i32
    %446 = arith.truncf %445 : vector<2x33xf32> to vector<2x33xbf16>
    %cst_150 = arith.constant dense<0.000000e+00> : vector<2x33xf32>
    %447 = tpu.matmul %446, %0, %cst_150 {dimension_numbers = #tpu.dot_dimension_numbers<[1], [0], [0], [1], [0, 0, 1, 1], [], []>} : vector<2x33xbf16>, vector<33x33xbf16>, vector<2x33xf32> -> vector<2x33xf32>
    %448 = math.tanh %447 : vector<2x33xf32>
    %cst_151 = arith.constant 0.00999999977 : f32
    %449 = vector.broadcast %cst_151 : f32 to vector<2x33xf32>
    %450 = arith.mulf %449, %448 : vector<2x33xf32>
    %451 = arith.addf %445, %450 : vector<2x33xf32>
    %c75_i32 = arith.constant 75 : i32
    %452 = arith.truncf %451 : vector<2x33xf32> to vector<2x33xbf16>
    %cst_152 = arith.constant dense<0.000000e+00> : vector<2x33xf32>
    %453 = tpu.matmul %452, %0, %cst_152 {dimension_numbers = #tpu.dot_dimension_numbers<[1], [0], [0], [1], [0, 0, 1, 1], [], []>} : vector<2x33xbf16>, vector<33x33xbf16>, vector<2x33xf32> -> vector<2x33xf32>
    %454 = math.tanh %453 : vector<2x33xf32>
    %cst_153 = arith.constant 0.00999999977 : f32
    %455 = vector.broadcast %cst_153 : f32 to vector<2x33xf32>
    %456 = arith.mulf %455, %454 : vector<2x33xf32>
    %457 = arith.addf %451, %456 : vector<2x33xf32>
    %c76_i32 = arith.constant 76 : i32
    %458 = arith.truncf %457 : vector<2x33xf32> to vector<2x33xbf16>
    %cst_154 = arith.constant dense<0.000000e+00> : vector<2x33xf32>
    %459 = tpu.matmul %458, %0, %cst_154 {dimension_numbers = #tpu.dot_dimension_numbers<[1], [0], [0], [1], [0, 0, 1, 1], [], []>} : vector<2x33xbf16>, vector<33x33xbf16>, vector<2x33xf32> -> vector<2x33xf32>
    %460 = math.tanh %459 : vector<2x33xf32>
    %cst_155 = arith.constant 0.00999999977 : f32
    %461 = vector.broadcast %cst_155 : f32 to vector<2x33xf32>
    %462 = arith.mulf %461, %460 : vector<2x33xf32>
    %463 = arith.addf %457, %462 : vector<2x33xf32>
    %c77_i32 = arith.constant 77 : i32
    %464 = arith.truncf %463 : vector<2x33xf32> to vector<2x33xbf16>
    %cst_156 = arith.constant dense<0.000000e+00> : vector<2x33xf32>
    %465 = tpu.matmul %464, %0, %cst_156 {dimension_numbers = #tpu.dot_dimension_numbers<[1], [0], [0], [1], [0, 0, 1, 1], [], []>} : vector<2x33xbf16>, vector<33x33xbf16>, vector<2x33xf32> -> vector<2x33xf32>
    %466 = math.tanh %465 : vector<2x33xf32>
    %cst_157 = arith.constant 0.00999999977 : f32
    %467 = vector.broadcast %cst_157 : f32 to vector<2x33xf32>
    %468 = arith.mulf %467, %466 : vector<2x33xf32>
    %469 = arith.addf %463, %468 : vector<2x33xf32>
    %c78_i32 = arith.constant 78 : i32
    %470 = arith.truncf %469 : vector<2x33xf32> to vector<2x33xbf16>
    %cst_158 = arith.constant dense<0.000000e+00> : vector<2x33xf32>
    %471 = tpu.matmul %470, %0, %cst_158 {dimension_numbers = #tpu.dot_dimension_numbers<[1], [0], [0], [1], [0, 0, 1, 1], [], []>} : vector<2x33xbf16>, vector<33x33xbf16>, vector<2x33xf32> -> vector<2x33xf32>
    %472 = math.tanh %471 : vector<2x33xf32>
    %cst_159 = arith.constant 0.00999999977 : f32
    %473 = vector.broadcast %cst_159 : f32 to vector<2x33xf32>
    %474 = arith.mulf %473, %472 : vector<2x33xf32>
    %475 = arith.addf %469, %474 : vector<2x33xf32>
    %c79_i32 = arith.constant 79 : i32
    %476 = arith.truncf %475 : vector<2x33xf32> to vector<2x33xbf16>
    %cst_160 = arith.constant dense<0.000000e+00> : vector<2x33xf32>
    %477 = tpu.matmul %476, %0, %cst_160 {dimension_numbers = #tpu.dot_dimension_numbers<[1], [0], [0], [1], [0, 0, 1, 1], [], []>} : vector<2x33xbf16>, vector<33x33xbf16>, vector<2x33xf32> -> vector<2x33xf32>
    %478 = math.tanh %477 : vector<2x33xf32>
    %cst_161 = arith.constant 0.00999999977 : f32
    %479 = vector.broadcast %cst_161 : f32 to vector<2x33xf32>
    %480 = arith.mulf %479, %478 : vector<2x33xf32>
    %481 = arith.addf %475, %480 : vector<2x33xf32>
    %c80_i32 = arith.constant 80 : i32
    %482 = arith.truncf %481 : vector<2x33xf32> to vector<2x33xbf16>
    %cst_162 = arith.constant dense<0.000000e+00> : vector<2x33xf32>
    %483 = tpu.matmul %482, %0, %cst_162 {dimension_numbers = #tpu.dot_dimension_numbers<[1], [0], [0], [1], [0, 0, 1, 1], [], []>} : vector<2x33xbf16>, vector<33x33xbf16>, vector<2x33xf32> -> vector<2x33xf32>
    %484 = math.tanh %483 : vector<2x33xf32>
    %cst_163 = arith.constant 0.00999999977 : f32
    %485 = vector.broadcast %cst_163 : f32 to vector<2x33xf32>
    %486 = arith.mulf %485, %484 : vector<2x33xf32>
    %487 = arith.addf %481, %486 : vector<2x33xf32>
    %c81_i32 = arith.constant 81 : i32
    %488 = arith.truncf %487 : vector<2x33xf32> to vector<2x33xbf16>
    %cst_164 = arith.constant dense<0.000000e+00> : vector<2x33xf32>
    %489 = tpu.matmul %488, %0, %cst_164 {dimension_numbers = #tpu.dot_dimension_numbers<[1], [0], [0], [1], [0, 0, 1, 1], [], []>} : vector<2x33xbf16>, vector<33x33xbf16>, vector<2x33xf32> -> vector<2x33xf32>
    %490 = math.tanh %489 : vector<2x33xf32>
    %cst_165 = arith.constant 0.00999999977 : f32
    %491 = vector.broadcast %cst_165 : f32 to vector<2x33xf32>
    %492 = arith.mulf %491, %490 : vector<2x33xf32>
    %493 = arith.addf %487, %492 : vector<2x33xf32>
    %c82_i32 = arith.constant 82 : i32
    %494 = arith.truncf %493 : vector<2x33xf32> to vector<2x33xbf16>
    %cst_166 = arith.constant dense<0.000000e+00> : vector<2x33xf32>
    %495 = tpu.matmul %494, %0, %cst_166 {dimension_numbers = #tpu.dot_dimension_numbers<[1], [0], [0], [1], [0, 0, 1, 1], [], []>} : vector<2x33xbf16>, vector<33x33xbf16>, vector<2x33xf32> -> vector<2x33xf32>
    %496 = math.tanh %495 : vector<2x33xf32>
    %cst_167 = arith.constant 0.00999999977 : f32
    %497 = vector.broadcast %cst_167 : f32 to vector<2x33xf32>
    %498 = arith.mulf %497, %496 : vector<2x33xf32>
    %499 = arith.addf %493, %498 : vector<2x33xf32>
    %c83_i32 = arith.constant 83 : i32
    %500 = arith.truncf %499 : vector<2x33xf32> to vector<2x33xbf16>
    %cst_168 = arith.constant dense<0.000000e+00> : vector<2x33xf32>
    %501 = tpu.matmul %500, %0, %cst_168 {dimension_numbers = #tpu.dot_dimension_numbers<[1], [0], [0], [1], [0, 0, 1, 1], [], []>} : vector<2x33xbf16>, vector<33x33xbf16>, vector<2x33xf32> -> vector<2x33xf32>
    %502 = math.tanh %501 : vector<2x33xf32>
    %cst_169 = arith.constant 0.00999999977 : f32
    %503 = vector.broadcast %cst_169 : f32 to vector<2x33xf32>
    %504 = arith.mulf %503, %502 : vector<2x33xf32>
    %505 = arith.addf %499, %504 : vector<2x33xf32>
    %c84_i32 = arith.constant 84 : i32
    %506 = arith.truncf %505 : vector<2x33xf32> to vector<2x33xbf16>
    %cst_170 = arith.constant dense<0.000000e+00> : vector<2x33xf32>
    %507 = tpu.matmul %506, %0, %cst_170 {dimension_numbers = #tpu.dot_dimension_numbers<[1], [0], [0], [1], [0, 0, 1, 1], [], []>} : vector<2x33xbf16>, vector<33x33xbf16>, vector<2x33xf32> -> vector<2x33xf32>
    %508 = math.tanh %507 : vector<2x33xf32>
    %cst_171 = arith.constant 0.00999999977 : f32
    %509 = vector.broadcast %cst_171 : f32 to vector<2x33xf32>
    %510 = arith.mulf %509, %508 : vector<2x33xf32>
    %511 = arith.addf %505, %510 : vector<2x33xf32>
    %c85_i32 = arith.constant 85 : i32
    %512 = arith.truncf %511 : vector<2x33xf32> to vector<2x33xbf16>
    %cst_172 = arith.constant dense<0.000000e+00> : vector<2x33xf32>
    %513 = tpu.matmul %512, %0, %cst_172 {dimension_numbers = #tpu.dot_dimension_numbers<[1], [0], [0], [1], [0, 0, 1, 1], [], []>} : vector<2x33xbf16>, vector<33x33xbf16>, vector<2x33xf32> -> vector<2x33xf32>
    %514 = math.tanh %513 : vector<2x33xf32>
    %cst_173 = arith.constant 0.00999999977 : f32
    %515 = vector.broadcast %cst_173 : f32 to vector<2x33xf32>
    %516 = arith.mulf %515, %514 : vector<2x33xf32>
    %517 = arith.addf %511, %516 : vector<2x33xf32>
    %c86_i32 = arith.constant 86 : i32
    %518 = arith.truncf %517 : vector<2x33xf32> to vector<2x33xbf16>
    %cst_174 = arith.constant dense<0.000000e+00> : vector<2x33xf32>
    %519 = tpu.matmul %518, %0, %cst_174 {dimension_numbers = #tpu.dot_dimension_numbers<[1], [0], [0], [1], [0, 0, 1, 1], [], []>} : vector<2x33xbf16>, vector<33x33xbf16>, vector<2x33xf32> -> vector<2x33xf32>
    %520 = math.tanh %519 : vector<2x33xf32>
    %cst_175 = arith.constant 0.00999999977 : f32
    %521 = vector.broadcast %cst_175 : f32 to vector<2x33xf32>
    %522 = arith.mulf %521, %520 : vector<2x33xf32>
    %523 = arith.addf %517, %522 : vector<2x33xf32>
    %c87_i32 = arith.constant 87 : i32
    %524 = arith.truncf %523 : vector<2x33xf32> to vector<2x33xbf16>
    %cst_176 = arith.constant dense<0.000000e+00> : vector<2x33xf32>
    %525 = tpu.matmul %524, %0, %cst_176 {dimension_numbers = #tpu.dot_dimension_numbers<[1], [0], [0], [1], [0, 0, 1, 1], [], []>} : vector<2x33xbf16>, vector<33x33xbf16>, vector<2x33xf32> -> vector<2x33xf32>
    %526 = math.tanh %525 : vector<2x33xf32>
    %cst_177 = arith.constant 0.00999999977 : f32
    %527 = vector.broadcast %cst_177 : f32 to vector<2x33xf32>
    %528 = arith.mulf %527, %526 : vector<2x33xf32>
    %529 = arith.addf %523, %528 : vector<2x33xf32>
    %c88_i32 = arith.constant 88 : i32
    %530 = arith.truncf %529 : vector<2x33xf32> to vector<2x33xbf16>
    %cst_178 = arith.constant dense<0.000000e+00> : vector<2x33xf32>
    %531 = tpu.matmul %530, %0, %cst_178 {dimension_numbers = #tpu.dot_dimension_numbers<[1], [0], [0], [1], [0, 0, 1, 1], [], []>} : vector<2x33xbf16>, vector<33x33xbf16>, vector<2x33xf32> -> vector<2x33xf32>
    %532 = math.tanh %531 : vector<2x33xf32>
    %cst_179 = arith.constant 0.00999999977 : f32
    %533 = vector.broadcast %cst_179 : f32 to vector<2x33xf32>
    %534 = arith.mulf %533, %532 : vector<2x33xf32>
    %535 = arith.addf %529, %534 : vector<2x33xf32>
    %c89_i32 = arith.constant 89 : i32
    %536 = arith.truncf %535 : vector<2x33xf32> to vector<2x33xbf16>
    %cst_180 = arith.constant dense<0.000000e+00> : vector<2x33xf32>
    %537 = tpu.matmul %536, %0, %cst_180 {dimension_numbers = #tpu.dot_dimension_numbers<[1], [0], [0], [1], [0, 0, 1, 1], [], []>} : vector<2x33xbf16>, vector<33x33xbf16>, vector<2x33xf32> -> vector<2x33xf32>
    %538 = math.tanh %537 : vector<2x33xf32>
    %cst_181 = arith.constant 0.00999999977 : f32
    %539 = vector.broadcast %cst_181 : f32 to vector<2x33xf32>
    %540 = arith.mulf %539, %538 : vector<2x33xf32>
    %541 = arith.addf %535, %540 : vector<2x33xf32>
    %c90_i32 = arith.constant 90 : i32
    %542 = arith.truncf %541 : vector<2x33xf32> to vector<2x33xbf16>
    %cst_182 = arith.constant dense<0.000000e+00> : vector<2x33xf32>
    %543 = tpu.matmul %542, %0, %cst_182 {dimension_numbers = #tpu.dot_dimension_numbers<[1], [0], [0], [1], [0, 0, 1, 1], [], []>} : vector<2x33xbf16>, vector<33x33xbf16>, vector<2x33xf32> -> vector<2x33xf32>
    %544 = math.tanh %543 : vector<2x33xf32>
    %cst_183 = arith.constant 0.00999999977 : f32
    %545 = vector.broadcast %cst_183 : f32 to vector<2x33xf32>
    %546 = arith.mulf %545, %544 : vector<2x33xf32>
    %547 = arith.addf %541, %546 : vector<2x33xf32>
    %c91_i32 = arith.constant 91 : i32
    %548 = arith.truncf %547 : vector<2x33xf32> to vector<2x33xbf16>
    %cst_184 = arith.constant dense<0.000000e+00> : vector<2x33xf32>
    %549 = tpu.matmul %548, %0, %cst_184 {dimension_numbers = #tpu.dot_dimension_numbers<[1], [0], [0], [1], [0, 0, 1, 1], [], []>} : vector<2x33xbf16>, vector<33x33xbf16>, vector<2x33xf32> -> vector<2x33xf32>
    %550 = math.tanh %549 : vector<2x33xf32>
    %cst_185 = arith.constant 0.00999999977 : f32
    %551 = vector.broadcast %cst_185 : f32 to vector<2x33xf32>
    %552 = arith.mulf %551, %550 : vector<2x33xf32>
    %553 = arith.addf %547, %552 : vector<2x33xf32>
    %c92_i32 = arith.constant 92 : i32
    %554 = arith.truncf %553 : vector<2x33xf32> to vector<2x33xbf16>
    %cst_186 = arith.constant dense<0.000000e+00> : vector<2x33xf32>
    %555 = tpu.matmul %554, %0, %cst_186 {dimension_numbers = #tpu.dot_dimension_numbers<[1], [0], [0], [1], [0, 0, 1, 1], [], []>} : vector<2x33xbf16>, vector<33x33xbf16>, vector<2x33xf32> -> vector<2x33xf32>
    %556 = math.tanh %555 : vector<2x33xf32>
    %cst_187 = arith.constant 0.00999999977 : f32
    %557 = vector.broadcast %cst_187 : f32 to vector<2x33xf32>
    %558 = arith.mulf %557, %556 : vector<2x33xf32>
    %559 = arith.addf %553, %558 : vector<2x33xf32>
    %c93_i32 = arith.constant 93 : i32
    %560 = arith.truncf %559 : vector<2x33xf32> to vector<2x33xbf16>
    %cst_188 = arith.constant dense<0.000000e+00> : vector<2x33xf32>
    %561 = tpu.matmul %560, %0, %cst_188 {dimension_numbers = #tpu.dot_dimension_numbers<[1], [0], [0], [1], [0, 0, 1, 1], [], []>} : vector<2x33xbf16>, vector<33x33xbf16>, vector<2x33xf32> -> vector<2x33xf32>
    %562 = math.tanh %561 : vector<2x33xf32>
    %cst_189 = arith.constant 0.00999999977 : f32
    %563 = vector.broadcast %cst_189 : f32 to vector<2x33xf32>
    %564 = arith.mulf %563, %562 : vector<2x33xf32>
    %565 = arith.addf %559, %564 : vector<2x33xf32>
    %c94_i32 = arith.constant 94 : i32
    %566 = arith.truncf %565 : vector<2x33xf32> to vector<2x33xbf16>
    %cst_190 = arith.constant dense<0.000000e+00> : vector<2x33xf32>
    %567 = tpu.matmul %566, %0, %cst_190 {dimension_numbers = #tpu.dot_dimension_numbers<[1], [0], [0], [1], [0, 0, 1, 1], [], []>} : vector<2x33xbf16>, vector<33x33xbf16>, vector<2x33xf32> -> vector<2x33xf32>
    %568 = math.tanh %567 : vector<2x33xf32>
    %cst_191 = arith.constant 0.00999999977 : f32
    %569 = vector.broadcast %cst_191 : f32 to vector<2x33xf32>
    %570 = arith.mulf %569, %568 : vector<2x33xf32>
    %571 = arith.addf %565, %570 : vector<2x33xf32>
    %c95_i32 = arith.constant 95 : i32
    %572 = arith.truncf %571 : vector<2x33xf32> to vector<2x33xbf16>
    %cst_192 = arith.constant dense<0.000000e+00> : vector<2x33xf32>
    %573 = tpu.matmul %572, %0, %cst_192 {dimension_numbers = #tpu.dot_dimension_numbers<[1], [0], [0], [1], [0, 0, 1, 1], [], []>} : vector<2x33xbf16>, vector<33x33xbf16>, vector<2x33xf32> -> vector<2x33xf32>
    %574 = math.tanh %573 : vector<2x33xf32>
    %cst_193 = arith.constant 0.00999999977 : f32
    %575 = vector.broadcast %cst_193 : f32 to vector<2x33xf32>
    %576 = arith.mulf %575, %574 : vector<2x33xf32>
    %577 = arith.addf %571, %576 : vector<2x33xf32>
    %c96_i32 = arith.constant 96 : i32
    %578 = arith.truncf %577 : vector<2x33xf32> to vector<2x33xbf16>
    %cst_194 = arith.constant dense<0.000000e+00> : vector<2x33xf32>
    %579 = tpu.matmul %578, %0, %cst_194 {dimension_numbers = #tpu.dot_dimension_numbers<[1], [0], [0], [1], [0, 0, 1, 1], [], []>} : vector<2x33xbf16>, vector<33x33xbf16>, vector<2x33xf32> -> vector<2x33xf32>
    %580 = math.tanh %579 : vector<2x33xf32>
    %cst_195 = arith.constant 0.00999999977 : f32
    %581 = vector.broadcast %cst_195 : f32 to vector<2x33xf32>
    %582 = arith.mulf %581, %580 : vector<2x33xf32>
    %583 = arith.addf %577, %582 : vector<2x33xf32>
    %c97_i32 = arith.constant 97 : i32
    %584 = arith.truncf %583 : vector<2x33xf32> to vector<2x33xbf16>
    %cst_196 = arith.constant dense<0.000000e+00> : vector<2x33xf32>
    %585 = tpu.matmul %584, %0, %cst_196 {dimension_numbers = #tpu.dot_dimension_numbers<[1], [0], [0], [1], [0, 0, 1, 1], [], []>} : vector<2x33xbf16>, vector<33x33xbf16>, vector<2x33xf32> -> vector<2x33xf32>
    %586 = math.tanh %585 : vector<2x33xf32>
    %cst_197 = arith.constant 0.00999999977 : f32
    %587 = vector.broadcast %cst_197 : f32 to vector<2x33xf32>
    %588 = arith.mulf %587, %586 : vector<2x33xf32>
    %589 = arith.addf %583, %588 : vector<2x33xf32>
    %c98_i32 = arith.constant 98 : i32
    %590 = arith.truncf %589 : vector<2x33xf32> to vector<2x33xbf16>
    %cst_198 = arith.constant dense<0.000000e+00> : vector<2x33xf32>
    %591 = tpu.matmul %590, %0, %cst_198 {dimension_numbers = #tpu.dot_dimension_numbers<[1], [0], [0], [1], [0, 0, 1, 1], [], []>} : vector<2x33xbf16>, vector<33x33xbf16>, vector<2x33xf32> -> vector<2x33xf32>
    %592 = math.tanh %591 : vector<2x33xf32>
    %cst_199 = arith.constant 0.00999999977 : f32
    %593 = vector.broadcast %cst_199 : f32 to vector<2x33xf32>
    %594 = arith.mulf %593, %592 : vector<2x33xf32>
    %595 = arith.addf %589, %594 : vector<2x33xf32>
    %c99_i32 = arith.constant 99 : i32
    %596 = arith.truncf %595 : vector<2x33xf32> to vector<2x33xbf16>
    %cst_200 = arith.constant dense<0.000000e+00> : vector<2x33xf32>
    %597 = tpu.matmul %596, %0, %cst_200 {dimension_numbers = #tpu.dot_dimension_numbers<[1], [0], [0], [1], [0, 0, 1, 1], [], []>} : vector<2x33xbf16>, vector<33x33xbf16>, vector<2x33xf32> -> vector<2x33xf32>
    %598 = math.tanh %597 : vector<2x33xf32>
    %cst_201 = arith.constant 0.00999999977 : f32
    %599 = vector.broadcast %cst_201 : f32 to vector<2x33xf32>
    %600 = arith.mulf %599, %598 : vector<2x33xf32>
    %601 = arith.addf %595, %600 : vector<2x33xf32>
    %c100_i32 = arith.constant 100 : i32
    %602 = arith.truncf %601 : vector<2x33xf32> to vector<2x33xbf16>
    %cst_202 = arith.constant dense<0.000000e+00> : vector<2x33xf32>
    %603 = tpu.matmul %602, %0, %cst_202 {dimension_numbers = #tpu.dot_dimension_numbers<[1], [0], [0], [1], [0, 0, 1, 1], [], []>} : vector<2x33xbf16>, vector<33x33xbf16>, vector<2x33xf32> -> vector<2x33xf32>
    %604 = math.tanh %603 : vector<2x33xf32>
    %cst_203 = arith.constant 0.00999999977 : f32
    %605 = vector.broadcast %cst_203 : f32 to vector<2x33xf32>
    %606 = arith.mulf %605, %604 : vector<2x33xf32>
    %607 = arith.addf %601, %606 : vector<2x33xf32>
    %c101_i32 = arith.constant 101 : i32
    %608 = arith.truncf %607 : vector<2x33xf32> to vector<2x33xbf16>
    %cst_204 = arith.constant dense<0.000000e+00> : vector<2x33xf32>
    %609 = tpu.matmul %608, %0, %cst_204 {dimension_numbers = #tpu.dot_dimension_numbers<[1], [0], [0], [1], [0, 0, 1, 1], [], []>} : vector<2x33xbf16>, vector<33x33xbf16>, vector<2x33xf32> -> vector<2x33xf32>
    %610 = math.tanh %609 : vector<2x33xf32>
    %cst_205 = arith.constant 0.00999999977 : f32
    %611 = vector.broadcast %cst_205 : f32 to vector<2x33xf32>
    %612 = arith.mulf %611, %610 : vector<2x33xf32>
    %613 = arith.addf %607, %612 : vector<2x33xf32>
    %c102_i32 = arith.constant 102 : i32
    %614 = arith.truncf %613 : vector<2x33xf32> to vector<2x33xbf16>
    %cst_206 = arith.constant dense<0.000000e+00> : vector<2x33xf32>
    %615 = tpu.matmul %614, %0, %cst_206 {dimension_numbers = #tpu.dot_dimension_numbers<[1], [0], [0], [1], [0, 0, 1, 1], [], []>} : vector<2x33xbf16>, vector<33x33xbf16>, vector<2x33xf32> -> vector<2x33xf32>
    %616 = math.tanh %615 : vector<2x33xf32>
    %cst_207 = arith.constant 0.00999999977 : f32
    %617 = vector.broadcast %cst_207 : f32 to vector<2x33xf32>
    %618 = arith.mulf %617, %616 : vector<2x33xf32>
    %619 = arith.addf %613, %618 : vector<2x33xf32>
    %c103_i32 = arith.constant 103 : i32
    %620 = arith.truncf %619 : vector<2x33xf32> to vector<2x33xbf16>
    %cst_208 = arith.constant dense<0.000000e+00> : vector<2x33xf32>
    %621 = tpu.matmul %620, %0, %cst_208 {dimension_numbers = #tpu.dot_dimension_numbers<[1], [0], [0], [1], [0, 0, 1, 1], [], []>} : vector<2x33xbf16>, vector<33x33xbf16>, vector<2x33xf32> -> vector<2x33xf32>
    %622 = math.tanh %621 : vector<2x33xf32>
    %cst_209 = arith.constant 0.00999999977 : f32
    %623 = vector.broadcast %cst_209 : f32 to vector<2x33xf32>
    %624 = arith.mulf %623, %622 : vector<2x33xf32>
    %625 = arith.addf %619, %624 : vector<2x33xf32>
    %c104_i32 = arith.constant 104 : i32
    %626 = arith.truncf %625 : vector<2x33xf32> to vector<2x33xbf16>
    %cst_210 = arith.constant dense<0.000000e+00> : vector<2x33xf32>
    %627 = tpu.matmul %626, %0, %cst_210 {dimension_numbers = #tpu.dot_dimension_numbers<[1], [0], [0], [1], [0, 0, 1, 1], [], []>} : vector<2x33xbf16>, vector<33x33xbf16>, vector<2x33xf32> -> vector<2x33xf32>
    %628 = math.tanh %627 : vector<2x33xf32>
    %cst_211 = arith.constant 0.00999999977 : f32
    %629 = vector.broadcast %cst_211 : f32 to vector<2x33xf32>
    %630 = arith.mulf %629, %628 : vector<2x33xf32>
    %631 = arith.addf %625, %630 : vector<2x33xf32>
    %c105_i32 = arith.constant 105 : i32
    %632 = arith.truncf %631 : vector<2x33xf32> to vector<2x33xbf16>
    %cst_212 = arith.constant dense<0.000000e+00> : vector<2x33xf32>
    %633 = tpu.matmul %632, %0, %cst_212 {dimension_numbers = #tpu.dot_dimension_numbers<[1], [0], [0], [1], [0, 0, 1, 1], [], []>} : vector<2x33xbf16>, vector<33x33xbf16>, vector<2x33xf32> -> vector<2x33xf32>
    %634 = math.tanh %633 : vector<2x33xf32>
    %cst_213 = arith.constant 0.00999999977 : f32
    %635 = vector.broadcast %cst_213 : f32 to vector<2x33xf32>
    %636 = arith.mulf %635, %634 : vector<2x33xf32>
    %637 = arith.addf %631, %636 : vector<2x33xf32>
    %c106_i32 = arith.constant 106 : i32
    %638 = arith.truncf %637 : vector<2x33xf32> to vector<2x33xbf16>
    %cst_214 = arith.constant dense<0.000000e+00> : vector<2x33xf32>
    %639 = tpu.matmul %638, %0, %cst_214 {dimension_numbers = #tpu.dot_dimension_numbers<[1], [0], [0], [1], [0, 0, 1, 1], [], []>} : vector<2x33xbf16>, vector<33x33xbf16>, vector<2x33xf32> -> vector<2x33xf32>
    %640 = math.tanh %639 : vector<2x33xf32>
    %cst_215 = arith.constant 0.00999999977 : f32
    %641 = vector.broadcast %cst_215 : f32 to vector<2x33xf32>
    %642 = arith.mulf %641, %640 : vector<2x33xf32>
    %643 = arith.addf %637, %642 : vector<2x33xf32>
    %c107_i32 = arith.constant 107 : i32
    %644 = arith.truncf %643 : vector<2x33xf32> to vector<2x33xbf16>
    %cst_216 = arith.constant dense<0.000000e+00> : vector<2x33xf32>
    %645 = tpu.matmul %644, %0, %cst_216 {dimension_numbers = #tpu.dot_dimension_numbers<[1], [0], [0], [1], [0, 0, 1, 1], [], []>} : vector<2x33xbf16>, vector<33x33xbf16>, vector<2x33xf32> -> vector<2x33xf32>
    %646 = math.tanh %645 : vector<2x33xf32>
    %cst_217 = arith.constant 0.00999999977 : f32
    %647 = vector.broadcast %cst_217 : f32 to vector<2x33xf32>
    %648 = arith.mulf %647, %646 : vector<2x33xf32>
    %649 = arith.addf %643, %648 : vector<2x33xf32>
    %c108_i32 = arith.constant 108 : i32
    %650 = arith.truncf %649 : vector<2x33xf32> to vector<2x33xbf16>
    %cst_218 = arith.constant dense<0.000000e+00> : vector<2x33xf32>
    %651 = tpu.matmul %650, %0, %cst_218 {dimension_numbers = #tpu.dot_dimension_numbers<[1], [0], [0], [1], [0, 0, 1, 1], [], []>} : vector<2x33xbf16>, vector<33x33xbf16>, vector<2x33xf32> -> vector<2x33xf32>
    %652 = math.tanh %651 : vector<2x33xf32>
    %cst_219 = arith.constant 0.00999999977 : f32
    %653 = vector.broadcast %cst_219 : f32 to vector<2x33xf32>
    %654 = arith.mulf %653, %652 : vector<2x33xf32>
    %655 = arith.addf %649, %654 : vector<2x33xf32>
    %c109_i32 = arith.constant 109 : i32
    %656 = arith.truncf %655 : vector<2x33xf32> to vector<2x33xbf16>
    %cst_220 = arith.constant dense<0.000000e+00> : vector<2x33xf32>
    %657 = tpu.matmul %656, %0, %cst_220 {dimension_numbers = #tpu.dot_dimension_numbers<[1], [0], [0], [1], [0, 0, 1, 1], [], []>} : vector<2x33xbf16>, vector<33x33xbf16>, vector<2x33xf32> -> vector<2x33xf32>
    %658 = math.tanh %657 : vector<2x33xf32>
    %cst_221 = arith.constant 0.00999999977 : f32
    %659 = vector.broadcast %cst_221 : f32 to vector<2x33xf32>
    %660 = arith.mulf %659, %658 : vector<2x33xf32>
    %661 = arith.addf %655, %660 : vector<2x33xf32>
    %c110_i32 = arith.constant 110 : i32
    %662 = arith.truncf %661 : vector<2x33xf32> to vector<2x33xbf16>
    %cst_222 = arith.constant dense<0.000000e+00> : vector<2x33xf32>
    %663 = tpu.matmul %662, %0, %cst_222 {dimension_numbers = #tpu.dot_dimension_numbers<[1], [0], [0], [1], [0, 0, 1, 1], [], []>} : vector<2x33xbf16>, vector<33x33xbf16>, vector<2x33xf32> -> vector<2x33xf32>
    %664 = math.tanh %663 : vector<2x33xf32>
    %cst_223 = arith.constant 0.00999999977 : f32
    %665 = vector.broadcast %cst_223 : f32 to vector<2x33xf32>
    %666 = arith.mulf %665, %664 : vector<2x33xf32>
    %667 = arith.addf %661, %666 : vector<2x33xf32>
    %c111_i32 = arith.constant 111 : i32
    %668 = arith.truncf %667 : vector<2x33xf32> to vector<2x33xbf16>
    %cst_224 = arith.constant dense<0.000000e+00> : vector<2x33xf32>
    %669 = tpu.matmul %668, %0, %cst_224 {dimension_numbers = #tpu.dot_dimension_numbers<[1], [0], [0], [1], [0, 0, 1, 1], [], []>} : vector<2x33xbf16>, vector<33x33xbf16>, vector<2x33xf32> -> vector<2x33xf32>
    %670 = math.tanh %669 : vector<2x33xf32>
    %cst_225 = arith.constant 0.00999999977 : f32
    %671 = vector.broadcast %cst_225 : f32 to vector<2x33xf32>
    %672 = arith.mulf %671, %670 : vector<2x33xf32>
    %673 = arith.addf %667, %672 : vector<2x33xf32>
    %c112_i32 = arith.constant 112 : i32
    %674 = arith.truncf %673 : vector<2x33xf32> to vector<2x33xbf16>
    %cst_226 = arith.constant dense<0.000000e+00> : vector<2x33xf32>
    %675 = tpu.matmul %674, %0, %cst_226 {dimension_numbers = #tpu.dot_dimension_numbers<[1], [0], [0], [1], [0, 0, 1, 1], [], []>} : vector<2x33xbf16>, vector<33x33xbf16>, vector<2x33xf32> -> vector<2x33xf32>
    %676 = math.tanh %675 : vector<2x33xf32>
    %cst_227 = arith.constant 0.00999999977 : f32
    %677 = vector.broadcast %cst_227 : f32 to vector<2x33xf32>
    %678 = arith.mulf %677, %676 : vector<2x33xf32>
    %679 = arith.addf %673, %678 : vector<2x33xf32>
    %c113_i32 = arith.constant 113 : i32
    %680 = arith.truncf %679 : vector<2x33xf32> to vector<2x33xbf16>
    %cst_228 = arith.constant dense<0.000000e+00> : vector<2x33xf32>
    %681 = tpu.matmul %680, %0, %cst_228 {dimension_numbers = #tpu.dot_dimension_numbers<[1], [0], [0], [1], [0, 0, 1, 1], [], []>} : vector<2x33xbf16>, vector<33x33xbf16>, vector<2x33xf32> -> vector<2x33xf32>
    %682 = math.tanh %681 : vector<2x33xf32>
    %cst_229 = arith.constant 0.00999999977 : f32
    %683 = vector.broadcast %cst_229 : f32 to vector<2x33xf32>
    %684 = arith.mulf %683, %682 : vector<2x33xf32>
    %685 = arith.addf %679, %684 : vector<2x33xf32>
    %c114_i32 = arith.constant 114 : i32
    %686 = arith.truncf %685 : vector<2x33xf32> to vector<2x33xbf16>
    %cst_230 = arith.constant dense<0.000000e+00> : vector<2x33xf32>
    %687 = tpu.matmul %686, %0, %cst_230 {dimension_numbers = #tpu.dot_dimension_numbers<[1], [0], [0], [1], [0, 0, 1, 1], [], []>} : vector<2x33xbf16>, vector<33x33xbf16>, vector<2x33xf32> -> vector<2x33xf32>
    %688 = math.tanh %687 : vector<2x33xf32>
    %cst_231 = arith.constant 0.00999999977 : f32
    %689 = vector.broadcast %cst_231 : f32 to vector<2x33xf32>
    %690 = arith.mulf %689, %688 : vector<2x33xf32>
    %691 = arith.addf %685, %690 : vector<2x33xf32>
    %c115_i32 = arith.constant 115 : i32
    %692 = arith.truncf %691 : vector<2x33xf32> to vector<2x33xbf16>
    %cst_232 = arith.constant dense<0.000000e+00> : vector<2x33xf32>
    %693 = tpu.matmul %692, %0, %cst_232 {dimension_numbers = #tpu.dot_dimension_numbers<[1], [0], [0], [1], [0, 0, 1, 1], [], []>} : vector<2x33xbf16>, vector<33x33xbf16>, vector<2x33xf32> -> vector<2x33xf32>
    %694 = math.tanh %693 : vector<2x33xf32>
    %cst_233 = arith.constant 0.00999999977 : f32
    %695 = vector.broadcast %cst_233 : f32 to vector<2x33xf32>
    %696 = arith.mulf %695, %694 : vector<2x33xf32>
    %697 = arith.addf %691, %696 : vector<2x33xf32>
    %c116_i32 = arith.constant 116 : i32
    %698 = arith.truncf %697 : vector<2x33xf32> to vector<2x33xbf16>
    %cst_234 = arith.constant dense<0.000000e+00> : vector<2x33xf32>
    %699 = tpu.matmul %698, %0, %cst_234 {dimension_numbers = #tpu.dot_dimension_numbers<[1], [0], [0], [1], [0, 0, 1, 1], [], []>} : vector<2x33xbf16>, vector<33x33xbf16>, vector<2x33xf32> -> vector<2x33xf32>
    %700 = math.tanh %699 : vector<2x33xf32>
    %cst_235 = arith.constant 0.00999999977 : f32
    %701 = vector.broadcast %cst_235 : f32 to vector<2x33xf32>
    %702 = arith.mulf %701, %700 : vector<2x33xf32>
    %703 = arith.addf %697, %702 : vector<2x33xf32>
    %c117_i32 = arith.constant 117 : i32
    %704 = arith.truncf %703 : vector<2x33xf32> to vector<2x33xbf16>
    %cst_236 = arith.constant dense<0.000000e+00> : vector<2x33xf32>
    %705 = tpu.matmul %704, %0, %cst_236 {dimension_numbers = #tpu.dot_dimension_numbers<[1], [0], [0], [1], [0, 0, 1, 1], [], []>} : vector<2x33xbf16>, vector<33x33xbf16>, vector<2x33xf32> -> vector<2x33xf32>
    %706 = math.tanh %705 : vector<2x33xf32>
    %cst_237 = arith.constant 0.00999999977 : f32
    %707 = vector.broadcast %cst_237 : f32 to vector<2x33xf32>
    %708 = arith.mulf %707, %706 : vector<2x33xf32>
    %709 = arith.addf %703, %708 : vector<2x33xf32>
    %c118_i32 = arith.constant 118 : i32
    %710 = arith.truncf %709 : vector<2x33xf32> to vector<2x33xbf16>
    %cst_238 = arith.constant dense<0.000000e+00> : vector<2x33xf32>
    %711 = tpu.matmul %710, %0, %cst_238 {dimension_numbers = #tpu.dot_dimension_numbers<[1], [0], [0], [1], [0, 0, 1, 1], [], []>} : vector<2x33xbf16>, vector<33x33xbf16>, vector<2x33xf32> -> vector<2x33xf32>
    %712 = math.tanh %711 : vector<2x33xf32>
    %cst_239 = arith.constant 0.00999999977 : f32
    %713 = vector.broadcast %cst_239 : f32 to vector<2x33xf32>
    %714 = arith.mulf %713, %712 : vector<2x33xf32>
    %715 = arith.addf %709, %714 : vector<2x33xf32>
    %c119_i32 = arith.constant 119 : i32
    %716 = arith.truncf %715 : vector<2x33xf32> to vector<2x33xbf16>
    %cst_240 = arith.constant dense<0.000000e+00> : vector<2x33xf32>
    %717 = tpu.matmul %716, %0, %cst_240 {dimension_numbers = #tpu.dot_dimension_numbers<[1], [0], [0], [1], [0, 0, 1, 1], [], []>} : vector<2x33xbf16>, vector<33x33xbf16>, vector<2x33xf32> -> vector<2x33xf32>
    %718 = math.tanh %717 : vector<2x33xf32>
    %cst_241 = arith.constant 0.00999999977 : f32
    %719 = vector.broadcast %cst_241 : f32 to vector<2x33xf32>
    %720 = arith.mulf %719, %718 : vector<2x33xf32>
    %721 = arith.addf %715, %720 : vector<2x33xf32>
    %c120_i32 = arith.constant 120 : i32
    %722 = arith.truncf %721 : vector<2x33xf32> to vector<2x33xbf16>
    %cst_242 = arith.constant dense<0.000000e+00> : vector<2x33xf32>
    %723 = tpu.matmul %722, %0, %cst_242 {dimension_numbers = #tpu.dot_dimension_numbers<[1], [0], [0], [1], [0, 0, 1, 1], [], []>} : vector<2x33xbf16>, vector<33x33xbf16>, vector<2x33xf32> -> vector<2x33xf32>
    %724 = math.tanh %723 : vector<2x33xf32>
    %cst_243 = arith.constant 0.00999999977 : f32
    %725 = vector.broadcast %cst_243 : f32 to vector<2x33xf32>
    %726 = arith.mulf %725, %724 : vector<2x33xf32>
    %727 = arith.addf %721, %726 : vector<2x33xf32>
    %c121_i32 = arith.constant 121 : i32
    %728 = arith.truncf %727 : vector<2x33xf32> to vector<2x33xbf16>
    %cst_244 = arith.constant dense<0.000000e+00> : vector<2x33xf32>
    %729 = tpu.matmul %728, %0, %cst_244 {dimension_numbers = #tpu.dot_dimension_numbers<[1], [0], [0], [1], [0, 0, 1, 1], [], []>} : vector<2x33xbf16>, vector<33x33xbf16>, vector<2x33xf32> -> vector<2x33xf32>
    %730 = math.tanh %729 : vector<2x33xf32>
    %cst_245 = arith.constant 0.00999999977 : f32
    %731 = vector.broadcast %cst_245 : f32 to vector<2x33xf32>
    %732 = arith.mulf %731, %730 : vector<2x33xf32>
    %733 = arith.addf %727, %732 : vector<2x33xf32>
    %c122_i32 = arith.constant 122 : i32
    %734 = arith.truncf %733 : vector<2x33xf32> to vector<2x33xbf16>
    %cst_246 = arith.constant dense<0.000000e+00> : vector<2x33xf32>
    %735 = tpu.matmul %734, %0, %cst_246 {dimension_numbers = #tpu.dot_dimension_numbers<[1], [0], [0], [1], [0, 0, 1, 1], [], []>} : vector<2x33xbf16>, vector<33x33xbf16>, vector<2x33xf32> -> vector<2x33xf32>
    %736 = math.tanh %735 : vector<2x33xf32>
    %cst_247 = arith.constant 0.00999999977 : f32
    %737 = vector.broadcast %cst_247 : f32 to vector<2x33xf32>
    %738 = arith.mulf %737, %736 : vector<2x33xf32>
    %739 = arith.addf %733, %738 : vector<2x33xf32>
    %c123_i32 = arith.constant 123 : i32
    %740 = arith.truncf %739 : vector<2x33xf32> to vector<2x33xbf16>
    %cst_248 = arith.constant dense<0.000000e+00> : vector<2x33xf32>
    %741 = tpu.matmul %740, %0, %cst_248 {dimension_numbers = #tpu.dot_dimension_numbers<[1], [0], [0], [1], [0, 0, 1, 1], [], []>} : vector<2x33xbf16>, vector<33x33xbf16>, vector<2x33xf32> -> vector<2x33xf32>
    %742 = math.tanh %741 : vector<2x33xf32>
    %cst_249 = arith.constant 0.00999999977 : f32
    %743 = vector.broadcast %cst_249 : f32 to vector<2x33xf32>
    %744 = arith.mulf %743, %742 : vector<2x33xf32>
    %745 = arith.addf %739, %744 : vector<2x33xf32>
    %c124_i32 = arith.constant 124 : i32
    %746 = arith.truncf %745 : vector<2x33xf32> to vector<2x33xbf16>
    %cst_250 = arith.constant dense<0.000000e+00> : vector<2x33xf32>
    %747 = tpu.matmul %746, %0, %cst_250 {dimension_numbers = #tpu.dot_dimension_numbers<[1], [0], [0], [1], [0, 0, 1, 1], [], []>} : vector<2x33xbf16>, vector<33x33xbf16>, vector<2x33xf32> -> vector<2x33xf32>
    %748 = math.tanh %747 : vector<2x33xf32>
    %cst_251 = arith.constant 0.00999999977 : f32
    %749 = vector.broadcast %cst_251 : f32 to vector<2x33xf32>
    %750 = arith.mulf %749, %748 : vector<2x33xf32>
    %751 = arith.addf %745, %750 : vector<2x33xf32>
    %c125_i32 = arith.constant 125 : i32
    %752 = arith.truncf %751 : vector<2x33xf32> to vector<2x33xbf16>
    %cst_252 = arith.constant dense<0.000000e+00> : vector<2x33xf32>
    %753 = tpu.matmul %752, %0, %cst_252 {dimension_numbers = #tpu.dot_dimension_numbers<[1], [0], [0], [1], [0, 0, 1, 1], [], []>} : vector<2x33xbf16>, vector<33x33xbf16>, vector<2x33xf32> -> vector<2x33xf32>
    %754 = math.tanh %753 : vector<2x33xf32>
    %cst_253 = arith.constant 0.00999999977 : f32
    %755 = vector.broadcast %cst_253 : f32 to vector<2x33xf32>
    %756 = arith.mulf %755, %754 : vector<2x33xf32>
    %757 = arith.addf %751, %756 : vector<2x33xf32>
    %c126_i32 = arith.constant 126 : i32
    %758 = arith.truncf %757 : vector<2x33xf32> to vector<2x33xbf16>
    %cst_254 = arith.constant dense<0.000000e+00> : vector<2x33xf32>
    %759 = tpu.matmul %758, %0, %cst_254 {dimension_numbers = #tpu.dot_dimension_numbers<[1], [0], [0], [1], [0, 0, 1, 1], [], []>} : vector<2x33xbf16>, vector<33x33xbf16>, vector<2x33xf32> -> vector<2x33xf32>
    %760 = math.tanh %759 : vector<2x33xf32>
    %cst_255 = arith.constant 0.00999999977 : f32
    %761 = vector.broadcast %cst_255 : f32 to vector<2x33xf32>
    %762 = arith.mulf %761, %760 : vector<2x33xf32>
    %763 = arith.addf %757, %762 : vector<2x33xf32>
    %c127_i32 = arith.constant 127 : i32
    %764 = arith.truncf %763 : vector<2x33xf32> to vector<2x33xbf16>
    %cst_256 = arith.constant dense<0.000000e+00> : vector<2x33xf32>
    %765 = tpu.matmul %764, %0, %cst_256 {dimension_numbers = #tpu.dot_dimension_numbers<[1], [0], [0], [1], [0, 0, 1, 1], [], []>} : vector<2x33xbf16>, vector<33x33xbf16>, vector<2x33xf32> -> vector<2x33xf32>
    %766 = math.tanh %765 : vector<2x33xf32>
    %cst_257 = arith.constant 0.00999999977 : f32
    %767 = vector.broadcast %cst_257 : f32 to vector<2x33xf32>
    %768 = arith.mulf %767, %766 : vector<2x33xf32>
    %769 = arith.addf %763, %768 : vector<2x33xf32>
    %c128_i32 = arith.constant 128 : i32
    %770 = arith.truncf %769 : vector<2x33xf32> to vector<2x33xbf16>
    %cst_258 = arith.constant dense<0.000000e+00> : vector<2x33xf32>
    %771 = tpu.matmul %770, %0, %cst_258 {dimension_numbers = #tpu.dot_dimension_numbers<[1], [0], [0], [1], [0, 0, 1, 1], [], []>} : vector<2x33xbf16>, vector<33x33xbf16>, vector<2x33xf32> -> vector<2x33xf32>
    %772 = math.tanh %771 : vector<2x33xf32>
    %cst_259 = arith.constant 0.00999999977 : f32
    %773 = vector.broadcast %cst_259 : f32 to vector<2x33xf32>
    %774 = arith.mulf %773, %772 : vector<2x33xf32>
    %775 = arith.addf %769, %774 : vector<2x33xf32>
    %c129_i32 = arith.constant 129 : i32
    %776 = arith.truncf %775 : vector<2x33xf32> to vector<2x33xbf16>
    %cst_260 = arith.constant dense<0.000000e+00> : vector<2x33xf32>
    %777 = tpu.matmul %776, %0, %cst_260 {dimension_numbers = #tpu.dot_dimension_numbers<[1], [0], [0], [1], [0, 0, 1, 1], [], []>} : vector<2x33xbf16>, vector<33x33xbf16>, vector<2x33xf32> -> vector<2x33xf32>
    %778 = math.tanh %777 : vector<2x33xf32>
    %cst_261 = arith.constant 0.00999999977 : f32
    %779 = vector.broadcast %cst_261 : f32 to vector<2x33xf32>
    %780 = arith.mulf %779, %778 : vector<2x33xf32>
    %781 = arith.addf %775, %780 : vector<2x33xf32>
    %c130_i32 = arith.constant 130 : i32
    %782 = arith.truncf %781 : vector<2x33xf32> to vector<2x33xbf16>
    %cst_262 = arith.constant dense<0.000000e+00> : vector<2x33xf32>
    %783 = tpu.matmul %782, %0, %cst_262 {dimension_numbers = #tpu.dot_dimension_numbers<[1], [0], [0], [1], [0, 0, 1, 1], [], []>} : vector<2x33xbf16>, vector<33x33xbf16>, vector<2x33xf32> -> vector<2x33xf32>
    %784 = math.tanh %783 : vector<2x33xf32>
    %cst_263 = arith.constant 0.00999999977 : f32
    %785 = vector.broadcast %cst_263 : f32 to vector<2x33xf32>
    %786 = arith.mulf %785, %784 : vector<2x33xf32>
    %787 = arith.addf %781, %786 : vector<2x33xf32>
    %c131_i32 = arith.constant 131 : i32
    %788 = arith.truncf %787 : vector<2x33xf32> to vector<2x33xbf16>
    %cst_264 = arith.constant dense<0.000000e+00> : vector<2x33xf32>
    %789 = tpu.matmul %788, %0, %cst_264 {dimension_numbers = #tpu.dot_dimension_numbers<[1], [0], [0], [1], [0, 0, 1, 1], [], []>} : vector<2x33xbf16>, vector<33x33xbf16>, vector<2x33xf32> -> vector<2x33xf32>
    %790 = math.tanh %789 : vector<2x33xf32>
    %cst_265 = arith.constant 0.00999999977 : f32
    %791 = vector.broadcast %cst_265 : f32 to vector<2x33xf32>
    %792 = arith.mulf %791, %790 : vector<2x33xf32>
    %793 = arith.addf %787, %792 : vector<2x33xf32>
    %c132_i32 = arith.constant 132 : i32
    %794 = arith.truncf %793 : vector<2x33xf32> to vector<2x33xbf16>
    %cst_266 = arith.constant dense<0.000000e+00> : vector<2x33xf32>
    %795 = tpu.matmul %794, %0, %cst_266 {dimension_numbers = #tpu.dot_dimension_numbers<[1], [0], [0], [1], [0, 0, 1, 1], [], []>} : vector<2x33xbf16>, vector<33x33xbf16>, vector<2x33xf32> -> vector<2x33xf32>
    %796 = math.tanh %795 : vector<2x33xf32>
    %cst_267 = arith.constant 0.00999999977 : f32
    %797 = vector.broadcast %cst_267 : f32 to vector<2x33xf32>
    %798 = arith.mulf %797, %796 : vector<2x33xf32>
    %799 = arith.addf %793, %798 : vector<2x33xf32>
    %c133_i32 = arith.constant 133 : i32
    %800 = arith.truncf %799 : vector<2x33xf32> to vector<2x33xbf16>
    %cst_268 = arith.constant dense<0.000000e+00> : vector<2x33xf32>
    %801 = tpu.matmul %800, %0, %cst_268 {dimension_numbers = #tpu.dot_dimension_numbers<[1], [0], [0], [1], [0, 0, 1, 1], [], []>} : vector<2x33xbf16>, vector<33x33xbf16>, vector<2x33xf32> -> vector<2x33xf32>
    %802 = math.tanh %801 : vector<2x33xf32>
    %cst_269 = arith.constant 0.00999999977 : f32
    %803 = vector.broadcast %cst_269 : f32 to vector<2x33xf32>
    %804 = arith.mulf %803, %802 : vector<2x33xf32>
    %805 = arith.addf %799, %804 : vector<2x33xf32>
    %c134_i32 = arith.constant 134 : i32
    %806 = arith.truncf %805 : vector<2x33xf32> to vector<2x33xbf16>
    %cst_270 = arith.constant dense<0.000000e+00> : vector<2x33xf32>
    %807 = tpu.matmul %806, %0, %cst_270 {dimension_numbers = #tpu.dot_dimension_numbers<[1], [0], [0], [1], [0, 0, 1, 1], [], []>} : vector<2x33xbf16>, vector<33x33xbf16>, vector<2x33xf32> -> vector<2x33xf32>
    %808 = math.tanh %807 : vector<2x33xf32>
    %cst_271 = arith.constant 0.00999999977 : f32
    %809 = vector.broadcast %cst_271 : f32 to vector<2x33xf32>
    %810 = arith.mulf %809, %808 : vector<2x33xf32>
    %811 = arith.addf %805, %810 : vector<2x33xf32>
    %c135_i32 = arith.constant 135 : i32
    %812 = arith.truncf %811 : vector<2x33xf32> to vector<2x33xbf16>
    %cst_272 = arith.constant dense<0.000000e+00> : vector<2x33xf32>
    %813 = tpu.matmul %812, %0, %cst_272 {dimension_numbers = #tpu.dot_dimension_numbers<[1], [0], [0], [1], [0, 0, 1, 1], [], []>} : vector<2x33xbf16>, vector<33x33xbf16>, vector<2x33xf32> -> vector<2x33xf32>
    %814 = math.tanh %813 : vector<2x33xf32>
    %cst_273 = arith.constant 0.00999999977 : f32
    %815 = vector.broadcast %cst_273 : f32 to vector<2x33xf32>
    %816 = arith.mulf %815, %814 : vector<2x33xf32>
    %817 = arith.addf %811, %816 : vector<2x33xf32>
    %c136_i32 = arith.constant 136 : i32
    %818 = arith.truncf %817 : vector<2x33xf32> to vector<2x33xbf16>
    %cst_274 = arith.constant dense<0.000000e+00> : vector<2x33xf32>
    %819 = tpu.matmul %818, %0, %cst_274 {dimension_numbers = #tpu.dot_dimension_numbers<[1], [0], [0], [1], [0, 0, 1, 1], [], []>} : vector<2x33xbf16>, vector<33x33xbf16>, vector<2x33xf32> -> vector<2x33xf32>
    %820 = math.tanh %819 : vector<2x33xf32>
    %cst_275 = arith.constant 0.00999999977 : f32
    %821 = vector.broadcast %cst_275 : f32 to vector<2x33xf32>
    %822 = arith.mulf %821, %820 : vector<2x33xf32>
    %823 = arith.addf %817, %822 : vector<2x33xf32>
    %c137_i32 = arith.constant 137 : i32
    %824 = arith.truncf %823 : vector<2x33xf32> to vector<2x33xbf16>
    %cst_276 = arith.constant dense<0.000000e+00> : vector<2x33xf32>
    %825 = tpu.matmul %824, %0, %cst_276 {dimension_numbers = #tpu.dot_dimension_numbers<[1], [0], [0], [1], [0, 0, 1, 1], [], []>} : vector<2x33xbf16>, vector<33x33xbf16>, vector<2x33xf32> -> vector<2x33xf32>
    %826 = math.tanh %825 : vector<2x33xf32>
    %cst_277 = arith.constant 0.00999999977 : f32
    %827 = vector.broadcast %cst_277 : f32 to vector<2x33xf32>
    %828 = arith.mulf %827, %826 : vector<2x33xf32>
    %829 = arith.addf %823, %828 : vector<2x33xf32>
    %c138_i32 = arith.constant 138 : i32
    %830 = arith.truncf %829 : vector<2x33xf32> to vector<2x33xbf16>
    %cst_278 = arith.constant dense<0.000000e+00> : vector<2x33xf32>
    %831 = tpu.matmul %830, %0, %cst_278 {dimension_numbers = #tpu.dot_dimension_numbers<[1], [0], [0], [1], [0, 0, 1, 1], [], []>} : vector<2x33xbf16>, vector<33x33xbf16>, vector<2x33xf32> -> vector<2x33xf32>
    %832 = math.tanh %831 : vector<2x33xf32>
    %cst_279 = arith.constant 0.00999999977 : f32
    %833 = vector.broadcast %cst_279 : f32 to vector<2x33xf32>
    %834 = arith.mulf %833, %832 : vector<2x33xf32>
    %835 = arith.addf %829, %834 : vector<2x33xf32>
    %c139_i32 = arith.constant 139 : i32
    %836 = arith.truncf %835 : vector<2x33xf32> to vector<2x33xbf16>
    %cst_280 = arith.constant dense<0.000000e+00> : vector<2x33xf32>
    %837 = tpu.matmul %836, %0, %cst_280 {dimension_numbers = #tpu.dot_dimension_numbers<[1], [0], [0], [1], [0, 0, 1, 1], [], []>} : vector<2x33xbf16>, vector<33x33xbf16>, vector<2x33xf32> -> vector<2x33xf32>
    %838 = math.tanh %837 : vector<2x33xf32>
    %cst_281 = arith.constant 0.00999999977 : f32
    %839 = vector.broadcast %cst_281 : f32 to vector<2x33xf32>
    %840 = arith.mulf %839, %838 : vector<2x33xf32>
    %841 = arith.addf %835, %840 : vector<2x33xf32>
    %c140_i32 = arith.constant 140 : i32
    %842 = arith.truncf %841 : vector<2x33xf32> to vector<2x33xbf16>
    %cst_282 = arith.constant dense<0.000000e+00> : vector<2x33xf32>
    %843 = tpu.matmul %842, %0, %cst_282 {dimension_numbers = #tpu.dot_dimension_numbers<[1], [0], [0], [1], [0, 0, 1, 1], [], []>} : vector<2x33xbf16>, vector<33x33xbf16>, vector<2x33xf32> -> vector<2x33xf32>
    %844 = math.tanh %843 : vector<2x33xf32>
    %cst_283 = arith.constant 0.00999999977 : f32
    %845 = vector.broadcast %cst_283 : f32 to vector<2x33xf32>
    %846 = arith.mulf %845, %844 : vector<2x33xf32>
    %847 = arith.addf %841, %846 : vector<2x33xf32>
    %c141_i32 = arith.constant 141 : i32
    %848 = arith.truncf %847 : vector<2x33xf32> to vector<2x33xbf16>
    %cst_284 = arith.constant dense<0.000000e+00> : vector<2x33xf32>
    %849 = tpu.matmul %848, %0, %cst_284 {dimension_numbers = #tpu.dot_dimension_numbers<[1], [0], [0], [1], [0, 0, 1, 1], [], []>} : vector<2x33xbf16>, vector<33x33xbf16>, vector<2x33xf32> -> vector<2x33xf32>
    %850 = math.tanh %849 : vector<2x33xf32>
    %cst_285 = arith.constant 0.00999999977 : f32
    %851 = vector.broadcast %cst_285 : f32 to vector<2x33xf32>
    %852 = arith.mulf %851, %850 : vector<2x33xf32>
    %853 = arith.addf %847, %852 : vector<2x33xf32>
    %c142_i32 = arith.constant 142 : i32
    %854 = arith.truncf %853 : vector<2x33xf32> to vector<2x33xbf16>
    %cst_286 = arith.constant dense<0.000000e+00> : vector<2x33xf32>
    %855 = tpu.matmul %854, %0, %cst_286 {dimension_numbers = #tpu.dot_dimension_numbers<[1], [0], [0], [1], [0, 0, 1, 1], [], []>} : vector<2x33xbf16>, vector<33x33xbf16>, vector<2x33xf32> -> vector<2x33xf32>
    %856 = math.tanh %855 : vector<2x33xf32>
    %cst_287 = arith.constant 0.00999999977 : f32
    %857 = vector.broadcast %cst_287 : f32 to vector<2x33xf32>
    %858 = arith.mulf %857, %856 : vector<2x33xf32>
    %859 = arith.addf %853, %858 : vector<2x33xf32>
    %c143_i32 = arith.constant 143 : i32
    %860 = arith.truncf %859 : vector<2x33xf32> to vector<2x33xbf16>
    %cst_288 = arith.constant dense<0.000000e+00> : vector<2x33xf32>
    %861 = tpu.matmul %860, %0, %cst_288 {dimension_numbers = #tpu.dot_dimension_numbers<[1], [0], [0], [1], [0, 0, 1, 1], [], []>} : vector<2x33xbf16>, vector<33x33xbf16>, vector<2x33xf32> -> vector<2x33xf32>
    %862 = math.tanh %861 : vector<2x33xf32>
    %cst_289 = arith.constant 0.00999999977 : f32
    %863 = vector.broadcast %cst_289 : f32 to vector<2x33xf32>
    %864 = arith.mulf %863, %862 : vector<2x33xf32>
    %865 = arith.addf %859, %864 : vector<2x33xf32>
    %c144_i32 = arith.constant 144 : i32
    %866 = arith.truncf %865 : vector<2x33xf32> to vector<2x33xbf16>
    %cst_290 = arith.constant dense<0.000000e+00> : vector<2x33xf32>
    %867 = tpu.matmul %866, %0, %cst_290 {dimension_numbers = #tpu.dot_dimension_numbers<[1], [0], [0], [1], [0, 0, 1, 1], [], []>} : vector<2x33xbf16>, vector<33x33xbf16>, vector<2x33xf32> -> vector<2x33xf32>
    %868 = math.tanh %867 : vector<2x33xf32>
    %cst_291 = arith.constant 0.00999999977 : f32
    %869 = vector.broadcast %cst_291 : f32 to vector<2x33xf32>
    %870 = arith.mulf %869, %868 : vector<2x33xf32>
    %871 = arith.addf %865, %870 : vector<2x33xf32>
    %c145_i32 = arith.constant 145 : i32
    %872 = arith.truncf %871 : vector<2x33xf32> to vector<2x33xbf16>
    %cst_292 = arith.constant dense<0.000000e+00> : vector<2x33xf32>
    %873 = tpu.matmul %872, %0, %cst_292 {dimension_numbers = #tpu.dot_dimension_numbers<[1], [0], [0], [1], [0, 0, 1, 1], [], []>} : vector<2x33xbf16>, vector<33x33xbf16>, vector<2x33xf32> -> vector<2x33xf32>
    %874 = math.tanh %873 : vector<2x33xf32>
    %cst_293 = arith.constant 0.00999999977 : f32
    %875 = vector.broadcast %cst_293 : f32 to vector<2x33xf32>
    %876 = arith.mulf %875, %874 : vector<2x33xf32>
    %877 = arith.addf %871, %876 : vector<2x33xf32>
    %c146_i32 = arith.constant 146 : i32
    %878 = arith.truncf %877 : vector<2x33xf32> to vector<2x33xbf16>
    %cst_294 = arith.constant dense<0.000000e+00> : vector<2x33xf32>
    %879 = tpu.matmul %878, %0, %cst_294 {dimension_numbers = #tpu.dot_dimension_numbers<[1], [0], [0], [1], [0, 0, 1, 1], [], []>} : vector<2x33xbf16>, vector<33x33xbf16>, vector<2x33xf32> -> vector<2x33xf32>
    %880 = math.tanh %879 : vector<2x33xf32>
    %cst_295 = arith.constant 0.00999999977 : f32
    %881 = vector.broadcast %cst_295 : f32 to vector<2x33xf32>
    %882 = arith.mulf %881, %880 : vector<2x33xf32>
    %883 = arith.addf %877, %882 : vector<2x33xf32>
    %c147_i32 = arith.constant 147 : i32
    %884 = arith.truncf %883 : vector<2x33xf32> to vector<2x33xbf16>
    %cst_296 = arith.constant dense<0.000000e+00> : vector<2x33xf32>
    %885 = tpu.matmul %884, %0, %cst_296 {dimension_numbers = #tpu.dot_dimension_numbers<[1], [0], [0], [1], [0, 0, 1, 1], [], []>} : vector<2x33xbf16>, vector<33x33xbf16>, vector<2x33xf32> -> vector<2x33xf32>
    %886 = math.tanh %885 : vector<2x33xf32>
    %cst_297 = arith.constant 0.00999999977 : f32
    %887 = vector.broadcast %cst_297 : f32 to vector<2x33xf32>
    %888 = arith.mulf %887, %886 : vector<2x33xf32>
    %889 = arith.addf %883, %888 : vector<2x33xf32>
    %c148_i32 = arith.constant 148 : i32
    %890 = arith.truncf %889 : vector<2x33xf32> to vector<2x33xbf16>
    %cst_298 = arith.constant dense<0.000000e+00> : vector<2x33xf32>
    %891 = tpu.matmul %890, %0, %cst_298 {dimension_numbers = #tpu.dot_dimension_numbers<[1], [0], [0], [1], [0, 0, 1, 1], [], []>} : vector<2x33xbf16>, vector<33x33xbf16>, vector<2x33xf32> -> vector<2x33xf32>
    %892 = math.tanh %891 : vector<2x33xf32>
    %cst_299 = arith.constant 0.00999999977 : f32
    %893 = vector.broadcast %cst_299 : f32 to vector<2x33xf32>
    %894 = arith.mulf %893, %892 : vector<2x33xf32>
    %895 = arith.addf %889, %894 : vector<2x33xf32>
    %c149_i32 = arith.constant 149 : i32
    %896 = arith.truncf %895 : vector<2x33xf32> to vector<2x33xbf16>
    %cst_300 = arith.constant dense<0.000000e+00> : vector<2x33xf32>
    %897 = tpu.matmul %896, %0, %cst_300 {dimension_numbers = #tpu.dot_dimension_numbers<[1], [0], [0], [1], [0, 0, 1, 1], [], []>} : vector<2x33xbf16>, vector<33x33xbf16>, vector<2x33xf32> -> vector<2x33xf32>
    %898 = math.tanh %897 : vector<2x33xf32>
    %cst_301 = arith.constant 0.00999999977 : f32
    %899 = vector.broadcast %cst_301 : f32 to vector<2x33xf32>
    %900 = arith.mulf %899, %898 : vector<2x33xf32>
    %901 = arith.addf %895, %900 : vector<2x33xf32>
    %c150_i32 = arith.constant 150 : i32
    %902 = arith.truncf %901 : vector<2x33xf32> to vector<2x33xbf16>
    %cst_302 = arith.constant dense<0.000000e+00> : vector<2x33xf32>
    %903 = tpu.matmul %902, %0, %cst_302 {dimension_numbers = #tpu.dot_dimension_numbers<[1], [0], [0], [1], [0, 0, 1, 1], [], []>} : vector<2x33xbf16>, vector<33x33xbf16>, vector<2x33xf32> -> vector<2x33xf32>
    %904 = math.tanh %903 : vector<2x33xf32>
    %cst_303 = arith.constant 0.00999999977 : f32
    %905 = vector.broadcast %cst_303 : f32 to vector<2x33xf32>
    %906 = arith.mulf %905, %904 : vector<2x33xf32>
    %907 = arith.addf %901, %906 : vector<2x33xf32>
    %c151_i32 = arith.constant 151 : i32
    %908 = arith.truncf %907 : vector<2x33xf32> to vector<2x33xbf16>
    %cst_304 = arith.constant dense<0.000000e+00> : vector<2x33xf32>
    %909 = tpu.matmul %908, %0, %cst_304 {dimension_numbers = #tpu.dot_dimension_numbers<[1], [0], [0], [1], [0, 0, 1, 1], [], []>} : vector<2x33xbf16>, vector<33x33xbf16>, vector<2x33xf32> -> vector<2x33xf32>
    %910 = math.tanh %909 : vector<2x33xf32>
    %cst_305 = arith.constant 0.00999999977 : f32
    %911 = vector.broadcast %cst_305 : f32 to vector<2x33xf32>
    %912 = arith.mulf %911, %910 : vector<2x33xf32>
    %913 = arith.addf %907, %912 : vector<2x33xf32>
    %c152_i32 = arith.constant 152 : i32
    %914 = arith.truncf %913 : vector<2x33xf32> to vector<2x33xbf16>
    %cst_306 = arith.constant dense<0.000000e+00> : vector<2x33xf32>
    %915 = tpu.matmul %914, %0, %cst_306 {dimension_numbers = #tpu.dot_dimension_numbers<[1], [0], [0], [1], [0, 0, 1, 1], [], []>} : vector<2x33xbf16>, vector<33x33xbf16>, vector<2x33xf32> -> vector<2x33xf32>
    %916 = math.tanh %915 : vector<2x33xf32>
    %cst_307 = arith.constant 0.00999999977 : f32
    %917 = vector.broadcast %cst_307 : f32 to vector<2x33xf32>
    %918 = arith.mulf %917, %916 : vector<2x33xf32>
    %919 = arith.addf %913, %918 : vector<2x33xf32>
    %c153_i32 = arith.constant 153 : i32
    %920 = arith.truncf %919 : vector<2x33xf32> to vector<2x33xbf16>
    %cst_308 = arith.constant dense<0.000000e+00> : vector<2x33xf32>
    %921 = tpu.matmul %920, %0, %cst_308 {dimension_numbers = #tpu.dot_dimension_numbers<[1], [0], [0], [1], [0, 0, 1, 1], [], []>} : vector<2x33xbf16>, vector<33x33xbf16>, vector<2x33xf32> -> vector<2x33xf32>
    %922 = math.tanh %921 : vector<2x33xf32>
    %cst_309 = arith.constant 0.00999999977 : f32
    %923 = vector.broadcast %cst_309 : f32 to vector<2x33xf32>
    %924 = arith.mulf %923, %922 : vector<2x33xf32>
    %925 = arith.addf %919, %924 : vector<2x33xf32>
    %c154_i32 = arith.constant 154 : i32
    %926 = arith.truncf %925 : vector<2x33xf32> to vector<2x33xbf16>
    %cst_310 = arith.constant dense<0.000000e+00> : vector<2x33xf32>
    %927 = tpu.matmul %926, %0, %cst_310 {dimension_numbers = #tpu.dot_dimension_numbers<[1], [0], [0], [1], [0, 0, 1, 1], [], []>} : vector<2x33xbf16>, vector<33x33xbf16>, vector<2x33xf32> -> vector<2x33xf32>
    %928 = math.tanh %927 : vector<2x33xf32>
    %cst_311 = arith.constant 0.00999999977 : f32
    %929 = vector.broadcast %cst_311 : f32 to vector<2x33xf32>
    %930 = arith.mulf %929, %928 : vector<2x33xf32>
    %931 = arith.addf %925, %930 : vector<2x33xf32>
    %c155_i32 = arith.constant 155 : i32
    %932 = arith.truncf %931 : vector<2x33xf32> to vector<2x33xbf16>
    %cst_312 = arith.constant dense<0.000000e+00> : vector<2x33xf32>
    %933 = tpu.matmul %932, %0, %cst_312 {dimension_numbers = #tpu.dot_dimension_numbers<[1], [0], [0], [1], [0, 0, 1, 1], [], []>} : vector<2x33xbf16>, vector<33x33xbf16>, vector<2x33xf32> -> vector<2x33xf32>
    %934 = math.tanh %933 : vector<2x33xf32>
    %cst_313 = arith.constant 0.00999999977 : f32
    %935 = vector.broadcast %cst_313 : f32 to vector<2x33xf32>
    %936 = arith.mulf %935, %934 : vector<2x33xf32>
    %937 = arith.addf %931, %936 : vector<2x33xf32>
    %c156_i32 = arith.constant 156 : i32
    %938 = arith.truncf %937 : vector<2x33xf32> to vector<2x33xbf16>
    %cst_314 = arith.constant dense<0.000000e+00> : vector<2x33xf32>
    %939 = tpu.matmul %938, %0, %cst_314 {dimension_numbers = #tpu.dot_dimension_numbers<[1], [0], [0], [1], [0, 0, 1, 1], [], []>} : vector<2x33xbf16>, vector<33x33xbf16>, vector<2x33xf32> -> vector<2x33xf32>
    %940 = math.tanh %939 : vector<2x33xf32>
    %cst_315 = arith.constant 0.00999999977 : f32
    %941 = vector.broadcast %cst_315 : f32 to vector<2x33xf32>
    %942 = arith.mulf %941, %940 : vector<2x33xf32>
    %943 = arith.addf %937, %942 : vector<2x33xf32>
    %c157_i32 = arith.constant 157 : i32
    %944 = arith.truncf %943 : vector<2x33xf32> to vector<2x33xbf16>
    %cst_316 = arith.constant dense<0.000000e+00> : vector<2x33xf32>
    %945 = tpu.matmul %944, %0, %cst_316 {dimension_numbers = #tpu.dot_dimension_numbers<[1], [0], [0], [1], [0, 0, 1, 1], [], []>} : vector<2x33xbf16>, vector<33x33xbf16>, vector<2x33xf32> -> vector<2x33xf32>
    %946 = math.tanh %945 : vector<2x33xf32>
    %cst_317 = arith.constant 0.00999999977 : f32
    %947 = vector.broadcast %cst_317 : f32 to vector<2x33xf32>
    %948 = arith.mulf %947, %946 : vector<2x33xf32>
    %949 = arith.addf %943, %948 : vector<2x33xf32>
    %c158_i32 = arith.constant 158 : i32
    %950 = arith.truncf %949 : vector<2x33xf32> to vector<2x33xbf16>
    %cst_318 = arith.constant dense<0.000000e+00> : vector<2x33xf32>
    %951 = tpu.matmul %950, %0, %cst_318 {dimension_numbers = #tpu.dot_dimension_numbers<[1], [0], [0], [1], [0, 0, 1, 1], [], []>} : vector<2x33xbf16>, vector<33x33xbf16>, vector<2x33xf32> -> vector<2x33xf32>
    %952 = math.tanh %951 : vector<2x33xf32>
    %cst_319 = arith.constant 0.00999999977 : f32
    %953 = vector.broadcast %cst_319 : f32 to vector<2x33xf32>
    %954 = arith.mulf %953, %952 : vector<2x33xf32>
    %955 = arith.addf %949, %954 : vector<2x33xf32>
    %c159_i32 = arith.constant 159 : i32
    %956 = arith.truncf %955 : vector<2x33xf32> to vector<2x33xbf16>
    %cst_320 = arith.constant dense<0.000000e+00> : vector<2x33xf32>
    %957 = tpu.matmul %956, %0, %cst_320 {dimension_numbers = #tpu.dot_dimension_numbers<[1], [0], [0], [1], [0, 0, 1, 1], [], []>} : vector<2x33xbf16>, vector<33x33xbf16>, vector<2x33xf32> -> vector<2x33xf32>
    %958 = math.tanh %957 : vector<2x33xf32>
    %cst_321 = arith.constant 0.00999999977 : f32
    %959 = vector.broadcast %cst_321 : f32 to vector<2x33xf32>
    %960 = arith.mulf %959, %958 : vector<2x33xf32>
    %961 = arith.addf %955, %960 : vector<2x33xf32>
    %c160_i32 = arith.constant 160 : i32
    %962 = arith.truncf %961 : vector<2x33xf32> to vector<2x33xbf16>
    %cst_322 = arith.constant dense<0.000000e+00> : vector<2x33xf32>
    %963 = tpu.matmul %962, %0, %cst_322 {dimension_numbers = #tpu.dot_dimension_numbers<[1], [0], [0], [1], [0, 0, 1, 1], [], []>} : vector<2x33xbf16>, vector<33x33xbf16>, vector<2x33xf32> -> vector<2x33xf32>
    %964 = math.tanh %963 : vector<2x33xf32>
    %cst_323 = arith.constant 0.00999999977 : f32
    %965 = vector.broadcast %cst_323 : f32 to vector<2x33xf32>
    %966 = arith.mulf %965, %964 : vector<2x33xf32>
    %967 = arith.addf %961, %966 : vector<2x33xf32>
    %c161_i32 = arith.constant 161 : i32
    %968 = arith.truncf %967 : vector<2x33xf32> to vector<2x33xbf16>
    %cst_324 = arith.constant dense<0.000000e+00> : vector<2x33xf32>
    %969 = tpu.matmul %968, %0, %cst_324 {dimension_numbers = #tpu.dot_dimension_numbers<[1], [0], [0], [1], [0, 0, 1, 1], [], []>} : vector<2x33xbf16>, vector<33x33xbf16>, vector<2x33xf32> -> vector<2x33xf32>
    %970 = math.tanh %969 : vector<2x33xf32>
    %cst_325 = arith.constant 0.00999999977 : f32
    %971 = vector.broadcast %cst_325 : f32 to vector<2x33xf32>
    %972 = arith.mulf %971, %970 : vector<2x33xf32>
    %973 = arith.addf %967, %972 : vector<2x33xf32>
    %c162_i32 = arith.constant 162 : i32
    %974 = arith.truncf %973 : vector<2x33xf32> to vector<2x33xbf16>
    %cst_326 = arith.constant dense<0.000000e+00> : vector<2x33xf32>
    %975 = tpu.matmul %974, %0, %cst_326 {dimension_numbers = #tpu.dot_dimension_numbers<[1], [0], [0], [1], [0, 0, 1, 1], [], []>} : vector<2x33xbf16>, vector<33x33xbf16>, vector<2x33xf32> -> vector<2x33xf32>
    %976 = math.tanh %975 : vector<2x33xf32>
    %cst_327 = arith.constant 0.00999999977 : f32
    %977 = vector.broadcast %cst_327 : f32 to vector<2x33xf32>
    %978 = arith.mulf %977, %976 : vector<2x33xf32>
    %979 = arith.addf %973, %978 : vector<2x33xf32>
    %c163_i32 = arith.constant 163 : i32
    %980 = arith.truncf %979 : vector<2x33xf32> to vector<2x33xbf16>
    %cst_328 = arith.constant dense<0.000000e+00> : vector<2x33xf32>
    %981 = tpu.matmul %980, %0, %cst_328 {dimension_numbers = #tpu.dot_dimension_numbers<[1], [0], [0], [1], [0, 0, 1, 1], [], []>} : vector<2x33xbf16>, vector<33x33xbf16>, vector<2x33xf32> -> vector<2x33xf32>
    %982 = math.tanh %981 : vector<2x33xf32>
    %cst_329 = arith.constant 0.00999999977 : f32
    %983 = vector.broadcast %cst_329 : f32 to vector<2x33xf32>
    %984 = arith.mulf %983, %982 : vector<2x33xf32>
    %985 = arith.addf %979, %984 : vector<2x33xf32>
    %c164_i32 = arith.constant 164 : i32
    %986 = arith.truncf %985 : vector<2x33xf32> to vector<2x33xbf16>
    %cst_330 = arith.constant dense<0.000000e+00> : vector<2x33xf32>
    %987 = tpu.matmul %986, %0, %cst_330 {dimension_numbers = #tpu.dot_dimension_numbers<[1], [0], [0], [1], [0, 0, 1, 1], [], []>} : vector<2x33xbf16>, vector<33x33xbf16>, vector<2x33xf32> -> vector<2x33xf32>
    %988 = math.tanh %987 : vector<2x33xf32>
    %cst_331 = arith.constant 0.00999999977 : f32
    %989 = vector.broadcast %cst_331 : f32 to vector<2x33xf32>
    %990 = arith.mulf %989, %988 : vector<2x33xf32>
    %991 = arith.addf %985, %990 : vector<2x33xf32>
    %c165_i32 = arith.constant 165 : i32
    %992 = arith.truncf %991 : vector<2x33xf32> to vector<2x33xbf16>
    %cst_332 = arith.constant dense<0.000000e+00> : vector<2x33xf32>
    %993 = tpu.matmul %992, %0, %cst_332 {dimension_numbers = #tpu.dot_dimension_numbers<[1], [0], [0], [1], [0, 0, 1, 1], [], []>} : vector<2x33xbf16>, vector<33x33xbf16>, vector<2x33xf32> -> vector<2x33xf32>
    %994 = math.tanh %993 : vector<2x33xf32>
    %cst_333 = arith.constant 0.00999999977 : f32
    %995 = vector.broadcast %cst_333 : f32 to vector<2x33xf32>
    %996 = arith.mulf %995, %994 : vector<2x33xf32>
    %997 = arith.addf %991, %996 : vector<2x33xf32>
    %c166_i32 = arith.constant 166 : i32
    %998 = arith.truncf %997 : vector<2x33xf32> to vector<2x33xbf16>
    %cst_334 = arith.constant dense<0.000000e+00> : vector<2x33xf32>
    %999 = tpu.matmul %998, %0, %cst_334 {dimension_numbers = #tpu.dot_dimension_numbers<[1], [0], [0], [1], [0, 0, 1, 1], [], []>} : vector<2x33xbf16>, vector<33x33xbf16>, vector<2x33xf32> -> vector<2x33xf32>
    %1000 = math.tanh %999 : vector<2x33xf32>
    %cst_335 = arith.constant 0.00999999977 : f32
    %1001 = vector.broadcast %cst_335 : f32 to vector<2x33xf32>
    %1002 = arith.mulf %1001, %1000 : vector<2x33xf32>
    %1003 = arith.addf %997, %1002 : vector<2x33xf32>
    %c167_i32 = arith.constant 167 : i32
    %1004 = arith.truncf %1003 : vector<2x33xf32> to vector<2x33xbf16>
    %cst_336 = arith.constant dense<0.000000e+00> : vector<2x33xf32>
    %1005 = tpu.matmul %1004, %0, %cst_336 {dimension_numbers = #tpu.dot_dimension_numbers<[1], [0], [0], [1], [0, 0, 1, 1], [], []>} : vector<2x33xbf16>, vector<33x33xbf16>, vector<2x33xf32> -> vector<2x33xf32>
    %1006 = math.tanh %1005 : vector<2x33xf32>
    %cst_337 = arith.constant 0.00999999977 : f32
    %1007 = vector.broadcast %cst_337 : f32 to vector<2x33xf32>
    %1008 = arith.mulf %1007, %1006 : vector<2x33xf32>
    %1009 = arith.addf %1003, %1008 : vector<2x33xf32>
    %c168_i32 = arith.constant 168 : i32
    %1010 = arith.truncf %1009 : vector<2x33xf32> to vector<2x33xbf16>
    %cst_338 = arith.constant dense<0.000000e+00> : vector<2x33xf32>
    %1011 = tpu.matmul %1010, %0, %cst_338 {dimension_numbers = #tpu.dot_dimension_numbers<[1], [0], [0], [1], [0, 0, 1, 1], [], []>} : vector<2x33xbf16>, vector<33x33xbf16>, vector<2x33xf32> -> vector<2x33xf32>
    %1012 = math.tanh %1011 : vector<2x33xf32>
    %cst_339 = arith.constant 0.00999999977 : f32
    %1013 = vector.broadcast %cst_339 : f32 to vector<2x33xf32>
    %1014 = arith.mulf %1013, %1012 : vector<2x33xf32>
    %1015 = arith.addf %1009, %1014 : vector<2x33xf32>
    %c169_i32 = arith.constant 169 : i32
    %1016 = arith.truncf %1015 : vector<2x33xf32> to vector<2x33xbf16>
    %cst_340 = arith.constant dense<0.000000e+00> : vector<2x33xf32>
    %1017 = tpu.matmul %1016, %0, %cst_340 {dimension_numbers = #tpu.dot_dimension_numbers<[1], [0], [0], [1], [0, 0, 1, 1], [], []>} : vector<2x33xbf16>, vector<33x33xbf16>, vector<2x33xf32> -> vector<2x33xf32>
    %1018 = math.tanh %1017 : vector<2x33xf32>
    %cst_341 = arith.constant 0.00999999977 : f32
    %1019 = vector.broadcast %cst_341 : f32 to vector<2x33xf32>
    %1020 = arith.mulf %1019, %1018 : vector<2x33xf32>
    %1021 = arith.addf %1015, %1020 : vector<2x33xf32>
    %c170_i32 = arith.constant 170 : i32
    %1022 = arith.truncf %1021 : vector<2x33xf32> to vector<2x33xbf16>
    %cst_342 = arith.constant dense<0.000000e+00> : vector<2x33xf32>
    %1023 = tpu.matmul %1022, %0, %cst_342 {dimension_numbers = #tpu.dot_dimension_numbers<[1], [0], [0], [1], [0, 0, 1, 1], [], []>} : vector<2x33xbf16>, vector<33x33xbf16>, vector<2x33xf32> -> vector<2x33xf32>
    %1024 = math.tanh %1023 : vector<2x33xf32>
    %cst_343 = arith.constant 0.00999999977 : f32
    %1025 = vector.broadcast %cst_343 : f32 to vector<2x33xf32>
    %1026 = arith.mulf %1025, %1024 : vector<2x33xf32>
    %1027 = arith.addf %1021, %1026 : vector<2x33xf32>
    %c171_i32 = arith.constant 171 : i32
    %1028 = arith.truncf %1027 : vector<2x33xf32> to vector<2x33xbf16>
    %cst_344 = arith.constant dense<0.000000e+00> : vector<2x33xf32>
    %1029 = tpu.matmul %1028, %0, %cst_344 {dimension_numbers = #tpu.dot_dimension_numbers<[1], [0], [0], [1], [0, 0, 1, 1], [], []>} : vector<2x33xbf16>, vector<33x33xbf16>, vector<2x33xf32> -> vector<2x33xf32>
    %1030 = math.tanh %1029 : vector<2x33xf32>
    %cst_345 = arith.constant 0.00999999977 : f32
    %1031 = vector.broadcast %cst_345 : f32 to vector<2x33xf32>
    %1032 = arith.mulf %1031, %1030 : vector<2x33xf32>
    %1033 = arith.addf %1027, %1032 : vector<2x33xf32>
    %c172_i32 = arith.constant 172 : i32
    %1034 = arith.truncf %1033 : vector<2x33xf32> to vector<2x33xbf16>
    %cst_346 = arith.constant dense<0.000000e+00> : vector<2x33xf32>
    %1035 = tpu.matmul %1034, %0, %cst_346 {dimension_numbers = #tpu.dot_dimension_numbers<[1], [0], [0], [1], [0, 0, 1, 1], [], []>} : vector<2x33xbf16>, vector<33x33xbf16>, vector<2x33xf32> -> vector<2x33xf32>
    %1036 = math.tanh %1035 : vector<2x33xf32>
    %cst_347 = arith.constant 0.00999999977 : f32
    %1037 = vector.broadcast %cst_347 : f32 to vector<2x33xf32>
    %1038 = arith.mulf %1037, %1036 : vector<2x33xf32>
    %1039 = arith.addf %1033, %1038 : vector<2x33xf32>
    %c173_i32 = arith.constant 173 : i32
    %1040 = arith.truncf %1039 : vector<2x33xf32> to vector<2x33xbf16>
    %cst_348 = arith.constant dense<0.000000e+00> : vector<2x33xf32>
    %1041 = tpu.matmul %1040, %0, %cst_348 {dimension_numbers = #tpu.dot_dimension_numbers<[1], [0], [0], [1], [0, 0, 1, 1], [], []>} : vector<2x33xbf16>, vector<33x33xbf16>, vector<2x33xf32> -> vector<2x33xf32>
    %1042 = math.tanh %1041 : vector<2x33xf32>
    %cst_349 = arith.constant 0.00999999977 : f32
    %1043 = vector.broadcast %cst_349 : f32 to vector<2x33xf32>
    %1044 = arith.mulf %1043, %1042 : vector<2x33xf32>
    %1045 = arith.addf %1039, %1044 : vector<2x33xf32>
    %c174_i32 = arith.constant 174 : i32
    %1046 = arith.truncf %1045 : vector<2x33xf32> to vector<2x33xbf16>
    %cst_350 = arith.constant dense<0.000000e+00> : vector<2x33xf32>
    %1047 = tpu.matmul %1046, %0, %cst_350 {dimension_numbers = #tpu.dot_dimension_numbers<[1], [0], [0], [1], [0, 0, 1, 1], [], []>} : vector<2x33xbf16>, vector<33x33xbf16>, vector<2x33xf32> -> vector<2x33xf32>
    %1048 = math.tanh %1047 : vector<2x33xf32>
    %cst_351 = arith.constant 0.00999999977 : f32
    %1049 = vector.broadcast %cst_351 : f32 to vector<2x33xf32>
    %1050 = arith.mulf %1049, %1048 : vector<2x33xf32>
    %1051 = arith.addf %1045, %1050 : vector<2x33xf32>
    %c175_i32 = arith.constant 175 : i32
    %1052 = arith.truncf %1051 : vector<2x33xf32> to vector<2x33xbf16>
    %cst_352 = arith.constant dense<0.000000e+00> : vector<2x33xf32>
    %1053 = tpu.matmul %1052, %0, %cst_352 {dimension_numbers = #tpu.dot_dimension_numbers<[1], [0], [0], [1], [0, 0, 1, 1], [], []>} : vector<2x33xbf16>, vector<33x33xbf16>, vector<2x33xf32> -> vector<2x33xf32>
    %1054 = math.tanh %1053 : vector<2x33xf32>
    %cst_353 = arith.constant 0.00999999977 : f32
    %1055 = vector.broadcast %cst_353 : f32 to vector<2x33xf32>
    %1056 = arith.mulf %1055, %1054 : vector<2x33xf32>
    %1057 = arith.addf %1051, %1056 : vector<2x33xf32>
    %c176_i32 = arith.constant 176 : i32
    %1058 = arith.truncf %1057 : vector<2x33xf32> to vector<2x33xbf16>
    %cst_354 = arith.constant dense<0.000000e+00> : vector<2x33xf32>
    %1059 = tpu.matmul %1058, %0, %cst_354 {dimension_numbers = #tpu.dot_dimension_numbers<[1], [0], [0], [1], [0, 0, 1, 1], [], []>} : vector<2x33xbf16>, vector<33x33xbf16>, vector<2x33xf32> -> vector<2x33xf32>
    %1060 = math.tanh %1059 : vector<2x33xf32>
    %cst_355 = arith.constant 0.00999999977 : f32
    %1061 = vector.broadcast %cst_355 : f32 to vector<2x33xf32>
    %1062 = arith.mulf %1061, %1060 : vector<2x33xf32>
    %1063 = arith.addf %1057, %1062 : vector<2x33xf32>
    %c177_i32 = arith.constant 177 : i32
    %1064 = arith.truncf %1063 : vector<2x33xf32> to vector<2x33xbf16>
    %cst_356 = arith.constant dense<0.000000e+00> : vector<2x33xf32>
    %1065 = tpu.matmul %1064, %0, %cst_356 {dimension_numbers = #tpu.dot_dimension_numbers<[1], [0], [0], [1], [0, 0, 1, 1], [], []>} : vector<2x33xbf16>, vector<33x33xbf16>, vector<2x33xf32> -> vector<2x33xf32>
    %1066 = math.tanh %1065 : vector<2x33xf32>
    %cst_357 = arith.constant 0.00999999977 : f32
    %1067 = vector.broadcast %cst_357 : f32 to vector<2x33xf32>
    %1068 = arith.mulf %1067, %1066 : vector<2x33xf32>
    %1069 = arith.addf %1063, %1068 : vector<2x33xf32>
    %c178_i32 = arith.constant 178 : i32
    %1070 = arith.truncf %1069 : vector<2x33xf32> to vector<2x33xbf16>
    %cst_358 = arith.constant dense<0.000000e+00> : vector<2x33xf32>
    %1071 = tpu.matmul %1070, %0, %cst_358 {dimension_numbers = #tpu.dot_dimension_numbers<[1], [0], [0], [1], [0, 0, 1, 1], [], []>} : vector<2x33xbf16>, vector<33x33xbf16>, vector<2x33xf32> -> vector<2x33xf32>
    %1072 = math.tanh %1071 : vector<2x33xf32>
    %cst_359 = arith.constant 0.00999999977 : f32
    %1073 = vector.broadcast %cst_359 : f32 to vector<2x33xf32>
    %1074 = arith.mulf %1073, %1072 : vector<2x33xf32>
    %1075 = arith.addf %1069, %1074 : vector<2x33xf32>
    %c179_i32 = arith.constant 179 : i32
    %1076 = arith.truncf %1075 : vector<2x33xf32> to vector<2x33xbf16>
    %cst_360 = arith.constant dense<0.000000e+00> : vector<2x33xf32>
    %1077 = tpu.matmul %1076, %0, %cst_360 {dimension_numbers = #tpu.dot_dimension_numbers<[1], [0], [0], [1], [0, 0, 1, 1], [], []>} : vector<2x33xbf16>, vector<33x33xbf16>, vector<2x33xf32> -> vector<2x33xf32>
    %1078 = math.tanh %1077 : vector<2x33xf32>
    %cst_361 = arith.constant 0.00999999977 : f32
    %1079 = vector.broadcast %cst_361 : f32 to vector<2x33xf32>
    %1080 = arith.mulf %1079, %1078 : vector<2x33xf32>
    %1081 = arith.addf %1075, %1080 : vector<2x33xf32>
    %c180_i32 = arith.constant 180 : i32
    %1082 = arith.truncf %1081 : vector<2x33xf32> to vector<2x33xbf16>
    %cst_362 = arith.constant dense<0.000000e+00> : vector<2x33xf32>
    %1083 = tpu.matmul %1082, %0, %cst_362 {dimension_numbers = #tpu.dot_dimension_numbers<[1], [0], [0], [1], [0, 0, 1, 1], [], []>} : vector<2x33xbf16>, vector<33x33xbf16>, vector<2x33xf32> -> vector<2x33xf32>
    %1084 = math.tanh %1083 : vector<2x33xf32>
    %cst_363 = arith.constant 0.00999999977 : f32
    %1085 = vector.broadcast %cst_363 : f32 to vector<2x33xf32>
    %1086 = arith.mulf %1085, %1084 : vector<2x33xf32>
    %1087 = arith.addf %1081, %1086 : vector<2x33xf32>
    %c181_i32 = arith.constant 181 : i32
    %1088 = arith.truncf %1087 : vector<2x33xf32> to vector<2x33xbf16>
    %cst_364 = arith.constant dense<0.000000e+00> : vector<2x33xf32>
    %1089 = tpu.matmul %1088, %0, %cst_364 {dimension_numbers = #tpu.dot_dimension_numbers<[1], [0], [0], [1], [0, 0, 1, 1], [], []>} : vector<2x33xbf16>, vector<33x33xbf16>, vector<2x33xf32> -> vector<2x33xf32>
    %1090 = math.tanh %1089 : vector<2x33xf32>
    %cst_365 = arith.constant 0.00999999977 : f32
    %1091 = vector.broadcast %cst_365 : f32 to vector<2x33xf32>
    %1092 = arith.mulf %1091, %1090 : vector<2x33xf32>
    %1093 = arith.addf %1087, %1092 : vector<2x33xf32>
    %c182_i32 = arith.constant 182 : i32
    %1094 = arith.truncf %1093 : vector<2x33xf32> to vector<2x33xbf16>
    %cst_366 = arith.constant dense<0.000000e+00> : vector<2x33xf32>
    %1095 = tpu.matmul %1094, %0, %cst_366 {dimension_numbers = #tpu.dot_dimension_numbers<[1], [0], [0], [1], [0, 0, 1, 1], [], []>} : vector<2x33xbf16>, vector<33x33xbf16>, vector<2x33xf32> -> vector<2x33xf32>
    %1096 = math.tanh %1095 : vector<2x33xf32>
    %cst_367 = arith.constant 0.00999999977 : f32
    %1097 = vector.broadcast %cst_367 : f32 to vector<2x33xf32>
    %1098 = arith.mulf %1097, %1096 : vector<2x33xf32>
    %1099 = arith.addf %1093, %1098 : vector<2x33xf32>
    %c183_i32 = arith.constant 183 : i32
    %1100 = arith.truncf %1099 : vector<2x33xf32> to vector<2x33xbf16>
    %cst_368 = arith.constant dense<0.000000e+00> : vector<2x33xf32>
    %1101 = tpu.matmul %1100, %0, %cst_368 {dimension_numbers = #tpu.dot_dimension_numbers<[1], [0], [0], [1], [0, 0, 1, 1], [], []>} : vector<2x33xbf16>, vector<33x33xbf16>, vector<2x33xf32> -> vector<2x33xf32>
    %1102 = math.tanh %1101 : vector<2x33xf32>
    %cst_369 = arith.constant 0.00999999977 : f32
    %1103 = vector.broadcast %cst_369 : f32 to vector<2x33xf32>
    %1104 = arith.mulf %1103, %1102 : vector<2x33xf32>
    %1105 = arith.addf %1099, %1104 : vector<2x33xf32>
    %c184_i32 = arith.constant 184 : i32
    %1106 = arith.truncf %1105 : vector<2x33xf32> to vector<2x33xbf16>
    %cst_370 = arith.constant dense<0.000000e+00> : vector<2x33xf32>
    %1107 = tpu.matmul %1106, %0, %cst_370 {dimension_numbers = #tpu.dot_dimension_numbers<[1], [0], [0], [1], [0, 0, 1, 1], [], []>} : vector<2x33xbf16>, vector<33x33xbf16>, vector<2x33xf32> -> vector<2x33xf32>
    %1108 = math.tanh %1107 : vector<2x33xf32>
    %cst_371 = arith.constant 0.00999999977 : f32
    %1109 = vector.broadcast %cst_371 : f32 to vector<2x33xf32>
    %1110 = arith.mulf %1109, %1108 : vector<2x33xf32>
    %1111 = arith.addf %1105, %1110 : vector<2x33xf32>
    %c185_i32 = arith.constant 185 : i32
    %1112 = arith.truncf %1111 : vector<2x33xf32> to vector<2x33xbf16>
    %cst_372 = arith.constant dense<0.000000e+00> : vector<2x33xf32>
    %1113 = tpu.matmul %1112, %0, %cst_372 {dimension_numbers = #tpu.dot_dimension_numbers<[1], [0], [0], [1], [0, 0, 1, 1], [], []>} : vector<2x33xbf16>, vector<33x33xbf16>, vector<2x33xf32> -> vector<2x33xf32>
    %1114 = math.tanh %1113 : vector<2x33xf32>
    %cst_373 = arith.constant 0.00999999977 : f32
    %1115 = vector.broadcast %cst_373 : f32 to vector<2x33xf32>
    %1116 = arith.mulf %1115, %1114 : vector<2x33xf32>
    %1117 = arith.addf %1111, %1116 : vector<2x33xf32>
    %c186_i32 = arith.constant 186 : i32
    %1118 = arith.truncf %1117 : vector<2x33xf32> to vector<2x33xbf16>
    %cst_374 = arith.constant dense<0.000000e+00> : vector<2x33xf32>
    %1119 = tpu.matmul %1118, %0, %cst_374 {dimension_numbers = #tpu.dot_dimension_numbers<[1], [0], [0], [1], [0, 0, 1, 1], [], []>} : vector<2x33xbf16>, vector<33x33xbf16>, vector<2x33xf32> -> vector<2x33xf32>
    %1120 = math.tanh %1119 : vector<2x33xf32>
    %cst_375 = arith.constant 0.00999999977 : f32
    %1121 = vector.broadcast %cst_375 : f32 to vector<2x33xf32>
    %1122 = arith.mulf %1121, %1120 : vector<2x33xf32>
    %1123 = arith.addf %1117, %1122 : vector<2x33xf32>
    %c187_i32 = arith.constant 187 : i32
    %1124 = arith.truncf %1123 : vector<2x33xf32> to vector<2x33xbf16>
    %cst_376 = arith.constant dense<0.000000e+00> : vector<2x33xf32>
    %1125 = tpu.matmul %1124, %0, %cst_376 {dimension_numbers = #tpu.dot_dimension_numbers<[1], [0], [0], [1], [0, 0, 1, 1], [], []>} : vector<2x33xbf16>, vector<33x33xbf16>, vector<2x33xf32> -> vector<2x33xf32>
    %1126 = math.tanh %1125 : vector<2x33xf32>
    %cst_377 = arith.constant 0.00999999977 : f32
    %1127 = vector.broadcast %cst_377 : f32 to vector<2x33xf32>
    %1128 = arith.mulf %1127, %1126 : vector<2x33xf32>
    %1129 = arith.addf %1123, %1128 : vector<2x33xf32>
    %c188_i32 = arith.constant 188 : i32
    %1130 = arith.truncf %1129 : vector<2x33xf32> to vector<2x33xbf16>
    %cst_378 = arith.constant dense<0.000000e+00> : vector<2x33xf32>
    %1131 = tpu.matmul %1130, %0, %cst_378 {dimension_numbers = #tpu.dot_dimension_numbers<[1], [0], [0], [1], [0, 0, 1, 1], [], []>} : vector<2x33xbf16>, vector<33x33xbf16>, vector<2x33xf32> -> vector<2x33xf32>
    %1132 = math.tanh %1131 : vector<2x33xf32>
    %cst_379 = arith.constant 0.00999999977 : f32
    %1133 = vector.broadcast %cst_379 : f32 to vector<2x33xf32>
    %1134 = arith.mulf %1133, %1132 : vector<2x33xf32>
    %1135 = arith.addf %1129, %1134 : vector<2x33xf32>
    %c189_i32 = arith.constant 189 : i32
    %1136 = arith.truncf %1135 : vector<2x33xf32> to vector<2x33xbf16>
    %cst_380 = arith.constant dense<0.000000e+00> : vector<2x33xf32>
    %1137 = tpu.matmul %1136, %0, %cst_380 {dimension_numbers = #tpu.dot_dimension_numbers<[1], [0], [0], [1], [0, 0, 1, 1], [], []>} : vector<2x33xbf16>, vector<33x33xbf16>, vector<2x33xf32> -> vector<2x33xf32>
    %1138 = math.tanh %1137 : vector<2x33xf32>
    %cst_381 = arith.constant 0.00999999977 : f32
    %1139 = vector.broadcast %cst_381 : f32 to vector<2x33xf32>
    %1140 = arith.mulf %1139, %1138 : vector<2x33xf32>
    %1141 = arith.addf %1135, %1140 : vector<2x33xf32>
    %c190_i32 = arith.constant 190 : i32
    %1142 = arith.truncf %1141 : vector<2x33xf32> to vector<2x33xbf16>
    %cst_382 = arith.constant dense<0.000000e+00> : vector<2x33xf32>
    %1143 = tpu.matmul %1142, %0, %cst_382 {dimension_numbers = #tpu.dot_dimension_numbers<[1], [0], [0], [1], [0, 0, 1, 1], [], []>} : vector<2x33xbf16>, vector<33x33xbf16>, vector<2x33xf32> -> vector<2x33xf32>
    %1144 = math.tanh %1143 : vector<2x33xf32>
    %cst_383 = arith.constant 0.00999999977 : f32
    %1145 = vector.broadcast %cst_383 : f32 to vector<2x33xf32>
    %1146 = arith.mulf %1145, %1144 : vector<2x33xf32>
    %1147 = arith.addf %1141, %1146 : vector<2x33xf32>
    %c191_i32 = arith.constant 191 : i32
    %1148 = arith.truncf %1147 : vector<2x33xf32> to vector<2x33xbf16>
    %cst_384 = arith.constant dense<0.000000e+00> : vector<2x33xf32>
    %1149 = tpu.matmul %1148, %0, %cst_384 {dimension_numbers = #tpu.dot_dimension_numbers<[1], [0], [0], [1], [0, 0, 1, 1], [], []>} : vector<2x33xbf16>, vector<33x33xbf16>, vector<2x33xf32> -> vector<2x33xf32>
    %1150 = math.tanh %1149 : vector<2x33xf32>
    %cst_385 = arith.constant 0.00999999977 : f32
    %1151 = vector.broadcast %cst_385 : f32 to vector<2x33xf32>
    %1152 = arith.mulf %1151, %1150 : vector<2x33xf32>
    %1153 = arith.addf %1147, %1152 : vector<2x33xf32>
    %c192_i32 = arith.constant 192 : i32
    %1154 = arith.truncf %1153 : vector<2x33xf32> to vector<2x33xbf16>
    %cst_386 = arith.constant dense<0.000000e+00> : vector<2x33xf32>
    %1155 = tpu.matmul %1154, %0, %cst_386 {dimension_numbers = #tpu.dot_dimension_numbers<[1], [0], [0], [1], [0, 0, 1, 1], [], []>} : vector<2x33xbf16>, vector<33x33xbf16>, vector<2x33xf32> -> vector<2x33xf32>
    %1156 = math.tanh %1155 : vector<2x33xf32>
    %cst_387 = arith.constant 0.00999999977 : f32
    %1157 = vector.broadcast %cst_387 : f32 to vector<2x33xf32>
    %1158 = arith.mulf %1157, %1156 : vector<2x33xf32>
    %1159 = arith.addf %1153, %1158 : vector<2x33xf32>
    %c193_i32 = arith.constant 193 : i32
    %1160 = arith.truncf %1159 : vector<2x33xf32> to vector<2x33xbf16>
    %cst_388 = arith.constant dense<0.000000e+00> : vector<2x33xf32>
    %1161 = tpu.matmul %1160, %0, %cst_388 {dimension_numbers = #tpu.dot_dimension_numbers<[1], [0], [0], [1], [0, 0, 1, 1], [], []>} : vector<2x33xbf16>, vector<33x33xbf16>, vector<2x33xf32> -> vector<2x33xf32>
    %1162 = math.tanh %1161 : vector<2x33xf32>
    %cst_389 = arith.constant 0.00999999977 : f32
    %1163 = vector.broadcast %cst_389 : f32 to vector<2x33xf32>
    %1164 = arith.mulf %1163, %1162 : vector<2x33xf32>
    %1165 = arith.addf %1159, %1164 : vector<2x33xf32>
    %c194_i32 = arith.constant 194 : i32
    %1166 = arith.truncf %1165 : vector<2x33xf32> to vector<2x33xbf16>
    %cst_390 = arith.constant dense<0.000000e+00> : vector<2x33xf32>
    %1167 = tpu.matmul %1166, %0, %cst_390 {dimension_numbers = #tpu.dot_dimension_numbers<[1], [0], [0], [1], [0, 0, 1, 1], [], []>} : vector<2x33xbf16>, vector<33x33xbf16>, vector<2x33xf32> -> vector<2x33xf32>
    %1168 = math.tanh %1167 : vector<2x33xf32>
    %cst_391 = arith.constant 0.00999999977 : f32
    %1169 = vector.broadcast %cst_391 : f32 to vector<2x33xf32>
    %1170 = arith.mulf %1169, %1168 : vector<2x33xf32>
    %1171 = arith.addf %1165, %1170 : vector<2x33xf32>
    %c195_i32 = arith.constant 195 : i32
    %1172 = arith.truncf %1171 : vector<2x33xf32> to vector<2x33xbf16>
    %cst_392 = arith.constant dense<0.000000e+00> : vector<2x33xf32>
    %1173 = tpu.matmul %1172, %0, %cst_392 {dimension_numbers = #tpu.dot_dimension_numbers<[1], [0], [0], [1], [0, 0, 1, 1], [], []>} : vector<2x33xbf16>, vector<33x33xbf16>, vector<2x33xf32> -> vector<2x33xf32>
    %1174 = math.tanh %1173 : vector<2x33xf32>
    %cst_393 = arith.constant 0.00999999977 : f32
    %1175 = vector.broadcast %cst_393 : f32 to vector<2x33xf32>
    %1176 = arith.mulf %1175, %1174 : vector<2x33xf32>
    %1177 = arith.addf %1171, %1176 : vector<2x33xf32>
    %c196_i32 = arith.constant 196 : i32
    %1178 = arith.truncf %1177 : vector<2x33xf32> to vector<2x33xbf16>
    %cst_394 = arith.constant dense<0.000000e+00> : vector<2x33xf32>
    %1179 = tpu.matmul %1178, %0, %cst_394 {dimension_numbers = #tpu.dot_dimension_numbers<[1], [0], [0], [1], [0, 0, 1, 1], [], []>} : vector<2x33xbf16>, vector<33x33xbf16>, vector<2x33xf32> -> vector<2x33xf32>
    %1180 = math.tanh %1179 : vector<2x33xf32>
    %cst_395 = arith.constant 0.00999999977 : f32
    %1181 = vector.broadcast %cst_395 : f32 to vector<2x33xf32>
    %1182 = arith.mulf %1181, %1180 : vector<2x33xf32>
    %1183 = arith.addf %1177, %1182 : vector<2x33xf32>
    %c197_i32 = arith.constant 197 : i32
    %1184 = arith.truncf %1183 : vector<2x33xf32> to vector<2x33xbf16>
    %cst_396 = arith.constant dense<0.000000e+00> : vector<2x33xf32>
    %1185 = tpu.matmul %1184, %0, %cst_396 {dimension_numbers = #tpu.dot_dimension_numbers<[1], [0], [0], [1], [0, 0, 1, 1], [], []>} : vector<2x33xbf16>, vector<33x33xbf16>, vector<2x33xf32> -> vector<2x33xf32>
    %1186 = math.tanh %1185 : vector<2x33xf32>
    %cst_397 = arith.constant 0.00999999977 : f32
    %1187 = vector.broadcast %cst_397 : f32 to vector<2x33xf32>
    %1188 = arith.mulf %1187, %1186 : vector<2x33xf32>
    %1189 = arith.addf %1183, %1188 : vector<2x33xf32>
    %c198_i32 = arith.constant 198 : i32
    %1190 = arith.truncf %1189 : vector<2x33xf32> to vector<2x33xbf16>
    %cst_398 = arith.constant dense<0.000000e+00> : vector<2x33xf32>
    %1191 = tpu.matmul %1190, %0, %cst_398 {dimension_numbers = #tpu.dot_dimension_numbers<[1], [0], [0], [1], [0, 0, 1, 1], [], []>} : vector<2x33xbf16>, vector<33x33xbf16>, vector<2x33xf32> -> vector<2x33xf32>
    %1192 = math.tanh %1191 : vector<2x33xf32>
    %cst_399 = arith.constant 0.00999999977 : f32
    %1193 = vector.broadcast %cst_399 : f32 to vector<2x33xf32>
    %1194 = arith.mulf %1193, %1192 : vector<2x33xf32>
    %1195 = arith.addf %1189, %1194 : vector<2x33xf32>
    %c199_i32 = arith.constant 199 : i32
    %1196 = arith.truncf %1195 : vector<2x33xf32> to vector<2x33xbf16>
    %cst_400 = arith.constant dense<0.000000e+00> : vector<2x33xf32>
    %1197 = tpu.matmul %1196, %0, %cst_400 {dimension_numbers = #tpu.dot_dimension_numbers<[1], [0], [0], [1], [0, 0, 1, 1], [], []>} : vector<2x33xbf16>, vector<33x33xbf16>, vector<2x33xf32> -> vector<2x33xf32>
    %1198 = math.tanh %1197 : vector<2x33xf32>
    %cst_401 = arith.constant 0.00999999977 : f32
    %1199 = vector.broadcast %cst_401 : f32 to vector<2x33xf32>
    %1200 = arith.mulf %1199, %1198 : vector<2x33xf32>
    %1201 = arith.addf %1195, %1200 : vector<2x33xf32>
    %c0_402 = arith.constant 0 : index
    %c0_403 = arith.constant 0 : index
    %1202 = vector.load %arg3[%c0_402, %c0_403] : memref<2x33xf32, #tpu.memory_space<vmem>>, vector<2x33xf32>
    tpu.vector_store %arg3[%c0_402, %c0_403], %1201 {strides = array<i32>} : memref<2x33xf32, #tpu.memory_space<vmem>>, vector<2x33xf32>,
    return
  }
  func.func @transform_0(%arg0: i32) -> (i32, i32) {
    %c0_i32 = arith.constant 0 : i32
    %c0_i32_0 = arith.constant 0 : i32
    return %arg0, %c0_i32 : i32, i32
  }
  func.func @transform_1(%arg0: i32) -> (i32, i32) {
    %c0_i32 = arith.constant 0 : i32
    %c0_i32_0 = arith.constant 0 : i32
    %c0_i32_1 = arith.constant 0 : i32
    return %c0_i32, %c0_i32_0 : i32, i32
  }
  func.func @transform_2(%arg0: i32) -> (i32, i32) {
    %c0_i32 = arith.constant 0 : i32
    %c0_i32_0 = arith.constant 0 : i32
    return %arg0, %c0_i32 : i32, i32
  }
}

</mosaic_0001>

<bundles_post_ra>
// kernel: tpu_custom_call.1
= control target key start
LH: loop header
LB: loop body
LE: loop exit
PB: predicated region body
PF: predicated region fallthrough
CT: control target
= control target key end

     0   :  { %7 = vsyncpa [#allocation3], 0  ;;  %s14839_s0 = inlined_call_operand.hbm [shape: f32[2,33], index: 0, kind: input, shape index: {}]   ;;  %s14840_s1 = inlined_call_operand.hbm [shape: bf16[33,33], index: 1, kind: input, shape index: {}]   ;;  %s14841_s2 = inlined_call_operand.hbm [shape: f32[2,33], index: 2, kind: output, shape index: {}]  }
   0x1   :  { %8 = vsyncpa [#allocation6], 0 }
   0x2   :  { %9 = vsyncpa [#allocation4], 0  ;;  %s12977_s9 = smov [#allocation2]   ;;  %s12978_s11 = smov [#allocation5]  }
   0x3   :  { %s16_s10 = sshll.u32 %s12977_s9, 4  ;;  %s25_s12 = sshll.u32 %s12978_s11, 4  ;;  %s17_s10 = int_to_ptr.vmem [resolvable:$true] %s16_s10  ;;  %s26_s12 = int_to_ptr.vmem [resolvable:$true] %s25_s12 }
   0x4   :  { %s12919_s13 = scalar_lea.vmem %s17_s10, 32  ;;  %p12924_p1 = scmp.lt.s32.totalorder %s17_s10, %s17_s10 }
   0x5   :  { %p12920_p0 = scmp.ne.s32.totalorder %s17_s10, %s12919_s13  ;;  %p12925_p2 = scmp.lt.s32.totalorder %s12919_s13, %s12919_s13 }
   0x7   :  { %p12926_p3 = por %p12925_p2, %p12924_p1 }
   0x9   :  { %p12927_p4 = pnand %p12926_p3, %p12920_p0 }
   0xb   :  { %12930 = shalt.err (!%p12927_p4)
}
   0xc   :  { %19 = dma.hbm_to_vmem [thread:$0]  %s14839_s0, 32, %s17_s10, [#allocation3]  }
   0xd   :  { %s12939_s16 = scalar_lea.vmem %s26_s12, 320  ;;  %p12944_p6 = scmp.lt.s32.totalorder %s26_s12, %s26_s12 }
   0xe   :  { %p12940_p5 = scmp.ne.s32.totalorder %s26_s12, %s12939_s16  ;;  %p12945_p7 = scmp.lt.s32.totalorder %s12939_s16, %s12939_s16 }
  0x10   :  { %p12946_p8 = por %p12945_p7, %p12944_p6 }
  0x12   :  { %p12947_p9 = pnand %p12946_p8, %p12940_p5 }
  0x14   :  { %12950 = shalt.err (!%p12947_p9)
}
  0x15   :  { %s12979_s17 = smov 64   ;;  %s12980_s18 = smov 4  }
  0x16   :  { %31 = dma.hbm_to_vmem [thread:$0]  %s14840_s1, 320, %s26_s12, [#allocation6], %s12979_s17, %s12979_s17, %s12980_s18  }
  0x17   :  { %12971 = dma.done.wait [#allocation3], 32  }
  0x18   :  { %12972 = vsyncadd [#allocation3], 4294967264 }
  0x19   :  { %12973 = dma.done.wait [#allocation6], 320  }
  0x1a   :  { %12974 = vsyncadd [#allocation6], 4294966976  ;;  %v12981_v0 = vmov 0.0   ;;  %vm12982_vm0 = vmmov 0   ;;  %vm65_vm1 = vcmask 1040384   ;;  %v12983_v1 = vmov 0  }
  0x1b   :  { %10488 = vmatprep.subr.bf16.mxu0 %v12981_v0  ;;  %10494 = vmatprep.mubr.msk.bf16.mxu0 %vm12982_vm0, %v12981_v0  ;;  %v67_v2 = vsel %vm65_vm1, 65535, %v12983_v1  ;;  %v12498_v3 = vld [vmem:[#allocation5 + $0x10] ss:$0 sps:$4 sm:$0x11]   ;;  %v13014_v5 = vld [vmem:[#allocation5 + $0x8] sm:$0xff]   ;;  %v13020_v6 = vld [vmem:[#allocation5] sm:$0xff]  }
  0x1c   :  { %10498 = vmatprep.subr.bf16.mxu1 %v12981_v0  ;;  %10504 = vmatprep.mubr.msk.bf16.mxu1 %vm12982_vm0, %v12981_v0  ;;  %v13012_v4 = vand.u32 %v12498_v3, %v67_v2  ;;  %v44_v7 = vld [vmem:[#allocation2] sm:$0x3]  ;;  %vm61_vm2 = vcmask 269312   ;;  %s12984_s0 = smov [#allocation7]   ;;  %vm9467_vm3 = vcmask 263168  }
  0x1d   :  { %v45_v8 = vpack.c.bf16 %v44_v7, %v44_v7  ;;  %s9475_s1 = sshll.u32 %s12984_s0, 4  ;;  %s9476_s1 = int_to_ptr.vmem [resolvable:$true] %s9475_s1 }
  0x1e   :  { %10489 = vmatpush3.bf16.msra.mxu0 %v13012_v4  ;;  %10499 = vmatpush3.bf16.msra.mxu1 %v13012_v4  ;;  %s12951_s21 = scalar_lea.vmem %s9476_s1, 32  ;;  %p12956_p11 = scmp.lt.s32.totalorder %s9476_s1, %s9476_s1 }
  0x1f   :  { %10490 = vmatprep.subr.bf16.mxu0 %v12981_v0  ;;  %10500 = vmatprep.subr.bf16.mxu1 %v12981_v0  ;;  %p12952_p10 = scmp.ne.s32.totalorder %s9476_s1, %s12951_s21  ;;  %p12957_p12 = scmp.lt.s32.totalorder %s12951_s21, %s12951_s21 }
  0x21   :  { %p12958_p13 = por %p12957_p12, %p12956_p11 }
  0x22   :  { %10491 = vmatpush3.bf16.msra.mxu0 %v13014_v5  ;;  %10501 = vmatpush3.bf16.msra.mxu1 %v13014_v5 }
  0x23   :  { %10492 = vmatprep.subr.bf16.mxu0 %v12981_v0  ;;  %10502 = vmatprep.subr.bf16.mxu1 %v12981_v0  ;;  %p12959_p0 = pnand %p12958_p13, %p12952_p10 }
  0x26   :  { %10493 = vmatpush3.bf16.msra.mxu0 %v13020_v6  ;;  %10503 = vmatpush3.bf16.msra.mxu1 %v13020_v6 }
  0x27   :  { %10508 = vmatprep.subr.bf16.mxu0 %v12981_v0  ;;  %10518 = vmatprep.subr.bf16.mxu1 %v12981_v0 }
  0x29   :  { %10495 = vmatmul.mubr.msk.bf16.vlgmr.msra.gmra.mxu0 %vm61_vm2, %v45_v8 }
  0x2a   :  { %10509 = vmatpush3.bf16.msra.mxu0 %v13012_v4  ;;  %10514 = vmatprep.mubr.msk.bf16.mxu0 %vm12982_vm0, %v12981_v0 }
  0x2b   :  { %10510 = vmatprep.subr.bf16.mxu0 %v12981_v0 }
  0x2e   :  { %10511 = vmatpush3.bf16.msra.mxu0 %v13014_v5 }
  0x2f   :  { %10512 = vmatprep.subr.bf16.mxu0 %v12981_v0 }
  0x32   :  { %10513 = vmatpush3.bf16.msra.mxu0 %v13020_v6 }
  0x33   :  { %10528 = vmatprep.subr.bf16.mxu0 %v12981_v0 }
  0xe9   :  { %v105_v9 = vpop.f32.mrf.mxu0 }
  0xea   :  { %12499 = vtanh.f32 %v105_v9 }
  0xeb   :  { %v10496_v10 = vpop.f32.mrf.mxu0 }
  0xed   :  { %v108_v11 = vpop.f32.mrf.mxu0 }
  0xef   :  { %v10497_v12 = vpop.f32.mrf.mxu0 }
  0xf7   :  { %v12500_v13 = vpop.eup %12499 }
  0xf8   :  { %v112_v14 = vmul.f32 0.01, %v12500_v13 }
  0xfa   :  { %v113_v15 = vadd.f32 %v112_v14, %v44_v7 }
  0xfc   :  { %v114_v16 = vpack.c.bf16 %v113_v15, %v113_v15 }
  0xfe   :  { %10505 = vmatmul.mubr.msk.bf16.vlgmr.msra.gmra.mxu1 %vm61_vm2, %v114_v16 }
  0xff   :  { %10519 = vmatpush3.bf16.msra.mxu1 %v13012_v4  ;;  %10524 = vmatprep.mubr.msk.bf16.mxu1 %vm12982_vm0, %v12981_v0 }
 0x100   :  { %10520 = vmatprep.subr.bf16.mxu1 %v12981_v0 }
 0x103   :  { %10521 = vmatpush3.bf16.msra.mxu1 %v13014_v5 }
 0x104   :  { %10522 = vmatprep.subr.bf16.mxu1 %v12981_v0 }
 0x107   :  { %10523 = vmatpush3.bf16.msra.mxu1 %v13020_v6 }
 0x108   :  { %10538 = vmatprep.subr.bf16.mxu1 %v12981_v0 }
 0x1be   :  { %v152_v17 = vpop.f32.mrf.mxu1 }
 0x1bf   :  { %12501 = vtanh.f32 %v152_v17 }
 0x1c0   :  { %v10506_v18 = vpop.f32.mrf.mxu1 }
 0x1c2   :  { %v155_v19 = vpop.f32.mrf.mxu1 }
 0x1c4   :  { %v10507_v20 = vpop.f32.mrf.mxu1 }
 0x1cc   :  { %v12502_v21 = vpop.eup %12501 }
 0x1cd   :  { %v159_v22 = vmul.f32 0.01, %v12502_v21 }
 0x1cf   :  { %v160_v23 = vadd.f32 %v159_v22, %v113_v15 }
 0x1d1   :  { %v161_v24 = vpack.c.bf16 %v160_v23, %v160_v23 }
 0x1d3   :  { %10515 = vmatmul.mubr.msk.bf16.vlgmr.msra.gmra.mxu0 %vm61_vm2, %v161_v24 }
 0x1d4   :  { %10529 = vmatpush3.bf16.msra.mxu0 %v13012_v4  ;;  %10534 = vmatprep.mubr.msk.bf16.mxu0 %vm12982_vm0, %v12981_v0 }
 0x1d5   :  { %10530 = vmatprep.subr.bf16.mxu0 %v12981_v0 }
 0x1d8   :  { %10531 = vmatpush3.bf16.msra.mxu0 %v13014_v5 }
 0x1d9   :  { %10532 = vmatprep.subr.bf16.mxu0 %v12981_v0 }
 0x1dc   :  { %10533 = vmatpush3.bf16.msra.mxu0 %v13020_v6 }
 0x1dd   :  { %10548 = vmatprep.subr.bf16.mxu0 %v12981_v0 }
 0x293   :  { %v199_v25 = vpop.f32.mrf.mxu0 }
 0x294   :  { %12503 = vtanh.f32 %v199_v25 }
 0x295   :  { %v10516_v26 = vpop.f32.mrf.mxu0 }
 0x297   :  { %v202_v27 = vpop.f32.mrf.mxu0 }
 0x299   :  { %v10517_v28 = vpop.f32.mrf.mxu0 }
 0x2a1   :  { %v12504_v29 = vpop.eup %12503 }
 0x2a2   :  { %v206_v30 = vmul.f32 0.01, %v12504_v29 }
 0x2a4   :  { %v207_v31 = vadd.f32 %v206_v30, %v160_v23 }
 0x2a6   :  { %v208_v32 = vpack.c.bf16 %v207_v31, %v207_v31 }
 0x2a8   :  { %10525 = vmatmul.mubr.msk.bf16.vlgmr.msra.gmra.mxu1 %vm61_vm2, %v208_v32 }
 0x2a9   :  { %10539 = vmatpush3.bf16.msra.mxu1 %v13012_v4  ;;  %10544 = vmatprep.mubr.msk.bf16.mxu1 %vm12982_vm0, %v12981_v0 }
 0x2aa   :  { %10540 = vmatprep.subr.bf16.mxu1 %v12981_v0 }
 0x2ad   :  { %10541 = vmatpush3.bf16.msra.mxu1 %v13014_v5 }
 0x2ae   :  { %10542 = vmatprep.subr.bf16.mxu1 %v12981_v0 }
 0x2b1   :  { %10543 = vmatpush3.bf16.msra.mxu1 %v13020_v6 }
 0x2b2   :  { %10558 = vmatprep.subr.bf16.mxu1 %v12981_v0 }
 0x368   :  { %v246_v33 = vpop.f32.mrf.mxu1 }
 0x369   :  { %12505 = vtanh.f32 %v246_v33 }
 0x36a   :  { %v10526_v34 = vpop.f32.mrf.mxu1 }
 0x36c   :  { %v249_v35 = vpop.f32.mrf.mxu1 }
 0x36e   :  { %v10527_v36 = vpop.f32.mrf.mxu1 }
 0x376   :  { %v12506_v37 = vpop.eup %12505 }
 0x377   :  { %v253_v38 = vmul.f32 0.01, %v12506_v37 }
 0x379   :  { %v254_v39 = vadd.f32 %v253_v38, %v207_v31 }
 0x37b   :  { %v255_v40 = vpack.c.bf16 %v254_v39, %v254_v39 }
 0x37d   :  { %10535 = vmatmul.mubr.msk.bf16.vlgmr.msra.gmra.mxu0 %vm61_vm2, %v255_v40 }
 0x37e   :  { %10549 = vmatpush3.bf16.msra.mxu0 %v13012_v4  ;;  %10554 = vmatprep.mubr.msk.bf16.mxu0 %vm12982_vm0, %v12981_v0 }
 0x37f   :  { %10550 = vmatprep.subr.bf16.mxu0 %v12981_v0 }
 0x382   :  { %10551 = vmatpush3.bf16.msra.mxu0 %v13014_v5 }
 0x383   :  { %10552 = vmatprep.subr.bf16.mxu0 %v12981_v0 }
 0x386   :  { %10553 = vmatpush3.bf16.msra.mxu0 %v13020_v6 }
 0x387   :  { %10568 = vmatprep.subr.bf16.mxu0 %v12981_v0 }
 0x43d   :  { %v293_v41 = vpop.f32.mrf.mxu0 }
 0x43e   :  { %12507 = vtanh.f32 %v293_v41 }
 0x43f   :  { %v10536_v42 = vpop.f32.mrf.mxu0 }
 0x441   :  { %v296_v43 = vpop.f32.mrf.mxu0 }
 0x443   :  { %v10537_v44 = vpop.f32.mrf.mxu0 }
 0x44b   :  { %v12508_v45 = vpop.eup %12507 }
 0x44c   :  { %v300_v46 = vmul.f32 0.01, %v12508_v45 }
 0x44e   :  { %v301_v47 = vadd.f32 %v300_v46, %v254_v39 }
 0x450   :  { %v302_v48 = vpack.c.bf16 %v301_v47, %v301_v47 }
 0x452   :  { %10545 = vmatmul.mubr.msk.bf16.vlgmr.msra.gmra.mxu1 %vm61_vm2, %v302_v48 }
 0x453   :  { %10559 = vmatpush3.bf16.msra.mxu1 %v13012_v4  ;;  %10564 = vmatprep.mubr.msk.bf16.mxu1 %vm12982_vm0, %v12981_v0 }
 0x454   :  { %10560 = vmatprep.subr.bf16.mxu1 %v12981_v0 }
 0x457   :  { %10561 = vmatpush3.bf16.msra.mxu1 %v13014_v5 }
 0x458   :  { %10562 = vmatprep.subr.bf16.mxu1 %v12981_v0 }
 0x45b   :  { %10563 = vmatpush3.bf16.msra.mxu1 %v13020_v6 }
 0x45c   :  { %10578 = vmatprep.subr.bf16.mxu1 %v12981_v0 }
 0x512   :  { %v340_v49 = vpop.f32.mrf.mxu1 }
 0x513   :  { %12509 = vtanh.f32 %v340_v49 }
 0x514   :  { %v10546_v50 = vpop.f32.mrf.mxu1 }
 0x516   :  { %v343_v51 = vpop.f32.mrf.mxu1 }
 0x518   :  { %v10547_v52 = vpop.f32.mrf.mxu1 }
 0x520   :  { %v12510_v53 = vpop.eup %12509 }
 0x521   :  { %v347_v54 = vmul.f32 0.01, %v12510_v53 }
 0x523   :  { %v348_v55 = vadd.f32 %v347_v54, %v301_v47 }
 0x525   :  { %v349_v56 = vpack.c.bf16 %v348_v55, %v348_v55 }
 0x527   :  { %10555 = vmatmul.mubr.msk.bf16.vlgmr.msra.gmra.mxu0 %vm61_vm2, %v349_v56 }
 0x528   :  { %10569 = vmatpush3.bf16.msra.mxu0 %v13012_v4  ;;  %10574 = vmatprep.mubr.msk.bf16.mxu0 %vm12982_vm0, %v12981_v0 }
 0x529   :  { %10570 = vmatprep.subr.bf16.mxu0 %v12981_v0 }
 0x52c   :  { %10571 = vmatpush3.bf16.msra.mxu0 %v13014_v5 }
 0x52d   :  { %10572 = vmatprep.subr.bf16.mxu0 %v12981_v0 }
 0x530   :  { %10573 = vmatpush3.bf16.msra.mxu0 %v13020_v6 }
 0x531   :  { %10588 = vmatprep.subr.bf16.mxu0 %v12981_v0 }
 0x5e7   :  { %v387_v57 = vpop.f32.mrf.mxu0 }
 0x5e8   :  { %12511 = vtanh.f32 %v387_v57 }
 0x5e9   :  { %v10556_v58 = vpop.f32.mrf.mxu0 }
 0x5eb   :  { %v390_v59 = vpop.f32.mrf.mxu0 }
 0x5ed   :  { %v10557_v60 = vpop.f32.mrf.mxu0 }
 0x5f5   :  { %v12512_v61 = vpop.eup %12511 }
 0x5f6   :  { %v394_v62 = vmul.f32 0.01, %v12512_v61 }
 0x5f8   :  { %v395_v63 = vadd.f32 %v394_v62, %v348_v55 }
 0x5fa   :  { %v396_v1 = vpack.c.bf16 %v395_v63, %v395_v63 }
 0x5fc   :  { %10565 = vmatmul.mubr.msk.bf16.vlgmr.msra.gmra.mxu1 %vm61_vm2, %v396_v1 }
 0x5fd   :  { %10579 = vmatpush3.bf16.msra.mxu1 %v13012_v4  ;;  %10584 = vmatprep.mubr.msk.bf16.mxu1 %vm12982_vm0, %v12981_v0 }
 0x5fe   :  { %10580 = vmatprep.subr.bf16.mxu1 %v12981_v0 }
 0x601   :  { %10581 = vmatpush3.bf16.msra.mxu1 %v13014_v5 }
 0x602   :  { %10582 = vmatprep.subr.bf16.mxu1 %v12981_v0 }
 0x605   :  { %10583 = vmatpush3.bf16.msra.mxu1 %v13020_v6 }
 0x606   :  { %10598 = vmatprep.subr.bf16.mxu1 %v12981_v0 }
 0x6bc   :  { %v434_v2 = vpop.f32.mrf.mxu1 }
 0x6bd   :  { %12513 = vtanh.f32 %v434_v2 }
 0x6be   :  { %v10566_v3 = vpop.f32.mrf.mxu1 }
 0x6c0   :  { %v437_v7 = vpop.f32.mrf.mxu1 }
 0x6c2   :  { %v10567_v8 = vpop.f32.mrf.mxu1 }
 0x6ca   :  { %v12514_v9 = vpop.eup %12513 }
 0x6cb   :  { %v441_v10 = vmul.f32 0.01, %v12514_v9 }
 0x6cd   :  { %v442_v11 = vadd.f32 %v441_v10, %v395_v63 }
 0x6cf   :  { %v443_v12 = vpack.c.bf16 %v442_v11, %v442_v11 }
 0x6d1   :  { %10575 = vmatmul.mubr.msk.bf16.vlgmr.msra.gmra.mxu0 %vm61_vm2, %v443_v12 }
 0x6d2   :  { %10589 = vmatpush3.bf16.msra.mxu0 %v13012_v4  ;;  %10594 = vmatprep.mubr.msk.bf16.mxu0 %vm12982_vm0, %v12981_v0 }
 0x6d3   :  { %10590 = vmatprep.subr.bf16.mxu0 %v12981_v0 }
 0x6d6   :  { %10591 = vmatpush3.bf16.msra.mxu0 %v13014_v5 }
 0x6d7   :  { %10592 = vmatprep.subr.bf16.mxu0 %v12981_v0 }
 0x6da   :  { %10593 = vmatpush3.bf16.msra.mxu0 %v13020_v6 }
 0x6db   :  { %10608 = vmatprep.subr.bf16.mxu0 %v12981_v0 }
 0x791   :  { %v481_v13 = vpop.f32.mrf.mxu0 }
 0x792   :  { %12515 = vtanh.f32 %v481_v13 }
 0x793   :  { %v10576_v14 = vpop.f32.mrf.mxu0 }
 0x795   :  { %v484_v15 = vpop.f32.mrf.mxu0 }
 0x797   :  { %v10577_v16 = vpop.f32.mrf.mxu0 }
 0x79f   :  { %v12516_v17 = vpop.eup %12515 }
 0x7a0   :  { %v488_v18 = vmul.f32 0.01, %v12516_v17 }
 0x7a2   :  { %v489_v19 = vadd.f32 %v488_v18, %v442_v11 }
 0x7a4   :  { %v490_v20 = vpack.c.bf16 %v489_v19, %v489_v19 }
 0x7a6   :  { %10585 = vmatmul.mubr.msk.bf16.vlgmr.msra.gmra.mxu1 %vm61_vm2, %v490_v20 }
 0x7a7   :  { %10599 = vmatpush3.bf16.msra.mxu1 %v13012_v4  ;;  %10604 = vmatprep.mubr.msk.bf16.mxu1 %vm12982_vm0, %v12981_v0 }
 0x7a8   :  { %10600 = vmatprep.subr.bf16.mxu1 %v12981_v0 }
 0x7ab   :  { %10601 = vmatpush3.bf16.msra.mxu1 %v13014_v5 }
 0x7ac   :  { %10602 = vmatprep.subr.bf16.mxu1 %v12981_v0 }
 0x7af   :  { %10603 = vmatpush3.bf16.msra.mxu1 %v13020_v6 }
 0x7b0   :  { %10618 = vmatprep.subr.bf16.mxu1 %v12981_v0 }
 0x866   :  { %v528_v21 = vpop.f32.mrf.mxu1 }
 0x867   :  { %12517 = vtanh.f32 %v528_v21 }
 0x868   :  { %v10586_v22 = vpop.f32.mrf.mxu1 }
 0x86a   :  { %v531_v23 = vpop.f32.mrf.mxu1 }
 0x86c   :  { %v10587_v24 = vpop.f32.mrf.mxu1 }
 0x874   :  { %v12518_v25 = vpop.eup %12517 }
 0x875   :  { %v535_v26 = vmul.f32 0.01, %v12518_v25 }
 0x877   :  { %v536_v27 = vadd.f32 %v535_v26, %v489_v19 }
 0x879   :  { %v537_v28 = vpack.c.bf16 %v536_v27, %v536_v27 }
 0x87b   :  { %10595 = vmatmul.mubr.msk.bf16.vlgmr.msra.gmra.mxu0 %vm61_vm2, %v537_v28 }
 0x87c   :  { %10609 = vmatpush3.bf16.msra.mxu0 %v13012_v4  ;;  %10614 = vmatprep.mubr.msk.bf16.mxu0 %vm12982_vm0, %v12981_v0 }
 0x87d   :  { %10610 = vmatprep.subr.bf16.mxu0 %v12981_v0 }
 0x880   :  { %10611 = vmatpush3.bf16.msra.mxu0 %v13014_v5 }
 0x881   :  { %10612 = vmatprep.subr.bf16.mxu0 %v12981_v0 }
 0x884   :  { %10613 = vmatpush3.bf16.msra.mxu0 %v13020_v6 }
 0x885   :  { %10628 = vmatprep.subr.bf16.mxu0 %v12981_v0 }
 0x93b   :  { %v575_v29 = vpop.f32.mrf.mxu0 }
 0x93c   :  { %12519 = vtanh.f32 %v575_v29 }
 0x93d   :  { %v10596_v30 = vpop.f32.mrf.mxu0 }
 0x93f   :  { %v578_v31 = vpop.f32.mrf.mxu0 }
 0x941   :  { %v10597_v32 = vpop.f32.mrf.mxu0 }
 0x949   :  { %v12520_v33 = vpop.eup %12519 }
 0x94a   :  { %v582_v34 = vmul.f32 0.01, %v12520_v33 }
 0x94c   :  { %v583_v35 = vadd.f32 %v582_v34, %v536_v27 }
 0x94e   :  { %v584_v36 = vpack.c.bf16 %v583_v35, %v583_v35 }
 0x950   :  { %10605 = vmatmul.mubr.msk.bf16.vlgmr.msra.gmra.mxu1 %vm61_vm2, %v584_v36 }
 0x951   :  { %10619 = vmatpush3.bf16.msra.mxu1 %v13012_v4  ;;  %10624 = vmatprep.mubr.msk.bf16.mxu1 %vm12982_vm0, %v12981_v0 }
 0x952   :  { %10620 = vmatprep.subr.bf16.mxu1 %v12981_v0 }
 0x955   :  { %10621 = vmatpush3.bf16.msra.mxu1 %v13014_v5 }
 0x956   :  { %10622 = vmatprep.subr.bf16.mxu1 %v12981_v0 }
 0x959   :  { %10623 = vmatpush3.bf16.msra.mxu1 %v13020_v6 }
 0x95a   :  { %10638 = vmatprep.subr.bf16.mxu1 %v12981_v0 }
 0xa10   :  { %v622_v37 = vpop.f32.mrf.mxu1 }
 0xa11   :  { %12521 = vtanh.f32 %v622_v37 }
 0xa12   :  { %v10606_v38 = vpop.f32.mrf.mxu1 }
 0xa14   :  { %v625_v39 = vpop.f32.mrf.mxu1 }
 0xa16   :  { %v10607_v40 = vpop.f32.mrf.mxu1 }
 0xa1e   :  { %v12522_v41 = vpop.eup %12521 }
 0xa1f   :  { %v629_v42 = vmul.f32 0.01, %v12522_v41 }
 0xa21   :  { %v630_v43 = vadd.f32 %v629_v42, %v583_v35 }
 0xa23   :  { %v631_v44 = vpack.c.bf16 %v630_v43, %v630_v43 }
 0xa25   :  { %10615 = vmatmul.mubr.msk.bf16.vlgmr.msra.gmra.mxu0 %vm61_vm2, %v631_v44 }
 0xa26   :  { %10629 = vmatpush3.bf16.msra.mxu0 %v13012_v4  ;;  %10634 = vmatprep.mubr.msk.bf16.mxu0 %vm12982_vm0, %v12981_v0 }
 0xa27   :  { %10630 = vmatprep.subr.bf16.mxu0 %v12981_v0 }
 0xa2a   :  { %10631 = vmatpush3.bf16.msra.mxu0 %v13014_v5 }
 0xa2b   :  { %10632 = vmatprep.subr.bf16.mxu0 %v12981_v0 }
 0xa2e   :  { %10633 = vmatpush3.bf16.msra.mxu0 %v13020_v6 }
 0xa2f   :  { %10648 = vmatprep.subr.bf16.mxu0 %v12981_v0 }
 0xae5   :  { %v669_v45 = vpop.f32.mrf.mxu0 }
 0xae6   :  { %12523 = vtanh.f32 %v669_v45 }
 0xae7   :  { %v10616_v46 = vpop.f32.mrf.mxu0 }
 0xae9   :  { %v672_v47 = vpop.f32.mrf.mxu0 }
 0xaeb   :  { %v10617_v48 = vpop.f32.mrf.mxu0 }
 0xaf3   :  { %v12524_v49 = vpop.eup %12523 }
 0xaf4   :  { %v676_v50 = vmul.f32 0.01, %v12524_v49 }
 0xaf6   :  { %v677_v51 = vadd.f32 %v676_v50, %v630_v43 }
 0xaf8   :  { %v678_v52 = vpack.c.bf16 %v677_v51, %v677_v51 }
 0xafa   :  { %10625 = vmatmul.mubr.msk.bf16.vlgmr.msra.gmra.mxu1 %vm61_vm2, %v678_v52 }
 0xafb   :  { %10639 = vmatpush3.bf16.msra.mxu1 %v13012_v4  ;;  %10644 = vmatprep.mubr.msk.bf16.mxu1 %vm12982_vm0, %v12981_v0 }
 0xafc   :  { %10640 = vmatprep.subr.bf16.mxu1 %v12981_v0 }
 0xaff   :  { %10641 = vmatpush3.bf16.msra.mxu1 %v13014_v5 }
 0xb00   :  { %10642 = vmatprep.subr.bf16.mxu1 %v12981_v0 }
 0xb03   :  { %10643 = vmatpush3.bf16.msra.mxu1 %v13020_v6 }
 0xb04   :  { %10658 = vmatprep.subr.bf16.mxu1 %v12981_v0 }
 0xbba   :  { %v716_v53 = vpop.f32.mrf.mxu1 }
 0xbbb   :  { %12525 = vtanh.f32 %v716_v53 }
 0xbbc   :  { %v10626_v54 = vpop.f32.mrf.mxu1 }
 0xbbe   :  { %v719_v55 = vpop.f32.mrf.mxu1 }
 0xbc0   :  { %v10627_v56 = vpop.f32.mrf.mxu1 }
 0xbc8   :  { %v12526_v57 = vpop.eup %12525 }
 0xbc9   :  { %v723_v58 = vmul.f32 0.01, %v12526_v57 }
 0xbcb   :  { %v724_v59 = vadd.f32 %v723_v58, %v677_v51 }
 0xbcd   :  { %v725_v60 = vpack.c.bf16 %v724_v59, %v724_v59 }
 0xbcf   :  { %10635 = vmatmul.mubr.msk.bf16.vlgmr.msra.gmra.mxu0 %vm61_vm2, %v725_v60 }
 0xbd0   :  { %10649 = vmatpush3.bf16.msra.mxu0 %v13012_v4  ;;  %10654 = vmatprep.mubr.msk.bf16.mxu0 %vm12982_vm0, %v12981_v0 }
 0xbd1   :  { %10650 = vmatprep.subr.bf16.mxu0 %v12981_v0 }
 0xbd4   :  { %10651 = vmatpush3.bf16.msra.mxu0 %v13014_v5 }
 0xbd5   :  { %10652 = vmatprep.subr.bf16.mxu0 %v12981_v0 }
 0xbd8   :  { %10653 = vmatpush3.bf16.msra.mxu0 %v13020_v6 }
 0xbd9   :  { %10668 = vmatprep.subr.bf16.mxu0 %v12981_v0 }
 0xc8f   :  { %v763_v61 = vpop.f32.mrf.mxu0 }
 0xc90   :  { %12527 = vtanh.f32 %v763_v61 }
 0xc91   :  { %v10636_v62 = vpop.f32.mrf.mxu0 }
 0xc93   :  { %v766_v63 = vpop.f32.mrf.mxu0 }
 0xc95   :  { %v10637_v1 = vpop.f32.mrf.mxu0 }
 0xc9d   :  { %v12528_v2 = vpop.eup %12527 }
 0xc9e   :  { %v770_v3 = vmul.f32 0.01, %v12528_v2 }
 0xca0   :  { %v771_v7 = vadd.f32 %v770_v3, %v724_v59 }
 0xca2   :  { %v772_v8 = vpack.c.bf16 %v771_v7, %v771_v7 }
 0xca4   :  { %10645 = vmatmul.mubr.msk.bf16.vlgmr.msra.gmra.mxu1 %vm61_vm2, %v772_v8 }
 0xca5   :  { %10659 = vmatpush3.bf16.msra.mxu1 %v13012_v4  ;;  %10664 = vmatprep.mubr.msk.bf16.mxu1 %vm12982_vm0, %v12981_v0 }
 0xca6   :  { %10660 = vmatprep.subr.bf16.mxu1 %v12981_v0 }
 0xca9   :  { %10661 = vmatpush3.bf16.msra.mxu1 %v13014_v5 }
 0xcaa   :  { %10662 = vmatprep.subr.bf16.mxu1 %v12981_v0 }
 0xcad   :  { %10663 = vmatpush3.bf16.msra.mxu1 %v13020_v6 }
 0xcae   :  { %10678 = vmatprep.subr.bf16.mxu1 %v12981_v0 }
 0xd64   :  { %v810_v9 = vpop.f32.mrf.mxu1 }
 0xd65   :  { %12529 = vtanh.f32 %v810_v9 }
 0xd66   :  { %v10646_v10 = vpop.f32.mrf.mxu1 }
 0xd68   :  { %v813_v11 = vpop.f32.mrf.mxu1 }
 0xd6a   :  { %v10647_v12 = vpop.f32.mrf.mxu1 }
 0xd72   :  { %v12530_v13 = vpop.eup %12529 }
 0xd73   :  { %v817_v14 = vmul.f32 0.01, %v12530_v13 }
 0xd75   :  { %v818_v15 = vadd.f32 %v817_v14, %v771_v7 }
 0xd77   :  { %v819_v16 = vpack.c.bf16 %v818_v15, %v818_v15 }
 0xd79   :  { %10655 = vmatmul.mubr.msk.bf16.vlgmr.msra.gmra.mxu0 %vm61_vm2, %v819_v16 }
 0xd7a   :  { %10669 = vmatpush3.bf16.msra.mxu0 %v13012_v4  ;;  %10674 = vmatprep.mubr.msk.bf16.mxu0 %vm12982_vm0, %v12981_v0 }
 0xd7b   :  { %10670 = vmatprep.subr.bf16.mxu0 %v12981_v0 }
 0xd7e   :  { %10671 = vmatpush3.bf16.msra.mxu0 %v13014_v5 }
 0xd7f   :  { %10672 = vmatprep.subr.bf16.mxu0 %v12981_v0 }
 0xd82   :  { %10673 = vmatpush3.bf16.msra.mxu0 %v13020_v6 }
 0xd83   :  { %10688 = vmatprep.subr.bf16.mxu0 %v12981_v0 }
 0xe39   :  { %v857_v17 = vpop.f32.mrf.mxu0 }
 0xe3a   :  { %12531 = vtanh.f32 %v857_v17 }
 0xe3b   :  { %v10656_v18 = vpop.f32.mrf.mxu0 }
 0xe3d   :  { %v860_v19 = vpop.f32.mrf.mxu0 }
 0xe3f   :  { %v10657_v20 = vpop.f32.mrf.mxu0 }
 0xe47   :  { %v12532_v21 = vpop.eup %12531 }
 0xe48   :  { %v864_v22 = vmul.f32 0.01, %v12532_v21 }
 0xe4a   :  { %v865_v23 = vadd.f32 %v864_v22, %v818_v15 }
 0xe4c   :  { %v866_v24 = vpack.c.bf16 %v865_v23, %v865_v23 }
 0xe4e   :  { %10665 = vmatmul.mubr.msk.bf16.vlgmr.msra.gmra.mxu1 %vm61_vm2, %v866_v24 }
 0xe4f   :  { %10679 = vmatpush3.bf16.msra.mxu1 %v13012_v4  ;;  %10684 = vmatprep.mubr.msk.bf16.mxu1 %vm12982_vm0, %v12981_v0 }
 0xe50   :  { %10680 = vmatprep.subr.bf16.mxu1 %v12981_v0 }
 0xe53   :  { %10681 = vmatpush3.bf16.msra.mxu1 %v13014_v5 }
 0xe54   :  { %10682 = vmatprep.subr.bf16.mxu1 %v12981_v0 }
 0xe57   :  { %10683 = vmatpush3.bf16.msra.mxu1 %v13020_v6 }
 0xe58   :  { %10698 = vmatprep.subr.bf16.mxu1 %v12981_v0 }
 0xf0e   :  { %v904_v25 = vpop.f32.mrf.mxu1 }
 0xf0f   :  { %12533 = vtanh.f32 %v904_v25 }
 0xf10   :  { %v10666_v26 = vpop.f32.mrf.mxu1 }
 0xf12   :  { %v907_v27 = vpop.f32.mrf.mxu1 }
 0xf14   :  { %v10667_v28 = vpop.f32.mrf.mxu1 }
 0xf1c   :  { %v12534_v29 = vpop.eup %12533 }
 0xf1d   :  { %v911_v30 = vmul.f32 0.01, %v12534_v29 }
 0xf1f   :  { %v912_v31 = vadd.f32 %v911_v30, %v865_v23 }
 0xf21   :  { %v913_v32 = vpack.c.bf16 %v912_v31, %v912_v31 }
 0xf23   :  { %10675 = vmatmul.mubr.msk.bf16.vlgmr.msra.gmra.mxu0 %vm61_vm2, %v913_v32 }
 0xf24   :  { %10689 = vmatpush3.bf16.msra.mxu0 %v13012_v4  ;;  %10694 = vmatprep.mubr.msk.bf16.mxu0 %vm12982_vm0, %v12981_v0 }
 0xf25   :  { %10690 = vmatprep.subr.bf16.mxu0 %v12981_v0 }
 0xf28   :  { %10691 = vmatpush3.bf16.msra.mxu0 %v13014_v5 }
 0xf29   :  { %10692 = vmatprep.subr.bf16.mxu0 %v12981_v0 }
 0xf2c   :  { %10693 = vmatpush3.bf16.msra.mxu0 %v13020_v6 }
 0xf2d   :  { %10708 = vmatprep.subr.bf16.mxu0 %v12981_v0 }
 0xfe3   :  { %v951_v33 = vpop.f32.mrf.mxu0 }
 0xfe4   :  { %12535 = vtanh.f32 %v951_v33 }
 0xfe5   :  { %v10676_v34 = vpop.f32.mrf.mxu0 }
 0xfe7   :  { %v954_v35 = vpop.f32.mrf.mxu0 }
 0xfe9   :  { %v10677_v36 = vpop.f32.mrf.mxu0 }
 0xff1   :  { %v12536_v37 = vpop.eup %12535 }
 0xff2   :  { %v958_v38 = vmul.f32 0.01, %v12536_v37 }
 0xff4   :  { %v959_v39 = vadd.f32 %v958_v38, %v912_v31 }
 0xff6   :  { %v960_v40 = vpack.c.bf16 %v959_v39, %v959_v39 }
 0xff8   :  { %10685 = vmatmul.mubr.msk.bf16.vlgmr.msra.gmra.mxu1 %vm61_vm2, %v960_v40 }
 0xff9   :  { %10699 = vmatpush3.bf16.msra.mxu1 %v13012_v4  ;;  %10704 = vmatprep.mubr.msk.bf16.mxu1 %vm12982_vm0, %v12981_v0 }
 0xffa   :  { %10700 = vmatprep.subr.bf16.mxu1 %v12981_v0 }
 0xffd   :  { %10701 = vmatpush3.bf16.msra.mxu1 %v13014_v5 }
 0xffe   :  { %10702 = vmatprep.subr.bf16.mxu1 %v12981_v0 }
0x1001   :  { %10703 = vmatpush3.bf16.msra.mxu1 %v13020_v6 }
0x1002   :  { %10718 = vmatprep.subr.bf16.mxu1 %v12981_v0 }
0x10b8   :  { %v998_v41 = vpop.f32.mrf.mxu1 }
0x10b9   :  { %12537 = vtanh.f32 %v998_v41 }
0x10ba   :  { %v10686_v42 = vpop.f32.mrf.mxu1 }
0x10bc   :  { %v1001_v43 = vpop.f32.mrf.mxu1 }
0x10be   :  { %v10687_v44 = vpop.f32.mrf.mxu1 }
0x10c6   :  { %v12538_v45 = vpop.eup %12537 }
0x10c7   :  { %v1005_v46 = vmul.f32 0.01, %v12538_v45 }
0x10c9   :  { %v1006_v47 = vadd.f32 %v1005_v46, %v959_v39 }
0x10cb   :  { %v1007_v48 = vpack.c.bf16 %v1006_v47, %v1006_v47 }
0x10cd   :  { %10695 = vmatmul.mubr.msk.bf16.vlgmr.msra.gmra.mxu0 %vm61_vm2, %v1007_v48 }
0x10ce   :  { %10709 = vmatpush3.bf16.msra.mxu0 %v13012_v4  ;;  %10714 = vmatprep.mubr.msk.bf16.mxu0 %vm12982_vm0, %v12981_v0 }
0x10cf   :  { %10710 = vmatprep.subr.bf16.mxu0 %v12981_v0 }
0x10d2   :  { %10711 = vmatpush3.bf16.msra.mxu0 %v13014_v5 }
0x10d3   :  { %10712 = vmatprep.subr.bf16.mxu0 %v12981_v0 }
0x10d6   :  { %10713 = vmatpush3.bf16.msra.mxu0 %v13020_v6 }
0x10d7   :  { %10728 = vmatprep.subr.bf16.mxu0 %v12981_v0 }
0x118d   :  { %v1045_v49 = vpop.f32.mrf.mxu0 }
0x118e   :  { %12539 = vtanh.f32 %v1045_v49 }
0x118f   :  { %v10696_v50 = vpop.f32.mrf.mxu0 }
0x1191   :  { %v1048_v51 = vpop.f32.mrf.mxu0 }
0x1193   :  { %v10697_v52 = vpop.f32.mrf.mxu0 }
0x119b   :  { %v12540_v53 = vpop.eup %12539 }
0x119c   :  { %v1052_v54 = vmul.f32 0.01, %v12540_v53 }
0x119e   :  { %v1053_v55 = vadd.f32 %v1052_v54, %v1006_v47 }
0x11a0   :  { %v1054_v56 = vpack.c.bf16 %v1053_v55, %v1053_v55 }
0x11a2   :  { %10705 = vmatmul.mubr.msk.bf16.vlgmr.msra.gmra.mxu1 %vm61_vm2, %v1054_v56 }
0x11a3   :  { %10719 = vmatpush3.bf16.msra.mxu1 %v13012_v4  ;;  %10724 = vmatprep.mubr.msk.bf16.mxu1 %vm12982_vm0, %v12981_v0 }
0x11a4   :  { %10720 = vmatprep.subr.bf16.mxu1 %v12981_v0 }
0x11a7   :  { %10721 = vmatpush3.bf16.msra.mxu1 %v13014_v5 }
0x11a8   :  { %10722 = vmatprep.subr.bf16.mxu1 %v12981_v0 }
0x11ab   :  { %10723 = vmatpush3.bf16.msra.mxu1 %v13020_v6 }
0x11ac   :  { %10738 = vmatprep.subr.bf16.mxu1 %v12981_v0 }
0x1262   :  { %v1092_v57 = vpop.f32.mrf.mxu1 }
0x1263   :  { %12541 = vtanh.f32 %v1092_v57 }
0x1264   :  { %v10706_v58 = vpop.f32.mrf.mxu1 }
0x1266   :  { %v1095_v59 = vpop.f32.mrf.mxu1 }
0x1268   :  { %v10707_v60 = vpop.f32.mrf.mxu1 }
0x1270   :  { %v12542_v61 = vpop.eup %12541 }
0x1271   :  { %v1099_v62 = vmul.f32 0.01, %v12542_v61 }
0x1273   :  { %v1100_v63 = vadd.f32 %v1099_v62, %v1053_v55 }
0x1275   :  { %v1101_v1 = vpack.c.bf16 %v1100_v63, %v1100_v63 }
0x1277   :  { %10715 = vmatmul.mubr.msk.bf16.vlgmr.msra.gmra.mxu0 %vm61_vm2, %v1101_v1 }
0x1278   :  { %10729 = vmatpush3.bf16.msra.mxu0 %v13012_v4  ;;  %10734 = vmatprep.mubr.msk.bf16.mxu0 %vm12982_vm0, %v12981_v0 }
0x1279   :  { %10730 = vmatprep.subr.bf16.mxu0 %v12981_v0 }
0x127c   :  { %10731 = vmatpush3.bf16.msra.mxu0 %v13014_v5 }
0x127d   :  { %10732 = vmatprep.subr.bf16.mxu0 %v12981_v0 }
0x1280   :  { %10733 = vmatpush3.bf16.msra.mxu0 %v13020_v6 }
0x1281   :  { %10748 = vmatprep.subr.bf16.mxu0 %v12981_v0 }
0x1337   :  { %v1139_v2 = vpop.f32.mrf.mxu0 }
0x1338   :  { %12543 = vtanh.f32 %v1139_v2 }
0x1339   :  { %v10716_v3 = vpop.f32.mrf.mxu0 }
0x133b   :  { %v1142_v7 = vpop.f32.mrf.mxu0 }
0x133d   :  { %v10717_v8 = vpop.f32.mrf.mxu0 }
0x1345   :  { %v12544_v9 = vpop.eup %12543 }
0x1346   :  { %v1146_v10 = vmul.f32 0.01, %v12544_v9 }
0x1348   :  { %v1147_v11 = vadd.f32 %v1146_v10, %v1100_v63 }
0x134a   :  { %v1148_v12 = vpack.c.bf16 %v1147_v11, %v1147_v11 }
0x134c   :  { %10725 = vmatmul.mubr.msk.bf16.vlgmr.msra.gmra.mxu1 %vm61_vm2, %v1148_v12 }
0x134d   :  { %10739 = vmatpush3.bf16.msra.mxu1 %v13012_v4  ;;  %10744 = vmatprep.mubr.msk.bf16.mxu1 %vm12982_vm0, %v12981_v0 }
0x134e   :  { %10740 = vmatprep.subr.bf16.mxu1 %v12981_v0 }
0x1351   :  { %10741 = vmatpush3.bf16.msra.mxu1 %v13014_v5 }
0x1352   :  { %10742 = vmatprep.subr.bf16.mxu1 %v12981_v0 }
0x1355   :  { %10743 = vmatpush3.bf16.msra.mxu1 %v13020_v6 }
0x1356   :  { %10758 = vmatprep.subr.bf16.mxu1 %v12981_v0 }
0x140c   :  { %v1186_v13 = vpop.f32.mrf.mxu1 }
0x140d   :  { %12545 = vtanh.f32 %v1186_v13 }
0x140e   :  { %v10726_v14 = vpop.f32.mrf.mxu1 }
0x1410   :  { %v1189_v15 = vpop.f32.mrf.mxu1 }
0x1412   :  { %v10727_v16 = vpop.f32.mrf.mxu1 }
0x141a   :  { %v12546_v17 = vpop.eup %12545 }
0x141b   :  { %v1193_v18 = vmul.f32 0.01, %v12546_v17 }
0x141d   :  { %v1194_v19 = vadd.f32 %v1193_v18, %v1147_v11 }
0x141f   :  { %v1195_v20 = vpack.c.bf16 %v1194_v19, %v1194_v19 }
0x1421   :  { %10735 = vmatmul.mubr.msk.bf16.vlgmr.msra.gmra.mxu0 %vm61_vm2, %v1195_v20 }
0x1422   :  { %10749 = vmatpush3.bf16.msra.mxu0 %v13012_v4  ;;  %10754 = vmatprep.mubr.msk.bf16.mxu0 %vm12982_vm0, %v12981_v0 }
0x1423   :  { %10750 = vmatprep.subr.bf16.mxu0 %v12981_v0 }
0x1426   :  { %10751 = vmatpush3.bf16.msra.mxu0 %v13014_v5 }
0x1427   :  { %10752 = vmatprep.subr.bf16.mxu0 %v12981_v0 }
0x142a   :  { %10753 = vmatpush3.bf16.msra.mxu0 %v13020_v6 }
0x142b   :  { %10768 = vmatprep.subr.bf16.mxu0 %v12981_v0 }
0x14e1   :  { %v1233_v21 = vpop.f32.mrf.mxu0 }
0x14e2   :  { %12547 = vtanh.f32 %v1233_v21 }
0x14e3   :  { %v10736_v22 = vpop.f32.mrf.mxu0 }
0x14e5   :  { %v1236_v23 = vpop.f32.mrf.mxu0 }
0x14e7   :  { %v10737_v24 = vpop.f32.mrf.mxu0 }
0x14ef   :  { %v12548_v25 = vpop.eup %12547 }
0x14f0   :  { %v1240_v26 = vmul.f32 0.01, %v12548_v25 }
0x14f2   :  { %v1241_v27 = vadd.f32 %v1240_v26, %v1194_v19 }
0x14f4   :  { %v1242_v28 = vpack.c.bf16 %v1241_v27, %v1241_v27 }
0x14f6   :  { %10745 = vmatmul.mubr.msk.bf16.vlgmr.msra.gmra.mxu1 %vm61_vm2, %v1242_v28 }
0x14f7   :  { %10759 = vmatpush3.bf16.msra.mxu1 %v13012_v4  ;;  %10764 = vmatprep.mubr.msk.bf16.mxu1 %vm12982_vm0, %v12981_v0 }
0x14f8   :  { %10760 = vmatprep.subr.bf16.mxu1 %v12981_v0 }
0x14fb   :  { %10761 = vmatpush3.bf16.msra.mxu1 %v13014_v5 }
0x14fc   :  { %10762 = vmatprep.subr.bf16.mxu1 %v12981_v0 }
0x14ff   :  { %10763 = vmatpush3.bf16.msra.mxu1 %v13020_v6 }
0x1500   :  { %10778 = vmatprep.subr.bf16.mxu1 %v12981_v0 }
0x15b6   :  { %v1280_v29 = vpop.f32.mrf.mxu1 }
0x15b7   :  { %12549 = vtanh.f32 %v1280_v29 }
0x15b8   :  { %v10746_v30 = vpop.f32.mrf.mxu1 }
0x15ba   :  { %v1283_v31 = vpop.f32.mrf.mxu1 }
0x15bc   :  { %v10747_v32 = vpop.f32.mrf.mxu1 }
0x15c4   :  { %v12550_v33 = vpop.eup %12549 }
0x15c5   :  { %v1287_v34 = vmul.f32 0.01, %v12550_v33 }
0x15c7   :  { %v1288_v35 = vadd.f32 %v1287_v34, %v1241_v27 }
0x15c9   :  { %v1289_v36 = vpack.c.bf16 %v1288_v35, %v1288_v35 }
0x15cb   :  { %10755 = vmatmul.mubr.msk.bf16.vlgmr.msra.gmra.mxu0 %vm61_vm2, %v1289_v36 }
0x15cc   :  { %10769 = vmatpush3.bf16.msra.mxu0 %v13012_v4  ;;  %10774 = vmatprep.mubr.msk.bf16.mxu0 %vm12982_vm0, %v12981_v0 }
0x15cd   :  { %10770 = vmatprep.subr.bf16.mxu0 %v12981_v0 }
0x15d0   :  { %10771 = vmatpush3.bf16.msra.mxu0 %v13014_v5 }
0x15d1   :  { %10772 = vmatprep.subr.bf16.mxu0 %v12981_v0 }
0x15d4   :  { %10773 = vmatpush3.bf16.msra.mxu0 %v13020_v6 }
0x15d5   :  { %10788 = vmatprep.subr.bf16.mxu0 %v12981_v0 }
0x168b   :  { %v1327_v37 = vpop.f32.mrf.mxu0 }
0x168c   :  { %12551 = vtanh.f32 %v1327_v37 }
0x168d   :  { %v10756_v38 = vpop.f32.mrf.mxu0 }
0x168f   :  { %v1330_v39 = vpop.f32.mrf.mxu0 }
0x1691   :  { %v10757_v40 = vpop.f32.mrf.mxu0 }
0x1699   :  { %v12552_v41 = vpop.eup %12551 }
0x169a   :  { %v1334_v42 = vmul.f32 0.01, %v12552_v41 }
0x169c   :  { %v1335_v43 = vadd.f32 %v1334_v42, %v1288_v35 }
0x169e   :  { %v1336_v44 = vpack.c.bf16 %v1335_v43, %v1335_v43 }
0x16a0   :  { %10765 = vmatmul.mubr.msk.bf16.vlgmr.msra.gmra.mxu1 %vm61_vm2, %v1336_v44 }
0x16a1   :  { %10779 = vmatpush3.bf16.msra.mxu1 %v13012_v4  ;;  %10784 = vmatprep.mubr.msk.bf16.mxu1 %vm12982_vm0, %v12981_v0 }
0x16a2   :  { %10780 = vmatprep.subr.bf16.mxu1 %v12981_v0 }
0x16a5   :  { %10781 = vmatpush3.bf16.msra.mxu1 %v13014_v5 }
0x16a6   :  { %10782 = vmatprep.subr.bf16.mxu1 %v12981_v0 }
0x16a9   :  { %10783 = vmatpush3.bf16.msra.mxu1 %v13020_v6 }
0x16aa   :  { %10798 = vmatprep.subr.bf16.mxu1 %v12981_v0 }
0x1760   :  { %v1374_v45 = vpop.f32.mrf.mxu1 }
0x1761   :  { %12553 = vtanh.f32 %v1374_v45 }
0x1762   :  { %v10766_v46 = vpop.f32.mrf.mxu1 }
0x1764   :  { %v1377_v47 = vpop.f32.mrf.mxu1 }
0x1766   :  { %v10767_v48 = vpop.f32.mrf.mxu1 }
0x176e   :  { %v12554_v49 = vpop.eup %12553 }
0x176f   :  { %v1381_v50 = vmul.f32 0.01, %v12554_v49 }
0x1771   :  { %v1382_v51 = vadd.f32 %v1381_v50, %v1335_v43 }
0x1773   :  { %v1383_v52 = vpack.c.bf16 %v1382_v51, %v1382_v51 }
0x1775   :  { %10775 = vmatmul.mubr.msk.bf16.vlgmr.msra.gmra.mxu0 %vm61_vm2, %v1383_v52 }
0x1776   :  { %10789 = vmatpush3.bf16.msra.mxu0 %v13012_v4  ;;  %10794 = vmatprep.mubr.msk.bf16.mxu0 %vm12982_vm0, %v12981_v0 }
0x1777   :  { %10790 = vmatprep.subr.bf16.mxu0 %v12981_v0 }
0x177a   :  { %10791 = vmatpush3.bf16.msra.mxu0 %v13014_v5  ;;  %v13296_v5 = vld [vmem:[#allocation5 + $0x8] sm:$0xff]  }
0x177b   :  { %10792 = vmatprep.subr.bf16.mxu0 %v12981_v0 }
0x177e   :  { %10793 = vmatpush3.bf16.msra.mxu0 %v13020_v6 }
0x177f   :  { %10808 = vmatprep.subr.bf16.mxu0 %v12981_v0 }
0x1835   :  { %v1421_v53 = vpop.f32.mrf.mxu0 }
0x1836   :  { %12555 = vtanh.f32 %v1421_v53 }
0x1837   :  { %v10776_v54 = vpop.f32.mrf.mxu0 }
0x1839   :  { %v1424_v55 = vpop.f32.mrf.mxu0 }
0x183b   :  { %v10777_v56 = vpop.f32.mrf.mxu0 }
0x1843   :  { %v12556_v57 = vpop.eup %12555 }
0x1844   :  { %v1428_v58 = vmul.f32 0.01, %v12556_v57 }
0x1846   :  { %v1429_v59 = vadd.f32 %v1428_v58, %v1382_v51 }
0x1848   :  { %v1430_v60 = vpack.c.bf16 %v1429_v59, %v1429_v59 }
0x184a   :  { %10785 = vmatmul.mubr.msk.bf16.vlgmr.msra.gmra.mxu1 %vm61_vm2, %v1430_v60 }
0x184b   :  { %10799 = vmatpush3.bf16.msra.mxu1 %v13012_v4  ;;  %10804 = vmatprep.mubr.msk.bf16.mxu1 %vm12982_vm0, %v12981_v0 }
0x184c   :  { %10800 = vmatprep.subr.bf16.mxu1 %v12981_v0 }
0x184f   :  { %10801 = vmatpush3.bf16.msra.mxu1 %v13296_v5 }
0x1850   :  { %10802 = vmatprep.subr.bf16.mxu1 %v12981_v0 }
0x1853   :  { %10803 = vmatpush3.bf16.msra.mxu1 %v13020_v6  ;;  %v13309_v6 = vld [vmem:[#allocation5] sm:$0xff]  }
0x1854   :  { %10818 = vmatprep.subr.bf16.mxu1 %v12981_v0 }
0x190a   :  { %v1468_v61 = vpop.f32.mrf.mxu1 }
0x190b   :  { %12557 = vtanh.f32 %v1468_v61 }
0x190c   :  { %v10786_v62 = vpop.f32.mrf.mxu1 }
0x190e   :  { %v1471_v63 = vpop.f32.mrf.mxu1 }
0x1910   :  { %v10787_v1 = vpop.f32.mrf.mxu1 }
0x1918   :  { %v12558_v2 = vpop.eup %12557 }
0x1919   :  { %v1475_v3 = vmul.f32 0.01, %v12558_v2 }
0x191b   :  { %v1476_v7 = vadd.f32 %v1475_v3, %v1429_v59 }
0x191d   :  { %v1477_v8 = vpack.c.bf16 %v1476_v7, %v1476_v7 }
0x191f   :  { %10795 = vmatmul.mubr.msk.bf16.vlgmr.msra.gmra.mxu0 %vm61_vm2, %v1477_v8 }
0x1920   :  { %10809 = vmatpush3.bf16.msra.mxu0 %v13012_v4  ;;  %10814 = vmatprep.mubr.msk.bf16.mxu0 %vm12982_vm0, %v12981_v0 }
0x1921   :  { %10810 = vmatprep.subr.bf16.mxu0 %v12981_v0 }
0x1924   :  { %10811 = vmatpush3.bf16.msra.mxu0 %v13296_v5 }
0x1925   :  { %10812 = vmatprep.subr.bf16.mxu0 %v12981_v0 }
0x1928   :  { %10813 = vmatpush3.bf16.msra.mxu0 %v13309_v6 }
0x1929   :  { %10828 = vmatprep.subr.bf16.mxu0 %v12981_v0 }
0x19df   :  { %v1515_v9 = vpop.f32.mrf.mxu0 }
0x19e0   :  { %12559 = vtanh.f32 %v1515_v9 }
0x19e1   :  { %v10796_v10 = vpop.f32.mrf.mxu0 }
0x19e3   :  { %v1518_v11 = vpop.f32.mrf.mxu0 }
0x19e5   :  { %v10797_v12 = vpop.f32.mrf.mxu0 }
0x19ed   :  { %v12560_v13 = vpop.eup %12559 }
0x19ee   :  { %v1522_v14 = vmul.f32 0.01, %v12560_v13 }
0x19f0   :  { %v1523_v15 = vadd.f32 %v1522_v14, %v1476_v7 }
0x19f2   :  { %v1524_v16 = vpack.c.bf16 %v1523_v15, %v1523_v15 }
0x19f4   :  { %10805 = vmatmul.mubr.msk.bf16.vlgmr.msra.gmra.mxu1 %vm61_vm2, %v1524_v16 }
0x19f5   :  { %10819 = vmatpush3.bf16.msra.mxu1 %v13012_v4  ;;  %10824 = vmatprep.mubr.msk.bf16.mxu1 %vm12982_vm0, %v12981_v0 }
0x19f6   :  { %10820 = vmatprep.subr.bf16.mxu1 %v12981_v0 }
0x19f9   :  { %10821 = vmatpush3.bf16.msra.mxu1 %v13296_v5 }
0x19fa   :  { %10822 = vmatprep.subr.bf16.mxu1 %v12981_v0 }
0x19fd   :  { %10823 = vmatpush3.bf16.msra.mxu1 %v13309_v6 }
0x19fe   :  { %10838 = vmatprep.subr.bf16.mxu1 %v12981_v0 }
0x1ab4   :  { %v1562_v17 = vpop.f32.mrf.mxu1 }
0x1ab5   :  { %12561 = vtanh.f32 %v1562_v17 }
0x1ab6   :  { %v10806_v18 = vpop.f32.mrf.mxu1 }
0x1ab8   :  { %v1565_v19 = vpop.f32.mrf.mxu1 }
0x1aba   :  { %v10807_v20 = vpop.f32.mrf.mxu1 }
0x1ac2   :  { %v12562_v21 = vpop.eup %12561 }
0x1ac3   :  { %v1569_v22 = vmul.f32 0.01, %v12562_v21 }
0x1ac5   :  { %v1570_v23 = vadd.f32 %v1569_v22, %v1523_v15 }
0x1ac7   :  { %v1571_v24 = vpack.c.bf16 %v1570_v23, %v1570_v23 }
0x1ac9   :  { %10815 = vmatmul.mubr.msk.bf16.vlgmr.msra.gmra.mxu0 %vm61_vm2, %v1571_v24 }
0x1aca   :  { %10829 = vmatpush3.bf16.msra.mxu0 %v13012_v4  ;;  %10834 = vmatprep.mubr.msk.bf16.mxu0 %vm12982_vm0, %v12981_v0 }
0x1acb   :  { %10830 = vmatprep.subr.bf16.mxu0 %v12981_v0 }
0x1ace   :  { %10831 = vmatpush3.bf16.msra.mxu0 %v13296_v5 }
0x1acf   :  { %10832 = vmatprep.subr.bf16.mxu0 %v12981_v0 }
0x1ad2   :  { %10833 = vmatpush3.bf16.msra.mxu0 %v13309_v6 }
0x1ad3   :  { %10848 = vmatprep.subr.bf16.mxu0 %v12981_v0 }
0x1b89   :  { %v1609_v25 = vpop.f32.mrf.mxu0 }
0x1b8a   :  { %12563 = vtanh.f32 %v1609_v25 }
0x1b8b   :  { %v10816_v26 = vpop.f32.mrf.mxu0 }
0x1b8d   :  { %v1612_v27 = vpop.f32.mrf.mxu0 }
0x1b8f   :  { %v10817_v28 = vpop.f32.mrf.mxu0 }
0x1b97   :  { %v12564_v29 = vpop.eup %12563 }
0x1b98   :  { %v1616_v30 = vmul.f32 0.01, %v12564_v29 }
0x1b9a   :  { %v1617_v31 = vadd.f32 %v1616_v30, %v1570_v23 }
0x1b9c   :  { %v1618_v32 = vpack.c.bf16 %v1617_v31, %v1617_v31 }
0x1b9e   :  { %10825 = vmatmul.mubr.msk.bf16.vlgmr.msra.gmra.mxu1 %vm61_vm2, %v1618_v32 }
0x1b9f   :  { %10839 = vmatpush3.bf16.msra.mxu1 %v13012_v4  ;;  %10844 = vmatprep.mubr.msk.bf16.mxu1 %vm12982_vm0, %v12981_v0 }
0x1ba0   :  { %10840 = vmatprep.subr.bf16.mxu1 %v12981_v0 }
0x1ba3   :  { %10841 = vmatpush3.bf16.msra.mxu1 %v13296_v5 }
0x1ba4   :  { %10842 = vmatprep.subr.bf16.mxu1 %v12981_v0 }
0x1ba7   :  { %10843 = vmatpush3.bf16.msra.mxu1 %v13309_v6 }
0x1ba8   :  { %10858 = vmatprep.subr.bf16.mxu1 %v12981_v0 }
0x1c5e   :  { %v1656_v33 = vpop.f32.mrf.mxu1 }
0x1c5f   :  { %12565 = vtanh.f32 %v1656_v33 }
0x1c60   :  { %v10826_v34 = vpop.f32.mrf.mxu1 }
0x1c62   :  { %v1659_v35 = vpop.f32.mrf.mxu1 }
0x1c64   :  { %v10827_v36 = vpop.f32.mrf.mxu1 }
0x1c6c   :  { %v12566_v37 = vpop.eup %12565 }
0x1c6d   :  { %v1663_v38 = vmul.f32 0.01, %v12566_v37 }
0x1c6f   :  { %v1664_v39 = vadd.f32 %v1663_v38, %v1617_v31 }
0x1c71   :  { %v1665_v40 = vpack.c.bf16 %v1664_v39, %v1664_v39 }
0x1c73   :  { %10835 = vmatmul.mubr.msk.bf16.vlgmr.msra.gmra.mxu0 %vm61_vm2, %v1665_v40 }
0x1c74   :  { %10849 = vmatpush3.bf16.msra.mxu0 %v13012_v4  ;;  %10854 = vmatprep.mubr.msk.bf16.mxu0 %vm12982_vm0, %v12981_v0 }
0x1c75   :  { %10850 = vmatprep.subr.bf16.mxu0 %v12981_v0 }
0x1c78   :  { %10851 = vmatpush3.bf16.msra.mxu0 %v13296_v5 }
0x1c79   :  { %10852 = vmatprep.subr.bf16.mxu0 %v12981_v0 }
0x1c7c   :  { %10853 = vmatpush3.bf16.msra.mxu0 %v13309_v6 }
0x1c7d   :  { %10868 = vmatprep.subr.bf16.mxu0 %v12981_v0 }
0x1d33   :  { %v1703_v41 = vpop.f32.mrf.mxu0 }
0x1d34   :  { %12567 = vtanh.f32 %v1703_v41 }
0x1d35   :  { %v10836_v42 = vpop.f32.mrf.mxu0 }
0x1d37   :  { %v1706_v43 = vpop.f32.mrf.mxu0 }
0x1d39   :  { %v10837_v44 = vpop.f32.mrf.mxu0 }
0x1d41   :  { %v12568_v45 = vpop.eup %12567 }
0x1d42   :  { %v1710_v46 = vmul.f32 0.01, %v12568_v45 }
0x1d44   :  { %v1711_v47 = vadd.f32 %v1710_v46, %v1664_v39 }
0x1d46   :  { %v1712_v48 = vpack.c.bf16 %v1711_v47, %v1711_v47 }
0x1d48   :  { %10845 = vmatmul.mubr.msk.bf16.vlgmr.msra.gmra.mxu1 %vm61_vm2, %v1712_v48 }
0x1d49   :  { %10859 = vmatpush3.bf16.msra.mxu1 %v13012_v4  ;;  %10864 = vmatprep.mubr.msk.bf16.mxu1 %vm12982_vm0, %v12981_v0 }
0x1d4a   :  { %10860 = vmatprep.subr.bf16.mxu1 %v12981_v0 }
0x1d4d   :  { %10861 = vmatpush3.bf16.msra.mxu1 %v13296_v5 }
0x1d4e   :  { %10862 = vmatprep.subr.bf16.mxu1 %v12981_v0 }
0x1d51   :  { %10863 = vmatpush3.bf16.msra.mxu1 %v13309_v6 }
0x1d52   :  { %10878 = vmatprep.subr.bf16.mxu1 %v12981_v0 }
0x1e08   :  { %v1750_v49 = vpop.f32.mrf.mxu1 }
0x1e09   :  { %12569 = vtanh.f32 %v1750_v49 }
0x1e0a   :  { %v10846_v50 = vpop.f32.mrf.mxu1 }
0x1e0c   :  { %v1753_v51 = vpop.f32.mrf.mxu1 }
0x1e0e   :  { %v10847_v52 = vpop.f32.mrf.mxu1 }
0x1e16   :  { %v12570_v53 = vpop.eup %12569 }
0x1e17   :  { %v1757_v54 = vmul.f32 0.01, %v12570_v53 }
0x1e19   :  { %v1758_v55 = vadd.f32 %v1757_v54, %v1711_v47 }
0x1e1b   :  { %v1759_v56 = vpack.c.bf16 %v1758_v55, %v1758_v55 }
0x1e1d   :  { %10855 = vmatmul.mubr.msk.bf16.vlgmr.msra.gmra.mxu0 %vm61_vm2, %v1759_v56 }
0x1e1e   :  { %10869 = vmatpush3.bf16.msra.mxu0 %v13012_v4  ;;  %10874 = vmatprep.mubr.msk.bf16.mxu0 %vm12982_vm0, %v12981_v0 }
0x1e1f   :  { %10870 = vmatprep.subr.bf16.mxu0 %v12981_v0 }
0x1e22   :  { %10871 = vmatpush3.bf16.msra.mxu0 %v13296_v5 }
0x1e23   :  { %10872 = vmatprep.subr.bf16.mxu0 %v12981_v0 }
0x1e26   :  { %10873 = vmatpush3.bf16.msra.mxu0 %v13309_v6 }
0x1e27   :  { %10888 = vmatprep.subr.bf16.mxu0 %v12981_v0 }
0x1edd   :  { %v1797_v57 = vpop.f32.mrf.mxu0 }
0x1ede   :  { %12571 = vtanh.f32 %v1797_v57 }
0x1edf   :  { %v10856_v58 = vpop.f32.mrf.mxu0 }
0x1ee1   :  { %v1800_v59 = vpop.f32.mrf.mxu0 }
0x1ee3   :  { %v10857_v60 = vpop.f32.mrf.mxu0 }
0x1eeb   :  { %v12572_v61 = vpop.eup %12571 }
0x1eec   :  { %v1804_v62 = vmul.f32 0.01, %v12572_v61 }
0x1eee   :  { %v1805_v63 = vadd.f32 %v1804_v62, %v1758_v55 }
0x1ef0   :  { %v1806_v1 = vpack.c.bf16 %v1805_v63, %v1805_v63 }
0x1ef2   :  { %10865 = vmatmul.mubr.msk.bf16.vlgmr.msra.gmra.mxu1 %vm61_vm2, %v1806_v1 }
0x1ef3   :  { %10879 = vmatpush3.bf16.msra.mxu1 %v13012_v4  ;;  %10884 = vmatprep.mubr.msk.bf16.mxu1 %vm12982_vm0, %v12981_v0 }
0x1ef4   :  { %10880 = vmatprep.subr.bf16.mxu1 %v12981_v0 }
0x1ef7   :  { %10881 = vmatpush3.bf16.msra.mxu1 %v13296_v5 }
0x1ef8   :  { %10882 = vmatprep.subr.bf16.mxu1 %v12981_v0 }
0x1efb   :  { %10883 = vmatpush3.bf16.msra.mxu1 %v13309_v6 }
0x1efc   :  { %10898 = vmatprep.subr.bf16.mxu1 %v12981_v0 }
0x1fb2   :  { %v1844_v2 = vpop.f32.mrf.mxu1 }
0x1fb3   :  { %12573 = vtanh.f32 %v1844_v2 }
0x1fb4   :  { %v10866_v3 = vpop.f32.mrf.mxu1 }
0x1fb6   :  { %v1847_v7 = vpop.f32.mrf.mxu1 }
0x1fb8   :  { %v10867_v8 = vpop.f32.mrf.mxu1 }
0x1fc0   :  { %v12574_v9 = vpop.eup %12573 }
0x1fc1   :  { %v1851_v10 = vmul.f32 0.01, %v12574_v9 }
0x1fc3   :  { %v1852_v11 = vadd.f32 %v1851_v10, %v1805_v63 }
0x1fc5   :  { %v1853_v12 = vpack.c.bf16 %v1852_v11, %v1852_v11 }
0x1fc7   :  { %10875 = vmatmul.mubr.msk.bf16.vlgmr.msra.gmra.mxu0 %vm61_vm2, %v1853_v12 }
0x1fc8   :  { %10889 = vmatpush3.bf16.msra.mxu0 %v13012_v4  ;;  %10894 = vmatprep.mubr.msk.bf16.mxu0 %vm12982_vm0, %v12981_v0 }
0x1fc9   :  { %10890 = vmatprep.subr.bf16.mxu0 %v12981_v0 }
0x1fcc   :  { %10891 = vmatpush3.bf16.msra.mxu0 %v13296_v5 }
0x1fcd   :  { %10892 = vmatprep.subr.bf16.mxu0 %v12981_v0 }
0x1fd0   :  { %10893 = vmatpush3.bf16.msra.mxu0 %v13309_v6 }
0x1fd1   :  { %10908 = vmatprep.subr.bf16.mxu0 %v12981_v0 }
0x2087   :  { %v1891_v13 = vpop.f32.mrf.mxu0 }
0x2088   :  { %12575 = vtanh.f32 %v1891_v13 }
0x2089   :  { %v10876_v14 = vpop.f32.mrf.mxu0 }
0x208b   :  { %v1894_v15 = vpop.f32.mrf.mxu0 }
0x208d   :  { %v10877_v16 = vpop.f32.mrf.mxu0 }
0x2095   :  { %v12576_v17 = vpop.eup %12575 }
0x2096   :  { %v1898_v18 = vmul.f32 0.01, %v12576_v17 }
0x2098   :  { %v1899_v19 = vadd.f32 %v1898_v18, %v1852_v11 }
0x209a   :  { %v1900_v20 = vpack.c.bf16 %v1899_v19, %v1899_v19 }
0x209c   :  { %10885 = vmatmul.mubr.msk.bf16.vlgmr.msra.gmra.mxu1 %vm61_vm2, %v1900_v20 }
0x209d   :  { %10899 = vmatpush3.bf16.msra.mxu1 %v13012_v4  ;;  %10904 = vmatprep.mubr.msk.bf16.mxu1 %vm12982_vm0, %v12981_v0 }
0x209e   :  { %10900 = vmatprep.subr.bf16.mxu1 %v12981_v0 }
0x20a1   :  { %10901 = vmatpush3.bf16.msra.mxu1 %v13296_v5 }
0x20a2   :  { %10902 = vmatprep.subr.bf16.mxu1 %v12981_v0 }
0x20a5   :  { %10903 = vmatpush3.bf16.msra.mxu1 %v13309_v6 }
0x20a6   :  { %10918 = vmatprep.subr.bf16.mxu1 %v12981_v0 }
0x215c   :  { %v1938_v21 = vpop.f32.mrf.mxu1 }
0x215d   :  { %12577 = vtanh.f32 %v1938_v21 }
0x215e   :  { %v10886_v22 = vpop.f32.mrf.mxu1 }
0x2160   :  { %v1941_v23 = vpop.f32.mrf.mxu1 }
0x2162   :  { %v10887_v24 = vpop.f32.mrf.mxu1 }
0x216a   :  { %v12578_v25 = vpop.eup %12577 }
0x216b   :  { %v1945_v26 = vmul.f32 0.01, %v12578_v25 }
0x216d   :  { %v1946_v27 = vadd.f32 %v1945_v26, %v1899_v19 }
0x216f   :  { %v1947_v28 = vpack.c.bf16 %v1946_v27, %v1946_v27 }
0x2171   :  { %10895 = vmatmul.mubr.msk.bf16.vlgmr.msra.gmra.mxu0 %vm61_vm2, %v1947_v28 }
0x2172   :  { %10909 = vmatpush3.bf16.msra.mxu0 %v13012_v4  ;;  %10914 = vmatprep.mubr.msk.bf16.mxu0 %vm12982_vm0, %v12981_v0 }
0x2173   :  { %10910 = vmatprep.subr.bf16.mxu0 %v12981_v0 }
0x2176   :  { %10911 = vmatpush3.bf16.msra.mxu0 %v13296_v5 }
0x2177   :  { %10912 = vmatprep.subr.bf16.mxu0 %v12981_v0 }
0x217a   :  { %10913 = vmatpush3.bf16.msra.mxu0 %v13309_v6 }
0x217b   :  { %10928 = vmatprep.subr.bf16.mxu0 %v12981_v0 }
0x2231   :  { %v1985_v29 = vpop.f32.mrf.mxu0 }
0x2232   :  { %12579 = vtanh.f32 %v1985_v29 }
0x2233   :  { %v10896_v30 = vpop.f32.mrf.mxu0 }
0x2235   :  { %v1988_v31 = vpop.f32.mrf.mxu0 }
0x2237   :  { %v10897_v32 = vpop.f32.mrf.mxu0 }
0x223f   :  { %v12580_v33 = vpop.eup %12579 }
0x2240   :  { %v1992_v34 = vmul.f32 0.01, %v12580_v33 }
0x2242   :  { %v1993_v35 = vadd.f32 %v1992_v34, %v1946_v27 }
0x2244   :  { %v1994_v36 = vpack.c.bf16 %v1993_v35, %v1993_v35 }
0x2246   :  { %10905 = vmatmul.mubr.msk.bf16.vlgmr.msra.gmra.mxu1 %vm61_vm2, %v1994_v36 }
0x2247   :  { %10919 = vmatpush3.bf16.msra.mxu1 %v13012_v4  ;;  %10924 = vmatprep.mubr.msk.bf16.mxu1 %vm12982_vm0, %v12981_v0 }
0x2248   :  { %10920 = vmatprep.subr.bf16.mxu1 %v12981_v0 }
0x224b   :  { %10921 = vmatpush3.bf16.msra.mxu1 %v13296_v5 }
0x224c   :  { %10922 = vmatprep.subr.bf16.mxu1 %v12981_v0 }
0x224f   :  { %10923 = vmatpush3.bf16.msra.mxu1 %v13309_v6 }
0x2250   :  { %10938 = vmatprep.subr.bf16.mxu1 %v12981_v0 }
0x2306   :  { %v2032_v37 = vpop.f32.mrf.mxu1 }
0x2307   :  { %12581 = vtanh.f32 %v2032_v37 }
0x2308   :  { %v10906_v38 = vpop.f32.mrf.mxu1 }
0x230a   :  { %v2035_v39 = vpop.f32.mrf.mxu1 }
0x230c   :  { %v10907_v40 = vpop.f32.mrf.mxu1 }
0x2314   :  { %v12582_v41 = vpop.eup %12581 }
0x2315   :  { %v2039_v42 = vmul.f32 0.01, %v12582_v41 }
0x2317   :  { %v2040_v43 = vadd.f32 %v2039_v42, %v1993_v35 }
0x2319   :  { %v2041_v44 = vpack.c.bf16 %v2040_v43, %v2040_v43 }
0x231b   :  { %10915 = vmatmul.mubr.msk.bf16.vlgmr.msra.gmra.mxu0 %vm61_vm2, %v2041_v44 }
0x231c   :  { %10929 = vmatpush3.bf16.msra.mxu0 %v13012_v4  ;;  %10934 = vmatprep.mubr.msk.bf16.mxu0 %vm12982_vm0, %v12981_v0 }
0x231d   :  { %10930 = vmatprep.subr.bf16.mxu0 %v12981_v0 }
0x2320   :  { %10931 = vmatpush3.bf16.msra.mxu0 %v13296_v5 }
0x2321   :  { %10932 = vmatprep.subr.bf16.mxu0 %v12981_v0 }
0x2324   :  { %10933 = vmatpush3.bf16.msra.mxu0 %v13309_v6 }
0x2325   :  { %10948 = vmatprep.subr.bf16.mxu0 %v12981_v0 }
0x23db   :  { %v2079_v45 = vpop.f32.mrf.mxu0 }
0x23dc   :  { %12583 = vtanh.f32 %v2079_v45 }
0x23dd   :  { %v10916_v46 = vpop.f32.mrf.mxu0 }
0x23df   :  { %v2082_v47 = vpop.f32.mrf.mxu0 }
0x23e1   :  { %v10917_v48 = vpop.f32.mrf.mxu0 }
0x23e9   :  { %v12584_v49 = vpop.eup %12583 }
0x23ea   :  { %v2086_v50 = vmul.f32 0.01, %v12584_v49 }
0x23ec   :  { %v2087_v51 = vadd.f32 %v2086_v50, %v2040_v43 }
0x23ee   :  { %v2088_v52 = vpack.c.bf16 %v2087_v51, %v2087_v51 }
0x23f0   :  { %10925 = vmatmul.mubr.msk.bf16.vlgmr.msra.gmra.mxu1 %vm61_vm2, %v2088_v52 }
0x23f1   :  { %10939 = vmatpush3.bf16.msra.mxu1 %v13012_v4  ;;  %10944 = vmatprep.mubr.msk.bf16.mxu1 %vm12982_vm0, %v12981_v0 }
0x23f2   :  { %10940 = vmatprep.subr.bf16.mxu1 %v12981_v0 }
0x23f5   :  { %10941 = vmatpush3.bf16.msra.mxu1 %v13296_v5 }
0x23f6   :  { %10942 = vmatprep.subr.bf16.mxu1 %v12981_v0 }
0x23f9   :  { %10943 = vmatpush3.bf16.msra.mxu1 %v13309_v6 }
0x23fa   :  { %10958 = vmatprep.subr.bf16.mxu1 %v12981_v0 }
0x24b0   :  { %v2126_v53 = vpop.f32.mrf.mxu1 }
0x24b1   :  { %12585 = vtanh.f32 %v2126_v53 }
0x24b2   :  { %v10926_v54 = vpop.f32.mrf.mxu1 }
0x24b4   :  { %v2129_v55 = vpop.f32.mrf.mxu1 }
0x24b6   :  { %v10927_v56 = vpop.f32.mrf.mxu1 }
0x24be   :  { %v12586_v57 = vpop.eup %12585 }
0x24bf   :  { %v2133_v58 = vmul.f32 0.01, %v12586_v57 }
0x24c1   :  { %v2134_v59 = vadd.f32 %v2133_v58, %v2087_v51 }
0x24c3   :  { %v2135_v60 = vpack.c.bf16 %v2134_v59, %v2134_v59 }
0x24c5   :  { %10935 = vmatmul.mubr.msk.bf16.vlgmr.msra.gmra.mxu0 %vm61_vm2, %v2135_v60 }
0x24c6   :  { %10949 = vmatpush3.bf16.msra.mxu0 %v13012_v4  ;;  %10954 = vmatprep.mubr.msk.bf16.mxu0 %vm12982_vm0, %v12981_v0 }
0x24c7   :  { %10950 = vmatprep.subr.bf16.mxu0 %v12981_v0 }
0x24ca   :  { %10951 = vmatpush3.bf16.msra.mxu0 %v13296_v5 }
0x24cb   :  { %10952 = vmatprep.subr.bf16.mxu0 %v12981_v0 }
0x24ce   :  { %10953 = vmatpush3.bf16.msra.mxu0 %v13309_v6 }
0x24cf   :  { %10968 = vmatprep.subr.bf16.mxu0 %v12981_v0 }
0x2585   :  { %v2173_v61 = vpop.f32.mrf.mxu0 }
0x2586   :  { %12587 = vtanh.f32 %v2173_v61 }
0x2587   :  { %v10936_v62 = vpop.f32.mrf.mxu0 }
0x2589   :  { %v2176_v63 = vpop.f32.mrf.mxu0 }
0x258b   :  { %v10937_v1 = vpop.f32.mrf.mxu0 }
0x2593   :  { %v12588_v2 = vpop.eup %12587 }
0x2594   :  { %v2180_v3 = vmul.f32 0.01, %v12588_v2 }
0x2596   :  { %v2181_v7 = vadd.f32 %v2180_v3, %v2134_v59 }
0x2598   :  { %v2182_v8 = vpack.c.bf16 %v2181_v7, %v2181_v7 }
0x259a   :  { %10945 = vmatmul.mubr.msk.bf16.vlgmr.msra.gmra.mxu1 %vm61_vm2, %v2182_v8 }
0x259b   :  { %10959 = vmatpush3.bf16.msra.mxu1 %v13012_v4  ;;  %10964 = vmatprep.mubr.msk.bf16.mxu1 %vm12982_vm0, %v12981_v0 }
0x259c   :  { %10960 = vmatprep.subr.bf16.mxu1 %v12981_v0 }
0x259f   :  { %10961 = vmatpush3.bf16.msra.mxu1 %v13296_v5 }
0x25a0   :  { %10962 = vmatprep.subr.bf16.mxu1 %v12981_v0 }
0x25a3   :  { %10963 = vmatpush3.bf16.msra.mxu1 %v13309_v6 }
0x25a4   :  { %10978 = vmatprep.subr.bf16.mxu1 %v12981_v0 }
0x265a   :  { %v2220_v9 = vpop.f32.mrf.mxu1 }
0x265b   :  { %12589 = vtanh.f32 %v2220_v9 }
0x265c   :  { %v10946_v10 = vpop.f32.mrf.mxu1 }
0x265e   :  { %v2223_v11 = vpop.f32.mrf.mxu1 }
0x2660   :  { %v10947_v12 = vpop.f32.mrf.mxu1 }
0x2668   :  { %v12590_v13 = vpop.eup %12589 }
0x2669   :  { %v2227_v14 = vmul.f32 0.01, %v12590_v13 }
0x266b   :  { %v2228_v15 = vadd.f32 %v2227_v14, %v2181_v7 }
0x266d   :  { %v2229_v16 = vpack.c.bf16 %v2228_v15, %v2228_v15 }
0x266f   :  { %10955 = vmatmul.mubr.msk.bf16.vlgmr.msra.gmra.mxu0 %vm61_vm2, %v2229_v16 }
0x2670   :  { %10969 = vmatpush3.bf16.msra.mxu0 %v13012_v4  ;;  %10974 = vmatprep.mubr.msk.bf16.mxu0 %vm12982_vm0, %v12981_v0 }
0x2671   :  { %10970 = vmatprep.subr.bf16.mxu0 %v12981_v0 }
0x2674   :  { %10971 = vmatpush3.bf16.msra.mxu0 %v13296_v5 }
0x2675   :  { %10972 = vmatprep.subr.bf16.mxu0 %v12981_v0 }
0x2678   :  { %10973 = vmatpush3.bf16.msra.mxu0 %v13309_v6 }
0x2679   :  { %10988 = vmatprep.subr.bf16.mxu0 %v12981_v0 }
0x272f   :  { %v2267_v17 = vpop.f32.mrf.mxu0 }
0x2730   :  { %12591 = vtanh.f32 %v2267_v17 }
0x2731   :  { %v10956_v18 = vpop.f32.mrf.mxu0 }
0x2733   :  { %v2270_v19 = vpop.f32.mrf.mxu0 }
0x2735   :  { %v10957_v20 = vpop.f32.mrf.mxu0 }
0x273d   :  { %v12592_v21 = vpop.eup %12591 }
0x273e   :  { %v2274_v22 = vmul.f32 0.01, %v12592_v21 }
0x2740   :  { %v2275_v23 = vadd.f32 %v2274_v22, %v2228_v15 }
0x2742   :  { %v2276_v24 = vpack.c.bf16 %v2275_v23, %v2275_v23 }
0x2744   :  { %10965 = vmatmul.mubr.msk.bf16.vlgmr.msra.gmra.mxu1 %vm61_vm2, %v2276_v24 }
0x2745   :  { %10979 = vmatpush3.bf16.msra.mxu1 %v13012_v4  ;;  %10984 = vmatprep.mubr.msk.bf16.mxu1 %vm12982_vm0, %v12981_v0 }
0x2746   :  { %10980 = vmatprep.subr.bf16.mxu1 %v12981_v0 }
0x2749   :  { %10981 = vmatpush3.bf16.msra.mxu1 %v13296_v5 }
0x274a   :  { %10982 = vmatprep.subr.bf16.mxu1 %v12981_v0 }
0x274d   :  { %10983 = vmatpush3.bf16.msra.mxu1 %v13309_v6 }
0x274e   :  { %10998 = vmatprep.subr.bf16.mxu1 %v12981_v0 }
0x2804   :  { %v2314_v25 = vpop.f32.mrf.mxu1 }
0x2805   :  { %12593 = vtanh.f32 %v2314_v25 }
0x2806   :  { %v10966_v26 = vpop.f32.mrf.mxu1 }
0x2808   :  { %v2317_v27 = vpop.f32.mrf.mxu1 }
0x280a   :  { %v10967_v28 = vpop.f32.mrf.mxu1 }
0x2812   :  { %v12594_v29 = vpop.eup %12593 }
0x2813   :  { %v2321_v30 = vmul.f32 0.01, %v12594_v29 }
0x2815   :  { %v2322_v31 = vadd.f32 %v2321_v30, %v2275_v23 }
0x2817   :  { %v2323_v32 = vpack.c.bf16 %v2322_v31, %v2322_v31 }
0x2819   :  { %10975 = vmatmul.mubr.msk.bf16.vlgmr.msra.gmra.mxu0 %vm61_vm2, %v2323_v32 }
0x281a   :  { %10989 = vmatpush3.bf16.msra.mxu0 %v13012_v4  ;;  %10994 = vmatprep.mubr.msk.bf16.mxu0 %vm12982_vm0, %v12981_v0 }
0x281b   :  { %10990 = vmatprep.subr.bf16.mxu0 %v12981_v0 }
0x281e   :  { %10991 = vmatpush3.bf16.msra.mxu0 %v13296_v5 }
0x281f   :  { %10992 = vmatprep.subr.bf16.mxu0 %v12981_v0 }
0x2822   :  { %10993 = vmatpush3.bf16.msra.mxu0 %v13309_v6 }
0x2823   :  { %11008 = vmatprep.subr.bf16.mxu0 %v12981_v0 }
0x28d9   :  { %v2361_v33 = vpop.f32.mrf.mxu0 }
0x28da   :  { %12595 = vtanh.f32 %v2361_v33 }
0x28db   :  { %v10976_v34 = vpop.f32.mrf.mxu0 }
0x28dd   :  { %v2364_v35 = vpop.f32.mrf.mxu0 }
0x28df   :  { %v10977_v36 = vpop.f32.mrf.mxu0 }
0x28e7   :  { %v12596_v37 = vpop.eup %12595 }
0x28e8   :  { %v2368_v38 = vmul.f32 0.01, %v12596_v37 }
0x28ea   :  { %v2369_v39 = vadd.f32 %v2368_v38, %v2322_v31 }
0x28ec   :  { %v2370_v40 = vpack.c.bf16 %v2369_v39, %v2369_v39 }
0x28ee   :  { %10985 = vmatmul.mubr.msk.bf16.vlgmr.msra.gmra.mxu1 %vm61_vm2, %v2370_v40 }
0x28ef   :  { %10999 = vmatpush3.bf16.msra.mxu1 %v13012_v4  ;;  %11004 = vmatprep.mubr.msk.bf16.mxu1 %vm12982_vm0, %v12981_v0 }
0x28f0   :  { %11000 = vmatprep.subr.bf16.mxu1 %v12981_v0 }
0x28f3   :  { %11001 = vmatpush3.bf16.msra.mxu1 %v13296_v5 }
0x28f4   :  { %11002 = vmatprep.subr.bf16.mxu1 %v12981_v0 }
0x28f7   :  { %11003 = vmatpush3.bf16.msra.mxu1 %v13309_v6 }
0x28f8   :  { %11018 = vmatprep.subr.bf16.mxu1 %v12981_v0 }
0x29ae   :  { %v2408_v41 = vpop.f32.mrf.mxu1 }
0x29af   :  { %12597 = vtanh.f32 %v2408_v41 }
0x29b0   :  { %v10986_v42 = vpop.f32.mrf.mxu1 }
0x29b2   :  { %v2411_v43 = vpop.f32.mrf.mxu1 }
0x29b4   :  { %v10987_v44 = vpop.f32.mrf.mxu1 }
0x29bc   :  { %v12598_v45 = vpop.eup %12597 }
0x29bd   :  { %v2415_v46 = vmul.f32 0.01, %v12598_v45 }
0x29bf   :  { %v2416_v47 = vadd.f32 %v2415_v46, %v2369_v39 }
0x29c1   :  { %v2417_v48 = vpack.c.bf16 %v2416_v47, %v2416_v47 }
0x29c3   :  { %10995 = vmatmul.mubr.msk.bf16.vlgmr.msra.gmra.mxu0 %vm61_vm2, %v2417_v48 }
0x29c4   :  { %11009 = vmatpush3.bf16.msra.mxu0 %v13012_v4  ;;  %11014 = vmatprep.mubr.msk.bf16.mxu0 %vm12982_vm0, %v12981_v0 }
0x29c5   :  { %11010 = vmatprep.subr.bf16.mxu0 %v12981_v0 }
0x29c8   :  { %11011 = vmatpush3.bf16.msra.mxu0 %v13296_v5 }
0x29c9   :  { %11012 = vmatprep.subr.bf16.mxu0 %v12981_v0 }
0x29cc   :  { %11013 = vmatpush3.bf16.msra.mxu0 %v13309_v6 }
0x29cd   :  { %11028 = vmatprep.subr.bf16.mxu0 %v12981_v0 }
0x2a83   :  { %v2455_v49 = vpop.f32.mrf.mxu0 }
0x2a84   :  { %12599 = vtanh.f32 %v2455_v49 }
0x2a85   :  { %v10996_v50 = vpop.f32.mrf.mxu0 }
0x2a87   :  { %v2458_v51 = vpop.f32.mrf.mxu0 }
0x2a89   :  { %v10997_v52 = vpop.f32.mrf.mxu0 }
0x2a91   :  { %v12600_v53 = vpop.eup %12599 }
0x2a92   :  { %v2462_v54 = vmul.f32 0.01, %v12600_v53 }
0x2a94   :  { %v2463_v55 = vadd.f32 %v2462_v54, %v2416_v47 }
0x2a96   :  { %v2464_v56 = vpack.c.bf16 %v2463_v55, %v2463_v55 }
0x2a98   :  { %11005 = vmatmul.mubr.msk.bf16.vlgmr.msra.gmra.mxu1 %vm61_vm2, %v2464_v56 }
0x2a99   :  { %11019 = vmatpush3.bf16.msra.mxu1 %v13012_v4  ;;  %11024 = vmatprep.mubr.msk.bf16.mxu1 %vm12982_vm0, %v12981_v0 }
0x2a9a   :  { %11020 = vmatprep.subr.bf16.mxu1 %v12981_v0 }
0x2a9d   :  { %11021 = vmatpush3.bf16.msra.mxu1 %v13296_v5 }
0x2a9e   :  { %11022 = vmatprep.subr.bf16.mxu1 %v12981_v0 }
0x2aa1   :  { %11023 = vmatpush3.bf16.msra.mxu1 %v13309_v6 }
0x2aa2   :  { %11038 = vmatprep.subr.bf16.mxu1 %v12981_v0 }
0x2b58   :  { %v2502_v57 = vpop.f32.mrf.mxu1 }
0x2b59   :  { %12601 = vtanh.f32 %v2502_v57 }
0x2b5a   :  { %v11006_v58 = vpop.f32.mrf.mxu1 }
0x2b5c   :  { %v2505_v59 = vpop.f32.mrf.mxu1 }
0x2b5e   :  { %v11007_v60 = vpop.f32.mrf.mxu1 }
0x2b66   :  { %v12602_v61 = vpop.eup %12601 }
0x2b67   :  { %v2509_v62 = vmul.f32 0.01, %v12602_v61 }
0x2b69   :  { %v2510_v63 = vadd.f32 %v2509_v62, %v2463_v55 }
0x2b6b   :  { %v2511_v1 = vpack.c.bf16 %v2510_v63, %v2510_v63 }
0x2b6d   :  { %11015 = vmatmul.mubr.msk.bf16.vlgmr.msra.gmra.mxu0 %vm61_vm2, %v2511_v1 }
0x2b6e   :  { %11029 = vmatpush3.bf16.msra.mxu0 %v13012_v4  ;;  %11034 = vmatprep.mubr.msk.bf16.mxu0 %vm12982_vm0, %v12981_v0 }
0x2b6f   :  { %11030 = vmatprep.subr.bf16.mxu0 %v12981_v0 }
0x2b72   :  { %11031 = vmatpush3.bf16.msra.mxu0 %v13296_v5 }
0x2b73   :  { %11032 = vmatprep.subr.bf16.mxu0 %v12981_v0 }
0x2b76   :  { %11033 = vmatpush3.bf16.msra.mxu0 %v13309_v6 }
0x2b77   :  { %11048 = vmatprep.subr.bf16.mxu0 %v12981_v0 }
0x2c2d   :  { %v2549_v2 = vpop.f32.mrf.mxu0 }
0x2c2e   :  { %12603 = vtanh.f32 %v2549_v2 }
0x2c2f   :  { %v11016_v3 = vpop.f32.mrf.mxu0 }
0x2c31   :  { %v2552_v7 = vpop.f32.mrf.mxu0 }
0x2c33   :  { %v11017_v8 = vpop.f32.mrf.mxu0 }
0x2c3b   :  { %v12604_v9 = vpop.eup %12603 }
0x2c3c   :  { %v2556_v10 = vmul.f32 0.01, %v12604_v9 }
0x2c3e   :  { %v2557_v11 = vadd.f32 %v2556_v10, %v2510_v63 }
0x2c40   :  { %v2558_v12 = vpack.c.bf16 %v2557_v11, %v2557_v11 }
0x2c42   :  { %11025 = vmatmul.mubr.msk.bf16.vlgmr.msra.gmra.mxu1 %vm61_vm2, %v2558_v12 }
0x2c43   :  { %11039 = vmatpush3.bf16.msra.mxu1 %v13012_v4  ;;  %11044 = vmatprep.mubr.msk.bf16.mxu1 %vm12982_vm0, %v12981_v0 }
0x2c44   :  { %11040 = vmatprep.subr.bf16.mxu1 %v12981_v0 }
0x2c47   :  { %11041 = vmatpush3.bf16.msra.mxu1 %v13296_v5 }
0x2c48   :  { %11042 = vmatprep.subr.bf16.mxu1 %v12981_v0 }
0x2c4b   :  { %11043 = vmatpush3.bf16.msra.mxu1 %v13309_v6 }
0x2c4c   :  { %11058 = vmatprep.subr.bf16.mxu1 %v12981_v0 }
0x2d02   :  { %v2596_v13 = vpop.f32.mrf.mxu1 }
0x2d03   :  { %12605 = vtanh.f32 %v2596_v13 }
0x2d04   :  { %v11026_v14 = vpop.f32.mrf.mxu1 }
0x2d06   :  { %v2599_v15 = vpop.f32.mrf.mxu1 }
0x2d08   :  { %v11027_v16 = vpop.f32.mrf.mxu1 }
0x2d10   :  { %v12606_v17 = vpop.eup %12605 }
0x2d11   :  { %v2603_v18 = vmul.f32 0.01, %v12606_v17 }
0x2d13   :  { %v2604_v19 = vadd.f32 %v2603_v18, %v2557_v11 }
0x2d15   :  { %v2605_v20 = vpack.c.bf16 %v2604_v19, %v2604_v19 }
0x2d17   :  { %11035 = vmatmul.mubr.msk.bf16.vlgmr.msra.gmra.mxu0 %vm61_vm2, %v2605_v20 }
0x2d18   :  { %11049 = vmatpush3.bf16.msra.mxu0 %v13012_v4  ;;  %11054 = vmatprep.mubr.msk.bf16.mxu0 %vm12982_vm0, %v12981_v0 }
0x2d19   :  { %11050 = vmatprep.subr.bf16.mxu0 %v12981_v0 }
0x2d1c   :  { %11051 = vmatpush3.bf16.msra.mxu0 %v13296_v5 }
0x2d1d   :  { %11052 = vmatprep.subr.bf16.mxu0 %v12981_v0 }
0x2d20   :  { %11053 = vmatpush3.bf16.msra.mxu0 %v13309_v6 }
0x2d21   :  { %11068 = vmatprep.subr.bf16.mxu0 %v12981_v0 }
0x2dd7   :  { %v2643_v21 = vpop.f32.mrf.mxu0 }
0x2dd8   :  { %12607 = vtanh.f32 %v2643_v21 }
0x2dd9   :  { %v11036_v22 = vpop.f32.mrf.mxu0 }
0x2ddb   :  { %v2646_v23 = vpop.f32.mrf.mxu0 }
0x2ddd   :  { %v11037_v24 = vpop.f32.mrf.mxu0 }
0x2de5   :  { %v12608_v25 = vpop.eup %12607 }
0x2de6   :  { %v2650_v26 = vmul.f32 0.01, %v12608_v25 }
0x2de8   :  { %v2651_v27 = vadd.f32 %v2650_v26, %v2604_v19 }
0x2dea   :  { %v2652_v28 = vpack.c.bf16 %v2651_v27, %v2651_v27 }
0x2dec   :  { %11045 = vmatmul.mubr.msk.bf16.vlgmr.msra.gmra.mxu1 %vm61_vm2, %v2652_v28 }
0x2ded   :  { %11059 = vmatpush3.bf16.msra.mxu1 %v13012_v4  ;;  %11064 = vmatprep.mubr.msk.bf16.mxu1 %vm12982_vm0, %v12981_v0 }
0x2dee   :  { %11060 = vmatprep.subr.bf16.mxu1 %v12981_v0 }
0x2df1   :  { %11061 = vmatpush3.bf16.msra.mxu1 %v13296_v5 }
0x2df2   :  { %11062 = vmatprep.subr.bf16.mxu1 %v12981_v0 }
0x2df5   :  { %11063 = vmatpush3.bf16.msra.mxu1 %v13309_v6 }
0x2df6   :  { %11078 = vmatprep.subr.bf16.mxu1 %v12981_v0 }
0x2eac   :  { %v2690_v29 = vpop.f32.mrf.mxu1 }
0x2ead   :  { %12609 = vtanh.f32 %v2690_v29 }
0x2eae   :  { %v11046_v30 = vpop.f32.mrf.mxu1 }
0x2eb0   :  { %v2693_v31 = vpop.f32.mrf.mxu1 }
0x2eb2   :  { %v11047_v32 = vpop.f32.mrf.mxu1 }
0x2eba   :  { %v12610_v33 = vpop.eup %12609 }
0x2ebb   :  { %v2697_v34 = vmul.f32 0.01, %v12610_v33 }
0x2ebd   :  { %v2698_v35 = vadd.f32 %v2697_v34, %v2651_v27 }
0x2ebf   :  { %v2699_v36 = vpack.c.bf16 %v2698_v35, %v2698_v35 }
0x2ec1   :  { %11055 = vmatmul.mubr.msk.bf16.vlgmr.msra.gmra.mxu0 %vm61_vm2, %v2699_v36 }
0x2ec2   :  { %11069 = vmatpush3.bf16.msra.mxu0 %v13012_v4  ;;  %11074 = vmatprep.mubr.msk.bf16.mxu0 %vm12982_vm0, %v12981_v0 }
0x2ec3   :  { %11070 = vmatprep.subr.bf16.mxu0 %v12981_v0 }
0x2ec6   :  { %11071 = vmatpush3.bf16.msra.mxu0 %v13296_v5 }
0x2ec7   :  { %11072 = vmatprep.subr.bf16.mxu0 %v12981_v0 }
0x2eca   :  { %11073 = vmatpush3.bf16.msra.mxu0 %v13309_v6 }
0x2ecb   :  { %11088 = vmatprep.subr.bf16.mxu0 %v12981_v0 }
0x2f81   :  { %v2737_v37 = vpop.f32.mrf.mxu0 }
0x2f82   :  { %12611 = vtanh.f32 %v2737_v37 }
0x2f83   :  { %v11056_v38 = vpop.f32.mrf.mxu0 }
0x2f85   :  { %v2740_v39 = vpop.f32.mrf.mxu0 }
0x2f87   :  { %v11057_v40 = vpop.f32.mrf.mxu0 }
0x2f8f   :  { %v12612_v41 = vpop.eup %12611 }
0x2f90   :  { %v2744_v42 = vmul.f32 0.01, %v12612_v41 }
0x2f92   :  { %v2745_v43 = vadd.f32 %v2744_v42, %v2698_v35 }
0x2f94   :  { %v2746_v44 = vpack.c.bf16 %v2745_v43, %v2745_v43 }
0x2f96   :  { %11065 = vmatmul.mubr.msk.bf16.vlgmr.msra.gmra.mxu1 %vm61_vm2, %v2746_v44 }
0x2f97   :  { %11079 = vmatpush3.bf16.msra.mxu1 %v13012_v4  ;;  %11084 = vmatprep.mubr.msk.bf16.mxu1 %vm12982_vm0, %v12981_v0 }
0x2f98   :  { %11080 = vmatprep.subr.bf16.mxu1 %v12981_v0 }
0x2f9b   :  { %11081 = vmatpush3.bf16.msra.mxu1 %v13296_v5 }
0x2f9c   :  { %11082 = vmatprep.subr.bf16.mxu1 %v12981_v0 }
0x2f9f   :  { %11083 = vmatpush3.bf16.msra.mxu1 %v13309_v6 }
0x2fa0   :  { %11098 = vmatprep.subr.bf16.mxu1 %v12981_v0 }
0x3056   :  { %v2784_v45 = vpop.f32.mrf.mxu1 }
0x3057   :  { %12613 = vtanh.f32 %v2784_v45 }
0x3058   :  { %v11066_v46 = vpop.f32.mrf.mxu1 }
0x305a   :  { %v2787_v47 = vpop.f32.mrf.mxu1 }
0x305c   :  { %v11067_v48 = vpop.f32.mrf.mxu1 }
0x3064   :  { %v12614_v49 = vpop.eup %12613 }
0x3065   :  { %v2791_v50 = vmul.f32 0.01, %v12614_v49 }
0x3067   :  { %v2792_v51 = vadd.f32 %v2791_v50, %v2745_v43 }
0x3069   :  { %v2793_v52 = vpack.c.bf16 %v2792_v51, %v2792_v51 }
0x306b   :  { %11075 = vmatmul.mubr.msk.bf16.vlgmr.msra.gmra.mxu0 %vm61_vm2, %v2793_v52 }
0x306c   :  { %11089 = vmatpush3.bf16.msra.mxu0 %v13012_v4  ;;  %11094 = vmatprep.mubr.msk.bf16.mxu0 %vm12982_vm0, %v12981_v0 }
0x306d   :  { %11090 = vmatprep.subr.bf16.mxu0 %v12981_v0 }
0x3070   :  { %11091 = vmatpush3.bf16.msra.mxu0 %v13296_v5 }
0x3071   :  { %11092 = vmatprep.subr.bf16.mxu0 %v12981_v0 }
0x3074   :  { %11093 = vmatpush3.bf16.msra.mxu0 %v13309_v6 }
0x3075   :  { %11108 = vmatprep.subr.bf16.mxu0 %v12981_v0 }
0x312b   :  { %v2831_v53 = vpop.f32.mrf.mxu0 }
0x312c   :  { %12615 = vtanh.f32 %v2831_v53 }
0x312d   :  { %v11076_v54 = vpop.f32.mrf.mxu0 }
0x312f   :  { %v2834_v55 = vpop.f32.mrf.mxu0 }
0x3131   :  { %v11077_v56 = vpop.f32.mrf.mxu0 }
0x3139   :  { %v12616_v57 = vpop.eup %12615 }
0x313a   :  { %v2838_v58 = vmul.f32 0.01, %v12616_v57 }
0x313c   :  { %v2839_v59 = vadd.f32 %v2838_v58, %v2792_v51 }
0x313e   :  { %v2840_v60 = vpack.c.bf16 %v2839_v59, %v2839_v59 }
0x3140   :  { %11085 = vmatmul.mubr.msk.bf16.vlgmr.msra.gmra.mxu1 %vm61_vm2, %v2840_v60 }
0x3141   :  { %11099 = vmatpush3.bf16.msra.mxu1 %v13012_v4  ;;  %11104 = vmatprep.mubr.msk.bf16.mxu1 %vm12982_vm0, %v12981_v0 }
0x3142   :  { %11100 = vmatprep.subr.bf16.mxu1 %v12981_v0 }
0x3145   :  { %11101 = vmatpush3.bf16.msra.mxu1 %v13296_v5  ;;  %v13579_v5 = vld [vmem:[#allocation5 + $0x8] sm:$0xff]  }
0x3146   :  { %11102 = vmatprep.subr.bf16.mxu1 %v12981_v0 }
0x3149   :  { %11103 = vmatpush3.bf16.msra.mxu1 %v13309_v6 }
0x314a   :  { %11118 = vmatprep.subr.bf16.mxu1 %v12981_v0 }
0x3200   :  { %v2878_v61 = vpop.f32.mrf.mxu1 }
0x3201   :  { %12617 = vtanh.f32 %v2878_v61 }
0x3202   :  { %v11086_v62 = vpop.f32.mrf.mxu1 }
0x3204   :  { %v2881_v63 = vpop.f32.mrf.mxu1 }
0x3206   :  { %v11087_v1 = vpop.f32.mrf.mxu1 }
0x320e   :  { %v12618_v2 = vpop.eup %12617 }
0x320f   :  { %v2885_v3 = vmul.f32 0.01, %v12618_v2 }
0x3211   :  { %v2886_v7 = vadd.f32 %v2885_v3, %v2839_v59 }
0x3213   :  { %v2887_v8 = vpack.c.bf16 %v2886_v7, %v2886_v7 }
0x3215   :  { %11095 = vmatmul.mubr.msk.bf16.vlgmr.msra.gmra.mxu0 %vm61_vm2, %v2887_v8 }
0x3216   :  { %11109 = vmatpush3.bf16.msra.mxu0 %v13012_v4  ;;  %11114 = vmatprep.mubr.msk.bf16.mxu0 %vm12982_vm0, %v12981_v0 }
0x3217   :  { %11110 = vmatprep.subr.bf16.mxu0 %v12981_v0 }
0x321a   :  { %11111 = vmatpush3.bf16.msra.mxu0 %v13579_v5 }
0x321b   :  { %11112 = vmatprep.subr.bf16.mxu0 %v12981_v0 }
0x321e   :  { %11113 = vmatpush3.bf16.msra.mxu0 %v13309_v6  ;;  %v13592_v6 = vld [vmem:[#allocation5] sm:$0xff]  }
0x321f   :  { %11128 = vmatprep.subr.bf16.mxu0 %v12981_v0 }
0x32d5   :  { %v2925_v9 = vpop.f32.mrf.mxu0 }
0x32d6   :  { %12619 = vtanh.f32 %v2925_v9 }
0x32d7   :  { %v11096_v10 = vpop.f32.mrf.mxu0 }
0x32d9   :  { %v2928_v11 = vpop.f32.mrf.mxu0 }
0x32db   :  { %v11097_v12 = vpop.f32.mrf.mxu0 }
0x32e3   :  { %v12620_v13 = vpop.eup %12619 }
0x32e4   :  { %v2932_v14 = vmul.f32 0.01, %v12620_v13 }
0x32e6   :  { %v2933_v15 = vadd.f32 %v2932_v14, %v2886_v7 }
0x32e8   :  { %v2934_v16 = vpack.c.bf16 %v2933_v15, %v2933_v15 }
0x32ea   :  { %11105 = vmatmul.mubr.msk.bf16.vlgmr.msra.gmra.mxu1 %vm61_vm2, %v2934_v16 }
0x32eb   :  { %11119 = vmatpush3.bf16.msra.mxu1 %v13012_v4  ;;  %11124 = vmatprep.mubr.msk.bf16.mxu1 %vm12982_vm0, %v12981_v0 }
0x32ec   :  { %11120 = vmatprep.subr.bf16.mxu1 %v12981_v0 }
0x32ef   :  { %11121 = vmatpush3.bf16.msra.mxu1 %v13579_v5 }
0x32f0   :  { %11122 = vmatprep.subr.bf16.mxu1 %v12981_v0 }
0x32f3   :  { %11123 = vmatpush3.bf16.msra.mxu1 %v13592_v6 }
0x32f4   :  { %11138 = vmatprep.subr.bf16.mxu1 %v12981_v0 }
0x33aa   :  { %v2972_v17 = vpop.f32.mrf.mxu1 }
0x33ab   :  { %12621 = vtanh.f32 %v2972_v17 }
0x33ac   :  { %v11106_v18 = vpop.f32.mrf.mxu1 }
0x33ae   :  { %v2975_v19 = vpop.f32.mrf.mxu1 }
0x33b0   :  { %v11107_v20 = vpop.f32.mrf.mxu1 }
0x33b8   :  { %v12622_v21 = vpop.eup %12621 }
0x33b9   :  { %v2979_v22 = vmul.f32 0.01, %v12622_v21 }
0x33bb   :  { %v2980_v23 = vadd.f32 %v2979_v22, %v2933_v15 }
0x33bd   :  { %v2981_v24 = vpack.c.bf16 %v2980_v23, %v2980_v23 }
0x33bf   :  { %11115 = vmatmul.mubr.msk.bf16.vlgmr.msra.gmra.mxu0 %vm61_vm2, %v2981_v24 }
0x33c0   :  { %11129 = vmatpush3.bf16.msra.mxu0 %v13012_v4  ;;  %11134 = vmatprep.mubr.msk.bf16.mxu0 %vm12982_vm0, %v12981_v0 }
0x33c1   :  { %11130 = vmatprep.subr.bf16.mxu0 %v12981_v0 }
0x33c4   :  { %11131 = vmatpush3.bf16.msra.mxu0 %v13579_v5 }
0x33c5   :  { %11132 = vmatprep.subr.bf16.mxu0 %v12981_v0 }
0x33c8   :  { %11133 = vmatpush3.bf16.msra.mxu0 %v13592_v6 }
0x33c9   :  { %11148 = vmatprep.subr.bf16.mxu0 %v12981_v0 }
0x347f   :  { %v3019_v25 = vpop.f32.mrf.mxu0 }
0x3480   :  { %12623 = vtanh.f32 %v3019_v25 }
0x3481   :  { %v11116_v26 = vpop.f32.mrf.mxu0 }
0x3483   :  { %v3022_v27 = vpop.f32.mrf.mxu0 }
0x3485   :  { %v11117_v28 = vpop.f32.mrf.mxu0 }
0x348d   :  { %v12624_v29 = vpop.eup %12623 }
0x348e   :  { %v3026_v30 = vmul.f32 0.01, %v12624_v29 }
0x3490   :  { %v3027_v31 = vadd.f32 %v3026_v30, %v2980_v23 }
0x3492   :  { %v3028_v32 = vpack.c.bf16 %v3027_v31, %v3027_v31 }
0x3494   :  { %11125 = vmatmul.mubr.msk.bf16.vlgmr.msra.gmra.mxu1 %vm61_vm2, %v3028_v32 }
0x3495   :  { %11139 = vmatpush3.bf16.msra.mxu1 %v13012_v4  ;;  %11144 = vmatprep.mubr.msk.bf16.mxu1 %vm12982_vm0, %v12981_v0 }
0x3496   :  { %11140 = vmatprep.subr.bf16.mxu1 %v12981_v0 }
0x3499   :  { %11141 = vmatpush3.bf16.msra.mxu1 %v13579_v5 }
0x349a   :  { %11142 = vmatprep.subr.bf16.mxu1 %v12981_v0 }
0x349d   :  { %11143 = vmatpush3.bf16.msra.mxu1 %v13592_v6 }
0x349e   :  { %11158 = vmatprep.subr.bf16.mxu1 %v12981_v0 }
0x3554   :  { %v3066_v33 = vpop.f32.mrf.mxu1 }
0x3555   :  { %12625 = vtanh.f32 %v3066_v33 }
0x3556   :  { %v11126_v34 = vpop.f32.mrf.mxu1 }
0x3558   :  { %v3069_v35 = vpop.f32.mrf.mxu1 }
0x355a   :  { %v11127_v36 = vpop.f32.mrf.mxu1 }
0x3562   :  { %v12626_v37 = vpop.eup %12625 }
0x3563   :  { %v3073_v38 = vmul.f32 0.01, %v12626_v37 }
0x3565   :  { %v3074_v39 = vadd.f32 %v3073_v38, %v3027_v31 }
0x3567   :  { %v3075_v40 = vpack.c.bf16 %v3074_v39, %v3074_v39 }
0x3569   :  { %11135 = vmatmul.mubr.msk.bf16.vlgmr.msra.gmra.mxu0 %vm61_vm2, %v3075_v40 }
0x356a   :  { %11149 = vmatpush3.bf16.msra.mxu0 %v13012_v4  ;;  %11154 = vmatprep.mubr.msk.bf16.mxu0 %vm12982_vm0, %v12981_v0 }
0x356b   :  { %11150 = vmatprep.subr.bf16.mxu0 %v12981_v0 }
0x356e   :  { %11151 = vmatpush3.bf16.msra.mxu0 %v13579_v5 }
0x356f   :  { %11152 = vmatprep.subr.bf16.mxu0 %v12981_v0 }
0x3572   :  { %11153 = vmatpush3.bf16.msra.mxu0 %v13592_v6 }
0x3573   :  { %11168 = vmatprep.subr.bf16.mxu0 %v12981_v0 }
0x3629   :  { %v3113_v41 = vpop.f32.mrf.mxu0 }
0x362a   :  { %12627 = vtanh.f32 %v3113_v41 }
0x362b   :  { %v11136_v42 = vpop.f32.mrf.mxu0 }
0x362d   :  { %v3116_v43 = vpop.f32.mrf.mxu0 }
0x362f   :  { %v11137_v44 = vpop.f32.mrf.mxu0 }
0x3637   :  { %v12628_v45 = vpop.eup %12627 }
0x3638   :  { %v3120_v46 = vmul.f32 0.01, %v12628_v45 }
0x363a   :  { %v3121_v47 = vadd.f32 %v3120_v46, %v3074_v39 }
0x363c   :  { %v3122_v48 = vpack.c.bf16 %v3121_v47, %v3121_v47 }
0x363e   :  { %11145 = vmatmul.mubr.msk.bf16.vlgmr.msra.gmra.mxu1 %vm61_vm2, %v3122_v48 }
0x363f   :  { %11159 = vmatpush3.bf16.msra.mxu1 %v13012_v4  ;;  %11164 = vmatprep.mubr.msk.bf16.mxu1 %vm12982_vm0, %v12981_v0 }
0x3640   :  { %11160 = vmatprep.subr.bf16.mxu1 %v12981_v0 }
0x3643   :  { %11161 = vmatpush3.bf16.msra.mxu1 %v13579_v5 }
0x3644   :  { %11162 = vmatprep.subr.bf16.mxu1 %v12981_v0 }
0x3647   :  { %11163 = vmatpush3.bf16.msra.mxu1 %v13592_v6 }
0x3648   :  { %11178 = vmatprep.subr.bf16.mxu1 %v12981_v0 }
0x36fe   :  { %v3160_v49 = vpop.f32.mrf.mxu1 }
0x36ff   :  { %12629 = vtanh.f32 %v3160_v49 }
0x3700   :  { %v11146_v50 = vpop.f32.mrf.mxu1 }
0x3702   :  { %v3163_v51 = vpop.f32.mrf.mxu1 }
0x3704   :  { %v11147_v52 = vpop.f32.mrf.mxu1 }
0x370c   :  { %v12630_v53 = vpop.eup %12629 }
0x370d   :  { %v3167_v54 = vmul.f32 0.01, %v12630_v53 }
0x370f   :  { %v3168_v55 = vadd.f32 %v3167_v54, %v3121_v47 }
0x3711   :  { %v3169_v56 = vpack.c.bf16 %v3168_v55, %v3168_v55 }
0x3713   :  { %11155 = vmatmul.mubr.msk.bf16.vlgmr.msra.gmra.mxu0 %vm61_vm2, %v3169_v56 }
0x3714   :  { %11169 = vmatpush3.bf16.msra.mxu0 %v13012_v4  ;;  %11174 = vmatprep.mubr.msk.bf16.mxu0 %vm12982_vm0, %v12981_v0 }
0x3715   :  { %11170 = vmatprep.subr.bf16.mxu0 %v12981_v0 }
0x3718   :  { %11171 = vmatpush3.bf16.msra.mxu0 %v13579_v5 }
0x3719   :  { %11172 = vmatprep.subr.bf16.mxu0 %v12981_v0 }
0x371c   :  { %11173 = vmatpush3.bf16.msra.mxu0 %v13592_v6 }
0x371d   :  { %11188 = vmatprep.subr.bf16.mxu0 %v12981_v0 }
0x37d3   :  { %v3207_v57 = vpop.f32.mrf.mxu0 }
0x37d4   :  { %12631 = vtanh.f32 %v3207_v57 }
0x37d5   :  { %v11156_v58 = vpop.f32.mrf.mxu0 }
0x37d7   :  { %v3210_v59 = vpop.f32.mrf.mxu0 }
0x37d9   :  { %v11157_v60 = vpop.f32.mrf.mxu0 }
0x37e1   :  { %v12632_v61 = vpop.eup %12631 }
0x37e2   :  { %v3214_v62 = vmul.f32 0.01, %v12632_v61 }
0x37e4   :  { %v3215_v63 = vadd.f32 %v3214_v62, %v3168_v55 }
0x37e6   :  { %v3216_v1 = vpack.c.bf16 %v3215_v63, %v3215_v63 }
0x37e8   :  { %11165 = vmatmul.mubr.msk.bf16.vlgmr.msra.gmra.mxu1 %vm61_vm2, %v3216_v1 }
0x37e9   :  { %11179 = vmatpush3.bf16.msra.mxu1 %v13012_v4  ;;  %11184 = vmatprep.mubr.msk.bf16.mxu1 %vm12982_vm0, %v12981_v0 }
0x37ea   :  { %11180 = vmatprep.subr.bf16.mxu1 %v12981_v0 }
0x37ed   :  { %11181 = vmatpush3.bf16.msra.mxu1 %v13579_v5 }
0x37ee   :  { %11182 = vmatprep.subr.bf16.mxu1 %v12981_v0 }
0x37f1   :  { %11183 = vmatpush3.bf16.msra.mxu1 %v13592_v6 }
0x37f2   :  { %11198 = vmatprep.subr.bf16.mxu1 %v12981_v0 }
0x38a8   :  { %v3254_v2 = vpop.f32.mrf.mxu1 }
0x38a9   :  { %12633 = vtanh.f32 %v3254_v2 }
0x38aa   :  { %v11166_v3 = vpop.f32.mrf.mxu1 }
0x38ac   :  { %v3257_v7 = vpop.f32.mrf.mxu1 }
0x38ae   :  { %v11167_v8 = vpop.f32.mrf.mxu1 }
0x38b6   :  { %v12634_v9 = vpop.eup %12633 }
0x38b7   :  { %v3261_v10 = vmul.f32 0.01, %v12634_v9 }
0x38b9   :  { %v3262_v11 = vadd.f32 %v3261_v10, %v3215_v63 }
0x38bb   :  { %v3263_v12 = vpack.c.bf16 %v3262_v11, %v3262_v11 }
0x38bd   :  { %11175 = vmatmul.mubr.msk.bf16.vlgmr.msra.gmra.mxu0 %vm61_vm2, %v3263_v12 }
0x38be   :  { %11189 = vmatpush3.bf16.msra.mxu0 %v13012_v4  ;;  %11194 = vmatprep.mubr.msk.bf16.mxu0 %vm12982_vm0, %v12981_v0 }
0x38bf   :  { %11190 = vmatprep.subr.bf16.mxu0 %v12981_v0 }
0x38c2   :  { %11191 = vmatpush3.bf16.msra.mxu0 %v13579_v5 }
0x38c3   :  { %11192 = vmatprep.subr.bf16.mxu0 %v12981_v0 }
0x38c6   :  { %11193 = vmatpush3.bf16.msra.mxu0 %v13592_v6 }
0x38c7   :  { %11208 = vmatprep.subr.bf16.mxu0 %v12981_v0 }
0x397d   :  { %v3301_v13 = vpop.f32.mrf.mxu0 }
0x397e   :  { %12635 = vtanh.f32 %v3301_v13 }
0x397f   :  { %v11176_v14 = vpop.f32.mrf.mxu0 }
0x3981   :  { %v3304_v15 = vpop.f32.mrf.mxu0 }
0x3983   :  { %v11177_v16 = vpop.f32.mrf.mxu0 }
0x398b   :  { %v12636_v17 = vpop.eup %12635 }
0x398c   :  { %v3308_v18 = vmul.f32 0.01, %v12636_v17 }
0x398e   :  { %v3309_v19 = vadd.f32 %v3308_v18, %v3262_v11 }
0x3990   :  { %v3310_v20 = vpack.c.bf16 %v3309_v19, %v3309_v19 }
0x3992   :  { %11185 = vmatmul.mubr.msk.bf16.vlgmr.msra.gmra.mxu1 %vm61_vm2, %v3310_v20 }
0x3993   :  { %11199 = vmatpush3.bf16.msra.mxu1 %v13012_v4  ;;  %11204 = vmatprep.mubr.msk.bf16.mxu1 %vm12982_vm0, %v12981_v0 }
0x3994   :  { %11200 = vmatprep.subr.bf16.mxu1 %v12981_v0 }
0x3997   :  { %11201 = vmatpush3.bf16.msra.mxu1 %v13579_v5 }
0x3998   :  { %11202 = vmatprep.subr.bf16.mxu1 %v12981_v0 }
0x399b   :  { %11203 = vmatpush3.bf16.msra.mxu1 %v13592_v6 }
0x399c   :  { %11218 = vmatprep.subr.bf16.mxu1 %v12981_v0 }
0x3a52   :  { %v3348_v21 = vpop.f32.mrf.mxu1 }
0x3a53   :  { %12637 = vtanh.f32 %v3348_v21 }
0x3a54   :  { %v11186_v22 = vpop.f32.mrf.mxu1 }
0x3a56   :  { %v3351_v23 = vpop.f32.mrf.mxu1 }
0x3a58   :  { %v11187_v24 = vpop.f32.mrf.mxu1 }
0x3a60   :  { %v12638_v25 = vpop.eup %12637 }
0x3a61   :  { %v3355_v26 = vmul.f32 0.01, %v12638_v25 }
0x3a63   :  { %v3356_v27 = vadd.f32 %v3355_v26, %v3309_v19 }
0x3a65   :  { %v3357_v28 = vpack.c.bf16 %v3356_v27, %v3356_v27 }
0x3a67   :  { %11195 = vmatmul.mubr.msk.bf16.vlgmr.msra.gmra.mxu0 %vm61_vm2, %v3357_v28 }
0x3a68   :  { %11209 = vmatpush3.bf16.msra.mxu0 %v13012_v4  ;;  %11214 = vmatprep.mubr.msk.bf16.mxu0 %vm12982_vm0, %v12981_v0 }
0x3a69   :  { %11210 = vmatprep.subr.bf16.mxu0 %v12981_v0 }
0x3a6c   :  { %11211 = vmatpush3.bf16.msra.mxu0 %v13579_v5 }
0x3a6d   :  { %11212 = vmatprep.subr.bf16.mxu0 %v12981_v0 }
0x3a70   :  { %11213 = vmatpush3.bf16.msra.mxu0 %v13592_v6 }
0x3a71   :  { %11228 = vmatprep.subr.bf16.mxu0 %v12981_v0 }
0x3b27   :  { %v3395_v29 = vpop.f32.mrf.mxu0 }
0x3b28   :  { %12639 = vtanh.f32 %v3395_v29 }
0x3b29   :  { %v11196_v30 = vpop.f32.mrf.mxu0 }
0x3b2b   :  { %v3398_v31 = vpop.f32.mrf.mxu0 }
0x3b2d   :  { %v11197_v32 = vpop.f32.mrf.mxu0 }
0x3b35   :  { %v12640_v33 = vpop.eup %12639 }
0x3b36   :  { %v3402_v34 = vmul.f32 0.01, %v12640_v33 }
0x3b38   :  { %v3403_v35 = vadd.f32 %v3402_v34, %v3356_v27 }
0x3b3a   :  { %v3404_v36 = vpack.c.bf16 %v3403_v35, %v3403_v35 }
0x3b3c   :  { %11205 = vmatmul.mubr.msk.bf16.vlgmr.msra.gmra.mxu1 %vm61_vm2, %v3404_v36 }
0x3b3d   :  { %11219 = vmatpush3.bf16.msra.mxu1 %v13012_v4  ;;  %11224 = vmatprep.mubr.msk.bf16.mxu1 %vm12982_vm0, %v12981_v0 }
0x3b3e   :  { %11220 = vmatprep.subr.bf16.mxu1 %v12981_v0 }
0x3b41   :  { %11221 = vmatpush3.bf16.msra.mxu1 %v13579_v5 }
0x3b42   :  { %11222 = vmatprep.subr.bf16.mxu1 %v12981_v0 }
0x3b45   :  { %11223 = vmatpush3.bf16.msra.mxu1 %v13592_v6 }
0x3b46   :  { %11238 = vmatprep.subr.bf16.mxu1 %v12981_v0 }
0x3bfc   :  { %v3442_v37 = vpop.f32.mrf.mxu1 }
0x3bfd   :  { %12641 = vtanh.f32 %v3442_v37 }
0x3bfe   :  { %v11206_v38 = vpop.f32.mrf.mxu1 }
0x3c00   :  { %v3445_v39 = vpop.f32.mrf.mxu1 }
0x3c02   :  { %v11207_v40 = vpop.f32.mrf.mxu1 }
0x3c0a   :  { %v12642_v41 = vpop.eup %12641 }
0x3c0b   :  { %v3449_v42 = vmul.f32 0.01, %v12642_v41 }
0x3c0d   :  { %v3450_v43 = vadd.f32 %v3449_v42, %v3403_v35 }
0x3c0f   :  { %v3451_v44 = vpack.c.bf16 %v3450_v43, %v3450_v43 }
0x3c11   :  { %11215 = vmatmul.mubr.msk.bf16.vlgmr.msra.gmra.mxu0 %vm61_vm2, %v3451_v44 }
0x3c12   :  { %11229 = vmatpush3.bf16.msra.mxu0 %v13012_v4  ;;  %11234 = vmatprep.mubr.msk.bf16.mxu0 %vm12982_vm0, %v12981_v0 }
0x3c13   :  { %11230 = vmatprep.subr.bf16.mxu0 %v12981_v0 }
0x3c16   :  { %11231 = vmatpush3.bf16.msra.mxu0 %v13579_v5 }
0x3c17   :  { %11232 = vmatprep.subr.bf16.mxu0 %v12981_v0 }
0x3c1a   :  { %11233 = vmatpush3.bf16.msra.mxu0 %v13592_v6 }
0x3c1b   :  { %11248 = vmatprep.subr.bf16.mxu0 %v12981_v0 }
0x3cd1   :  { %v3489_v45 = vpop.f32.mrf.mxu0 }
0x3cd2   :  { %12643 = vtanh.f32 %v3489_v45 }
0x3cd3   :  { %v11216_v46 = vpop.f32.mrf.mxu0 }
0x3cd5   :  { %v3492_v47 = vpop.f32.mrf.mxu0 }
0x3cd7   :  { %v11217_v48 = vpop.f32.mrf.mxu0 }
0x3cdf   :  { %v12644_v49 = vpop.eup %12643 }
0x3ce0   :  { %v3496_v50 = vmul.f32 0.01, %v12644_v49 }
0x3ce2   :  { %v3497_v51 = vadd.f32 %v3496_v50, %v3450_v43 }
0x3ce4   :  { %v3498_v52 = vpack.c.bf16 %v3497_v51, %v3497_v51 }
0x3ce6   :  { %11225 = vmatmul.mubr.msk.bf16.vlgmr.msra.gmra.mxu1 %vm61_vm2, %v3498_v52 }
0x3ce7   :  { %11239 = vmatpush3.bf16.msra.mxu1 %v13012_v4  ;;  %11244 = vmatprep.mubr.msk.bf16.mxu1 %vm12982_vm0, %v12981_v0 }
0x3ce8   :  { %11240 = vmatprep.subr.bf16.mxu1 %v12981_v0 }
0x3ceb   :  { %11241 = vmatpush3.bf16.msra.mxu1 %v13579_v5 }
0x3cec   :  { %11242 = vmatprep.subr.bf16.mxu1 %v12981_v0 }
0x3cef   :  { %11243 = vmatpush3.bf16.msra.mxu1 %v13592_v6 }
0x3cf0   :  { %11258 = vmatprep.subr.bf16.mxu1 %v12981_v0 }
0x3da6   :  { %v3536_v53 = vpop.f32.mrf.mxu1 }
0x3da7   :  { %12645 = vtanh.f32 %v3536_v53 }
0x3da8   :  { %v11226_v54 = vpop.f32.mrf.mxu1 }
0x3daa   :  { %v3539_v55 = vpop.f32.mrf.mxu1 }
0x3dac   :  { %v11227_v56 = vpop.f32.mrf.mxu1 }
0x3db4   :  { %v12646_v57 = vpop.eup %12645 }
0x3db5   :  { %v3543_v58 = vmul.f32 0.01, %v12646_v57 }
0x3db7   :  { %v3544_v59 = vadd.f32 %v3543_v58, %v3497_v51 }
0x3db9   :  { %v3545_v60 = vpack.c.bf16 %v3544_v59, %v3544_v59 }
0x3dbb   :  { %11235 = vmatmul.mubr.msk.bf16.vlgmr.msra.gmra.mxu0 %vm61_vm2, %v3545_v60 }
0x3dbc   :  { %11249 = vmatpush3.bf16.msra.mxu0 %v13012_v4  ;;  %11254 = vmatprep.mubr.msk.bf16.mxu0 %vm12982_vm0, %v12981_v0 }
0x3dbd   :  { %11250 = vmatprep.subr.bf16.mxu0 %v12981_v0 }
0x3dc0   :  { %11251 = vmatpush3.bf16.msra.mxu0 %v13579_v5 }
0x3dc1   :  { %11252 = vmatprep.subr.bf16.mxu0 %v12981_v0 }
0x3dc4   :  { %11253 = vmatpush3.bf16.msra.mxu0 %v13592_v6 }
0x3dc5   :  { %11268 = vmatprep.subr.bf16.mxu0 %v12981_v0 }
0x3e7b   :  { %v3583_v61 = vpop.f32.mrf.mxu0 }
0x3e7c   :  { %12647 = vtanh.f32 %v3583_v61 }
0x3e7d   :  { %v11236_v62 = vpop.f32.mrf.mxu0 }
0x3e7f   :  { %v3586_v63 = vpop.f32.mrf.mxu0 }
0x3e81   :  { %v11237_v1 = vpop.f32.mrf.mxu0 }
0x3e89   :  { %v12648_v2 = vpop.eup %12647 }
0x3e8a   :  { %v3590_v3 = vmul.f32 0.01, %v12648_v2 }
0x3e8c   :  { %v3591_v7 = vadd.f32 %v3590_v3, %v3544_v59 }
0x3e8e   :  { %v3592_v8 = vpack.c.bf16 %v3591_v7, %v3591_v7 }
0x3e90   :  { %11245 = vmatmul.mubr.msk.bf16.vlgmr.msra.gmra.mxu1 %vm61_vm2, %v3592_v8 }
0x3e91   :  { %11259 = vmatpush3.bf16.msra.mxu1 %v13012_v4  ;;  %11264 = vmatprep.mubr.msk.bf16.mxu1 %vm12982_vm0, %v12981_v0 }
0x3e92   :  { %11260 = vmatprep.subr.bf16.mxu1 %v12981_v0 }
0x3e95   :  { %11261 = vmatpush3.bf16.msra.mxu1 %v13579_v5 }
0x3e96   :  { %11262 = vmatprep.subr.bf16.mxu1 %v12981_v0 }
0x3e99   :  { %11263 = vmatpush3.bf16.msra.mxu1 %v13592_v6 }
0x3e9a   :  { %11278 = vmatprep.subr.bf16.mxu1 %v12981_v0 }
0x3f50   :  { %v3630_v9 = vpop.f32.mrf.mxu1 }
0x3f51   :  { %12649 = vtanh.f32 %v3630_v9 }
0x3f52   :  { %v11246_v10 = vpop.f32.mrf.mxu1 }
0x3f54   :  { %v3633_v11 = vpop.f32.mrf.mxu1 }
0x3f56   :  { %v11247_v12 = vpop.f32.mrf.mxu1 }
0x3f5e   :  { %v12650_v13 = vpop.eup %12649 }
0x3f5f   :  { %v3637_v14 = vmul.f32 0.01, %v12650_v13 }
0x3f61   :  { %v3638_v15 = vadd.f32 %v3637_v14, %v3591_v7 }
0x3f63   :  { %v3639_v16 = vpack.c.bf16 %v3638_v15, %v3638_v15 }
0x3f65   :  { %11255 = vmatmul.mubr.msk.bf16.vlgmr.msra.gmra.mxu0 %vm61_vm2, %v3639_v16 }
0x3f66   :  { %11269 = vmatpush3.bf16.msra.mxu0 %v13012_v4  ;;  %11274 = vmatprep.mubr.msk.bf16.mxu0 %vm12982_vm0, %v12981_v0 }
0x3f67   :  { %11270 = vmatprep.subr.bf16.mxu0 %v12981_v0 }
0x3f6a   :  { %11271 = vmatpush3.bf16.msra.mxu0 %v13579_v5 }
0x3f6b   :  { %11272 = vmatprep.subr.bf16.mxu0 %v12981_v0 }
0x3f6e   :  { %11273 = vmatpush3.bf16.msra.mxu0 %v13592_v6 }
0x3f6f   :  { %11288 = vmatprep.subr.bf16.mxu0 %v12981_v0 }
0x4025   :  { %v3677_v17 = vpop.f32.mrf.mxu0 }
0x4026   :  { %12651 = vtanh.f32 %v3677_v17 }
0x4027   :  { %v11256_v18 = vpop.f32.mrf.mxu0 }
0x4029   :  { %v3680_v19 = vpop.f32.mrf.mxu0 }
0x402b   :  { %v11257_v20 = vpop.f32.mrf.mxu0 }
0x4033   :  { %v12652_v21 = vpop.eup %12651 }
0x4034   :  { %v3684_v22 = vmul.f32 0.01, %v12652_v21 }
0x4036   :  { %v3685_v23 = vadd.f32 %v3684_v22, %v3638_v15 }
0x4038   :  { %v3686_v24 = vpack.c.bf16 %v3685_v23, %v3685_v23 }
0x403a   :  { %11265 = vmatmul.mubr.msk.bf16.vlgmr.msra.gmra.mxu1 %vm61_vm2, %v3686_v24 }
0x403b   :  { %11279 = vmatpush3.bf16.msra.mxu1 %v13012_v4  ;;  %11284 = vmatprep.mubr.msk.bf16.mxu1 %vm12982_vm0, %v12981_v0 }
0x403c   :  { %11280 = vmatprep.subr.bf16.mxu1 %v12981_v0 }
0x403f   :  { %11281 = vmatpush3.bf16.msra.mxu1 %v13579_v5 }
0x4040   :  { %11282 = vmatprep.subr.bf16.mxu1 %v12981_v0 }
0x4043   :  { %11283 = vmatpush3.bf16.msra.mxu1 %v13592_v6 }
0x4044   :  { %11298 = vmatprep.subr.bf16.mxu1 %v12981_v0 }
0x40fa   :  { %v3724_v25 = vpop.f32.mrf.mxu1 }
0x40fb   :  { %12653 = vtanh.f32 %v3724_v25 }
0x40fc   :  { %v11266_v26 = vpop.f32.mrf.mxu1 }
0x40fe   :  { %v3727_v27 = vpop.f32.mrf.mxu1 }
0x4100   :  { %v11267_v28 = vpop.f32.mrf.mxu1 }
0x4108   :  { %v12654_v29 = vpop.eup %12653 }
0x4109   :  { %v3731_v30 = vmul.f32 0.01, %v12654_v29 }
0x410b   :  { %v3732_v31 = vadd.f32 %v3731_v30, %v3685_v23 }
0x410d   :  { %v3733_v32 = vpack.c.bf16 %v3732_v31, %v3732_v31 }
0x410f   :  { %11275 = vmatmul.mubr.msk.bf16.vlgmr.msra.gmra.mxu0 %vm61_vm2, %v3733_v32 }
0x4110   :  { %11289 = vmatpush3.bf16.msra.mxu0 %v13012_v4  ;;  %11294 = vmatprep.mubr.msk.bf16.mxu0 %vm12982_vm0, %v12981_v0 }
0x4111   :  { %11290 = vmatprep.subr.bf16.mxu0 %v12981_v0 }
0x4114   :  { %11291 = vmatpush3.bf16.msra.mxu0 %v13579_v5 }
0x4115   :  { %11292 = vmatprep.subr.bf16.mxu0 %v12981_v0 }
0x4118   :  { %11293 = vmatpush3.bf16.msra.mxu0 %v13592_v6 }
0x4119   :  { %11308 = vmatprep.subr.bf16.mxu0 %v12981_v0 }
0x41cf   :  { %v3771_v33 = vpop.f32.mrf.mxu0 }
0x41d0   :  { %12655 = vtanh.f32 %v3771_v33 }
0x41d1   :  { %v11276_v34 = vpop.f32.mrf.mxu0 }
0x41d3   :  { %v3774_v35 = vpop.f32.mrf.mxu0 }
0x41d5   :  { %v11277_v36 = vpop.f32.mrf.mxu0 }
0x41dd   :  { %v12656_v37 = vpop.eup %12655 }
0x41de   :  { %v3778_v38 = vmul.f32 0.01, %v12656_v37 }
0x41e0   :  { %v3779_v39 = vadd.f32 %v3778_v38, %v3732_v31 }
0x41e2   :  { %v3780_v40 = vpack.c.bf16 %v3779_v39, %v3779_v39 }
0x41e4   :  { %11285 = vmatmul.mubr.msk.bf16.vlgmr.msra.gmra.mxu1 %vm61_vm2, %v3780_v40 }
0x41e5   :  { %11299 = vmatpush3.bf16.msra.mxu1 %v13012_v4  ;;  %11304 = vmatprep.mubr.msk.bf16.mxu1 %vm12982_vm0, %v12981_v0 }
0x41e6   :  { %11300 = vmatprep.subr.bf16.mxu1 %v12981_v0 }
0x41e9   :  { %11301 = vmatpush3.bf16.msra.mxu1 %v13579_v5 }
0x41ea   :  { %11302 = vmatprep.subr.bf16.mxu1 %v12981_v0 }
0x41ed   :  { %11303 = vmatpush3.bf16.msra.mxu1 %v13592_v6 }
0x41ee   :  { %11318 = vmatprep.subr.bf16.mxu1 %v12981_v0 }
0x42a4   :  { %v3818_v41 = vpop.f32.mrf.mxu1 }
0x42a5   :  { %12657 = vtanh.f32 %v3818_v41 }
0x42a6   :  { %v11286_v42 = vpop.f32.mrf.mxu1 }
0x42a8   :  { %v3821_v43 = vpop.f32.mrf.mxu1 }
0x42aa   :  { %v11287_v44 = vpop.f32.mrf.mxu1 }
0x42b2   :  { %v12658_v45 = vpop.eup %12657 }
0x42b3   :  { %v3825_v46 = vmul.f32 0.01, %v12658_v45 }
0x42b5   :  { %v3826_v47 = vadd.f32 %v3825_v46, %v3779_v39 }
0x42b7   :  { %v3827_v48 = vpack.c.bf16 %v3826_v47, %v3826_v47 }
0x42b9   :  { %11295 = vmatmul.mubr.msk.bf16.vlgmr.msra.gmra.mxu0 %vm61_vm2, %v3827_v48 }
0x42ba   :  { %11309 = vmatpush3.bf16.msra.mxu0 %v13012_v4  ;;  %11314 = vmatprep.mubr.msk.bf16.mxu0 %vm12982_vm0, %v12981_v0 }
0x42bb   :  { %11310 = vmatprep.subr.bf16.mxu0 %v12981_v0 }
0x42be   :  { %11311 = vmatpush3.bf16.msra.mxu0 %v13579_v5 }
0x42bf   :  { %11312 = vmatprep.subr.bf16.mxu0 %v12981_v0 }
0x42c2   :  { %11313 = vmatpush3.bf16.msra.mxu0 %v13592_v6 }
0x42c3   :  { %11328 = vmatprep.subr.bf16.mxu0 %v12981_v0 }
0x4379   :  { %v3865_v49 = vpop.f32.mrf.mxu0 }
0x437a   :  { %12659 = vtanh.f32 %v3865_v49 }
0x437b   :  { %v11296_v50 = vpop.f32.mrf.mxu0 }
0x437d   :  { %v3868_v51 = vpop.f32.mrf.mxu0 }
0x437f   :  { %v11297_v52 = vpop.f32.mrf.mxu0 }
0x4387   :  { %v12660_v53 = vpop.eup %12659 }
0x4388   :  { %v3872_v54 = vmul.f32 0.01, %v12660_v53 }
0x438a   :  { %v3873_v55 = vadd.f32 %v3872_v54, %v3826_v47 }
0x438c   :  { %v3874_v56 = vpack.c.bf16 %v3873_v55, %v3873_v55 }
0x438e   :  { %11305 = vmatmul.mubr.msk.bf16.vlgmr.msra.gmra.mxu1 %vm61_vm2, %v3874_v56 }
0x438f   :  { %11319 = vmatpush3.bf16.msra.mxu1 %v13012_v4  ;;  %11324 = vmatprep.mubr.msk.bf16.mxu1 %vm12982_vm0, %v12981_v0 }
0x4390   :  { %11320 = vmatprep.subr.bf16.mxu1 %v12981_v0 }
0x4393   :  { %11321 = vmatpush3.bf16.msra.mxu1 %v13579_v5 }
0x4394   :  { %11322 = vmatprep.subr.bf16.mxu1 %v12981_v0 }
0x4397   :  { %11323 = vmatpush3.bf16.msra.mxu1 %v13592_v6 }
0x4398   :  { %11338 = vmatprep.subr.bf16.mxu1 %v12981_v0 }
0x444e   :  { %v3912_v57 = vpop.f32.mrf.mxu1 }
0x444f   :  { %12661 = vtanh.f32 %v3912_v57 }
0x4450   :  { %v11306_v58 = vpop.f32.mrf.mxu1 }
0x4452   :  { %v3915_v59 = vpop.f32.mrf.mxu1 }
0x4454   :  { %v11307_v60 = vpop.f32.mrf.mxu1 }
0x445c   :  { %v12662_v61 = vpop.eup %12661 }
0x445d   :  { %v3919_v62 = vmul.f32 0.01, %v12662_v61 }
0x445f   :  { %v3920_v63 = vadd.f32 %v3919_v62, %v3873_v55 }
0x4461   :  { %v3921_v1 = vpack.c.bf16 %v3920_v63, %v3920_v63 }
0x4463   :  { %11315 = vmatmul.mubr.msk.bf16.vlgmr.msra.gmra.mxu0 %vm61_vm2, %v3921_v1 }
0x4464   :  { %11329 = vmatpush3.bf16.msra.mxu0 %v13012_v4  ;;  %11334 = vmatprep.mubr.msk.bf16.mxu0 %vm12982_vm0, %v12981_v0 }
0x4465   :  { %11330 = vmatprep.subr.bf16.mxu0 %v12981_v0 }
0x4468   :  { %11331 = vmatpush3.bf16.msra.mxu0 %v13579_v5 }
0x4469   :  { %11332 = vmatprep.subr.bf16.mxu0 %v12981_v0 }
0x446c   :  { %11333 = vmatpush3.bf16.msra.mxu0 %v13592_v6 }
0x446d   :  { %11348 = vmatprep.subr.bf16.mxu0 %v12981_v0 }
0x4523   :  { %v3959_v2 = vpop.f32.mrf.mxu0 }
0x4524   :  { %12663 = vtanh.f32 %v3959_v2 }
0x4525   :  { %v11316_v3 = vpop.f32.mrf.mxu0 }
0x4527   :  { %v3962_v7 = vpop.f32.mrf.mxu0 }
0x4529   :  { %v11317_v8 = vpop.f32.mrf.mxu0 }
0x4531   :  { %v12664_v9 = vpop.eup %12663 }
0x4532   :  { %v3966_v10 = vmul.f32 0.01, %v12664_v9 }
0x4534   :  { %v3967_v11 = vadd.f32 %v3966_v10, %v3920_v63 }
0x4536   :  { %v3968_v12 = vpack.c.bf16 %v3967_v11, %v3967_v11 }
0x4538   :  { %11325 = vmatmul.mubr.msk.bf16.vlgmr.msra.gmra.mxu1 %vm61_vm2, %v3968_v12 }
0x4539   :  { %11339 = vmatpush3.bf16.msra.mxu1 %v13012_v4  ;;  %11344 = vmatprep.mubr.msk.bf16.mxu1 %vm12982_vm0, %v12981_v0 }
0x453a   :  { %11340 = vmatprep.subr.bf16.mxu1 %v12981_v0 }
0x453d   :  { %11341 = vmatpush3.bf16.msra.mxu1 %v13579_v5 }
0x453e   :  { %11342 = vmatprep.subr.bf16.mxu1 %v12981_v0 }
0x4541   :  { %11343 = vmatpush3.bf16.msra.mxu1 %v13592_v6 }
0x4542   :  { %11358 = vmatprep.subr.bf16.mxu1 %v12981_v0 }
0x45f8   :  { %v4006_v13 = vpop.f32.mrf.mxu1 }
0x45f9   :  { %12665 = vtanh.f32 %v4006_v13 }
0x45fa   :  { %v11326_v14 = vpop.f32.mrf.mxu1 }
0x45fc   :  { %v4009_v15 = vpop.f32.mrf.mxu1 }
0x45fe   :  { %v11327_v16 = vpop.f32.mrf.mxu1 }
0x4606   :  { %v12666_v17 = vpop.eup %12665 }
0x4607   :  { %v4013_v18 = vmul.f32 0.01, %v12666_v17 }
0x4609   :  { %v4014_v19 = vadd.f32 %v4013_v18, %v3967_v11 }
0x460b   :  { %v4015_v20 = vpack.c.bf16 %v4014_v19, %v4014_v19 }
0x460d   :  { %11335 = vmatmul.mubr.msk.bf16.vlgmr.msra.gmra.mxu0 %vm61_vm2, %v4015_v20 }
0x460e   :  { %11349 = vmatpush3.bf16.msra.mxu0 %v13012_v4  ;;  %11354 = vmatprep.mubr.msk.bf16.mxu0 %vm12982_vm0, %v12981_v0 }
0x460f   :  { %11350 = vmatprep.subr.bf16.mxu0 %v12981_v0 }
0x4612   :  { %11351 = vmatpush3.bf16.msra.mxu0 %v13579_v5 }
0x4613   :  { %11352 = vmatprep.subr.bf16.mxu0 %v12981_v0 }
0x4616   :  { %11353 = vmatpush3.bf16.msra.mxu0 %v13592_v6 }
0x4617   :  { %11368 = vmatprep.subr.bf16.mxu0 %v12981_v0 }
0x46cd   :  { %v4053_v21 = vpop.f32.mrf.mxu0 }
0x46ce   :  { %12667 = vtanh.f32 %v4053_v21 }
0x46cf   :  { %v11336_v22 = vpop.f32.mrf.mxu0 }
0x46d1   :  { %v4056_v23 = vpop.f32.mrf.mxu0 }
0x46d3   :  { %v11337_v24 = vpop.f32.mrf.mxu0 }
0x46db   :  { %v12668_v25 = vpop.eup %12667 }
0x46dc   :  { %v4060_v26 = vmul.f32 0.01, %v12668_v25 }
0x46de   :  { %v4061_v27 = vadd.f32 %v4060_v26, %v4014_v19 }
0x46e0   :  { %v4062_v28 = vpack.c.bf16 %v4061_v27, %v4061_v27 }
0x46e2   :  { %11345 = vmatmul.mubr.msk.bf16.vlgmr.msra.gmra.mxu1 %vm61_vm2, %v4062_v28 }
0x46e3   :  { %11359 = vmatpush3.bf16.msra.mxu1 %v13012_v4  ;;  %11364 = vmatprep.mubr.msk.bf16.mxu1 %vm12982_vm0, %v12981_v0 }
0x46e4   :  { %11360 = vmatprep.subr.bf16.mxu1 %v12981_v0 }
0x46e7   :  { %11361 = vmatpush3.bf16.msra.mxu1 %v13579_v5 }
0x46e8   :  { %11362 = vmatprep.subr.bf16.mxu1 %v12981_v0 }
0x46eb   :  { %11363 = vmatpush3.bf16.msra.mxu1 %v13592_v6 }
0x46ec   :  { %11378 = vmatprep.subr.bf16.mxu1 %v12981_v0 }
0x47a2   :  { %v4100_v29 = vpop.f32.mrf.mxu1 }
0x47a3   :  { %12669 = vtanh.f32 %v4100_v29 }
0x47a4   :  { %v11346_v30 = vpop.f32.mrf.mxu1 }
0x47a6   :  { %v4103_v31 = vpop.f32.mrf.mxu1 }
0x47a8   :  { %v11347_v32 = vpop.f32.mrf.mxu1 }
0x47b0   :  { %v12670_v33 = vpop.eup %12669 }
0x47b1   :  { %v4107_v34 = vmul.f32 0.01, %v12670_v33 }
0x47b3   :  { %v4108_v35 = vadd.f32 %v4107_v34, %v4061_v27 }
0x47b5   :  { %v4109_v36 = vpack.c.bf16 %v4108_v35, %v4108_v35 }
0x47b7   :  { %11355 = vmatmul.mubr.msk.bf16.vlgmr.msra.gmra.mxu0 %vm61_vm2, %v4109_v36 }
0x47b8   :  { %11369 = vmatpush3.bf16.msra.mxu0 %v13012_v4  ;;  %11374 = vmatprep.mubr.msk.bf16.mxu0 %vm12982_vm0, %v12981_v0 }
0x47b9   :  { %11370 = vmatprep.subr.bf16.mxu0 %v12981_v0 }
0x47bc   :  { %11371 = vmatpush3.bf16.msra.mxu0 %v13579_v5 }
0x47bd   :  { %11372 = vmatprep.subr.bf16.mxu0 %v12981_v0 }
0x47c0   :  { %11373 = vmatpush3.bf16.msra.mxu0 %v13592_v6 }
0x47c1   :  { %11388 = vmatprep.subr.bf16.mxu0 %v12981_v0 }
0x4877   :  { %v4147_v37 = vpop.f32.mrf.mxu0 }
0x4878   :  { %12671 = vtanh.f32 %v4147_v37 }
0x4879   :  { %v11356_v38 = vpop.f32.mrf.mxu0 }
0x487b   :  { %v4150_v39 = vpop.f32.mrf.mxu0 }
0x487d   :  { %v11357_v40 = vpop.f32.mrf.mxu0 }
0x4885   :  { %v12672_v41 = vpop.eup %12671 }
0x4886   :  { %v4154_v42 = vmul.f32 0.01, %v12672_v41 }
0x4888   :  { %v4155_v43 = vadd.f32 %v4154_v42, %v4108_v35 }
0x488a   :  { %v4156_v44 = vpack.c.bf16 %v4155_v43, %v4155_v43 }
0x488c   :  { %11365 = vmatmul.mubr.msk.bf16.vlgmr.msra.gmra.mxu1 %vm61_vm2, %v4156_v44 }
0x488d   :  { %11379 = vmatpush3.bf16.msra.mxu1 %v13012_v4  ;;  %11384 = vmatprep.mubr.msk.bf16.mxu1 %vm12982_vm0, %v12981_v0 }
0x488e   :  { %11380 = vmatprep.subr.bf16.mxu1 %v12981_v0 }
0x4891   :  { %11381 = vmatpush3.bf16.msra.mxu1 %v13579_v5 }
0x4892   :  { %11382 = vmatprep.subr.bf16.mxu1 %v12981_v0 }
0x4895   :  { %11383 = vmatpush3.bf16.msra.mxu1 %v13592_v6 }
0x4896   :  { %11398 = vmatprep.subr.bf16.mxu1 %v12981_v0 }
0x494c   :  { %v4194_v45 = vpop.f32.mrf.mxu1 }
0x494d   :  { %12673 = vtanh.f32 %v4194_v45 }
0x494e   :  { %v11366_v46 = vpop.f32.mrf.mxu1 }
0x4950   :  { %v4197_v47 = vpop.f32.mrf.mxu1 }
0x4952   :  { %v11367_v48 = vpop.f32.mrf.mxu1 }
0x495a   :  { %v12674_v49 = vpop.eup %12673 }
0x495b   :  { %v4201_v50 = vmul.f32 0.01, %v12674_v49 }
0x495d   :  { %v4202_v51 = vadd.f32 %v4201_v50, %v4155_v43 }
0x495f   :  { %v4203_v52 = vpack.c.bf16 %v4202_v51, %v4202_v51 }
0x4961   :  { %11375 = vmatmul.mubr.msk.bf16.vlgmr.msra.gmra.mxu0 %vm61_vm2, %v4203_v52 }
0x4962   :  { %11389 = vmatpush3.bf16.msra.mxu0 %v13012_v4  ;;  %11394 = vmatprep.mubr.msk.bf16.mxu0 %vm12982_vm0, %v12981_v0 }
0x4963   :  { %11390 = vmatprep.subr.bf16.mxu0 %v12981_v0 }
0x4966   :  { %11391 = vmatpush3.bf16.msra.mxu0 %v13579_v5 }
0x4967   :  { %11392 = vmatprep.subr.bf16.mxu0 %v12981_v0 }
0x496a   :  { %11393 = vmatpush3.bf16.msra.mxu0 %v13592_v6 }
0x496b   :  { %11408 = vmatprep.subr.bf16.mxu0 %v12981_v0 }
0x4a21   :  { %v4241_v53 = vpop.f32.mrf.mxu0 }
0x4a22   :  { %12675 = vtanh.f32 %v4241_v53 }
0x4a23   :  { %v11376_v54 = vpop.f32.mrf.mxu0 }
0x4a25   :  { %v4244_v55 = vpop.f32.mrf.mxu0 }
0x4a27   :  { %v11377_v56 = vpop.f32.mrf.mxu0 }
0x4a2f   :  { %v12676_v57 = vpop.eup %12675 }
0x4a30   :  { %v4248_v58 = vmul.f32 0.01, %v12676_v57 }
0x4a32   :  { %v4249_v59 = vadd.f32 %v4248_v58, %v4202_v51 }
0x4a34   :  { %v4250_v60 = vpack.c.bf16 %v4249_v59, %v4249_v59 }
0x4a36   :  { %11385 = vmatmul.mubr.msk.bf16.vlgmr.msra.gmra.mxu1 %vm61_vm2, %v4250_v60 }
0x4a37   :  { %11399 = vmatpush3.bf16.msra.mxu1 %v13012_v4  ;;  %11404 = vmatprep.mubr.msk.bf16.mxu1 %vm12982_vm0, %v12981_v0 }
0x4a38   :  { %11400 = vmatprep.subr.bf16.mxu1 %v12981_v0 }
0x4a3b   :  { %11401 = vmatpush3.bf16.msra.mxu1 %v13579_v5 }
0x4a3c   :  { %11402 = vmatprep.subr.bf16.mxu1 %v12981_v0 }
0x4a3f   :  { %11403 = vmatpush3.bf16.msra.mxu1 %v13592_v6 }
0x4a40   :  { %11418 = vmatprep.subr.bf16.mxu1 %v12981_v0 }
0x4af6   :  { %v4288_v61 = vpop.f32.mrf.mxu1 }
0x4af7   :  { %12677 = vtanh.f32 %v4288_v61 }
0x4af8   :  { %v11386_v62 = vpop.f32.mrf.mxu1 }
0x4afa   :  { %v4291_v63 = vpop.f32.mrf.mxu1 }
0x4afc   :  { %v11387_v1 = vpop.f32.mrf.mxu1 }
0x4b04   :  { %v12678_v2 = vpop.eup %12677 }
0x4b05   :  { %v4295_v3 = vmul.f32 0.01, %v12678_v2 }
0x4b07   :  { %v4296_v7 = vadd.f32 %v4295_v3, %v4249_v59 }
0x4b09   :  { %v4297_v8 = vpack.c.bf16 %v4296_v7, %v4296_v7 }
0x4b0b   :  { %11395 = vmatmul.mubr.msk.bf16.vlgmr.msra.gmra.mxu0 %vm61_vm2, %v4297_v8 }
0x4b0c   :  { %11409 = vmatpush3.bf16.msra.mxu0 %v13012_v4  ;;  %11414 = vmatprep.mubr.msk.bf16.mxu0 %vm12982_vm0, %v12981_v0 }
0x4b0d   :  { %11410 = vmatprep.subr.bf16.mxu0 %v12981_v0 }
0x4b10   :  { %11411 = vmatpush3.bf16.msra.mxu0 %v13579_v5  ;;  %v13862_v5 = vld [vmem:[#allocation5 + $0x8] sm:$0xff]  }
0x4b11   :  { %11412 = vmatprep.subr.bf16.mxu0 %v12981_v0 }
0x4b14   :  { %11413 = vmatpush3.bf16.msra.mxu0 %v13592_v6 }
0x4b15   :  { %11428 = vmatprep.subr.bf16.mxu0 %v12981_v0 }
0x4bcb   :  { %v4335_v9 = vpop.f32.mrf.mxu0 }
0x4bcc   :  { %12679 = vtanh.f32 %v4335_v9 }
0x4bcd   :  { %v11396_v10 = vpop.f32.mrf.mxu0 }
0x4bcf   :  { %v4338_v11 = vpop.f32.mrf.mxu0 }
0x4bd1   :  { %v11397_v12 = vpop.f32.mrf.mxu0 }
0x4bd9   :  { %v12680_v13 = vpop.eup %12679 }
0x4bda   :  { %v4342_v14 = vmul.f32 0.01, %v12680_v13 }
0x4bdc   :  { %v4343_v15 = vadd.f32 %v4342_v14, %v4296_v7 }
0x4bde   :  { %v4344_v16 = vpack.c.bf16 %v4343_v15, %v4343_v15 }
0x4be0   :  { %11405 = vmatmul.mubr.msk.bf16.vlgmr.msra.gmra.mxu1 %vm61_vm2, %v4344_v16 }
0x4be1   :  { %11419 = vmatpush3.bf16.msra.mxu1 %v13012_v4  ;;  %11424 = vmatprep.mubr.msk.bf16.mxu1 %vm12982_vm0, %v12981_v0 }
0x4be2   :  { %11420 = vmatprep.subr.bf16.mxu1 %v12981_v0 }
0x4be5   :  { %11421 = vmatpush3.bf16.msra.mxu1 %v13862_v5 }
0x4be6   :  { %11422 = vmatprep.subr.bf16.mxu1 %v12981_v0 }
0x4be9   :  { %11423 = vmatpush3.bf16.msra.mxu1 %v13592_v6  ;;  %v13875_v6 = vld [vmem:[#allocation5] sm:$0xff]  }
0x4bea   :  { %11438 = vmatprep.subr.bf16.mxu1 %v12981_v0 }
0x4ca0   :  { %v4382_v17 = vpop.f32.mrf.mxu1 }
0x4ca1   :  { %12681 = vtanh.f32 %v4382_v17 }
0x4ca2   :  { %v11406_v18 = vpop.f32.mrf.mxu1 }
0x4ca4   :  { %v4385_v19 = vpop.f32.mrf.mxu1 }
0x4ca6   :  { %v11407_v20 = vpop.f32.mrf.mxu1 }
0x4cae   :  { %v12682_v21 = vpop.eup %12681 }
0x4caf   :  { %v4389_v22 = vmul.f32 0.01, %v12682_v21 }
0x4cb1   :  { %v4390_v23 = vadd.f32 %v4389_v22, %v4343_v15 }
0x4cb3   :  { %v4391_v24 = vpack.c.bf16 %v4390_v23, %v4390_v23 }
0x4cb5   :  { %11415 = vmatmul.mubr.msk.bf16.vlgmr.msra.gmra.mxu0 %vm61_vm2, %v4391_v24 }
0x4cb6   :  { %11429 = vmatpush3.bf16.msra.mxu0 %v13012_v4  ;;  %11434 = vmatprep.mubr.msk.bf16.mxu0 %vm12982_vm0, %v12981_v0 }
0x4cb7   :  { %11430 = vmatprep.subr.bf16.mxu0 %v12981_v0 }
0x4cba   :  { %11431 = vmatpush3.bf16.msra.mxu0 %v13862_v5 }
0x4cbb   :  { %11432 = vmatprep.subr.bf16.mxu0 %v12981_v0 }
0x4cbe   :  { %11433 = vmatpush3.bf16.msra.mxu0 %v13875_v6 }
0x4cbf   :  { %11448 = vmatprep.subr.bf16.mxu0 %v12981_v0 }
0x4d75   :  { %v4429_v25 = vpop.f32.mrf.mxu0 }
0x4d76   :  { %12683 = vtanh.f32 %v4429_v25 }
0x4d77   :  { %v11416_v26 = vpop.f32.mrf.mxu0 }
0x4d79   :  { %v4432_v27 = vpop.f32.mrf.mxu0 }
0x4d7b   :  { %v11417_v28 = vpop.f32.mrf.mxu0 }
0x4d83   :  { %v12684_v29 = vpop.eup %12683 }
0x4d84   :  { %v4436_v30 = vmul.f32 0.01, %v12684_v29 }
0x4d86   :  { %v4437_v31 = vadd.f32 %v4436_v30, %v4390_v23 }
0x4d88   :  { %v4438_v32 = vpack.c.bf16 %v4437_v31, %v4437_v31 }
0x4d8a   :  { %11425 = vmatmul.mubr.msk.bf16.vlgmr.msra.gmra.mxu1 %vm61_vm2, %v4438_v32 }
0x4d8b   :  { %11439 = vmatpush3.bf16.msra.mxu1 %v13012_v4  ;;  %11444 = vmatprep.mubr.msk.bf16.mxu1 %vm12982_vm0, %v12981_v0 }
0x4d8c   :  { %11440 = vmatprep.subr.bf16.mxu1 %v12981_v0 }
0x4d8f   :  { %11441 = vmatpush3.bf16.msra.mxu1 %v13862_v5 }
0x4d90   :  { %11442 = vmatprep.subr.bf16.mxu1 %v12981_v0 }
0x4d93   :  { %11443 = vmatpush3.bf16.msra.mxu1 %v13875_v6 }
0x4d94   :  { %11458 = vmatprep.subr.bf16.mxu1 %v12981_v0 }
0x4e4a   :  { %v4476_v33 = vpop.f32.mrf.mxu1 }
0x4e4b   :  { %12685 = vtanh.f32 %v4476_v33 }
0x4e4c   :  { %v11426_v34 = vpop.f32.mrf.mxu1 }
0x4e4e   :  { %v4479_v35 = vpop.f32.mrf.mxu1 }
0x4e50   :  { %v11427_v36 = vpop.f32.mrf.mxu1 }
0x4e58   :  { %v12686_v37 = vpop.eup %12685 }
0x4e59   :  { %v4483_v38 = vmul.f32 0.01, %v12686_v37 }
0x4e5b   :  { %v4484_v39 = vadd.f32 %v4483_v38, %v4437_v31 }
0x4e5d   :  { %v4485_v40 = vpack.c.bf16 %v4484_v39, %v4484_v39 }
0x4e5f   :  { %11435 = vmatmul.mubr.msk.bf16.vlgmr.msra.gmra.mxu0 %vm61_vm2, %v4485_v40 }
0x4e60   :  { %11449 = vmatpush3.bf16.msra.mxu0 %v13012_v4  ;;  %11454 = vmatprep.mubr.msk.bf16.mxu0 %vm12982_vm0, %v12981_v0 }
0x4e61   :  { %11450 = vmatprep.subr.bf16.mxu0 %v12981_v0 }
0x4e64   :  { %11451 = vmatpush3.bf16.msra.mxu0 %v13862_v5 }
0x4e65   :  { %11452 = vmatprep.subr.bf16.mxu0 %v12981_v0 }
0x4e68   :  { %11453 = vmatpush3.bf16.msra.mxu0 %v13875_v6 }
0x4e69   :  { %11468 = vmatprep.subr.bf16.mxu0 %v12981_v0 }
0x4f1f   :  { %v4523_v41 = vpop.f32.mrf.mxu0 }
0x4f20   :  { %12687 = vtanh.f32 %v4523_v41 }
0x4f21   :  { %v11436_v42 = vpop.f32.mrf.mxu0 }
0x4f23   :  { %v4526_v43 = vpop.f32.mrf.mxu0 }
0x4f25   :  { %v11437_v44 = vpop.f32.mrf.mxu0 }
0x4f2d   :  { %v12688_v45 = vpop.eup %12687 }
0x4f2e   :  { %v4530_v46 = vmul.f32 0.01, %v12688_v45 }
0x4f30   :  { %v4531_v47 = vadd.f32 %v4530_v46, %v4484_v39 }
0x4f32   :  { %v4532_v48 = vpack.c.bf16 %v4531_v47, %v4531_v47 }
0x4f34   :  { %11445 = vmatmul.mubr.msk.bf16.vlgmr.msra.gmra.mxu1 %vm61_vm2, %v4532_v48 }
0x4f35   :  { %11459 = vmatpush3.bf16.msra.mxu1 %v13012_v4  ;;  %11464 = vmatprep.mubr.msk.bf16.mxu1 %vm12982_vm0, %v12981_v0 }
0x4f36   :  { %11460 = vmatprep.subr.bf16.mxu1 %v12981_v0 }
0x4f39   :  { %11461 = vmatpush3.bf16.msra.mxu1 %v13862_v5 }
0x4f3a   :  { %11462 = vmatprep.subr.bf16.mxu1 %v12981_v0 }
0x4f3d   :  { %11463 = vmatpush3.bf16.msra.mxu1 %v13875_v6 }
0x4f3e   :  { %11478 = vmatprep.subr.bf16.mxu1 %v12981_v0 }
0x4ff4   :  { %v4570_v49 = vpop.f32.mrf.mxu1 }
0x4ff5   :  { %12689 = vtanh.f32 %v4570_v49 }
0x4ff6   :  { %v11446_v50 = vpop.f32.mrf.mxu1 }
0x4ff8   :  { %v4573_v51 = vpop.f32.mrf.mxu1 }
0x4ffa   :  { %v11447_v52 = vpop.f32.mrf.mxu1 }
0x5002   :  { %v12690_v53 = vpop.eup %12689 }
0x5003   :  { %v4577_v54 = vmul.f32 0.01, %v12690_v53 }
0x5005   :  { %v4578_v55 = vadd.f32 %v4577_v54, %v4531_v47 }
0x5007   :  { %v4579_v56 = vpack.c.bf16 %v4578_v55, %v4578_v55 }
0x5009   :  { %11455 = vmatmul.mubr.msk.bf16.vlgmr.msra.gmra.mxu0 %vm61_vm2, %v4579_v56 }
0x500a   :  { %11469 = vmatpush3.bf16.msra.mxu0 %v13012_v4  ;;  %11474 = vmatprep.mubr.msk.bf16.mxu0 %vm12982_vm0, %v12981_v0 }
0x500b   :  { %11470 = vmatprep.subr.bf16.mxu0 %v12981_v0 }
0x500e   :  { %11471 = vmatpush3.bf16.msra.mxu0 %v13862_v5 }
0x500f   :  { %11472 = vmatprep.subr.bf16.mxu0 %v12981_v0 }
0x5012   :  { %11473 = vmatpush3.bf16.msra.mxu0 %v13875_v6 }
0x5013   :  { %11488 = vmatprep.subr.bf16.mxu0 %v12981_v0 }
0x50c9   :  { %v4617_v57 = vpop.f32.mrf.mxu0 }
0x50ca   :  { %12691 = vtanh.f32 %v4617_v57 }
0x50cb   :  { %v11456_v58 = vpop.f32.mrf.mxu0 }
0x50cd   :  { %v4620_v59 = vpop.f32.mrf.mxu0 }
0x50cf   :  { %v11457_v60 = vpop.f32.mrf.mxu0 }
0x50d7   :  { %v12692_v61 = vpop.eup %12691 }
0x50d8   :  { %v4624_v62 = vmul.f32 0.01, %v12692_v61 }
0x50da   :  { %v4625_v63 = vadd.f32 %v4624_v62, %v4578_v55 }
0x50dc   :  { %v4626_v1 = vpack.c.bf16 %v4625_v63, %v4625_v63 }
0x50de   :  { %11465 = vmatmul.mubr.msk.bf16.vlgmr.msra.gmra.mxu1 %vm61_vm2, %v4626_v1 }
0x50df   :  { %11479 = vmatpush3.bf16.msra.mxu1 %v13012_v4  ;;  %11484 = vmatprep.mubr.msk.bf16.mxu1 %vm12982_vm0, %v12981_v0 }
0x50e0   :  { %11480 = vmatprep.subr.bf16.mxu1 %v12981_v0 }
0x50e3   :  { %11481 = vmatpush3.bf16.msra.mxu1 %v13862_v5 }
0x50e4   :  { %11482 = vmatprep.subr.bf16.mxu1 %v12981_v0 }
0x50e7   :  { %11483 = vmatpush3.bf16.msra.mxu1 %v13875_v6 }
0x50e8   :  { %11498 = vmatprep.subr.bf16.mxu1 %v12981_v0 }
0x519e   :  { %v4664_v2 = vpop.f32.mrf.mxu1 }
0x519f   :  { %12693 = vtanh.f32 %v4664_v2 }
0x51a0   :  { %v11466_v3 = vpop.f32.mrf.mxu1 }
0x51a2   :  { %v4667_v7 = vpop.f32.mrf.mxu1 }
0x51a4   :  { %v11467_v8 = vpop.f32.mrf.mxu1 }
0x51ac   :  { %v12694_v9 = vpop.eup %12693 }
0x51ad   :  { %v4671_v10 = vmul.f32 0.01, %v12694_v9 }
0x51af   :  { %v4672_v11 = vadd.f32 %v4671_v10, %v4625_v63 }
0x51b1   :  { %v4673_v12 = vpack.c.bf16 %v4672_v11, %v4672_v11 }
0x51b3   :  { %11475 = vmatmul.mubr.msk.bf16.vlgmr.msra.gmra.mxu0 %vm61_vm2, %v4673_v12 }
0x51b4   :  { %11489 = vmatpush3.bf16.msra.mxu0 %v13012_v4  ;;  %11494 = vmatprep.mubr.msk.bf16.mxu0 %vm12982_vm0, %v12981_v0 }
0x51b5   :  { %11490 = vmatprep.subr.bf16.mxu0 %v12981_v0 }
0x51b8   :  { %11491 = vmatpush3.bf16.msra.mxu0 %v13862_v5 }
0x51b9   :  { %11492 = vmatprep.subr.bf16.mxu0 %v12981_v0 }
0x51bc   :  { %11493 = vmatpush3.bf16.msra.mxu0 %v13875_v6 }
0x51bd   :  { %11508 = vmatprep.subr.bf16.mxu0 %v12981_v0 }
0x5273   :  { %v4711_v13 = vpop.f32.mrf.mxu0 }
0x5274   :  { %12695 = vtanh.f32 %v4711_v13 }
0x5275   :  { %v11476_v14 = vpop.f32.mrf.mxu0 }
0x5277   :  { %v4714_v15 = vpop.f32.mrf.mxu0 }
0x5279   :  { %v11477_v16 = vpop.f32.mrf.mxu0 }
0x5281   :  { %v12696_v17 = vpop.eup %12695 }
0x5282   :  { %v4718_v18 = vmul.f32 0.01, %v12696_v17 }
0x5284   :  { %v4719_v19 = vadd.f32 %v4718_v18, %v4672_v11 }
0x5286   :  { %v4720_v20 = vpack.c.bf16 %v4719_v19, %v4719_v19 }
0x5288   :  { %11485 = vmatmul.mubr.msk.bf16.vlgmr.msra.gmra.mxu1 %vm61_vm2, %v4720_v20 }
0x5289   :  { %11499 = vmatpush3.bf16.msra.mxu1 %v13012_v4  ;;  %11504 = vmatprep.mubr.msk.bf16.mxu1 %vm12982_vm0, %v12981_v0 }
0x528a   :  { %11500 = vmatprep.subr.bf16.mxu1 %v12981_v0 }
0x528d   :  { %11501 = vmatpush3.bf16.msra.mxu1 %v13862_v5 }
0x528e   :  { %11502 = vmatprep.subr.bf16.mxu1 %v12981_v0 }
0x5291   :  { %11503 = vmatpush3.bf16.msra.mxu1 %v13875_v6 }
0x5292   :  { %11518 = vmatprep.subr.bf16.mxu1 %v12981_v0 }
0x5348   :  { %v4758_v21 = vpop.f32.mrf.mxu1 }
0x5349   :  { %12697 = vtanh.f32 %v4758_v21 }
0x534a   :  { %v11486_v22 = vpop.f32.mrf.mxu1 }
0x534c   :  { %v4761_v23 = vpop.f32.mrf.mxu1 }
0x534e   :  { %v11487_v24 = vpop.f32.mrf.mxu1 }
0x5356   :  { %v12698_v25 = vpop.eup %12697 }
0x5357   :  { %v4765_v26 = vmul.f32 0.01, %v12698_v25 }
0x5359   :  { %v4766_v27 = vadd.f32 %v4765_v26, %v4719_v19 }
0x535b   :  { %v4767_v28 = vpack.c.bf16 %v4766_v27, %v4766_v27 }
0x535d   :  { %11495 = vmatmul.mubr.msk.bf16.vlgmr.msra.gmra.mxu0 %vm61_vm2, %v4767_v28 }
0x535e   :  { %11509 = vmatpush3.bf16.msra.mxu0 %v13012_v4  ;;  %11514 = vmatprep.mubr.msk.bf16.mxu0 %vm12982_vm0, %v12981_v0 }
0x535f   :  { %11510 = vmatprep.subr.bf16.mxu0 %v12981_v0 }
0x5362   :  { %11511 = vmatpush3.bf16.msra.mxu0 %v13862_v5 }
0x5363   :  { %11512 = vmatprep.subr.bf16.mxu0 %v12981_v0 }
0x5366   :  { %11513 = vmatpush3.bf16.msra.mxu0 %v13875_v6 }
0x5367   :  { %11528 = vmatprep.subr.bf16.mxu0 %v12981_v0 }
0x541d   :  { %v4805_v29 = vpop.f32.mrf.mxu0 }
0x541e   :  { %12699 = vtanh.f32 %v4805_v29 }
0x541f   :  { %v11496_v30 = vpop.f32.mrf.mxu0 }
0x5421   :  { %v4808_v31 = vpop.f32.mrf.mxu0 }
0x5423   :  { %v11497_v32 = vpop.f32.mrf.mxu0 }
0x542b   :  { %v12700_v33 = vpop.eup %12699 }
0x542c   :  { %v4812_v34 = vmul.f32 0.01, %v12700_v33 }
0x542e   :  { %v4813_v35 = vadd.f32 %v4812_v34, %v4766_v27 }
0x5430   :  { %v4814_v36 = vpack.c.bf16 %v4813_v35, %v4813_v35 }
0x5432   :  { %11505 = vmatmul.mubr.msk.bf16.vlgmr.msra.gmra.mxu1 %vm61_vm2, %v4814_v36 }
0x5433   :  { %11519 = vmatpush3.bf16.msra.mxu1 %v13012_v4  ;;  %11524 = vmatprep.mubr.msk.bf16.mxu1 %vm12982_vm0, %v12981_v0 }
0x5434   :  { %11520 = vmatprep.subr.bf16.mxu1 %v12981_v0 }
0x5437   :  { %11521 = vmatpush3.bf16.msra.mxu1 %v13862_v5 }
0x5438   :  { %11522 = vmatprep.subr.bf16.mxu1 %v12981_v0 }
0x543b   :  { %11523 = vmatpush3.bf16.msra.mxu1 %v13875_v6 }
0x543c   :  { %11538 = vmatprep.subr.bf16.mxu1 %v12981_v0 }
0x54f2   :  { %v4852_v37 = vpop.f32.mrf.mxu1 }
0x54f3   :  { %12701 = vtanh.f32 %v4852_v37 }
0x54f4   :  { %v11506_v38 = vpop.f32.mrf.mxu1 }
0x54f6   :  { %v4855_v39 = vpop.f32.mrf.mxu1 }
0x54f8   :  { %v11507_v40 = vpop.f32.mrf.mxu1 }
0x5500   :  { %v12702_v41 = vpop.eup %12701 }
0x5501   :  { %v4859_v42 = vmul.f32 0.01, %v12702_v41 }
0x5503   :  { %v4860_v43 = vadd.f32 %v4859_v42, %v4813_v35 }
0x5505   :  { %v4861_v44 = vpack.c.bf16 %v4860_v43, %v4860_v43 }
0x5507   :  { %11515 = vmatmul.mubr.msk.bf16.vlgmr.msra.gmra.mxu0 %vm61_vm2, %v4861_v44 }
0x5508   :  { %11529 = vmatpush3.bf16.msra.mxu0 %v13012_v4  ;;  %11534 = vmatprep.mubr.msk.bf16.mxu0 %vm12982_vm0, %v12981_v0 }
0x5509   :  { %11530 = vmatprep.subr.bf16.mxu0 %v12981_v0 }
0x550c   :  { %11531 = vmatpush3.bf16.msra.mxu0 %v13862_v5 }
0x550d   :  { %11532 = vmatprep.subr.bf16.mxu0 %v12981_v0 }
0x5510   :  { %11533 = vmatpush3.bf16.msra.mxu0 %v13875_v6 }
0x5511   :  { %11548 = vmatprep.subr.bf16.mxu0 %v12981_v0 }
0x55c7   :  { %v4899_v45 = vpop.f32.mrf.mxu0 }
0x55c8   :  { %12703 = vtanh.f32 %v4899_v45 }
0x55c9   :  { %v11516_v46 = vpop.f32.mrf.mxu0 }
0x55cb   :  { %v4902_v47 = vpop.f32.mrf.mxu0 }
0x55cd   :  { %v11517_v48 = vpop.f32.mrf.mxu0 }
0x55d5   :  { %v12704_v49 = vpop.eup %12703 }
0x55d6   :  { %v4906_v50 = vmul.f32 0.01, %v12704_v49 }
0x55d8   :  { %v4907_v51 = vadd.f32 %v4906_v50, %v4860_v43 }
0x55da   :  { %v4908_v52 = vpack.c.bf16 %v4907_v51, %v4907_v51 }
0x55dc   :  { %11525 = vmatmul.mubr.msk.bf16.vlgmr.msra.gmra.mxu1 %vm61_vm2, %v4908_v52 }
0x55dd   :  { %11539 = vmatpush3.bf16.msra.mxu1 %v13012_v4  ;;  %11544 = vmatprep.mubr.msk.bf16.mxu1 %vm12982_vm0, %v12981_v0 }
0x55de   :  { %11540 = vmatprep.subr.bf16.mxu1 %v12981_v0 }
0x55e1   :  { %11541 = vmatpush3.bf16.msra.mxu1 %v13862_v5 }
0x55e2   :  { %11542 = vmatprep.subr.bf16.mxu1 %v12981_v0 }
0x55e5   :  { %11543 = vmatpush3.bf16.msra.mxu1 %v13875_v6 }
0x55e6   :  { %11558 = vmatprep.subr.bf16.mxu1 %v12981_v0 }
0x569c   :  { %v4946_v53 = vpop.f32.mrf.mxu1 }
0x569d   :  { %12705 = vtanh.f32 %v4946_v53 }
0x569e   :  { %v11526_v54 = vpop.f32.mrf.mxu1 }
0x56a0   :  { %v4949_v55 = vpop.f32.mrf.mxu1 }
0x56a2   :  { %v11527_v56 = vpop.f32.mrf.mxu1 }
0x56aa   :  { %v12706_v57 = vpop.eup %12705 }
0x56ab   :  { %v4953_v58 = vmul.f32 0.01, %v12706_v57 }
0x56ad   :  { %v4954_v59 = vadd.f32 %v4953_v58, %v4907_v51 }
0x56af   :  { %v4955_v60 = vpack.c.bf16 %v4954_v59, %v4954_v59 }
0x56b1   :  { %11535 = vmatmul.mubr.msk.bf16.vlgmr.msra.gmra.mxu0 %vm61_vm2, %v4955_v60 }
0x56b2   :  { %11549 = vmatpush3.bf16.msra.mxu0 %v13012_v4  ;;  %11554 = vmatprep.mubr.msk.bf16.mxu0 %vm12982_vm0, %v12981_v0 }
0x56b3   :  { %11550 = vmatprep.subr.bf16.mxu0 %v12981_v0 }
0x56b6   :  { %11551 = vmatpush3.bf16.msra.mxu0 %v13862_v5 }
0x56b7   :  { %11552 = vmatprep.subr.bf16.mxu0 %v12981_v0 }
0x56ba   :  { %11553 = vmatpush3.bf16.msra.mxu0 %v13875_v6 }
0x56bb   :  { %11568 = vmatprep.subr.bf16.mxu0 %v12981_v0 }
0x5771   :  { %v4993_v61 = vpop.f32.mrf.mxu0 }
0x5772   :  { %12707 = vtanh.f32 %v4993_v61 }
0x5773   :  { %v11536_v62 = vpop.f32.mrf.mxu0 }
0x5775   :  { %v4996_v63 = vpop.f32.mrf.mxu0 }
0x5777   :  { %v11537_v1 = vpop.f32.mrf.mxu0 }
0x577f   :  { %v12708_v2 = vpop.eup %12707 }
0x5780   :  { %v5000_v3 = vmul.f32 0.01, %v12708_v2 }
0x5782   :  { %v5001_v7 = vadd.f32 %v5000_v3, %v4954_v59 }
0x5784   :  { %v5002_v8 = vpack.c.bf16 %v5001_v7, %v5001_v7 }
0x5786   :  { %11545 = vmatmul.mubr.msk.bf16.vlgmr.msra.gmra.mxu1 %vm61_vm2, %v5002_v8 }
0x5787   :  { %11559 = vmatpush3.bf16.msra.mxu1 %v13012_v4  ;;  %11564 = vmatprep.mubr.msk.bf16.mxu1 %vm12982_vm0, %v12981_v0 }
0x5788   :  { %11560 = vmatprep.subr.bf16.mxu1 %v12981_v0 }
0x578b   :  { %11561 = vmatpush3.bf16.msra.mxu1 %v13862_v5 }
0x578c   :  { %11562 = vmatprep.subr.bf16.mxu1 %v12981_v0 }
0x578f   :  { %11563 = vmatpush3.bf16.msra.mxu1 %v13875_v6 }
0x5790   :  { %11578 = vmatprep.subr.bf16.mxu1 %v12981_v0 }
0x5846   :  { %v5040_v9 = vpop.f32.mrf.mxu1 }
0x5847   :  { %12709 = vtanh.f32 %v5040_v9 }
0x5848   :  { %v11546_v10 = vpop.f32.mrf.mxu1 }
0x584a   :  { %v5043_v11 = vpop.f32.mrf.mxu1 }
0x584c   :  { %v11547_v12 = vpop.f32.mrf.mxu1 }
0x5854   :  { %v12710_v13 = vpop.eup %12709 }
0x5855   :  { %v5047_v14 = vmul.f32 0.01, %v12710_v13 }
0x5857   :  { %v5048_v15 = vadd.f32 %v5047_v14, %v5001_v7 }
0x5859   :  { %v5049_v16 = vpack.c.bf16 %v5048_v15, %v5048_v15 }
0x585b   :  { %11555 = vmatmul.mubr.msk.bf16.vlgmr.msra.gmra.mxu0 %vm61_vm2, %v5049_v16 }
0x585c   :  { %11569 = vmatpush3.bf16.msra.mxu0 %v13012_v4  ;;  %11574 = vmatprep.mubr.msk.bf16.mxu0 %vm12982_vm0, %v12981_v0 }
0x585d   :  { %11570 = vmatprep.subr.bf16.mxu0 %v12981_v0 }
0x5860   :  { %11571 = vmatpush3.bf16.msra.mxu0 %v13862_v5 }
0x5861   :  { %11572 = vmatprep.subr.bf16.mxu0 %v12981_v0 }
0x5864   :  { %11573 = vmatpush3.bf16.msra.mxu0 %v13875_v6 }
0x5865   :  { %11588 = vmatprep.subr.bf16.mxu0 %v12981_v0 }
0x591b   :  { %v5087_v17 = vpop.f32.mrf.mxu0 }
0x591c   :  { %12711 = vtanh.f32 %v5087_v17 }
0x591d   :  { %v11556_v18 = vpop.f32.mrf.mxu0 }
0x591f   :  { %v5090_v19 = vpop.f32.mrf.mxu0 }
0x5921   :  { %v11557_v20 = vpop.f32.mrf.mxu0 }
0x5929   :  { %v12712_v21 = vpop.eup %12711 }
0x592a   :  { %v5094_v22 = vmul.f32 0.01, %v12712_v21 }
0x592c   :  { %v5095_v23 = vadd.f32 %v5094_v22, %v5048_v15 }
0x592e   :  { %v5096_v24 = vpack.c.bf16 %v5095_v23, %v5095_v23 }
0x5930   :  { %11565 = vmatmul.mubr.msk.bf16.vlgmr.msra.gmra.mxu1 %vm61_vm2, %v5096_v24 }
0x5931   :  { %11579 = vmatpush3.bf16.msra.mxu1 %v13012_v4  ;;  %11584 = vmatprep.mubr.msk.bf16.mxu1 %vm12982_vm0, %v12981_v0 }
0x5932   :  { %11580 = vmatprep.subr.bf16.mxu1 %v12981_v0 }
0x5935   :  { %11581 = vmatpush3.bf16.msra.mxu1 %v13862_v5 }
0x5936   :  { %11582 = vmatprep.subr.bf16.mxu1 %v12981_v0 }
0x5939   :  { %11583 = vmatpush3.bf16.msra.mxu1 %v13875_v6 }
0x593a   :  { %11598 = vmatprep.subr.bf16.mxu1 %v12981_v0 }
0x59f0   :  { %v5134_v25 = vpop.f32.mrf.mxu1 }
0x59f1   :  { %12713 = vtanh.f32 %v5134_v25 }
0x59f2   :  { %v11566_v26 = vpop.f32.mrf.mxu1 }
0x59f4   :  { %v5137_v27 = vpop.f32.mrf.mxu1 }
0x59f6   :  { %v11567_v28 = vpop.f32.mrf.mxu1 }
0x59fe   :  { %v12714_v29 = vpop.eup %12713 }
0x59ff   :  { %v5141_v30 = vmul.f32 0.01, %v12714_v29 }
0x5a01   :  { %v5142_v31 = vadd.f32 %v5141_v30, %v5095_v23 }
0x5a03   :  { %v5143_v32 = vpack.c.bf16 %v5142_v31, %v5142_v31 }
0x5a05   :  { %11575 = vmatmul.mubr.msk.bf16.vlgmr.msra.gmra.mxu0 %vm61_vm2, %v5143_v32 }
0x5a06   :  { %11589 = vmatpush3.bf16.msra.mxu0 %v13012_v4  ;;  %11594 = vmatprep.mubr.msk.bf16.mxu0 %vm12982_vm0, %v12981_v0 }
0x5a07   :  { %11590 = vmatprep.subr.bf16.mxu0 %v12981_v0 }
0x5a0a   :  { %11591 = vmatpush3.bf16.msra.mxu0 %v13862_v5 }
0x5a0b   :  { %11592 = vmatprep.subr.bf16.mxu0 %v12981_v0 }
0x5a0e   :  { %11593 = vmatpush3.bf16.msra.mxu0 %v13875_v6 }
0x5a0f   :  { %11608 = vmatprep.subr.bf16.mxu0 %v12981_v0 }
0x5ac5   :  { %v5181_v33 = vpop.f32.mrf.mxu0 }
0x5ac6   :  { %12715 = vtanh.f32 %v5181_v33 }
0x5ac7   :  { %v11576_v34 = vpop.f32.mrf.mxu0 }
0x5ac9   :  { %v5184_v35 = vpop.f32.mrf.mxu0 }
0x5acb   :  { %v11577_v36 = vpop.f32.mrf.mxu0 }
0x5ad3   :  { %v12716_v37 = vpop.eup %12715 }
0x5ad4   :  { %v5188_v38 = vmul.f32 0.01, %v12716_v37 }
0x5ad6   :  { %v5189_v39 = vadd.f32 %v5188_v38, %v5142_v31 }
0x5ad8   :  { %v5190_v40 = vpack.c.bf16 %v5189_v39, %v5189_v39 }
0x5ada   :  { %11585 = vmatmul.mubr.msk.bf16.vlgmr.msra.gmra.mxu1 %vm61_vm2, %v5190_v40 }
0x5adb   :  { %11599 = vmatpush3.bf16.msra.mxu1 %v13012_v4  ;;  %11604 = vmatprep.mubr.msk.bf16.mxu1 %vm12982_vm0, %v12981_v0 }
0x5adc   :  { %11600 = vmatprep.subr.bf16.mxu1 %v12981_v0 }
0x5adf   :  { %11601 = vmatpush3.bf16.msra.mxu1 %v13862_v5 }
0x5ae0   :  { %11602 = vmatprep.subr.bf16.mxu1 %v12981_v0 }
0x5ae3   :  { %11603 = vmatpush3.bf16.msra.mxu1 %v13875_v6 }
0x5ae4   :  { %11618 = vmatprep.subr.bf16.mxu1 %v12981_v0 }
0x5b9a   :  { %v5228_v41 = vpop.f32.mrf.mxu1 }
0x5b9b   :  { %12717 = vtanh.f32 %v5228_v41 }
0x5b9c   :  { %v11586_v42 = vpop.f32.mrf.mxu1 }
0x5b9e   :  { %v5231_v43 = vpop.f32.mrf.mxu1 }
0x5ba0   :  { %v11587_v44 = vpop.f32.mrf.mxu1 }
0x5ba8   :  { %v12718_v45 = vpop.eup %12717 }
0x5ba9   :  { %v5235_v46 = vmul.f32 0.01, %v12718_v45 }
0x5bab   :  { %v5236_v47 = vadd.f32 %v5235_v46, %v5189_v39 }
0x5bad   :  { %v5237_v48 = vpack.c.bf16 %v5236_v47, %v5236_v47 }
0x5baf   :  { %11595 = vmatmul.mubr.msk.bf16.vlgmr.msra.gmra.mxu0 %vm61_vm2, %v5237_v48 }
0x5bb0   :  { %11609 = vmatpush3.bf16.msra.mxu0 %v13012_v4  ;;  %11614 = vmatprep.mubr.msk.bf16.mxu0 %vm12982_vm0, %v12981_v0 }
0x5bb1   :  { %11610 = vmatprep.subr.bf16.mxu0 %v12981_v0 }
0x5bb4   :  { %11611 = vmatpush3.bf16.msra.mxu0 %v13862_v5 }
0x5bb5   :  { %11612 = vmatprep.subr.bf16.mxu0 %v12981_v0 }
0x5bb8   :  { %11613 = vmatpush3.bf16.msra.mxu0 %v13875_v6 }
0x5bb9   :  { %11628 = vmatprep.subr.bf16.mxu0 %v12981_v0 }
0x5c6f   :  { %v5275_v49 = vpop.f32.mrf.mxu0 }
0x5c70   :  { %12719 = vtanh.f32 %v5275_v49 }
0x5c71   :  { %v11596_v50 = vpop.f32.mrf.mxu0 }
0x5c73   :  { %v5278_v51 = vpop.f32.mrf.mxu0 }
0x5c75   :  { %v11597_v52 = vpop.f32.mrf.mxu0 }
0x5c7d   :  { %v12720_v53 = vpop.eup %12719 }
0x5c7e   :  { %v5282_v54 = vmul.f32 0.01, %v12720_v53 }
0x5c80   :  { %v5283_v55 = vadd.f32 %v5282_v54, %v5236_v47 }
0x5c82   :  { %v5284_v56 = vpack.c.bf16 %v5283_v55, %v5283_v55 }
0x5c84   :  { %11605 = vmatmul.mubr.msk.bf16.vlgmr.msra.gmra.mxu1 %vm61_vm2, %v5284_v56 }
0x5c85   :  { %11619 = vmatpush3.bf16.msra.mxu1 %v13012_v4  ;;  %11624 = vmatprep.mubr.msk.bf16.mxu1 %vm12982_vm0, %v12981_v0 }
0x5c86   :  { %11620 = vmatprep.subr.bf16.mxu1 %v12981_v0 }
0x5c89   :  { %11621 = vmatpush3.bf16.msra.mxu1 %v13862_v5 }
0x5c8a   :  { %11622 = vmatprep.subr.bf16.mxu1 %v12981_v0 }
0x5c8d   :  { %11623 = vmatpush3.bf16.msra.mxu1 %v13875_v6 }
0x5c8e   :  { %11638 = vmatprep.subr.bf16.mxu1 %v12981_v0 }
0x5d44   :  { %v5322_v57 = vpop.f32.mrf.mxu1 }
0x5d45   :  { %12721 = vtanh.f32 %v5322_v57 }
0x5d46   :  { %v11606_v58 = vpop.f32.mrf.mxu1 }
0x5d48   :  { %v5325_v59 = vpop.f32.mrf.mxu1 }
0x5d4a   :  { %v11607_v60 = vpop.f32.mrf.mxu1 }
0x5d52   :  { %v12722_v61 = vpop.eup %12721 }
0x5d53   :  { %v5329_v62 = vmul.f32 0.01, %v12722_v61 }
0x5d55   :  { %v5330_v63 = vadd.f32 %v5329_v62, %v5283_v55 }
0x5d57   :  { %v5331_v1 = vpack.c.bf16 %v5330_v63, %v5330_v63 }
0x5d59   :  { %11615 = vmatmul.mubr.msk.bf16.vlgmr.msra.gmra.mxu0 %vm61_vm2, %v5331_v1 }
0x5d5a   :  { %11629 = vmatpush3.bf16.msra.mxu0 %v13012_v4  ;;  %11634 = vmatprep.mubr.msk.bf16.mxu0 %vm12982_vm0, %v12981_v0 }
0x5d5b   :  { %11630 = vmatprep.subr.bf16.mxu0 %v12981_v0 }
0x5d5e   :  { %11631 = vmatpush3.bf16.msra.mxu0 %v13862_v5 }
0x5d5f   :  { %11632 = vmatprep.subr.bf16.mxu0 %v12981_v0 }
0x5d62   :  { %11633 = vmatpush3.bf16.msra.mxu0 %v13875_v6 }
0x5d63   :  { %11648 = vmatprep.subr.bf16.mxu0 %v12981_v0 }
0x5e19   :  { %v5369_v2 = vpop.f32.mrf.mxu0 }
0x5e1a   :  { %12723 = vtanh.f32 %v5369_v2 }
0x5e1b   :  { %v11616_v3 = vpop.f32.mrf.mxu0 }
0x5e1d   :  { %v5372_v7 = vpop.f32.mrf.mxu0 }
0x5e1f   :  { %v11617_v8 = vpop.f32.mrf.mxu0 }
0x5e27   :  { %v12724_v9 = vpop.eup %12723 }
0x5e28   :  { %v5376_v10 = vmul.f32 0.01, %v12724_v9 }
0x5e2a   :  { %v5377_v11 = vadd.f32 %v5376_v10, %v5330_v63 }
0x5e2c   :  { %v5378_v12 = vpack.c.bf16 %v5377_v11, %v5377_v11 }
0x5e2e   :  { %11625 = vmatmul.mubr.msk.bf16.vlgmr.msra.gmra.mxu1 %vm61_vm2, %v5378_v12 }
0x5e2f   :  { %11639 = vmatpush3.bf16.msra.mxu1 %v13012_v4  ;;  %11644 = vmatprep.mubr.msk.bf16.mxu1 %vm12982_vm0, %v12981_v0 }
0x5e30   :  { %11640 = vmatprep.subr.bf16.mxu1 %v12981_v0 }
0x5e33   :  { %11641 = vmatpush3.bf16.msra.mxu1 %v13862_v5 }
0x5e34   :  { %11642 = vmatprep.subr.bf16.mxu1 %v12981_v0 }
0x5e37   :  { %11643 = vmatpush3.bf16.msra.mxu1 %v13875_v6 }
0x5e38   :  { %11658 = vmatprep.subr.bf16.mxu1 %v12981_v0 }
0x5eee   :  { %v5416_v13 = vpop.f32.mrf.mxu1 }
0x5eef   :  { %12725 = vtanh.f32 %v5416_v13 }
0x5ef0   :  { %v11626_v14 = vpop.f32.mrf.mxu1 }
0x5ef2   :  { %v5419_v15 = vpop.f32.mrf.mxu1 }
0x5ef4   :  { %v11627_v16 = vpop.f32.mrf.mxu1 }
0x5efc   :  { %v12726_v17 = vpop.eup %12725 }
0x5efd   :  { %v5423_v18 = vmul.f32 0.01, %v12726_v17 }
0x5eff   :  { %v5424_v19 = vadd.f32 %v5423_v18, %v5377_v11 }
0x5f01   :  { %v5425_v20 = vpack.c.bf16 %v5424_v19, %v5424_v19 }
0x5f03   :  { %11635 = vmatmul.mubr.msk.bf16.vlgmr.msra.gmra.mxu0 %vm61_vm2, %v5425_v20 }
0x5f04   :  { %11649 = vmatpush3.bf16.msra.mxu0 %v13012_v4  ;;  %11654 = vmatprep.mubr.msk.bf16.mxu0 %vm12982_vm0, %v12981_v0 }
0x5f05   :  { %11650 = vmatprep.subr.bf16.mxu0 %v12981_v0 }
0x5f08   :  { %11651 = vmatpush3.bf16.msra.mxu0 %v13862_v5 }
0x5f09   :  { %11652 = vmatprep.subr.bf16.mxu0 %v12981_v0 }
0x5f0c   :  { %11653 = vmatpush3.bf16.msra.mxu0 %v13875_v6 }
0x5f0d   :  { %11668 = vmatprep.subr.bf16.mxu0 %v12981_v0 }
0x5fc3   :  { %v5463_v21 = vpop.f32.mrf.mxu0 }
0x5fc4   :  { %12727 = vtanh.f32 %v5463_v21 }
0x5fc5   :  { %v11636_v22 = vpop.f32.mrf.mxu0 }
0x5fc7   :  { %v5466_v23 = vpop.f32.mrf.mxu0 }
0x5fc9   :  { %v11637_v24 = vpop.f32.mrf.mxu0 }
0x5fd1   :  { %v12728_v25 = vpop.eup %12727 }
0x5fd2   :  { %v5470_v26 = vmul.f32 0.01, %v12728_v25 }
0x5fd4   :  { %v5471_v27 = vadd.f32 %v5470_v26, %v5424_v19 }
0x5fd6   :  { %v5472_v28 = vpack.c.bf16 %v5471_v27, %v5471_v27 }
0x5fd8   :  { %11645 = vmatmul.mubr.msk.bf16.vlgmr.msra.gmra.mxu1 %vm61_vm2, %v5472_v28 }
0x5fd9   :  { %11659 = vmatpush3.bf16.msra.mxu1 %v13012_v4  ;;  %11664 = vmatprep.mubr.msk.bf16.mxu1 %vm12982_vm0, %v12981_v0 }
0x5fda   :  { %11660 = vmatprep.subr.bf16.mxu1 %v12981_v0 }
0x5fdd   :  { %11661 = vmatpush3.bf16.msra.mxu1 %v13862_v5 }
0x5fde   :  { %11662 = vmatprep.subr.bf16.mxu1 %v12981_v0 }
0x5fe1   :  { %11663 = vmatpush3.bf16.msra.mxu1 %v13875_v6 }
0x5fe2   :  { %11678 = vmatprep.subr.bf16.mxu1 %v12981_v0 }
0x6098   :  { %v5510_v29 = vpop.f32.mrf.mxu1 }
0x6099   :  { %12729 = vtanh.f32 %v5510_v29 }
0x609a   :  { %v11646_v30 = vpop.f32.mrf.mxu1 }
0x609c   :  { %v5513_v31 = vpop.f32.mrf.mxu1 }
0x609e   :  { %v11647_v32 = vpop.f32.mrf.mxu1 }
0x60a6   :  { %v12730_v33 = vpop.eup %12729 }
0x60a7   :  { %v5517_v34 = vmul.f32 0.01, %v12730_v33 }
0x60a9   :  { %v5518_v35 = vadd.f32 %v5517_v34, %v5471_v27 }
0x60ab   :  { %v5519_v36 = vpack.c.bf16 %v5518_v35, %v5518_v35 }
0x60ad   :  { %11655 = vmatmul.mubr.msk.bf16.vlgmr.msra.gmra.mxu0 %vm61_vm2, %v5519_v36 }
0x60ae   :  { %11669 = vmatpush3.bf16.msra.mxu0 %v13012_v4  ;;  %11674 = vmatprep.mubr.msk.bf16.mxu0 %vm12982_vm0, %v12981_v0 }
0x60af   :  { %11670 = vmatprep.subr.bf16.mxu0 %v12981_v0 }
0x60b2   :  { %11671 = vmatpush3.bf16.msra.mxu0 %v13862_v5 }
0x60b3   :  { %11672 = vmatprep.subr.bf16.mxu0 %v12981_v0 }
0x60b6   :  { %11673 = vmatpush3.bf16.msra.mxu0 %v13875_v6 }
0x60b7   :  { %11688 = vmatprep.subr.bf16.mxu0 %v12981_v0 }
0x616d   :  { %v5557_v37 = vpop.f32.mrf.mxu0 }
0x616e   :  { %12731 = vtanh.f32 %v5557_v37 }
0x616f   :  { %v11656_v38 = vpop.f32.mrf.mxu0 }
0x6171   :  { %v5560_v39 = vpop.f32.mrf.mxu0 }
0x6173   :  { %v11657_v40 = vpop.f32.mrf.mxu0 }
0x617b   :  { %v12732_v41 = vpop.eup %12731 }
0x617c   :  { %v5564_v42 = vmul.f32 0.01, %v12732_v41 }
0x617e   :  { %v5565_v43 = vadd.f32 %v5564_v42, %v5518_v35 }
0x6180   :  { %v5566_v44 = vpack.c.bf16 %v5565_v43, %v5565_v43 }
0x6182   :  { %11665 = vmatmul.mubr.msk.bf16.vlgmr.msra.gmra.mxu1 %vm61_vm2, %v5566_v44 }
0x6183   :  { %11679 = vmatpush3.bf16.msra.mxu1 %v13012_v4  ;;  %11684 = vmatprep.mubr.msk.bf16.mxu1 %vm12982_vm0, %v12981_v0 }
0x6184   :  { %11680 = vmatprep.subr.bf16.mxu1 %v12981_v0 }
0x6187   :  { %11681 = vmatpush3.bf16.msra.mxu1 %v13862_v5 }
0x6188   :  { %11682 = vmatprep.subr.bf16.mxu1 %v12981_v0 }
0x618b   :  { %11683 = vmatpush3.bf16.msra.mxu1 %v13875_v6 }
0x618c   :  { %11698 = vmatprep.subr.bf16.mxu1 %v12981_v0 }
0x6242   :  { %v5604_v45 = vpop.f32.mrf.mxu1 }
0x6243   :  { %12733 = vtanh.f32 %v5604_v45 }
0x6244   :  { %v11666_v46 = vpop.f32.mrf.mxu1 }
0x6246   :  { %v5607_v47 = vpop.f32.mrf.mxu1 }
0x6248   :  { %v11667_v48 = vpop.f32.mrf.mxu1 }
0x6250   :  { %v12734_v49 = vpop.eup %12733 }
0x6251   :  { %v5611_v50 = vmul.f32 0.01, %v12734_v49 }
0x6253   :  { %v5612_v51 = vadd.f32 %v5611_v50, %v5565_v43 }
0x6255   :  { %v5613_v52 = vpack.c.bf16 %v5612_v51, %v5612_v51 }
0x6257   :  { %11675 = vmatmul.mubr.msk.bf16.vlgmr.msra.gmra.mxu0 %vm61_vm2, %v5613_v52 }
0x6258   :  { %11689 = vmatpush3.bf16.msra.mxu0 %v13012_v4  ;;  %11694 = vmatprep.mubr.msk.bf16.mxu0 %vm12982_vm0, %v12981_v0 }
0x6259   :  { %11690 = vmatprep.subr.bf16.mxu0 %v12981_v0 }
0x625c   :  { %11691 = vmatpush3.bf16.msra.mxu0 %v13862_v5 }
0x625d   :  { %11692 = vmatprep.subr.bf16.mxu0 %v12981_v0 }
0x6260   :  { %11693 = vmatpush3.bf16.msra.mxu0 %v13875_v6 }
0x6261   :  { %11708 = vmatprep.subr.bf16.mxu0 %v12981_v0 }
0x6317   :  { %v5651_v53 = vpop.f32.mrf.mxu0 }
0x6318   :  { %12735 = vtanh.f32 %v5651_v53 }
0x6319   :  { %v11676_v54 = vpop.f32.mrf.mxu0 }
0x631b   :  { %v5654_v55 = vpop.f32.mrf.mxu0 }
0x631d   :  { %v11677_v56 = vpop.f32.mrf.mxu0 }
0x6325   :  { %v12736_v57 = vpop.eup %12735 }
0x6326   :  { %v5658_v58 = vmul.f32 0.01, %v12736_v57 }
0x6328   :  { %v5659_v59 = vadd.f32 %v5658_v58, %v5612_v51 }
0x632a   :  { %v5660_v60 = vpack.c.bf16 %v5659_v59, %v5659_v59 }
0x632c   :  { %11685 = vmatmul.mubr.msk.bf16.vlgmr.msra.gmra.mxu1 %vm61_vm2, %v5660_v60 }
0x632d   :  { %11699 = vmatpush3.bf16.msra.mxu1 %v13012_v4  ;;  %11704 = vmatprep.mubr.msk.bf16.mxu1 %vm12982_vm0, %v12981_v0 }
0x632e   :  { %11700 = vmatprep.subr.bf16.mxu1 %v12981_v0 }
0x6331   :  { %11701 = vmatpush3.bf16.msra.mxu1 %v13862_v5 }
0x6332   :  { %11702 = vmatprep.subr.bf16.mxu1 %v12981_v0 }
0x6335   :  { %11703 = vmatpush3.bf16.msra.mxu1 %v13875_v6 }
0x6336   :  { %11718 = vmatprep.subr.bf16.mxu1 %v12981_v0 }
0x63ec   :  { %v5698_v61 = vpop.f32.mrf.mxu1 }
0x63ed   :  { %12737 = vtanh.f32 %v5698_v61 }
0x63ee   :  { %v11686_v62 = vpop.f32.mrf.mxu1 }
0x63f0   :  { %v5701_v63 = vpop.f32.mrf.mxu1 }
0x63f2   :  { %v11687_v1 = vpop.f32.mrf.mxu1 }
0x63fa   :  { %v12738_v2 = vpop.eup %12737 }
0x63fb   :  { %v5705_v3 = vmul.f32 0.01, %v12738_v2 }
0x63fd   :  { %v5706_v7 = vadd.f32 %v5705_v3, %v5659_v59 }
0x63ff   :  { %v5707_v8 = vpack.c.bf16 %v5706_v7, %v5706_v7 }
0x6401   :  { %11695 = vmatmul.mubr.msk.bf16.vlgmr.msra.gmra.mxu0 %vm61_vm2, %v5707_v8 }
0x6402   :  { %11709 = vmatpush3.bf16.msra.mxu0 %v13012_v4  ;;  %11714 = vmatprep.mubr.msk.bf16.mxu0 %vm12982_vm0, %v12981_v0 }
0x6403   :  { %11710 = vmatprep.subr.bf16.mxu0 %v12981_v0 }
0x6406   :  { %11711 = vmatpush3.bf16.msra.mxu0 %v13862_v5 }
0x6407   :  { %11712 = vmatprep.subr.bf16.mxu0 %v12981_v0 }
0x640a   :  { %11713 = vmatpush3.bf16.msra.mxu0 %v13875_v6 }
0x640b   :  { %11728 = vmatprep.subr.bf16.mxu0 %v12981_v0 }
0x64c1   :  { %v5745_v9 = vpop.f32.mrf.mxu0 }
0x64c2   :  { %12739 = vtanh.f32 %v5745_v9 }
0x64c3   :  { %v11696_v10 = vpop.f32.mrf.mxu0 }
0x64c5   :  { %v5748_v11 = vpop.f32.mrf.mxu0 }
0x64c7   :  { %v11697_v12 = vpop.f32.mrf.mxu0 }
0x64cf   :  { %v12740_v13 = vpop.eup %12739 }
0x64d0   :  { %v5752_v14 = vmul.f32 0.01, %v12740_v13 }
0x64d2   :  { %v5753_v15 = vadd.f32 %v5752_v14, %v5706_v7 }
0x64d4   :  { %v5754_v16 = vpack.c.bf16 %v5753_v15, %v5753_v15 }
0x64d6   :  { %11705 = vmatmul.mubr.msk.bf16.vlgmr.msra.gmra.mxu1 %vm61_vm2, %v5754_v16 }
0x64d7   :  { %11719 = vmatpush3.bf16.msra.mxu1 %v13012_v4  ;;  %11724 = vmatprep.mubr.msk.bf16.mxu1 %vm12982_vm0, %v12981_v0 }
0x64d8   :  { %11720 = vmatprep.subr.bf16.mxu1 %v12981_v0 }
0x64db   :  { %11721 = vmatpush3.bf16.msra.mxu1 %v13862_v5  ;;  %v14145_v5 = vld [vmem:[#allocation5 + $0x8] sm:$0xff]  }
0x64dc   :  { %11722 = vmatprep.subr.bf16.mxu1 %v12981_v0 }
0x64df   :  { %11723 = vmatpush3.bf16.msra.mxu1 %v13875_v6 }
0x64e0   :  { %11738 = vmatprep.subr.bf16.mxu1 %v12981_v0 }
0x6596   :  { %v5792_v17 = vpop.f32.mrf.mxu1 }
0x6597   :  { %12741 = vtanh.f32 %v5792_v17 }
0x6598   :  { %v11706_v18 = vpop.f32.mrf.mxu1 }
0x659a   :  { %v5795_v19 = vpop.f32.mrf.mxu1 }
0x659c   :  { %v11707_v20 = vpop.f32.mrf.mxu1 }
0x65a4   :  { %v12742_v21 = vpop.eup %12741 }
0x65a5   :  { %v5799_v22 = vmul.f32 0.01, %v12742_v21 }
0x65a7   :  { %v5800_v23 = vadd.f32 %v5799_v22, %v5753_v15 }
0x65a9   :  { %v5801_v24 = vpack.c.bf16 %v5800_v23, %v5800_v23 }
0x65ab   :  { %11715 = vmatmul.mubr.msk.bf16.vlgmr.msra.gmra.mxu0 %vm61_vm2, %v5801_v24 }
0x65ac   :  { %11729 = vmatpush3.bf16.msra.mxu0 %v13012_v4  ;;  %11734 = vmatprep.mubr.msk.bf16.mxu0 %vm12982_vm0, %v12981_v0 }
0x65ad   :  { %11730 = vmatprep.subr.bf16.mxu0 %v12981_v0 }
0x65b0   :  { %11731 = vmatpush3.bf16.msra.mxu0 %v14145_v5 }
0x65b1   :  { %11732 = vmatprep.subr.bf16.mxu0 %v12981_v0 }
0x65b4   :  { %11733 = vmatpush3.bf16.msra.mxu0 %v13875_v6  ;;  %v14158_v6 = vld [vmem:[#allocation5] sm:$0xff]  }
0x65b5   :  { %11748 = vmatprep.subr.bf16.mxu0 %v12981_v0 }
0x666b   :  { %v5839_v25 = vpop.f32.mrf.mxu0 }
0x666c   :  { %12743 = vtanh.f32 %v5839_v25 }
0x666d   :  { %v11716_v26 = vpop.f32.mrf.mxu0 }
0x666f   :  { %v5842_v27 = vpop.f32.mrf.mxu0 }
0x6671   :  { %v11717_v28 = vpop.f32.mrf.mxu0 }
0x6679   :  { %v12744_v29 = vpop.eup %12743 }
0x667a   :  { %v5846_v30 = vmul.f32 0.01, %v12744_v29 }
0x667c   :  { %v5847_v31 = vadd.f32 %v5846_v30, %v5800_v23 }
0x667e   :  { %v5848_v32 = vpack.c.bf16 %v5847_v31, %v5847_v31 }
0x6680   :  { %11725 = vmatmul.mubr.msk.bf16.vlgmr.msra.gmra.mxu1 %vm61_vm2, %v5848_v32 }
0x6681   :  { %11739 = vmatpush3.bf16.msra.mxu1 %v13012_v4  ;;  %11744 = vmatprep.mubr.msk.bf16.mxu1 %vm12982_vm0, %v12981_v0 }
0x6682   :  { %11740 = vmatprep.subr.bf16.mxu1 %v12981_v0 }
0x6685   :  { %11741 = vmatpush3.bf16.msra.mxu1 %v14145_v5 }
0x6686   :  { %11742 = vmatprep.subr.bf16.mxu1 %v12981_v0 }
0x6689   :  { %11743 = vmatpush3.bf16.msra.mxu1 %v14158_v6 }
0x668a   :  { %11758 = vmatprep.subr.bf16.mxu1 %v12981_v0 }
0x6740   :  { %v5886_v33 = vpop.f32.mrf.mxu1 }
0x6741   :  { %12745 = vtanh.f32 %v5886_v33 }
0x6742   :  { %v11726_v34 = vpop.f32.mrf.mxu1 }
0x6744   :  { %v5889_v35 = vpop.f32.mrf.mxu1 }
0x6746   :  { %v11727_v36 = vpop.f32.mrf.mxu1 }
0x674e   :  { %v12746_v37 = vpop.eup %12745 }
0x674f   :  { %v5893_v38 = vmul.f32 0.01, %v12746_v37 }
0x6751   :  { %v5894_v39 = vadd.f32 %v5893_v38, %v5847_v31 }
0x6753   :  { %v5895_v40 = vpack.c.bf16 %v5894_v39, %v5894_v39 }
0x6755   :  { %11735 = vmatmul.mubr.msk.bf16.vlgmr.msra.gmra.mxu0 %vm61_vm2, %v5895_v40 }
0x6756   :  { %11749 = vmatpush3.bf16.msra.mxu0 %v13012_v4  ;;  %11754 = vmatprep.mubr.msk.bf16.mxu0 %vm12982_vm0, %v12981_v0 }
0x6757   :  { %11750 = vmatprep.subr.bf16.mxu0 %v12981_v0 }
0x675a   :  { %11751 = vmatpush3.bf16.msra.mxu0 %v14145_v5 }
0x675b   :  { %11752 = vmatprep.subr.bf16.mxu0 %v12981_v0 }
0x675e   :  { %11753 = vmatpush3.bf16.msra.mxu0 %v14158_v6 }
0x675f   :  { %11768 = vmatprep.subr.bf16.mxu0 %v12981_v0 }
0x6815   :  { %v5933_v41 = vpop.f32.mrf.mxu0 }
0x6816   :  { %12747 = vtanh.f32 %v5933_v41 }
0x6817   :  { %v11736_v42 = vpop.f32.mrf.mxu0 }
0x6819   :  { %v5936_v43 = vpop.f32.mrf.mxu0 }
0x681b   :  { %v11737_v44 = vpop.f32.mrf.mxu0 }
0x6823   :  { %v12748_v45 = vpop.eup %12747 }
0x6824   :  { %v5940_v46 = vmul.f32 0.01, %v12748_v45 }
0x6826   :  { %v5941_v47 = vadd.f32 %v5940_v46, %v5894_v39 }
0x6828   :  { %v5942_v48 = vpack.c.bf16 %v5941_v47, %v5941_v47 }
0x682a   :  { %11745 = vmatmul.mubr.msk.bf16.vlgmr.msra.gmra.mxu1 %vm61_vm2, %v5942_v48 }
0x682b   :  { %11759 = vmatpush3.bf16.msra.mxu1 %v13012_v4  ;;  %11764 = vmatprep.mubr.msk.bf16.mxu1 %vm12982_vm0, %v12981_v0 }
0x682c   :  { %11760 = vmatprep.subr.bf16.mxu1 %v12981_v0 }
0x682f   :  { %11761 = vmatpush3.bf16.msra.mxu1 %v14145_v5 }
0x6830   :  { %11762 = vmatprep.subr.bf16.mxu1 %v12981_v0 }
0x6833   :  { %11763 = vmatpush3.bf16.msra.mxu1 %v14158_v6 }
0x6834   :  { %11778 = vmatprep.subr.bf16.mxu1 %v12981_v0 }
0x68ea   :  { %v5980_v49 = vpop.f32.mrf.mxu1 }
0x68eb   :  { %12749 = vtanh.f32 %v5980_v49 }
0x68ec   :  { %v11746_v50 = vpop.f32.mrf.mxu1 }
0x68ee   :  { %v5983_v51 = vpop.f32.mrf.mxu1 }
0x68f0   :  { %v11747_v52 = vpop.f32.mrf.mxu1 }
0x68f8   :  { %v12750_v53 = vpop.eup %12749 }
0x68f9   :  { %v5987_v54 = vmul.f32 0.01, %v12750_v53 }
0x68fb   :  { %v5988_v55 = vadd.f32 %v5987_v54, %v5941_v47 }
0x68fd   :  { %v5989_v56 = vpack.c.bf16 %v5988_v55, %v5988_v55 }
0x68ff   :  { %11755 = vmatmul.mubr.msk.bf16.vlgmr.msra.gmra.mxu0 %vm61_vm2, %v5989_v56 }
0x6900   :  { %11769 = vmatpush3.bf16.msra.mxu0 %v13012_v4  ;;  %11774 = vmatprep.mubr.msk.bf16.mxu0 %vm12982_vm0, %v12981_v0 }
0x6901   :  { %11770 = vmatprep.subr.bf16.mxu0 %v12981_v0 }
0x6904   :  { %11771 = vmatpush3.bf16.msra.mxu0 %v14145_v5 }
0x6905   :  { %11772 = vmatprep.subr.bf16.mxu0 %v12981_v0 }
0x6908   :  { %11773 = vmatpush3.bf16.msra.mxu0 %v14158_v6 }
0x6909   :  { %11788 = vmatprep.subr.bf16.mxu0 %v12981_v0 }
0x69bf   :  { %v6027_v57 = vpop.f32.mrf.mxu0 }
0x69c0   :  { %12751 = vtanh.f32 %v6027_v57 }
0x69c1   :  { %v11756_v58 = vpop.f32.mrf.mxu0 }
0x69c3   :  { %v6030_v59 = vpop.f32.mrf.mxu0 }
0x69c5   :  { %v11757_v60 = vpop.f32.mrf.mxu0 }
0x69cd   :  { %v12752_v61 = vpop.eup %12751 }
0x69ce   :  { %v6034_v62 = vmul.f32 0.01, %v12752_v61 }
0x69d0   :  { %v6035_v63 = vadd.f32 %v6034_v62, %v5988_v55 }
0x69d2   :  { %v6036_v1 = vpack.c.bf16 %v6035_v63, %v6035_v63 }
0x69d4   :  { %11765 = vmatmul.mubr.msk.bf16.vlgmr.msra.gmra.mxu1 %vm61_vm2, %v6036_v1 }
0x69d5   :  { %11779 = vmatpush3.bf16.msra.mxu1 %v13012_v4  ;;  %11784 = vmatprep.mubr.msk.bf16.mxu1 %vm12982_vm0, %v12981_v0 }
0x69d6   :  { %11780 = vmatprep.subr.bf16.mxu1 %v12981_v0 }
0x69d9   :  { %11781 = vmatpush3.bf16.msra.mxu1 %v14145_v5 }
0x69da   :  { %11782 = vmatprep.subr.bf16.mxu1 %v12981_v0 }
0x69dd   :  { %11783 = vmatpush3.bf16.msra.mxu1 %v14158_v6 }
0x69de   :  { %11798 = vmatprep.subr.bf16.mxu1 %v12981_v0 }
0x6a94   :  { %v6074_v2 = vpop.f32.mrf.mxu1 }
0x6a95   :  { %12753 = vtanh.f32 %v6074_v2 }
0x6a96   :  { %v11766_v3 = vpop.f32.mrf.mxu1 }
0x6a98   :  { %v6077_v7 = vpop.f32.mrf.mxu1 }
0x6a9a   :  { %v11767_v8 = vpop.f32.mrf.mxu1 }
0x6aa2   :  { %v12754_v9 = vpop.eup %12753 }
0x6aa3   :  { %v6081_v10 = vmul.f32 0.01, %v12754_v9 }
0x6aa5   :  { %v6082_v11 = vadd.f32 %v6081_v10, %v6035_v63 }
0x6aa7   :  { %v6083_v12 = vpack.c.bf16 %v6082_v11, %v6082_v11 }
0x6aa9   :  { %11775 = vmatmul.mubr.msk.bf16.vlgmr.msra.gmra.mxu0 %vm61_vm2, %v6083_v12 }
0x6aaa   :  { %11789 = vmatpush3.bf16.msra.mxu0 %v13012_v4  ;;  %11794 = vmatprep.mubr.msk.bf16.mxu0 %vm12982_vm0, %v12981_v0 }
0x6aab   :  { %11790 = vmatprep.subr.bf16.mxu0 %v12981_v0 }
0x6aae   :  { %11791 = vmatpush3.bf16.msra.mxu0 %v14145_v5 }
0x6aaf   :  { %11792 = vmatprep.subr.bf16.mxu0 %v12981_v0 }
0x6ab2   :  { %11793 = vmatpush3.bf16.msra.mxu0 %v14158_v6 }
0x6ab3   :  { %11808 = vmatprep.subr.bf16.mxu0 %v12981_v0 }
0x6b69   :  { %v6121_v13 = vpop.f32.mrf.mxu0 }
0x6b6a   :  { %12755 = vtanh.f32 %v6121_v13 }
0x6b6b   :  { %v11776_v14 = vpop.f32.mrf.mxu0 }
0x6b6d   :  { %v6124_v15 = vpop.f32.mrf.mxu0 }
0x6b6f   :  { %v11777_v16 = vpop.f32.mrf.mxu0 }
0x6b77   :  { %v12756_v17 = vpop.eup %12755 }
0x6b78   :  { %v6128_v18 = vmul.f32 0.01, %v12756_v17 }
0x6b7a   :  { %v6129_v19 = vadd.f32 %v6128_v18, %v6082_v11 }
0x6b7c   :  { %v6130_v20 = vpack.c.bf16 %v6129_v19, %v6129_v19 }
0x6b7e   :  { %11785 = vmatmul.mubr.msk.bf16.vlgmr.msra.gmra.mxu1 %vm61_vm2, %v6130_v20 }
0x6b7f   :  { %11799 = vmatpush3.bf16.msra.mxu1 %v13012_v4  ;;  %11804 = vmatprep.mubr.msk.bf16.mxu1 %vm12982_vm0, %v12981_v0 }
0x6b80   :  { %11800 = vmatprep.subr.bf16.mxu1 %v12981_v0 }
0x6b83   :  { %11801 = vmatpush3.bf16.msra.mxu1 %v14145_v5 }
0x6b84   :  { %11802 = vmatprep.subr.bf16.mxu1 %v12981_v0 }
0x6b87   :  { %11803 = vmatpush3.bf16.msra.mxu1 %v14158_v6 }
0x6b88   :  { %11818 = vmatprep.subr.bf16.mxu1 %v12981_v0 }
0x6c3e   :  { %v6168_v21 = vpop.f32.mrf.mxu1 }
0x6c3f   :  { %12757 = vtanh.f32 %v6168_v21 }
0x6c40   :  { %v11786_v22 = vpop.f32.mrf.mxu1 }
0x6c42   :  { %v6171_v23 = vpop.f32.mrf.mxu1 }
0x6c44   :  { %v11787_v24 = vpop.f32.mrf.mxu1 }
0x6c4c   :  { %v12758_v25 = vpop.eup %12757 }
0x6c4d   :  { %v6175_v26 = vmul.f32 0.01, %v12758_v25 }
0x6c4f   :  { %v6176_v27 = vadd.f32 %v6175_v26, %v6129_v19 }
0x6c51   :  { %v6177_v28 = vpack.c.bf16 %v6176_v27, %v6176_v27 }
0x6c53   :  { %11795 = vmatmul.mubr.msk.bf16.vlgmr.msra.gmra.mxu0 %vm61_vm2, %v6177_v28 }
0x6c54   :  { %11809 = vmatpush3.bf16.msra.mxu0 %v13012_v4  ;;  %11814 = vmatprep.mubr.msk.bf16.mxu0 %vm12982_vm0, %v12981_v0 }
0x6c55   :  { %11810 = vmatprep.subr.bf16.mxu0 %v12981_v0 }
0x6c58   :  { %11811 = vmatpush3.bf16.msra.mxu0 %v14145_v5 }
0x6c59   :  { %11812 = vmatprep.subr.bf16.mxu0 %v12981_v0 }
0x6c5c   :  { %11813 = vmatpush3.bf16.msra.mxu0 %v14158_v6 }
0x6c5d   :  { %11828 = vmatprep.subr.bf16.mxu0 %v12981_v0 }
0x6d13   :  { %v6215_v29 = vpop.f32.mrf.mxu0 }
0x6d14   :  { %12759 = vtanh.f32 %v6215_v29 }
0x6d15   :  { %v11796_v30 = vpop.f32.mrf.mxu0 }
0x6d17   :  { %v6218_v31 = vpop.f32.mrf.mxu0 }
0x6d19   :  { %v11797_v32 = vpop.f32.mrf.mxu0 }
0x6d21   :  { %v12760_v33 = vpop.eup %12759 }
0x6d22   :  { %v6222_v34 = vmul.f32 0.01, %v12760_v33 }
0x6d24   :  { %v6223_v35 = vadd.f32 %v6222_v34, %v6176_v27 }
0x6d26   :  { %v6224_v36 = vpack.c.bf16 %v6223_v35, %v6223_v35 }
0x6d28   :  { %11805 = vmatmul.mubr.msk.bf16.vlgmr.msra.gmra.mxu1 %vm61_vm2, %v6224_v36 }
0x6d29   :  { %11819 = vmatpush3.bf16.msra.mxu1 %v13012_v4  ;;  %11824 = vmatprep.mubr.msk.bf16.mxu1 %vm12982_vm0, %v12981_v0 }
0x6d2a   :  { %11820 = vmatprep.subr.bf16.mxu1 %v12981_v0 }
0x6d2d   :  { %11821 = vmatpush3.bf16.msra.mxu1 %v14145_v5 }
0x6d2e   :  { %11822 = vmatprep.subr.bf16.mxu1 %v12981_v0 }
0x6d31   :  { %11823 = vmatpush3.bf16.msra.mxu1 %v14158_v6 }
0x6d32   :  { %11838 = vmatprep.subr.bf16.mxu1 %v12981_v0 }
0x6de8   :  { %v6262_v37 = vpop.f32.mrf.mxu1 }
0x6de9   :  { %12761 = vtanh.f32 %v6262_v37 }
0x6dea   :  { %v11806_v38 = vpop.f32.mrf.mxu1 }
0x6dec   :  { %v6265_v39 = vpop.f32.mrf.mxu1 }
0x6dee   :  { %v11807_v40 = vpop.f32.mrf.mxu1 }
0x6df6   :  { %v12762_v41 = vpop.eup %12761 }
0x6df7   :  { %v6269_v42 = vmul.f32 0.01, %v12762_v41 }
0x6df9   :  { %v6270_v43 = vadd.f32 %v6269_v42, %v6223_v35 }
0x6dfb   :  { %v6271_v44 = vpack.c.bf16 %v6270_v43, %v6270_v43 }
0x6dfd   :  { %11815 = vmatmul.mubr.msk.bf16.vlgmr.msra.gmra.mxu0 %vm61_vm2, %v6271_v44 }
0x6dfe   :  { %11829 = vmatpush3.bf16.msra.mxu0 %v13012_v4  ;;  %11834 = vmatprep.mubr.msk.bf16.mxu0 %vm12982_vm0, %v12981_v0 }
0x6dff   :  { %11830 = vmatprep.subr.bf16.mxu0 %v12981_v0 }
0x6e02   :  { %11831 = vmatpush3.bf16.msra.mxu0 %v14145_v5 }
0x6e03   :  { %11832 = vmatprep.subr.bf16.mxu0 %v12981_v0 }
0x6e06   :  { %11833 = vmatpush3.bf16.msra.mxu0 %v14158_v6 }
0x6e07   :  { %11848 = vmatprep.subr.bf16.mxu0 %v12981_v0 }
0x6ebd   :  { %v6309_v45 = vpop.f32.mrf.mxu0 }
0x6ebe   :  { %12763 = vtanh.f32 %v6309_v45 }
0x6ebf   :  { %v11816_v46 = vpop.f32.mrf.mxu0 }
0x6ec1   :  { %v6312_v47 = vpop.f32.mrf.mxu0 }
0x6ec3   :  { %v11817_v48 = vpop.f32.mrf.mxu0 }
0x6ecb   :  { %v12764_v49 = vpop.eup %12763 }
0x6ecc   :  { %v6316_v50 = vmul.f32 0.01, %v12764_v49 }
0x6ece   :  { %v6317_v51 = vadd.f32 %v6316_v50, %v6270_v43 }
0x6ed0   :  { %v6318_v52 = vpack.c.bf16 %v6317_v51, %v6317_v51 }
0x6ed2   :  { %11825 = vmatmul.mubr.msk.bf16.vlgmr.msra.gmra.mxu1 %vm61_vm2, %v6318_v52 }
0x6ed3   :  { %11839 = vmatpush3.bf16.msra.mxu1 %v13012_v4  ;;  %11844 = vmatprep.mubr.msk.bf16.mxu1 %vm12982_vm0, %v12981_v0 }
0x6ed4   :  { %11840 = vmatprep.subr.bf16.mxu1 %v12981_v0 }
0x6ed7   :  { %11841 = vmatpush3.bf16.msra.mxu1 %v14145_v5 }
0x6ed8   :  { %11842 = vmatprep.subr.bf16.mxu1 %v12981_v0 }
0x6edb   :  { %11843 = vmatpush3.bf16.msra.mxu1 %v14158_v6 }
0x6edc   :  { %11858 = vmatprep.subr.bf16.mxu1 %v12981_v0 }
0x6f92   :  { %v6356_v53 = vpop.f32.mrf.mxu1 }
0x6f93   :  { %12765 = vtanh.f32 %v6356_v53 }
0x6f94   :  { %v11826_v54 = vpop.f32.mrf.mxu1 }
0x6f96   :  { %v6359_v55 = vpop.f32.mrf.mxu1 }
0x6f98   :  { %v11827_v56 = vpop.f32.mrf.mxu1 }
0x6fa0   :  { %v12766_v57 = vpop.eup %12765 }
0x6fa1   :  { %v6363_v58 = vmul.f32 0.01, %v12766_v57 }
0x6fa3   :  { %v6364_v59 = vadd.f32 %v6363_v58, %v6317_v51 }
0x6fa5   :  { %v6365_v60 = vpack.c.bf16 %v6364_v59, %v6364_v59 }
0x6fa7   :  { %11835 = vmatmul.mubr.msk.bf16.vlgmr.msra.gmra.mxu0 %vm61_vm2, %v6365_v60 }
0x6fa8   :  { %11849 = vmatpush3.bf16.msra.mxu0 %v13012_v4  ;;  %11854 = vmatprep.mubr.msk.bf16.mxu0 %vm12982_vm0, %v12981_v0 }
0x6fa9   :  { %11850 = vmatprep.subr.bf16.mxu0 %v12981_v0 }
0x6fac   :  { %11851 = vmatpush3.bf16.msra.mxu0 %v14145_v5 }
0x6fad   :  { %11852 = vmatprep.subr.bf16.mxu0 %v12981_v0 }
0x6fb0   :  { %11853 = vmatpush3.bf16.msra.mxu0 %v14158_v6 }
0x6fb1   :  { %11868 = vmatprep.subr.bf16.mxu0 %v12981_v0 }
0x7067   :  { %v6403_v61 = vpop.f32.mrf.mxu0 }
0x7068   :  { %12767 = vtanh.f32 %v6403_v61 }
0x7069   :  { %v11836_v62 = vpop.f32.mrf.mxu0 }
0x706b   :  { %v6406_v63 = vpop.f32.mrf.mxu0 }
0x706d   :  { %v11837_v1 = vpop.f32.mrf.mxu0 }
0x7075   :  { %v12768_v2 = vpop.eup %12767 }
0x7076   :  { %v6410_v3 = vmul.f32 0.01, %v12768_v2 }
0x7078   :  { %v6411_v7 = vadd.f32 %v6410_v3, %v6364_v59 }
0x707a   :  { %v6412_v8 = vpack.c.bf16 %v6411_v7, %v6411_v7 }
0x707c   :  { %11845 = vmatmul.mubr.msk.bf16.vlgmr.msra.gmra.mxu1 %vm61_vm2, %v6412_v8 }
0x707d   :  { %11859 = vmatpush3.bf16.msra.mxu1 %v13012_v4  ;;  %11864 = vmatprep.mubr.msk.bf16.mxu1 %vm12982_vm0, %v12981_v0 }
0x707e   :  { %11860 = vmatprep.subr.bf16.mxu1 %v12981_v0 }
0x7081   :  { %11861 = vmatpush3.bf16.msra.mxu1 %v14145_v5 }
0x7082   :  { %11862 = vmatprep.subr.bf16.mxu1 %v12981_v0 }
0x7085   :  { %11863 = vmatpush3.bf16.msra.mxu1 %v14158_v6 }
0x7086   :  { %11878 = vmatprep.subr.bf16.mxu1 %v12981_v0 }
0x713c   :  { %v6450_v9 = vpop.f32.mrf.mxu1 }
0x713d   :  { %12769 = vtanh.f32 %v6450_v9 }
0x713e   :  { %v11846_v10 = vpop.f32.mrf.mxu1 }
0x7140   :  { %v6453_v11 = vpop.f32.mrf.mxu1 }
0x7142   :  { %v11847_v12 = vpop.f32.mrf.mxu1 }
0x714a   :  { %v12770_v13 = vpop.eup %12769 }
0x714b   :  { %v6457_v14 = vmul.f32 0.01, %v12770_v13 }
0x714d   :  { %v6458_v15 = vadd.f32 %v6457_v14, %v6411_v7 }
0x714f   :  { %v6459_v16 = vpack.c.bf16 %v6458_v15, %v6458_v15 }
0x7151   :  { %11855 = vmatmul.mubr.msk.bf16.vlgmr.msra.gmra.mxu0 %vm61_vm2, %v6459_v16 }
0x7152   :  { %11869 = vmatpush3.bf16.msra.mxu0 %v13012_v4  ;;  %11874 = vmatprep.mubr.msk.bf16.mxu0 %vm12982_vm0, %v12981_v0 }
0x7153   :  { %11870 = vmatprep.subr.bf16.mxu0 %v12981_v0 }
0x7156   :  { %11871 = vmatpush3.bf16.msra.mxu0 %v14145_v5 }
0x7157   :  { %11872 = vmatprep.subr.bf16.mxu0 %v12981_v0 }
0x715a   :  { %11873 = vmatpush3.bf16.msra.mxu0 %v14158_v6 }
0x715b   :  { %11888 = vmatprep.subr.bf16.mxu0 %v12981_v0 }
0x7211   :  { %v6497_v17 = vpop.f32.mrf.mxu0 }
0x7212   :  { %12771 = vtanh.f32 %v6497_v17 }
0x7213   :  { %v11856_v18 = vpop.f32.mrf.mxu0 }
0x7215   :  { %v6500_v19 = vpop.f32.mrf.mxu0 }
0x7217   :  { %v11857_v20 = vpop.f32.mrf.mxu0 }
0x721f   :  { %v12772_v21 = vpop.eup %12771 }
0x7220   :  { %v6504_v22 = vmul.f32 0.01, %v12772_v21 }
0x7222   :  { %v6505_v23 = vadd.f32 %v6504_v22, %v6458_v15 }
0x7224   :  { %v6506_v24 = vpack.c.bf16 %v6505_v23, %v6505_v23 }
0x7226   :  { %11865 = vmatmul.mubr.msk.bf16.vlgmr.msra.gmra.mxu1 %vm61_vm2, %v6506_v24 }
0x7227   :  { %11879 = vmatpush3.bf16.msra.mxu1 %v13012_v4  ;;  %11884 = vmatprep.mubr.msk.bf16.mxu1 %vm12982_vm0, %v12981_v0 }
0x7228   :  { %11880 = vmatprep.subr.bf16.mxu1 %v12981_v0 }
0x722b   :  { %11881 = vmatpush3.bf16.msra.mxu1 %v14145_v5 }
0x722c   :  { %11882 = vmatprep.subr.bf16.mxu1 %v12981_v0 }
0x722f   :  { %11883 = vmatpush3.bf16.msra.mxu1 %v14158_v6 }
0x7230   :  { %11898 = vmatprep.subr.bf16.mxu1 %v12981_v0 }
0x72e6   :  { %v6544_v25 = vpop.f32.mrf.mxu1 }
0x72e7   :  { %12773 = vtanh.f32 %v6544_v25 }
0x72e8   :  { %v11866_v26 = vpop.f32.mrf.mxu1 }
0x72ea   :  { %v6547_v27 = vpop.f32.mrf.mxu1 }
0x72ec   :  { %v11867_v28 = vpop.f32.mrf.mxu1 }
0x72f4   :  { %v12774_v29 = vpop.eup %12773 }
0x72f5   :  { %v6551_v30 = vmul.f32 0.01, %v12774_v29 }
0x72f7   :  { %v6552_v31 = vadd.f32 %v6551_v30, %v6505_v23 }
0x72f9   :  { %v6553_v32 = vpack.c.bf16 %v6552_v31, %v6552_v31 }
0x72fb   :  { %11875 = vmatmul.mubr.msk.bf16.vlgmr.msra.gmra.mxu0 %vm61_vm2, %v6553_v32 }
0x72fc   :  { %11889 = vmatpush3.bf16.msra.mxu0 %v13012_v4  ;;  %11894 = vmatprep.mubr.msk.bf16.mxu0 %vm12982_vm0, %v12981_v0 }
0x72fd   :  { %11890 = vmatprep.subr.bf16.mxu0 %v12981_v0 }
0x7300   :  { %11891 = vmatpush3.bf16.msra.mxu0 %v14145_v5 }
0x7301   :  { %11892 = vmatprep.subr.bf16.mxu0 %v12981_v0 }
0x7304   :  { %11893 = vmatpush3.bf16.msra.mxu0 %v14158_v6 }
0x7305   :  { %11908 = vmatprep.subr.bf16.mxu0 %v12981_v0 }
0x73bb   :  { %v6591_v33 = vpop.f32.mrf.mxu0 }
0x73bc   :  { %12775 = vtanh.f32 %v6591_v33 }
0x73bd   :  { %v11876_v34 = vpop.f32.mrf.mxu0 }
0x73bf   :  { %v6594_v35 = vpop.f32.mrf.mxu0 }
0x73c1   :  { %v11877_v36 = vpop.f32.mrf.mxu0 }
0x73c9   :  { %v12776_v37 = vpop.eup %12775 }
0x73ca   :  { %v6598_v38 = vmul.f32 0.01, %v12776_v37 }
0x73cc   :  { %v6599_v39 = vadd.f32 %v6598_v38, %v6552_v31 }
0x73ce   :  { %v6600_v40 = vpack.c.bf16 %v6599_v39, %v6599_v39 }
0x73d0   :  { %11885 = vmatmul.mubr.msk.bf16.vlgmr.msra.gmra.mxu1 %vm61_vm2, %v6600_v40 }
0x73d1   :  { %11899 = vmatpush3.bf16.msra.mxu1 %v13012_v4  ;;  %11904 = vmatprep.mubr.msk.bf16.mxu1 %vm12982_vm0, %v12981_v0 }
0x73d2   :  { %11900 = vmatprep.subr.bf16.mxu1 %v12981_v0 }
0x73d5   :  { %11901 = vmatpush3.bf16.msra.mxu1 %v14145_v5 }
0x73d6   :  { %11902 = vmatprep.subr.bf16.mxu1 %v12981_v0 }
0x73d9   :  { %11903 = vmatpush3.bf16.msra.mxu1 %v14158_v6 }
0x73da   :  { %11918 = vmatprep.subr.bf16.mxu1 %v12981_v0 }
0x7490   :  { %v6638_v41 = vpop.f32.mrf.mxu1 }
0x7491   :  { %12777 = vtanh.f32 %v6638_v41 }
0x7492   :  { %v11886_v42 = vpop.f32.mrf.mxu1 }
0x7494   :  { %v6641_v43 = vpop.f32.mrf.mxu1 }
0x7496   :  { %v11887_v44 = vpop.f32.mrf.mxu1 }
0x749e   :  { %v12778_v45 = vpop.eup %12777 }
0x749f   :  { %v6645_v46 = vmul.f32 0.01, %v12778_v45 }
0x74a1   :  { %v6646_v47 = vadd.f32 %v6645_v46, %v6599_v39 }
0x74a3   :  { %v6647_v48 = vpack.c.bf16 %v6646_v47, %v6646_v47 }
0x74a5   :  { %11895 = vmatmul.mubr.msk.bf16.vlgmr.msra.gmra.mxu0 %vm61_vm2, %v6647_v48 }
0x74a6   :  { %11909 = vmatpush3.bf16.msra.mxu0 %v13012_v4  ;;  %11914 = vmatprep.mubr.msk.bf16.mxu0 %vm12982_vm0, %v12981_v0 }
0x74a7   :  { %11910 = vmatprep.subr.bf16.mxu0 %v12981_v0 }
0x74aa   :  { %11911 = vmatpush3.bf16.msra.mxu0 %v14145_v5 }
0x74ab   :  { %11912 = vmatprep.subr.bf16.mxu0 %v12981_v0 }
0x74ae   :  { %11913 = vmatpush3.bf16.msra.mxu0 %v14158_v6 }
0x74af   :  { %11928 = vmatprep.subr.bf16.mxu0 %v12981_v0 }
0x7565   :  { %v6685_v49 = vpop.f32.mrf.mxu0 }
0x7566   :  { %12779 = vtanh.f32 %v6685_v49 }
0x7567   :  { %v11896_v50 = vpop.f32.mrf.mxu0 }
0x7569   :  { %v6688_v51 = vpop.f32.mrf.mxu0 }
0x756b   :  { %v11897_v52 = vpop.f32.mrf.mxu0 }
0x7573   :  { %v12780_v53 = vpop.eup %12779 }
0x7574   :  { %v6692_v54 = vmul.f32 0.01, %v12780_v53 }
0x7576   :  { %v6693_v55 = vadd.f32 %v6692_v54, %v6646_v47 }
0x7578   :  { %v6694_v56 = vpack.c.bf16 %v6693_v55, %v6693_v55 }
0x757a   :  { %11905 = vmatmul.mubr.msk.bf16.vlgmr.msra.gmra.mxu1 %vm61_vm2, %v6694_v56 }
0x757b   :  { %11919 = vmatpush3.bf16.msra.mxu1 %v13012_v4  ;;  %11924 = vmatprep.mubr.msk.bf16.mxu1 %vm12982_vm0, %v12981_v0 }
0x757c   :  { %11920 = vmatprep.subr.bf16.mxu1 %v12981_v0 }
0x757f   :  { %11921 = vmatpush3.bf16.msra.mxu1 %v14145_v5 }
0x7580   :  { %11922 = vmatprep.subr.bf16.mxu1 %v12981_v0 }
0x7583   :  { %11923 = vmatpush3.bf16.msra.mxu1 %v14158_v6 }
0x7584   :  { %11938 = vmatprep.subr.bf16.mxu1 %v12981_v0 }
0x763a   :  { %v6732_v57 = vpop.f32.mrf.mxu1 }
0x763b   :  { %12781 = vtanh.f32 %v6732_v57 }
0x763c   :  { %v11906_v58 = vpop.f32.mrf.mxu1 }
0x763e   :  { %v6735_v59 = vpop.f32.mrf.mxu1 }
0x7640   :  { %v11907_v60 = vpop.f32.mrf.mxu1 }
0x7648   :  { %v12782_v61 = vpop.eup %12781 }
0x7649   :  { %v6739_v62 = vmul.f32 0.01, %v12782_v61 }
0x764b   :  { %v6740_v63 = vadd.f32 %v6739_v62, %v6693_v55 }
0x764d   :  { %v6741_v1 = vpack.c.bf16 %v6740_v63, %v6740_v63 }
0x764f   :  { %11915 = vmatmul.mubr.msk.bf16.vlgmr.msra.gmra.mxu0 %vm61_vm2, %v6741_v1 }
0x7650   :  { %11929 = vmatpush3.bf16.msra.mxu0 %v13012_v4  ;;  %11934 = vmatprep.mubr.msk.bf16.mxu0 %vm12982_vm0, %v12981_v0 }
0x7651   :  { %11930 = vmatprep.subr.bf16.mxu0 %v12981_v0 }
0x7654   :  { %11931 = vmatpush3.bf16.msra.mxu0 %v14145_v5 }
0x7655   :  { %11932 = vmatprep.subr.bf16.mxu0 %v12981_v0 }
0x7658   :  { %11933 = vmatpush3.bf16.msra.mxu0 %v14158_v6 }
0x7659   :  { %11948 = vmatprep.subr.bf16.mxu0 %v12981_v0 }
0x770f   :  { %v6779_v2 = vpop.f32.mrf.mxu0 }
0x7710   :  { %12783 = vtanh.f32 %v6779_v2 }
0x7711   :  { %v11916_v3 = vpop.f32.mrf.mxu0 }
0x7713   :  { %v6782_v7 = vpop.f32.mrf.mxu0 }
0x7715   :  { %v11917_v8 = vpop.f32.mrf.mxu0 }
0x771d   :  { %v12784_v9 = vpop.eup %12783 }
0x771e   :  { %v6786_v10 = vmul.f32 0.01, %v12784_v9 }
0x7720   :  { %v6787_v11 = vadd.f32 %v6786_v10, %v6740_v63 }
0x7722   :  { %v6788_v12 = vpack.c.bf16 %v6787_v11, %v6787_v11 }
0x7724   :  { %11925 = vmatmul.mubr.msk.bf16.vlgmr.msra.gmra.mxu1 %vm61_vm2, %v6788_v12 }
0x7725   :  { %11939 = vmatpush3.bf16.msra.mxu1 %v13012_v4  ;;  %11944 = vmatprep.mubr.msk.bf16.mxu1 %vm12982_vm0, %v12981_v0 }
0x7726   :  { %11940 = vmatprep.subr.bf16.mxu1 %v12981_v0 }
0x7729   :  { %11941 = vmatpush3.bf16.msra.mxu1 %v14145_v5 }
0x772a   :  { %11942 = vmatprep.subr.bf16.mxu1 %v12981_v0 }
0x772d   :  { %11943 = vmatpush3.bf16.msra.mxu1 %v14158_v6 }
0x772e   :  { %11958 = vmatprep.subr.bf16.mxu1 %v12981_v0 }
0x77e4   :  { %v6826_v13 = vpop.f32.mrf.mxu1 }
0x77e5   :  { %12785 = vtanh.f32 %v6826_v13 }
0x77e6   :  { %v11926_v14 = vpop.f32.mrf.mxu1 }
0x77e8   :  { %v6829_v15 = vpop.f32.mrf.mxu1 }
0x77ea   :  { %v11927_v16 = vpop.f32.mrf.mxu1 }
0x77f2   :  { %v12786_v17 = vpop.eup %12785 }
0x77f3   :  { %v6833_v18 = vmul.f32 0.01, %v12786_v17 }
0x77f5   :  { %v6834_v19 = vadd.f32 %v6833_v18, %v6787_v11 }
0x77f7   :  { %v6835_v20 = vpack.c.bf16 %v6834_v19, %v6834_v19 }
0x77f9   :  { %11935 = vmatmul.mubr.msk.bf16.vlgmr.msra.gmra.mxu0 %vm61_vm2, %v6835_v20 }
0x77fa   :  { %11949 = vmatpush3.bf16.msra.mxu0 %v13012_v4  ;;  %11954 = vmatprep.mubr.msk.bf16.mxu0 %vm12982_vm0, %v12981_v0 }
0x77fb   :  { %11950 = vmatprep.subr.bf16.mxu0 %v12981_v0 }
0x77fe   :  { %11951 = vmatpush3.bf16.msra.mxu0 %v14145_v5 }
0x77ff   :  { %11952 = vmatprep.subr.bf16.mxu0 %v12981_v0 }
0x7802   :  { %11953 = vmatpush3.bf16.msra.mxu0 %v14158_v6 }
0x7803   :  { %11968 = vmatprep.subr.bf16.mxu0 %v12981_v0 }
0x78b9   :  { %v6873_v21 = vpop.f32.mrf.mxu0 }
0x78ba   :  { %12787 = vtanh.f32 %v6873_v21 }
0x78bb   :  { %v11936_v22 = vpop.f32.mrf.mxu0 }
0x78bd   :  { %v6876_v23 = vpop.f32.mrf.mxu0 }
0x78bf   :  { %v11937_v24 = vpop.f32.mrf.mxu0 }
0x78c7   :  { %v12788_v25 = vpop.eup %12787 }
0x78c8   :  { %v6880_v26 = vmul.f32 0.01, %v12788_v25 }
0x78ca   :  { %v6881_v27 = vadd.f32 %v6880_v26, %v6834_v19 }
0x78cc   :  { %v6882_v28 = vpack.c.bf16 %v6881_v27, %v6881_v27 }
0x78ce   :  { %11945 = vmatmul.mubr.msk.bf16.vlgmr.msra.gmra.mxu1 %vm61_vm2, %v6882_v28 }
0x78cf   :  { %11959 = vmatpush3.bf16.msra.mxu1 %v13012_v4  ;;  %11964 = vmatprep.mubr.msk.bf16.mxu1 %vm12982_vm0, %v12981_v0 }
0x78d0   :  { %11960 = vmatprep.subr.bf16.mxu1 %v12981_v0 }
0x78d3   :  { %11961 = vmatpush3.bf16.msra.mxu1 %v14145_v5 }
0x78d4   :  { %11962 = vmatprep.subr.bf16.mxu1 %v12981_v0 }
0x78d7   :  { %11963 = vmatpush3.bf16.msra.mxu1 %v14158_v6 }
0x78d8   :  { %11978 = vmatprep.subr.bf16.mxu1 %v12981_v0 }
0x798e   :  { %v6920_v29 = vpop.f32.mrf.mxu1 }
0x798f   :  { %12789 = vtanh.f32 %v6920_v29 }
0x7990   :  { %v11946_v30 = vpop.f32.mrf.mxu1 }
0x7992   :  { %v6923_v31 = vpop.f32.mrf.mxu1 }
0x7994   :  { %v11947_v32 = vpop.f32.mrf.mxu1 }
0x799c   :  { %v12790_v33 = vpop.eup %12789 }
0x799d   :  { %v6927_v34 = vmul.f32 0.01, %v12790_v33 }
0x799f   :  { %v6928_v35 = vadd.f32 %v6927_v34, %v6881_v27 }
0x79a1   :  { %v6929_v36 = vpack.c.bf16 %v6928_v35, %v6928_v35 }
0x79a3   :  { %11955 = vmatmul.mubr.msk.bf16.vlgmr.msra.gmra.mxu0 %vm61_vm2, %v6929_v36 }
0x79a4   :  { %11969 = vmatpush3.bf16.msra.mxu0 %v13012_v4  ;;  %11974 = vmatprep.mubr.msk.bf16.mxu0 %vm12982_vm0, %v12981_v0 }
0x79a5   :  { %11970 = vmatprep.subr.bf16.mxu0 %v12981_v0 }
0x79a8   :  { %11971 = vmatpush3.bf16.msra.mxu0 %v14145_v5 }
0x79a9   :  { %11972 = vmatprep.subr.bf16.mxu0 %v12981_v0 }
0x79ac   :  { %11973 = vmatpush3.bf16.msra.mxu0 %v14158_v6 }
0x79ad   :  { %11988 = vmatprep.subr.bf16.mxu0 %v12981_v0 }
0x7a63   :  { %v6967_v37 = vpop.f32.mrf.mxu0 }
0x7a64   :  { %12791 = vtanh.f32 %v6967_v37 }
0x7a65   :  { %v11956_v38 = vpop.f32.mrf.mxu0 }
0x7a67   :  { %v6970_v39 = vpop.f32.mrf.mxu0 }
0x7a69   :  { %v11957_v40 = vpop.f32.mrf.mxu0 }
0x7a71   :  { %v12792_v41 = vpop.eup %12791 }
0x7a72   :  { %v6974_v42 = vmul.f32 0.01, %v12792_v41 }
0x7a74   :  { %v6975_v43 = vadd.f32 %v6974_v42, %v6928_v35 }
0x7a76   :  { %v6976_v44 = vpack.c.bf16 %v6975_v43, %v6975_v43 }
0x7a78   :  { %11965 = vmatmul.mubr.msk.bf16.vlgmr.msra.gmra.mxu1 %vm61_vm2, %v6976_v44 }
0x7a79   :  { %11979 = vmatpush3.bf16.msra.mxu1 %v13012_v4  ;;  %11984 = vmatprep.mubr.msk.bf16.mxu1 %vm12982_vm0, %v12981_v0 }
0x7a7a   :  { %11980 = vmatprep.subr.bf16.mxu1 %v12981_v0 }
0x7a7d   :  { %11981 = vmatpush3.bf16.msra.mxu1 %v14145_v5 }
0x7a7e   :  { %11982 = vmatprep.subr.bf16.mxu1 %v12981_v0 }
0x7a81   :  { %11983 = vmatpush3.bf16.msra.mxu1 %v14158_v6 }
0x7a82   :  { %11998 = vmatprep.subr.bf16.mxu1 %v12981_v0 }
0x7b38   :  { %v7014_v45 = vpop.f32.mrf.mxu1 }
0x7b39   :  { %12793 = vtanh.f32 %v7014_v45 }
0x7b3a   :  { %v11966_v46 = vpop.f32.mrf.mxu1 }
0x7b3c   :  { %v7017_v47 = vpop.f32.mrf.mxu1 }
0x7b3e   :  { %v11967_v48 = vpop.f32.mrf.mxu1 }
0x7b46   :  { %v12794_v49 = vpop.eup %12793 }
0x7b47   :  { %v7021_v50 = vmul.f32 0.01, %v12794_v49 }
0x7b49   :  { %v7022_v51 = vadd.f32 %v7021_v50, %v6975_v43 }
0x7b4b   :  { %v7023_v52 = vpack.c.bf16 %v7022_v51, %v7022_v51 }
0x7b4d   :  { %11975 = vmatmul.mubr.msk.bf16.vlgmr.msra.gmra.mxu0 %vm61_vm2, %v7023_v52 }
0x7b4e   :  { %11989 = vmatpush3.bf16.msra.mxu0 %v13012_v4  ;;  %11994 = vmatprep.mubr.msk.bf16.mxu0 %vm12982_vm0, %v12981_v0 }
0x7b4f   :  { %11990 = vmatprep.subr.bf16.mxu0 %v12981_v0 }
0x7b52   :  { %11991 = vmatpush3.bf16.msra.mxu0 %v14145_v5 }
0x7b53   :  { %11992 = vmatprep.subr.bf16.mxu0 %v12981_v0 }
0x7b56   :  { %11993 = vmatpush3.bf16.msra.mxu0 %v14158_v6 }
0x7b57   :  { %12008 = vmatprep.subr.bf16.mxu0 %v12981_v0 }
0x7c0d   :  { %v7061_v53 = vpop.f32.mrf.mxu0 }
0x7c0e   :  { %12795 = vtanh.f32 %v7061_v53 }
0x7c0f   :  { %v11976_v54 = vpop.f32.mrf.mxu0 }
0x7c11   :  { %v7064_v55 = vpop.f32.mrf.mxu0 }
0x7c13   :  { %v11977_v56 = vpop.f32.mrf.mxu0 }
0x7c1b   :  { %v12796_v57 = vpop.eup %12795 }
0x7c1c   :  { %v7068_v58 = vmul.f32 0.01, %v12796_v57 }
0x7c1e   :  { %v7069_v59 = vadd.f32 %v7068_v58, %v7022_v51 }
0x7c20   :  { %v7070_v60 = vpack.c.bf16 %v7069_v59, %v7069_v59 }
0x7c22   :  { %11985 = vmatmul.mubr.msk.bf16.vlgmr.msra.gmra.mxu1 %vm61_vm2, %v7070_v60 }
0x7c23   :  { %11999 = vmatpush3.bf16.msra.mxu1 %v13012_v4  ;;  %12004 = vmatprep.mubr.msk.bf16.mxu1 %vm12982_vm0, %v12981_v0 }
0x7c24   :  { %12000 = vmatprep.subr.bf16.mxu1 %v12981_v0 }
0x7c27   :  { %12001 = vmatpush3.bf16.msra.mxu1 %v14145_v5 }
0x7c28   :  { %12002 = vmatprep.subr.bf16.mxu1 %v12981_v0 }
0x7c2b   :  { %12003 = vmatpush3.bf16.msra.mxu1 %v14158_v6 }
0x7c2c   :  { %12018 = vmatprep.subr.bf16.mxu1 %v12981_v0 }
0x7ce2   :  { %v7108_v61 = vpop.f32.mrf.mxu1 }
0x7ce3   :  { %12797 = vtanh.f32 %v7108_v61 }
0x7ce4   :  { %v11986_v62 = vpop.f32.mrf.mxu1 }
0x7ce6   :  { %v7111_v63 = vpop.f32.mrf.mxu1 }
0x7ce8   :  { %v11987_v1 = vpop.f32.mrf.mxu1 }
0x7cf0   :  { %v12798_v2 = vpop.eup %12797 }
0x7cf1   :  { %v7115_v3 = vmul.f32 0.01, %v12798_v2 }
0x7cf3   :  { %v7116_v7 = vadd.f32 %v7115_v3, %v7069_v59 }
0x7cf5   :  { %v7117_v8 = vpack.c.bf16 %v7116_v7, %v7116_v7 }
0x7cf7   :  { %11995 = vmatmul.mubr.msk.bf16.vlgmr.msra.gmra.mxu0 %vm61_vm2, %v7117_v8 }
0x7cf8   :  { %12009 = vmatpush3.bf16.msra.mxu0 %v13012_v4  ;;  %12014 = vmatprep.mubr.msk.bf16.mxu0 %vm12982_vm0, %v12981_v0 }
0x7cf9   :  { %12010 = vmatprep.subr.bf16.mxu0 %v12981_v0 }
0x7cfc   :  { %12011 = vmatpush3.bf16.msra.mxu0 %v14145_v5 }
0x7cfd   :  { %12012 = vmatprep.subr.bf16.mxu0 %v12981_v0 }
0x7d00   :  { %12013 = vmatpush3.bf16.msra.mxu0 %v14158_v6 }
0x7d01   :  { %12028 = vmatprep.subr.bf16.mxu0 %v12981_v0 }
0x7db7   :  { %v7155_v9 = vpop.f32.mrf.mxu0 }
0x7db8   :  { %12799 = vtanh.f32 %v7155_v9 }
0x7db9   :  { %v11996_v10 = vpop.f32.mrf.mxu0 }
0x7dbb   :  { %v7158_v11 = vpop.f32.mrf.mxu0 }
0x7dbd   :  { %v11997_v12 = vpop.f32.mrf.mxu0 }
0x7dc5   :  { %v12800_v13 = vpop.eup %12799 }
0x7dc6   :  { %v7162_v14 = vmul.f32 0.01, %v12800_v13 }
0x7dc8   :  { %v7163_v15 = vadd.f32 %v7162_v14, %v7116_v7 }
0x7dca   :  { %v7164_v16 = vpack.c.bf16 %v7163_v15, %v7163_v15 }
0x7dcc   :  { %12005 = vmatmul.mubr.msk.bf16.vlgmr.msra.gmra.mxu1 %vm61_vm2, %v7164_v16 }
0x7dcd   :  { %12019 = vmatpush3.bf16.msra.mxu1 %v13012_v4  ;;  %12024 = vmatprep.mubr.msk.bf16.mxu1 %vm12982_vm0, %v12981_v0 }
0x7dce   :  { %12020 = vmatprep.subr.bf16.mxu1 %v12981_v0 }
0x7dd1   :  { %12021 = vmatpush3.bf16.msra.mxu1 %v14145_v5 }
0x7dd2   :  { %12022 = vmatprep.subr.bf16.mxu1 %v12981_v0 }
0x7dd5   :  { %12023 = vmatpush3.bf16.msra.mxu1 %v14158_v6 }
0x7dd6   :  { %12038 = vmatprep.subr.bf16.mxu1 %v12981_v0 }
0x7e8c   :  { %v7202_v17 = vpop.f32.mrf.mxu1 }
0x7e8d   :  { %12801 = vtanh.f32 %v7202_v17 }
0x7e8e   :  { %v12006_v18 = vpop.f32.mrf.mxu1 }
0x7e90   :  { %v7205_v19 = vpop.f32.mrf.mxu1 }
0x7e92   :  { %v12007_v20 = vpop.f32.mrf.mxu1 }
0x7e9a   :  { %v12802_v21 = vpop.eup %12801 }
0x7e9b   :  { %v7209_v22 = vmul.f32 0.01, %v12802_v21 }
0x7e9d   :  { %v7210_v23 = vadd.f32 %v7209_v22, %v7163_v15 }
0x7e9f   :  { %v7211_v24 = vpack.c.bf16 %v7210_v23, %v7210_v23 }
0x7ea1   :  { %12015 = vmatmul.mubr.msk.bf16.vlgmr.msra.gmra.mxu0 %vm61_vm2, %v7211_v24 }
0x7ea2   :  { %12029 = vmatpush3.bf16.msra.mxu0 %v13012_v4  ;;  %12034 = vmatprep.mubr.msk.bf16.mxu0 %vm12982_vm0, %v12981_v0 }
0x7ea3   :  { %12030 = vmatprep.subr.bf16.mxu0 %v12981_v0 }
0x7ea6   :  { %12031 = vmatpush3.bf16.msra.mxu0 %v14145_v5  ;;  %v14428_v5 = vld [vmem:[#allocation5 + $0x8] sm:$0xff]  }
0x7ea7   :  { %12032 = vmatprep.subr.bf16.mxu0 %v12981_v0 }
0x7eaa   :  { %12033 = vmatpush3.bf16.msra.mxu0 %v14158_v6 }
0x7eab   :  { %12048 = vmatprep.subr.bf16.mxu0 %v12981_v0 }
0x7f61   :  { %v7249_v25 = vpop.f32.mrf.mxu0 }
0x7f62   :  { %12803 = vtanh.f32 %v7249_v25 }
0x7f63   :  { %v12016_v26 = vpop.f32.mrf.mxu0 }
0x7f65   :  { %v7252_v27 = vpop.f32.mrf.mxu0 }
0x7f67   :  { %v12017_v28 = vpop.f32.mrf.mxu0 }
0x7f6f   :  { %v12804_v29 = vpop.eup %12803 }
0x7f70   :  { %v7256_v30 = vmul.f32 0.01, %v12804_v29 }
0x7f72   :  { %v7257_v31 = vadd.f32 %v7256_v30, %v7210_v23 }
0x7f74   :  { %v7258_v32 = vpack.c.bf16 %v7257_v31, %v7257_v31 }
0x7f76   :  { %12025 = vmatmul.mubr.msk.bf16.vlgmr.msra.gmra.mxu1 %vm61_vm2, %v7258_v32 }
0x7f77   :  { %12039 = vmatpush3.bf16.msra.mxu1 %v13012_v4  ;;  %12044 = vmatprep.mubr.msk.bf16.mxu1 %vm12982_vm0, %v12981_v0 }
0x7f78   :  { %12040 = vmatprep.subr.bf16.mxu1 %v12981_v0 }
0x7f7b   :  { %12041 = vmatpush3.bf16.msra.mxu1 %v14428_v5 }
0x7f7c   :  { %12042 = vmatprep.subr.bf16.mxu1 %v12981_v0 }
0x7f7f   :  { %12043 = vmatpush3.bf16.msra.mxu1 %v14158_v6  ;;  %v14441_v6 = vld [vmem:[#allocation5] sm:$0xff]  }
0x7f80   :  { %12058 = vmatprep.subr.bf16.mxu1 %v12981_v0 }
0x8036   :  { %v7296_v33 = vpop.f32.mrf.mxu1 }
0x8037   :  { %12805 = vtanh.f32 %v7296_v33 }
0x8038   :  { %v12026_v34 = vpop.f32.mrf.mxu1 }
0x803a   :  { %v7299_v35 = vpop.f32.mrf.mxu1 }
0x803c   :  { %v12027_v36 = vpop.f32.mrf.mxu1 }
0x8044   :  { %v12806_v37 = vpop.eup %12805 }
0x8045   :  { %v7303_v38 = vmul.f32 0.01, %v12806_v37 }
0x8047   :  { %v7304_v39 = vadd.f32 %v7303_v38, %v7257_v31 }
0x8049   :  { %v7305_v40 = vpack.c.bf16 %v7304_v39, %v7304_v39 }
0x804b   :  { %12035 = vmatmul.mubr.msk.bf16.vlgmr.msra.gmra.mxu0 %vm61_vm2, %v7305_v40 }
0x804c   :  { %12049 = vmatpush3.bf16.msra.mxu0 %v13012_v4  ;;  %12054 = vmatprep.mubr.msk.bf16.mxu0 %vm12982_vm0, %v12981_v0 }
0x804d   :  { %12050 = vmatprep.subr.bf16.mxu0 %v12981_v0 }
0x8050   :  { %12051 = vmatpush3.bf16.msra.mxu0 %v14428_v5 }
0x8051   :  { %12052 = vmatprep.subr.bf16.mxu0 %v12981_v0 }
0x8054   :  { %12053 = vmatpush3.bf16.msra.mxu0 %v14441_v6 }
0x8055   :  { %12068 = vmatprep.subr.bf16.mxu0 %v12981_v0 }
0x810b   :  { %v7343_v41 = vpop.f32.mrf.mxu0 }
0x810c   :  { %12807 = vtanh.f32 %v7343_v41 }
0x810d   :  { %v12036_v42 = vpop.f32.mrf.mxu0 }
0x810f   :  { %v7346_v43 = vpop.f32.mrf.mxu0 }
0x8111   :  { %v12037_v44 = vpop.f32.mrf.mxu0 }
0x8119   :  { %v12808_v45 = vpop.eup %12807 }
0x811a   :  { %v7350_v46 = vmul.f32 0.01, %v12808_v45 }
0x811c   :  { %v7351_v47 = vadd.f32 %v7350_v46, %v7304_v39 }
0x811e   :  { %v7352_v48 = vpack.c.bf16 %v7351_v47, %v7351_v47 }
0x8120   :  { %12045 = vmatmul.mubr.msk.bf16.vlgmr.msra.gmra.mxu1 %vm61_vm2, %v7352_v48 }
0x8121   :  { %12059 = vmatpush3.bf16.msra.mxu1 %v13012_v4  ;;  %12064 = vmatprep.mubr.msk.bf16.mxu1 %vm12982_vm0, %v12981_v0 }
0x8122   :  { %12060 = vmatprep.subr.bf16.mxu1 %v12981_v0 }
0x8125   :  { %12061 = vmatpush3.bf16.msra.mxu1 %v14428_v5 }
0x8126   :  { %12062 = vmatprep.subr.bf16.mxu1 %v12981_v0 }
0x8129   :  { %12063 = vmatpush3.bf16.msra.mxu1 %v14441_v6 }
0x812a   :  { %12078 = vmatprep.subr.bf16.mxu1 %v12981_v0 }
0x81e0   :  { %v7390_v49 = vpop.f32.mrf.mxu1 }
0x81e1   :  { %12809 = vtanh.f32 %v7390_v49 }
0x81e2   :  { %v12046_v50 = vpop.f32.mrf.mxu1 }
0x81e4   :  { %v7393_v51 = vpop.f32.mrf.mxu1 }
0x81e6   :  { %v12047_v52 = vpop.f32.mrf.mxu1 }
0x81ee   :  { %v12810_v53 = vpop.eup %12809 }
0x81ef   :  { %v7397_v54 = vmul.f32 0.01, %v12810_v53 }
0x81f1   :  { %v7398_v55 = vadd.f32 %v7397_v54, %v7351_v47 }
0x81f3   :  { %v7399_v56 = vpack.c.bf16 %v7398_v55, %v7398_v55 }
0x81f5   :  { %12055 = vmatmul.mubr.msk.bf16.vlgmr.msra.gmra.mxu0 %vm61_vm2, %v7399_v56 }
0x81f6   :  { %12069 = vmatpush3.bf16.msra.mxu0 %v13012_v4  ;;  %12074 = vmatprep.mubr.msk.bf16.mxu0 %vm12982_vm0, %v12981_v0 }
0x81f7   :  { %12070 = vmatprep.subr.bf16.mxu0 %v12981_v0 }
0x81fa   :  { %12071 = vmatpush3.bf16.msra.mxu0 %v14428_v5 }
0x81fb   :  { %12072 = vmatprep.subr.bf16.mxu0 %v12981_v0 }
0x81fe   :  { %12073 = vmatpush3.bf16.msra.mxu0 %v14441_v6 }
0x81ff   :  { %12088 = vmatprep.subr.bf16.mxu0 %v12981_v0 }
0x82b5   :  { %v7437_v57 = vpop.f32.mrf.mxu0 }
0x82b6   :  { %12811 = vtanh.f32 %v7437_v57 }
0x82b7   :  { %v12056_v58 = vpop.f32.mrf.mxu0 }
0x82b9   :  { %v7440_v59 = vpop.f32.mrf.mxu0 }
0x82bb   :  { %v12057_v60 = vpop.f32.mrf.mxu0 }
0x82c3   :  { %v12812_v61 = vpop.eup %12811 }
0x82c4   :  { %v7444_v62 = vmul.f32 0.01, %v12812_v61 }
0x82c6   :  { %v7445_v63 = vadd.f32 %v7444_v62, %v7398_v55 }
0x82c8   :  { %v7446_v1 = vpack.c.bf16 %v7445_v63, %v7445_v63 }
0x82ca   :  { %12065 = vmatmul.mubr.msk.bf16.vlgmr.msra.gmra.mxu1 %vm61_vm2, %v7446_v1 }
0x82cb   :  { %12079 = vmatpush3.bf16.msra.mxu1 %v13012_v4  ;;  %12084 = vmatprep.mubr.msk.bf16.mxu1 %vm12982_vm0, %v12981_v0 }
0x82cc   :  { %12080 = vmatprep.subr.bf16.mxu1 %v12981_v0 }
0x82cf   :  { %12081 = vmatpush3.bf16.msra.mxu1 %v14428_v5 }
0x82d0   :  { %12082 = vmatprep.subr.bf16.mxu1 %v12981_v0 }
0x82d3   :  { %12083 = vmatpush3.bf16.msra.mxu1 %v14441_v6 }
0x82d4   :  { %12098 = vmatprep.subr.bf16.mxu1 %v12981_v0 }
0x838a   :  { %v7484_v2 = vpop.f32.mrf.mxu1 }
0x838b   :  { %12813 = vtanh.f32 %v7484_v2 }
0x838c   :  { %v12066_v3 = vpop.f32.mrf.mxu1 }
0x838e   :  { %v7487_v7 = vpop.f32.mrf.mxu1 }
0x8390   :  { %v12067_v8 = vpop.f32.mrf.mxu1 }
0x8398   :  { %v12814_v9 = vpop.eup %12813 }
0x8399   :  { %v7491_v10 = vmul.f32 0.01, %v12814_v9 }
0x839b   :  { %v7492_v11 = vadd.f32 %v7491_v10, %v7445_v63 }
0x839d   :  { %v7493_v12 = vpack.c.bf16 %v7492_v11, %v7492_v11 }
0x839f   :  { %12075 = vmatmul.mubr.msk.bf16.vlgmr.msra.gmra.mxu0 %vm61_vm2, %v7493_v12 }
0x83a0   :  { %12089 = vmatpush3.bf16.msra.mxu0 %v13012_v4  ;;  %12094 = vmatprep.mubr.msk.bf16.mxu0 %vm12982_vm0, %v12981_v0 }
0x83a1   :  { %12090 = vmatprep.subr.bf16.mxu0 %v12981_v0 }
0x83a4   :  { %12091 = vmatpush3.bf16.msra.mxu0 %v14428_v5 }
0x83a5   :  { %12092 = vmatprep.subr.bf16.mxu0 %v12981_v0 }
0x83a8   :  { %12093 = vmatpush3.bf16.msra.mxu0 %v14441_v6 }
0x83a9   :  { %12108 = vmatprep.subr.bf16.mxu0 %v12981_v0 }
0x845f   :  { %v7531_v13 = vpop.f32.mrf.mxu0 }
0x8460   :  { %12815 = vtanh.f32 %v7531_v13 }
0x8461   :  { %v12076_v14 = vpop.f32.mrf.mxu0 }
0x8463   :  { %v7534_v15 = vpop.f32.mrf.mxu0 }
0x8465   :  { %v12077_v16 = vpop.f32.mrf.mxu0 }
0x846d   :  { %v12816_v17 = vpop.eup %12815 }
0x846e   :  { %v7538_v18 = vmul.f32 0.01, %v12816_v17 }
0x8470   :  { %v7539_v19 = vadd.f32 %v7538_v18, %v7492_v11 }
0x8472   :  { %v7540_v20 = vpack.c.bf16 %v7539_v19, %v7539_v19 }
0x8474   :  { %12085 = vmatmul.mubr.msk.bf16.vlgmr.msra.gmra.mxu1 %vm61_vm2, %v7540_v20 }
0x8475   :  { %12099 = vmatpush3.bf16.msra.mxu1 %v13012_v4  ;;  %12104 = vmatprep.mubr.msk.bf16.mxu1 %vm12982_vm0, %v12981_v0 }
0x8476   :  { %12100 = vmatprep.subr.bf16.mxu1 %v12981_v0 }
0x8479   :  { %12101 = vmatpush3.bf16.msra.mxu1 %v14428_v5 }
0x847a   :  { %12102 = vmatprep.subr.bf16.mxu1 %v12981_v0 }
0x847d   :  { %12103 = vmatpush3.bf16.msra.mxu1 %v14441_v6 }
0x847e   :  { %12118 = vmatprep.subr.bf16.mxu1 %v12981_v0 }
0x8534   :  { %v7578_v21 = vpop.f32.mrf.mxu1 }
0x8535   :  { %12817 = vtanh.f32 %v7578_v21 }
0x8536   :  { %v12086_v22 = vpop.f32.mrf.mxu1 }
0x8538   :  { %v7581_v23 = vpop.f32.mrf.mxu1 }
0x853a   :  { %v12087_v24 = vpop.f32.mrf.mxu1 }
0x8542   :  { %v12818_v25 = vpop.eup %12817 }
0x8543   :  { %v7585_v26 = vmul.f32 0.01, %v12818_v25 }
0x8545   :  { %v7586_v27 = vadd.f32 %v7585_v26, %v7539_v19 }
0x8547   :  { %v7587_v28 = vpack.c.bf16 %v7586_v27, %v7586_v27 }
0x8549   :  { %12095 = vmatmul.mubr.msk.bf16.vlgmr.msra.gmra.mxu0 %vm61_vm2, %v7587_v28 }
0x854a   :  { %12109 = vmatpush3.bf16.msra.mxu0 %v13012_v4  ;;  %12114 = vmatprep.mubr.msk.bf16.mxu0 %vm12982_vm0, %v12981_v0 }
0x854b   :  { %12110 = vmatprep.subr.bf16.mxu0 %v12981_v0 }
0x854e   :  { %12111 = vmatpush3.bf16.msra.mxu0 %v14428_v5 }
0x854f   :  { %12112 = vmatprep.subr.bf16.mxu0 %v12981_v0 }
0x8552   :  { %12113 = vmatpush3.bf16.msra.mxu0 %v14441_v6 }
0x8553   :  { %12128 = vmatprep.subr.bf16.mxu0 %v12981_v0 }
0x8609   :  { %v7625_v29 = vpop.f32.mrf.mxu0 }
0x860a   :  { %12819 = vtanh.f32 %v7625_v29 }
0x860b   :  { %v12096_v30 = vpop.f32.mrf.mxu0 }
0x860d   :  { %v7628_v31 = vpop.f32.mrf.mxu0 }
0x860f   :  { %v12097_v32 = vpop.f32.mrf.mxu0 }
0x8617   :  { %v12820_v33 = vpop.eup %12819 }
0x8618   :  { %v7632_v34 = vmul.f32 0.01, %v12820_v33 }
0x861a   :  { %v7633_v35 = vadd.f32 %v7632_v34, %v7586_v27 }
0x861c   :  { %v7634_v36 = vpack.c.bf16 %v7633_v35, %v7633_v35 }
0x861e   :  { %12105 = vmatmul.mubr.msk.bf16.vlgmr.msra.gmra.mxu1 %vm61_vm2, %v7634_v36 }
0x861f   :  { %12119 = vmatpush3.bf16.msra.mxu1 %v13012_v4  ;;  %12124 = vmatprep.mubr.msk.bf16.mxu1 %vm12982_vm0, %v12981_v0 }
0x8620   :  { %12120 = vmatprep.subr.bf16.mxu1 %v12981_v0 }
0x8623   :  { %12121 = vmatpush3.bf16.msra.mxu1 %v14428_v5 }
0x8624   :  { %12122 = vmatprep.subr.bf16.mxu1 %v12981_v0 }
0x8627   :  { %12123 = vmatpush3.bf16.msra.mxu1 %v14441_v6 }
0x8628   :  { %12138 = vmatprep.subr.bf16.mxu1 %v12981_v0 }
0x86de   :  { %v7672_v37 = vpop.f32.mrf.mxu1 }
0x86df   :  { %12821 = vtanh.f32 %v7672_v37 }
0x86e0   :  { %v12106_v38 = vpop.f32.mrf.mxu1 }
0x86e2   :  { %v7675_v39 = vpop.f32.mrf.mxu1 }
0x86e4   :  { %v12107_v40 = vpop.f32.mrf.mxu1 }
0x86ec   :  { %v12822_v41 = vpop.eup %12821 }
0x86ed   :  { %v7679_v42 = vmul.f32 0.01, %v12822_v41 }
0x86ef   :  { %v7680_v43 = vadd.f32 %v7679_v42, %v7633_v35 }
0x86f1   :  { %v7681_v44 = vpack.c.bf16 %v7680_v43, %v7680_v43 }
0x86f3   :  { %12115 = vmatmul.mubr.msk.bf16.vlgmr.msra.gmra.mxu0 %vm61_vm2, %v7681_v44 }
0x86f4   :  { %12129 = vmatpush3.bf16.msra.mxu0 %v13012_v4  ;;  %12134 = vmatprep.mubr.msk.bf16.mxu0 %vm12982_vm0, %v12981_v0 }
0x86f5   :  { %12130 = vmatprep.subr.bf16.mxu0 %v12981_v0 }
0x86f8   :  { %12131 = vmatpush3.bf16.msra.mxu0 %v14428_v5 }
0x86f9   :  { %12132 = vmatprep.subr.bf16.mxu0 %v12981_v0 }
0x86fc   :  { %12133 = vmatpush3.bf16.msra.mxu0 %v14441_v6 }
0x86fd   :  { %12148 = vmatprep.subr.bf16.mxu0 %v12981_v0 }
0x87b3   :  { %v7719_v45 = vpop.f32.mrf.mxu0 }
0x87b4   :  { %12823 = vtanh.f32 %v7719_v45 }
0x87b5   :  { %v12116_v46 = vpop.f32.mrf.mxu0 }
0x87b7   :  { %v7722_v47 = vpop.f32.mrf.mxu0 }
0x87b9   :  { %v12117_v48 = vpop.f32.mrf.mxu0 }
0x87c1   :  { %v12824_v49 = vpop.eup %12823 }
0x87c2   :  { %v7726_v50 = vmul.f32 0.01, %v12824_v49 }
0x87c4   :  { %v7727_v51 = vadd.f32 %v7726_v50, %v7680_v43 }
0x87c6   :  { %v7728_v52 = vpack.c.bf16 %v7727_v51, %v7727_v51 }
0x87c8   :  { %12125 = vmatmul.mubr.msk.bf16.vlgmr.msra.gmra.mxu1 %vm61_vm2, %v7728_v52 }
0x87c9   :  { %12139 = vmatpush3.bf16.msra.mxu1 %v13012_v4  ;;  %12144 = vmatprep.mubr.msk.bf16.mxu1 %vm12982_vm0, %v12981_v0 }
0x87ca   :  { %12140 = vmatprep.subr.bf16.mxu1 %v12981_v0 }
0x87cd   :  { %12141 = vmatpush3.bf16.msra.mxu1 %v14428_v5 }
0x87ce   :  { %12142 = vmatprep.subr.bf16.mxu1 %v12981_v0 }
0x87d1   :  { %12143 = vmatpush3.bf16.msra.mxu1 %v14441_v6 }
0x87d2   :  { %12158 = vmatprep.subr.bf16.mxu1 %v12981_v0 }
0x8888   :  { %v7766_v53 = vpop.f32.mrf.mxu1 }
0x8889   :  { %12825 = vtanh.f32 %v7766_v53 }
0x888a   :  { %v12126_v54 = vpop.f32.mrf.mxu1 }
0x888c   :  { %v7769_v55 = vpop.f32.mrf.mxu1 }
0x888e   :  { %v12127_v56 = vpop.f32.mrf.mxu1 }
0x8896   :  { %v12826_v57 = vpop.eup %12825 }
0x8897   :  { %v7773_v58 = vmul.f32 0.01, %v12826_v57 }
0x8899   :  { %v7774_v59 = vadd.f32 %v7773_v58, %v7727_v51 }
0x889b   :  { %v7775_v60 = vpack.c.bf16 %v7774_v59, %v7774_v59 }
0x889d   :  { %12135 = vmatmul.mubr.msk.bf16.vlgmr.msra.gmra.mxu0 %vm61_vm2, %v7775_v60 }
0x889e   :  { %12149 = vmatpush3.bf16.msra.mxu0 %v13012_v4  ;;  %12154 = vmatprep.mubr.msk.bf16.mxu0 %vm12982_vm0, %v12981_v0 }
0x889f   :  { %12150 = vmatprep.subr.bf16.mxu0 %v12981_v0 }
0x88a2   :  { %12151 = vmatpush3.bf16.msra.mxu0 %v14428_v5 }
0x88a3   :  { %12152 = vmatprep.subr.bf16.mxu0 %v12981_v0 }
0x88a6   :  { %12153 = vmatpush3.bf16.msra.mxu0 %v14441_v6 }
0x88a7   :  { %12168 = vmatprep.subr.bf16.mxu0 %v12981_v0 }
0x895d   :  { %v7813_v61 = vpop.f32.mrf.mxu0 }
0x895e   :  { %12827 = vtanh.f32 %v7813_v61 }
0x895f   :  { %v12136_v62 = vpop.f32.mrf.mxu0 }
0x8961   :  { %v7816_v63 = vpop.f32.mrf.mxu0 }
0x8963   :  { %v12137_v1 = vpop.f32.mrf.mxu0 }
0x896b   :  { %v12828_v2 = vpop.eup %12827 }
0x896c   :  { %v7820_v3 = vmul.f32 0.01, %v12828_v2 }
0x896e   :  { %v7821_v7 = vadd.f32 %v7820_v3, %v7774_v59 }
0x8970   :  { %v7822_v8 = vpack.c.bf16 %v7821_v7, %v7821_v7 }
0x8972   :  { %12145 = vmatmul.mubr.msk.bf16.vlgmr.msra.gmra.mxu1 %vm61_vm2, %v7822_v8 }
0x8973   :  { %12159 = vmatpush3.bf16.msra.mxu1 %v13012_v4  ;;  %12164 = vmatprep.mubr.msk.bf16.mxu1 %vm12982_vm0, %v12981_v0 }
0x8974   :  { %12160 = vmatprep.subr.bf16.mxu1 %v12981_v0 }
0x8977   :  { %12161 = vmatpush3.bf16.msra.mxu1 %v14428_v5 }
0x8978   :  { %12162 = vmatprep.subr.bf16.mxu1 %v12981_v0 }
0x897b   :  { %12163 = vmatpush3.bf16.msra.mxu1 %v14441_v6 }
0x897c   :  { %12178 = vmatprep.subr.bf16.mxu1 %v12981_v0 }
0x8a32   :  { %v7860_v9 = vpop.f32.mrf.mxu1 }
0x8a33   :  { %12829 = vtanh.f32 %v7860_v9 }
0x8a34   :  { %v12146_v10 = vpop.f32.mrf.mxu1 }
0x8a36   :  { %v7863_v11 = vpop.f32.mrf.mxu1 }
0x8a38   :  { %v12147_v12 = vpop.f32.mrf.mxu1 }
0x8a40   :  { %v12830_v13 = vpop.eup %12829 }
0x8a41   :  { %v7867_v14 = vmul.f32 0.01, %v12830_v13 }
0x8a43   :  { %v7868_v15 = vadd.f32 %v7867_v14, %v7821_v7 }
0x8a45   :  { %v7869_v16 = vpack.c.bf16 %v7868_v15, %v7868_v15 }
0x8a47   :  { %12155 = vmatmul.mubr.msk.bf16.vlgmr.msra.gmra.mxu0 %vm61_vm2, %v7869_v16 }
0x8a48   :  { %12169 = vmatpush3.bf16.msra.mxu0 %v13012_v4  ;;  %12174 = vmatprep.mubr.msk.bf16.mxu0 %vm12982_vm0, %v12981_v0 }
0x8a49   :  { %12170 = vmatprep.subr.bf16.mxu0 %v12981_v0 }
0x8a4c   :  { %12171 = vmatpush3.bf16.msra.mxu0 %v14428_v5 }
0x8a4d   :  { %12172 = vmatprep.subr.bf16.mxu0 %v12981_v0 }
0x8a50   :  { %12173 = vmatpush3.bf16.msra.mxu0 %v14441_v6 }
0x8a51   :  { %12188 = vmatprep.subr.bf16.mxu0 %v12981_v0 }
0x8b07   :  { %v7907_v17 = vpop.f32.mrf.mxu0 }
0x8b08   :  { %12831 = vtanh.f32 %v7907_v17 }
0x8b09   :  { %v12156_v18 = vpop.f32.mrf.mxu0 }
0x8b0b   :  { %v7910_v19 = vpop.f32.mrf.mxu0 }
0x8b0d   :  { %v12157_v20 = vpop.f32.mrf.mxu0 }
0x8b15   :  { %v12832_v21 = vpop.eup %12831 }
0x8b16   :  { %v7914_v22 = vmul.f32 0.01, %v12832_v21 }
0x8b18   :  { %v7915_v23 = vadd.f32 %v7914_v22, %v7868_v15 }
0x8b1a   :  { %v7916_v24 = vpack.c.bf16 %v7915_v23, %v7915_v23 }
0x8b1c   :  { %12165 = vmatmul.mubr.msk.bf16.vlgmr.msra.gmra.mxu1 %vm61_vm2, %v7916_v24 }
0x8b1d   :  { %12179 = vmatpush3.bf16.msra.mxu1 %v13012_v4  ;;  %12184 = vmatprep.mubr.msk.bf16.mxu1 %vm12982_vm0, %v12981_v0 }
0x8b1e   :  { %12180 = vmatprep.subr.bf16.mxu1 %v12981_v0 }
0x8b21   :  { %12181 = vmatpush3.bf16.msra.mxu1 %v14428_v5 }
0x8b22   :  { %12182 = vmatprep.subr.bf16.mxu1 %v12981_v0 }
0x8b25   :  { %12183 = vmatpush3.bf16.msra.mxu1 %v14441_v6 }
0x8b26   :  { %12198 = vmatprep.subr.bf16.mxu1 %v12981_v0 }
0x8bdc   :  { %v7954_v25 = vpop.f32.mrf.mxu1 }
0x8bdd   :  { %12833 = vtanh.f32 %v7954_v25 }
0x8bde   :  { %v12166_v26 = vpop.f32.mrf.mxu1 }
0x8be0   :  { %v7957_v27 = vpop.f32.mrf.mxu1 }
0x8be2   :  { %v12167_v28 = vpop.f32.mrf.mxu1 }
0x8bea   :  { %v12834_v29 = vpop.eup %12833 }
0x8beb   :  { %v7961_v30 = vmul.f32 0.01, %v12834_v29 }
0x8bed   :  { %v7962_v31 = vadd.f32 %v7961_v30, %v7915_v23 }
0x8bef   :  { %v7963_v32 = vpack.c.bf16 %v7962_v31, %v7962_v31 }
0x8bf1   :  { %12175 = vmatmul.mubr.msk.bf16.vlgmr.msra.gmra.mxu0 %vm61_vm2, %v7963_v32 }
0x8bf2   :  { %12189 = vmatpush3.bf16.msra.mxu0 %v13012_v4  ;;  %12194 = vmatprep.mubr.msk.bf16.mxu0 %vm12982_vm0, %v12981_v0 }
0x8bf3   :  { %12190 = vmatprep.subr.bf16.mxu0 %v12981_v0 }
0x8bf6   :  { %12191 = vmatpush3.bf16.msra.mxu0 %v14428_v5 }
0x8bf7   :  { %12192 = vmatprep.subr.bf16.mxu0 %v12981_v0 }
0x8bfa   :  { %12193 = vmatpush3.bf16.msra.mxu0 %v14441_v6 }
0x8bfb   :  { %12208 = vmatprep.subr.bf16.mxu0 %v12981_v0 }
0x8cb1   :  { %v8001_v33 = vpop.f32.mrf.mxu0 }
0x8cb2   :  { %12835 = vtanh.f32 %v8001_v33 }
0x8cb3   :  { %v12176_v34 = vpop.f32.mrf.mxu0 }
0x8cb5   :  { %v8004_v35 = vpop.f32.mrf.mxu0 }
0x8cb7   :  { %v12177_v36 = vpop.f32.mrf.mxu0 }
0x8cbf   :  { %v12836_v37 = vpop.eup %12835 }
0x8cc0   :  { %v8008_v38 = vmul.f32 0.01, %v12836_v37 }
0x8cc2   :  { %v8009_v39 = vadd.f32 %v8008_v38, %v7962_v31 }
0x8cc4   :  { %v8010_v40 = vpack.c.bf16 %v8009_v39, %v8009_v39 }
0x8cc6   :  { %12185 = vmatmul.mubr.msk.bf16.vlgmr.msra.gmra.mxu1 %vm61_vm2, %v8010_v40 }
0x8cc7   :  { %12199 = vmatpush3.bf16.msra.mxu1 %v13012_v4  ;;  %12204 = vmatprep.mubr.msk.bf16.mxu1 %vm12982_vm0, %v12981_v0 }
0x8cc8   :  { %12200 = vmatprep.subr.bf16.mxu1 %v12981_v0 }
0x8ccb   :  { %12201 = vmatpush3.bf16.msra.mxu1 %v14428_v5 }
0x8ccc   :  { %12202 = vmatprep.subr.bf16.mxu1 %v12981_v0 }
0x8ccf   :  { %12203 = vmatpush3.bf16.msra.mxu1 %v14441_v6 }
0x8cd0   :  { %12218 = vmatprep.subr.bf16.mxu1 %v12981_v0 }
0x8d86   :  { %v8048_v41 = vpop.f32.mrf.mxu1 }
0x8d87   :  { %12837 = vtanh.f32 %v8048_v41 }
0x8d88   :  { %v12186_v42 = vpop.f32.mrf.mxu1 }
0x8d8a   :  { %v8051_v43 = vpop.f32.mrf.mxu1 }
0x8d8c   :  { %v12187_v44 = vpop.f32.mrf.mxu1 }
0x8d94   :  { %v12838_v45 = vpop.eup %12837 }
0x8d95   :  { %v8055_v46 = vmul.f32 0.01, %v12838_v45 }
0x8d97   :  { %v8056_v47 = vadd.f32 %v8055_v46, %v8009_v39 }
0x8d99   :  { %v8057_v48 = vpack.c.bf16 %v8056_v47, %v8056_v47 }
0x8d9b   :  { %12195 = vmatmul.mubr.msk.bf16.vlgmr.msra.gmra.mxu0 %vm61_vm2, %v8057_v48 }
0x8d9c   :  { %12209 = vmatpush3.bf16.msra.mxu0 %v13012_v4  ;;  %12214 = vmatprep.mubr.msk.bf16.mxu0 %vm12982_vm0, %v12981_v0 }
0x8d9d   :  { %12210 = vmatprep.subr.bf16.mxu0 %v12981_v0 }
0x8da0   :  { %12211 = vmatpush3.bf16.msra.mxu0 %v14428_v5 }
0x8da1   :  { %12212 = vmatprep.subr.bf16.mxu0 %v12981_v0 }
0x8da4   :  { %12213 = vmatpush3.bf16.msra.mxu0 %v14441_v6 }
0x8da5   :  { %12228 = vmatprep.subr.bf16.mxu0 %v12981_v0 }
0x8e5b   :  { %v8095_v49 = vpop.f32.mrf.mxu0 }
0x8e5c   :  { %12839 = vtanh.f32 %v8095_v49 }
0x8e5d   :  { %v12196_v50 = vpop.f32.mrf.mxu0 }
0x8e5f   :  { %v8098_v51 = vpop.f32.mrf.mxu0 }
0x8e61   :  { %v12197_v52 = vpop.f32.mrf.mxu0 }
0x8e69   :  { %v12840_v53 = vpop.eup %12839 }
0x8e6a   :  { %v8102_v54 = vmul.f32 0.01, %v12840_v53 }
0x8e6c   :  { %v8103_v55 = vadd.f32 %v8102_v54, %v8056_v47 }
0x8e6e   :  { %v8104_v56 = vpack.c.bf16 %v8103_v55, %v8103_v55 }
0x8e70   :  { %12205 = vmatmul.mubr.msk.bf16.vlgmr.msra.gmra.mxu1 %vm61_vm2, %v8104_v56 }
0x8e71   :  { %12219 = vmatpush3.bf16.msra.mxu1 %v13012_v4  ;;  %12224 = vmatprep.mubr.msk.bf16.mxu1 %vm12982_vm0, %v12981_v0 }
0x8e72   :  { %12220 = vmatprep.subr.bf16.mxu1 %v12981_v0 }
0x8e75   :  { %12221 = vmatpush3.bf16.msra.mxu1 %v14428_v5 }
0x8e76   :  { %12222 = vmatprep.subr.bf16.mxu1 %v12981_v0 }
0x8e79   :  { %12223 = vmatpush3.bf16.msra.mxu1 %v14441_v6 }
0x8e7a   :  { %12238 = vmatprep.subr.bf16.mxu1 %v12981_v0 }
0x8f30   :  { %v8142_v57 = vpop.f32.mrf.mxu1 }
0x8f31   :  { %12841 = vtanh.f32 %v8142_v57 }
0x8f32   :  { %v12206_v58 = vpop.f32.mrf.mxu1 }
0x8f34   :  { %v8145_v59 = vpop.f32.mrf.mxu1 }
0x8f36   :  { %v12207_v60 = vpop.f32.mrf.mxu1 }
0x8f3e   :  { %v12842_v61 = vpop.eup %12841 }
0x8f3f   :  { %v8149_v62 = vmul.f32 0.01, %v12842_v61 }
0x8f41   :  { %v8150_v63 = vadd.f32 %v8149_v62, %v8103_v55 }
0x8f43   :  { %v8151_v1 = vpack.c.bf16 %v8150_v63, %v8150_v63 }
0x8f45   :  { %12215 = vmatmul.mubr.msk.bf16.vlgmr.msra.gmra.mxu0 %vm61_vm2, %v8151_v1 }
0x8f46   :  { %12229 = vmatpush3.bf16.msra.mxu0 %v13012_v4  ;;  %12234 = vmatprep.mubr.msk.bf16.mxu0 %vm12982_vm0, %v12981_v0 }
0x8f47   :  { %12230 = vmatprep.subr.bf16.mxu0 %v12981_v0 }
0x8f4a   :  { %12231 = vmatpush3.bf16.msra.mxu0 %v14428_v5 }
0x8f4b   :  { %12232 = vmatprep.subr.bf16.mxu0 %v12981_v0 }
0x8f4e   :  { %12233 = vmatpush3.bf16.msra.mxu0 %v14441_v6 }
0x8f4f   :  { %12248 = vmatprep.subr.bf16.mxu0 %v12981_v0 }
0x9005   :  { %v8189_v2 = vpop.f32.mrf.mxu0 }
0x9006   :  { %12843 = vtanh.f32 %v8189_v2 }
0x9007   :  { %v12216_v3 = vpop.f32.mrf.mxu0 }
0x9009   :  { %v8192_v7 = vpop.f32.mrf.mxu0 }
0x900b   :  { %v12217_v8 = vpop.f32.mrf.mxu0 }
0x9013   :  { %v12844_v9 = vpop.eup %12843 }
0x9014   :  { %v8196_v10 = vmul.f32 0.01, %v12844_v9 }
0x9016   :  { %v8197_v11 = vadd.f32 %v8196_v10, %v8150_v63 }
0x9018   :  { %v8198_v12 = vpack.c.bf16 %v8197_v11, %v8197_v11 }
0x901a   :  { %12225 = vmatmul.mubr.msk.bf16.vlgmr.msra.gmra.mxu1 %vm61_vm2, %v8198_v12 }
0x901b   :  { %12239 = vmatpush3.bf16.msra.mxu1 %v13012_v4  ;;  %12244 = vmatprep.mubr.msk.bf16.mxu1 %vm12982_vm0, %v12981_v0 }
0x901c   :  { %12240 = vmatprep.subr.bf16.mxu1 %v12981_v0 }
0x901f   :  { %12241 = vmatpush3.bf16.msra.mxu1 %v14428_v5 }
0x9020   :  { %12242 = vmatprep.subr.bf16.mxu1 %v12981_v0 }
0x9023   :  { %12243 = vmatpush3.bf16.msra.mxu1 %v14441_v6 }
0x9024   :  { %12258 = vmatprep.subr.bf16.mxu1 %v12981_v0 }
0x90da   :  { %v8236_v13 = vpop.f32.mrf.mxu1 }
0x90db   :  { %12845 = vtanh.f32 %v8236_v13 }
0x90dc   :  { %v12226_v14 = vpop.f32.mrf.mxu1 }
0x90de   :  { %v8239_v15 = vpop.f32.mrf.mxu1 }
0x90e0   :  { %v12227_v16 = vpop.f32.mrf.mxu1 }
0x90e8   :  { %v12846_v17 = vpop.eup %12845 }
0x90e9   :  { %v8243_v18 = vmul.f32 0.01, %v12846_v17 }
0x90eb   :  { %v8244_v19 = vadd.f32 %v8243_v18, %v8197_v11 }
0x90ed   :  { %v8245_v20 = vpack.c.bf16 %v8244_v19, %v8244_v19 }
0x90ef   :  { %12235 = vmatmul.mubr.msk.bf16.vlgmr.msra.gmra.mxu0 %vm61_vm2, %v8245_v20 }
0x90f0   :  { %12249 = vmatpush3.bf16.msra.mxu0 %v13012_v4  ;;  %12254 = vmatprep.mubr.msk.bf16.mxu0 %vm12982_vm0, %v12981_v0 }
0x90f1   :  { %12250 = vmatprep.subr.bf16.mxu0 %v12981_v0 }
0x90f4   :  { %12251 = vmatpush3.bf16.msra.mxu0 %v14428_v5 }
0x90f5   :  { %12252 = vmatprep.subr.bf16.mxu0 %v12981_v0 }
0x90f8   :  { %12253 = vmatpush3.bf16.msra.mxu0 %v14441_v6 }
0x90f9   :  { %12268 = vmatprep.subr.bf16.mxu0 %v12981_v0 }
0x91af   :  { %v8283_v21 = vpop.f32.mrf.mxu0 }
0x91b0   :  { %12847 = vtanh.f32 %v8283_v21 }
0x91b1   :  { %v12236_v22 = vpop.f32.mrf.mxu0 }
0x91b3   :  { %v8286_v23 = vpop.f32.mrf.mxu0 }
0x91b5   :  { %v12237_v24 = vpop.f32.mrf.mxu0 }
0x91bd   :  { %v12848_v25 = vpop.eup %12847 }
0x91be   :  { %v8290_v26 = vmul.f32 0.01, %v12848_v25 }
0x91c0   :  { %v8291_v27 = vadd.f32 %v8290_v26, %v8244_v19 }
0x91c2   :  { %v8292_v28 = vpack.c.bf16 %v8291_v27, %v8291_v27 }
0x91c4   :  { %12245 = vmatmul.mubr.msk.bf16.vlgmr.msra.gmra.mxu1 %vm61_vm2, %v8292_v28 }
0x91c5   :  { %12259 = vmatpush3.bf16.msra.mxu1 %v13012_v4  ;;  %12264 = vmatprep.mubr.msk.bf16.mxu1 %vm12982_vm0, %v12981_v0 }
0x91c6   :  { %12260 = vmatprep.subr.bf16.mxu1 %v12981_v0 }
0x91c9   :  { %12261 = vmatpush3.bf16.msra.mxu1 %v14428_v5 }
0x91ca   :  { %12262 = vmatprep.subr.bf16.mxu1 %v12981_v0 }
0x91cd   :  { %12263 = vmatpush3.bf16.msra.mxu1 %v14441_v6 }
0x91ce   :  { %12278 = vmatprep.subr.bf16.mxu1 %v12981_v0 }
0x9284   :  { %v8330_v29 = vpop.f32.mrf.mxu1 }
0x9285   :  { %12849 = vtanh.f32 %v8330_v29 }
0x9286   :  { %v12246_v30 = vpop.f32.mrf.mxu1 }
0x9288   :  { %v8333_v31 = vpop.f32.mrf.mxu1 }
0x928a   :  { %v12247_v32 = vpop.f32.mrf.mxu1 }
0x9292   :  { %v12850_v33 = vpop.eup %12849 }
0x9293   :  { %v8337_v34 = vmul.f32 0.01, %v12850_v33 }
0x9295   :  { %v8338_v35 = vadd.f32 %v8337_v34, %v8291_v27 }
0x9297   :  { %v8339_v36 = vpack.c.bf16 %v8338_v35, %v8338_v35 }
0x9299   :  { %12255 = vmatmul.mubr.msk.bf16.vlgmr.msra.gmra.mxu0 %vm61_vm2, %v8339_v36 }
0x929a   :  { %12269 = vmatpush3.bf16.msra.mxu0 %v13012_v4  ;;  %12274 = vmatprep.mubr.msk.bf16.mxu0 %vm12982_vm0, %v12981_v0 }
0x929b   :  { %12270 = vmatprep.subr.bf16.mxu0 %v12981_v0 }
0x929e   :  { %12271 = vmatpush3.bf16.msra.mxu0 %v14428_v5 }
0x929f   :  { %12272 = vmatprep.subr.bf16.mxu0 %v12981_v0 }
0x92a2   :  { %12273 = vmatpush3.bf16.msra.mxu0 %v14441_v6 }
0x92a3   :  { %12288 = vmatprep.subr.bf16.mxu0 %v12981_v0 }
0x9359   :  { %v8377_v37 = vpop.f32.mrf.mxu0 }
0x935a   :  { %12851 = vtanh.f32 %v8377_v37 }
0x935b   :  { %v12256_v38 = vpop.f32.mrf.mxu0 }
0x935d   :  { %v8380_v39 = vpop.f32.mrf.mxu0 }
0x935f   :  { %v12257_v40 = vpop.f32.mrf.mxu0 }
0x9367   :  { %v12852_v41 = vpop.eup %12851 }
0x9368   :  { %v8384_v42 = vmul.f32 0.01, %v12852_v41 }
0x936a   :  { %v8385_v43 = vadd.f32 %v8384_v42, %v8338_v35 }
0x936c   :  { %v8386_v44 = vpack.c.bf16 %v8385_v43, %v8385_v43 }
0x936e   :  { %12265 = vmatmul.mubr.msk.bf16.vlgmr.msra.gmra.mxu1 %vm61_vm2, %v8386_v44 }
0x936f   :  { %12279 = vmatpush3.bf16.msra.mxu1 %v13012_v4  ;;  %12284 = vmatprep.mubr.msk.bf16.mxu1 %vm12982_vm0, %v12981_v0 }
0x9370   :  { %12280 = vmatprep.subr.bf16.mxu1 %v12981_v0 }
0x9373   :  { %12281 = vmatpush3.bf16.msra.mxu1 %v14428_v5 }
0x9374   :  { %12282 = vmatprep.subr.bf16.mxu1 %v12981_v0 }
0x9377   :  { %12283 = vmatpush3.bf16.msra.mxu1 %v14441_v6 }
0x9378   :  { %12298 = vmatprep.subr.bf16.mxu1 %v12981_v0 }
0x942e   :  { %v8424_v45 = vpop.f32.mrf.mxu1 }
0x942f   :  { %12853 = vtanh.f32 %v8424_v45 }
0x9430   :  { %v12266_v46 = vpop.f32.mrf.mxu1 }
0x9432   :  { %v8427_v47 = vpop.f32.mrf.mxu1 }
0x9434   :  { %v12267_v48 = vpop.f32.mrf.mxu1 }
0x943c   :  { %v12854_v49 = vpop.eup %12853 }
0x943d   :  { %v8431_v50 = vmul.f32 0.01, %v12854_v49 }
0x943f   :  { %v8432_v51 = vadd.f32 %v8431_v50, %v8385_v43 }
0x9441   :  { %v8433_v52 = vpack.c.bf16 %v8432_v51, %v8432_v51 }
0x9443   :  { %12275 = vmatmul.mubr.msk.bf16.vlgmr.msra.gmra.mxu0 %vm61_vm2, %v8433_v52 }
0x9444   :  { %12289 = vmatpush3.bf16.msra.mxu0 %v13012_v4  ;;  %12294 = vmatprep.mubr.msk.bf16.mxu0 %vm12982_vm0, %v12981_v0 }
0x9445   :  { %12290 = vmatprep.subr.bf16.mxu0 %v12981_v0 }
0x9448   :  { %12291 = vmatpush3.bf16.msra.mxu0 %v14428_v5 }
0x9449   :  { %12292 = vmatprep.subr.bf16.mxu0 %v12981_v0 }
0x944c   :  { %12293 = vmatpush3.bf16.msra.mxu0 %v14441_v6 }
0x944d   :  { %12308 = vmatprep.subr.bf16.mxu0 %v12981_v0 }
0x9503   :  { %v8471_v53 = vpop.f32.mrf.mxu0 }
0x9504   :  { %12855 = vtanh.f32 %v8471_v53 }
0x9505   :  { %v12276_v54 = vpop.f32.mrf.mxu0 }
0x9507   :  { %v8474_v55 = vpop.f32.mrf.mxu0 }
0x9509   :  { %v12277_v56 = vpop.f32.mrf.mxu0 }
0x9511   :  { %v12856_v57 = vpop.eup %12855 }
0x9512   :  { %v8478_v58 = vmul.f32 0.01, %v12856_v57 }
0x9514   :  { %v8479_v59 = vadd.f32 %v8478_v58, %v8432_v51 }
0x9516   :  { %v8480_v60 = vpack.c.bf16 %v8479_v59, %v8479_v59 }
0x9518   :  { %12285 = vmatmul.mubr.msk.bf16.vlgmr.msra.gmra.mxu1 %vm61_vm2, %v8480_v60 }
0x9519   :  { %12299 = vmatpush3.bf16.msra.mxu1 %v13012_v4  ;;  %12304 = vmatprep.mubr.msk.bf16.mxu1 %vm12982_vm0, %v12981_v0 }
0x951a   :  { %12300 = vmatprep.subr.bf16.mxu1 %v12981_v0 }
0x951d   :  { %12301 = vmatpush3.bf16.msra.mxu1 %v14428_v5 }
0x951e   :  { %12302 = vmatprep.subr.bf16.mxu1 %v12981_v0 }
0x9521   :  { %12303 = vmatpush3.bf16.msra.mxu1 %v14441_v6 }
0x9522   :  { %12318 = vmatprep.subr.bf16.mxu1 %v12981_v0 }
0x95d8   :  { %v8518_v61 = vpop.f32.mrf.mxu1 }
0x95d9   :  { %12857 = vtanh.f32 %v8518_v61 }
0x95da   :  { %v12286_v62 = vpop.f32.mrf.mxu1 }
0x95dc   :  { %v8521_v63 = vpop.f32.mrf.mxu1 }
0x95de   :  { %v12287_v1 = vpop.f32.mrf.mxu1 }
0x95e6   :  { %v12858_v2 = vpop.eup %12857 }
0x95e7   :  { %v8525_v3 = vmul.f32 0.01, %v12858_v2 }
0x95e9   :  { %v8526_v7 = vadd.f32 %v8525_v3, %v8479_v59 }
0x95eb   :  { %v8527_v8 = vpack.c.bf16 %v8526_v7, %v8526_v7 }
0x95ed   :  { %12295 = vmatmul.mubr.msk.bf16.vlgmr.msra.gmra.mxu0 %vm61_vm2, %v8527_v8 }
0x95ee   :  { %12309 = vmatpush3.bf16.msra.mxu0 %v13012_v4  ;;  %12314 = vmatprep.mubr.msk.bf16.mxu0 %vm12982_vm0, %v12981_v0 }
0x95ef   :  { %12310 = vmatprep.subr.bf16.mxu0 %v12981_v0 }
0x95f2   :  { %12311 = vmatpush3.bf16.msra.mxu0 %v14428_v5 }
0x95f3   :  { %12312 = vmatprep.subr.bf16.mxu0 %v12981_v0 }
0x95f6   :  { %12313 = vmatpush3.bf16.msra.mxu0 %v14441_v6 }
0x95f7   :  { %12328 = vmatprep.subr.bf16.mxu0 %v12981_v0 }
0x96ad   :  { %v8565_v9 = vpop.f32.mrf.mxu0 }
0x96ae   :  { %12859 = vtanh.f32 %v8565_v9 }
0x96af   :  { %v12296_v10 = vpop.f32.mrf.mxu0 }
0x96b1   :  { %v8568_v11 = vpop.f32.mrf.mxu0 }
0x96b3   :  { %v12297_v12 = vpop.f32.mrf.mxu0 }
0x96bb   :  { %v12860_v13 = vpop.eup %12859 }
0x96bc   :  { %v8572_v14 = vmul.f32 0.01, %v12860_v13 }
0x96be   :  { %v8573_v15 = vadd.f32 %v8572_v14, %v8526_v7 }
0x96c0   :  { %v8574_v16 = vpack.c.bf16 %v8573_v15, %v8573_v15 }
0x96c2   :  { %12305 = vmatmul.mubr.msk.bf16.vlgmr.msra.gmra.mxu1 %vm61_vm2, %v8574_v16 }
0x96c3   :  { %12319 = vmatpush3.bf16.msra.mxu1 %v13012_v4  ;;  %12324 = vmatprep.mubr.msk.bf16.mxu1 %vm12982_vm0, %v12981_v0 }
0x96c4   :  { %12320 = vmatprep.subr.bf16.mxu1 %v12981_v0 }
0x96c7   :  { %12321 = vmatpush3.bf16.msra.mxu1 %v14428_v5 }
0x96c8   :  { %12322 = vmatprep.subr.bf16.mxu1 %v12981_v0 }
0x96cb   :  { %12323 = vmatpush3.bf16.msra.mxu1 %v14441_v6 }
0x96cc   :  { %12338 = vmatprep.subr.bf16.mxu1 %v12981_v0 }
0x9782   :  { %v8612_v17 = vpop.f32.mrf.mxu1 }
0x9783   :  { %12861 = vtanh.f32 %v8612_v17 }
0x9784   :  { %v12306_v18 = vpop.f32.mrf.mxu1 }
0x9786   :  { %v8615_v19 = vpop.f32.mrf.mxu1 }
0x9788   :  { %v12307_v20 = vpop.f32.mrf.mxu1 }
0x9790   :  { %v12862_v21 = vpop.eup %12861 }
0x9791   :  { %v8619_v22 = vmul.f32 0.01, %v12862_v21 }
0x9793   :  { %v8620_v23 = vadd.f32 %v8619_v22, %v8573_v15 }
0x9795   :  { %v8621_v24 = vpack.c.bf16 %v8620_v23, %v8620_v23 }
0x9797   :  { %12315 = vmatmul.mubr.msk.bf16.vlgmr.msra.gmra.mxu0 %vm61_vm2, %v8621_v24 }
0x9798   :  { %12329 = vmatpush3.bf16.msra.mxu0 %v13012_v4  ;;  %12334 = vmatprep.mubr.msk.bf16.mxu0 %vm12982_vm0, %v12981_v0 }
0x9799   :  { %12330 = vmatprep.subr.bf16.mxu0 %v12981_v0 }
0x979c   :  { %12331 = vmatpush3.bf16.msra.mxu0 %v14428_v5 }
0x979d   :  { %12332 = vmatprep.subr.bf16.mxu0 %v12981_v0 }
0x97a0   :  { %12333 = vmatpush3.bf16.msra.mxu0 %v14441_v6 }
0x97a1   :  { %12348 = vmatprep.subr.bf16.mxu0 %v12981_v0 }
0x9857   :  { %v8659_v25 = vpop.f32.mrf.mxu0 }
0x9858   :  { %12863 = vtanh.f32 %v8659_v25 }
0x9859   :  { %v12316_v26 = vpop.f32.mrf.mxu0 }
0x985b   :  { %v8662_v27 = vpop.f32.mrf.mxu0 }
0x985d   :  { %v12317_v28 = vpop.f32.mrf.mxu0 }
0x9865   :  { %v12864_v29 = vpop.eup %12863 }
0x9866   :  { %v8666_v30 = vmul.f32 0.01, %v12864_v29 }
0x9868   :  { %v8667_v31 = vadd.f32 %v8666_v30, %v8620_v23 }
0x986a   :  { %v8668_v32 = vpack.c.bf16 %v8667_v31, %v8667_v31 }
0x986c   :  { %12325 = vmatmul.mubr.msk.bf16.vlgmr.msra.gmra.mxu1 %vm61_vm2, %v8668_v32 }
0x986d   :  { %12339 = vmatpush3.bf16.msra.mxu1 %v13012_v4  ;;  %12344 = vmatprep.mubr.msk.bf16.mxu1 %vm12982_vm0, %v12981_v0 }
0x986e   :  { %12340 = vmatprep.subr.bf16.mxu1 %v12981_v0 }
0x9871   :  { %12341 = vmatpush3.bf16.msra.mxu1 %v14428_v5  ;;  %v14711_v5 = vld [vmem:[#allocation5 + $0x8] sm:$0xff]  }
0x9872   :  { %12342 = vmatprep.subr.bf16.mxu1 %v12981_v0 }
0x9875   :  { %12343 = vmatpush3.bf16.msra.mxu1 %v14441_v6 }
0x9876   :  { %12358 = vmatprep.subr.bf16.mxu1 %v12981_v0 }
0x992c   :  { %v8706_v33 = vpop.f32.mrf.mxu1 }
0x992d   :  { %12865 = vtanh.f32 %v8706_v33 }
0x992e   :  { %v12326_v34 = vpop.f32.mrf.mxu1 }
0x9930   :  { %v8709_v35 = vpop.f32.mrf.mxu1 }
0x9932   :  { %v12327_v36 = vpop.f32.mrf.mxu1 }
0x993a   :  { %v12866_v37 = vpop.eup %12865 }
0x993b   :  { %v8713_v38 = vmul.f32 0.01, %v12866_v37 }
0x993d   :  { %v8714_v39 = vadd.f32 %v8713_v38, %v8667_v31 }
0x993f   :  { %v8715_v40 = vpack.c.bf16 %v8714_v39, %v8714_v39 }
0x9941   :  { %12335 = vmatmul.mubr.msk.bf16.vlgmr.msra.gmra.mxu0 %vm61_vm2, %v8715_v40 }
0x9942   :  { %12349 = vmatpush3.bf16.msra.mxu0 %v13012_v4  ;;  %12354 = vmatprep.mubr.msk.bf16.mxu0 %vm12982_vm0, %v12981_v0 }
0x9943   :  { %12350 = vmatprep.subr.bf16.mxu0 %v12981_v0 }
0x9946   :  { %12351 = vmatpush3.bf16.msra.mxu0 %v14711_v5 }
0x9947   :  { %12352 = vmatprep.subr.bf16.mxu0 %v12981_v0 }
0x994a   :  { %12353 = vmatpush3.bf16.msra.mxu0 %v14441_v6  ;;  %v14724_v6 = vld [vmem:[#allocation5] sm:$0xff]  }
0x994b   :  { %12368 = vmatprep.subr.bf16.mxu0 %v12981_v0 }
0x9a01   :  { %v8753_v41 = vpop.f32.mrf.mxu0 }
0x9a02   :  { %12867 = vtanh.f32 %v8753_v41 }
0x9a03   :  { %v12336_v42 = vpop.f32.mrf.mxu0 }
0x9a05   :  { %v8756_v43 = vpop.f32.mrf.mxu0 }
0x9a07   :  { %v12337_v44 = vpop.f32.mrf.mxu0 }
0x9a0f   :  { %v12868_v45 = vpop.eup %12867 }
0x9a10   :  { %v8760_v46 = vmul.f32 0.01, %v12868_v45 }
0x9a12   :  { %v8761_v47 = vadd.f32 %v8760_v46, %v8714_v39 }
0x9a14   :  { %v8762_v48 = vpack.c.bf16 %v8761_v47, %v8761_v47 }
0x9a16   :  { %12345 = vmatmul.mubr.msk.bf16.vlgmr.msra.gmra.mxu1 %vm61_vm2, %v8762_v48 }
0x9a17   :  { %12359 = vmatpush3.bf16.msra.mxu1 %v13012_v4  ;;  %12364 = vmatprep.mubr.msk.bf16.mxu1 %vm12982_vm0, %v12981_v0 }
0x9a18   :  { %12360 = vmatprep.subr.bf16.mxu1 %v12981_v0 }
0x9a1b   :  { %12361 = vmatpush3.bf16.msra.mxu1 %v14711_v5 }
0x9a1c   :  { %12362 = vmatprep.subr.bf16.mxu1 %v12981_v0 }
0x9a1f   :  { %12363 = vmatpush3.bf16.msra.mxu1 %v14724_v6 }
0x9a20   :  { %12378 = vmatprep.subr.bf16.mxu1 %v12981_v0 }
0x9ad6   :  { %v8800_v49 = vpop.f32.mrf.mxu1 }
0x9ad7   :  { %12869 = vtanh.f32 %v8800_v49 }
0x9ad8   :  { %v12346_v50 = vpop.f32.mrf.mxu1 }
0x9ada   :  { %v8803_v51 = vpop.f32.mrf.mxu1 }
0x9adc   :  { %v12347_v52 = vpop.f32.mrf.mxu1 }
0x9ae4   :  { %v12870_v53 = vpop.eup %12869 }
0x9ae5   :  { %v8807_v54 = vmul.f32 0.01, %v12870_v53 }
0x9ae7   :  { %v8808_v55 = vadd.f32 %v8807_v54, %v8761_v47 }
0x9ae9   :  { %v8809_v56 = vpack.c.bf16 %v8808_v55, %v8808_v55 }
0x9aeb   :  { %12355 = vmatmul.mubr.msk.bf16.vlgmr.msra.gmra.mxu0 %vm61_vm2, %v8809_v56 }
0x9aec   :  { %12369 = vmatpush3.bf16.msra.mxu0 %v13012_v4  ;;  %12374 = vmatprep.mubr.msk.bf16.mxu0 %vm12982_vm0, %v12981_v0 }
0x9aed   :  { %12370 = vmatprep.subr.bf16.mxu0 %v12981_v0 }
0x9af0   :  { %12371 = vmatpush3.bf16.msra.mxu0 %v14711_v5 }
0x9af1   :  { %12372 = vmatprep.subr.bf16.mxu0 %v12981_v0 }
0x9af4   :  { %12373 = vmatpush3.bf16.msra.mxu0 %v14724_v6 }
0x9af5   :  { %12388 = vmatprep.subr.bf16.mxu0 %v12981_v0 }
0x9bab   :  { %v8847_v57 = vpop.f32.mrf.mxu0 }
0x9bac   :  { %12871 = vtanh.f32 %v8847_v57 }
0x9bad   :  { %v12356_v58 = vpop.f32.mrf.mxu0 }
0x9baf   :  { %v8850_v59 = vpop.f32.mrf.mxu0 }
0x9bb1   :  { %v12357_v60 = vpop.f32.mrf.mxu0 }
0x9bb9   :  { %v12872_v61 = vpop.eup %12871 }
0x9bba   :  { %v8854_v62 = vmul.f32 0.01, %v12872_v61 }
0x9bbc   :  { %v8855_v63 = vadd.f32 %v8854_v62, %v8808_v55 }
0x9bbe   :  { %v8856_v1 = vpack.c.bf16 %v8855_v63, %v8855_v63 }
0x9bc0   :  { %12365 = vmatmul.mubr.msk.bf16.vlgmr.msra.gmra.mxu1 %vm61_vm2, %v8856_v1 }
0x9bc1   :  { %12379 = vmatpush3.bf16.msra.mxu1 %v13012_v4  ;;  %12384 = vmatprep.mubr.msk.bf16.mxu1 %vm12982_vm0, %v12981_v0 }
0x9bc2   :  { %12380 = vmatprep.subr.bf16.mxu1 %v12981_v0 }
0x9bc5   :  { %12381 = vmatpush3.bf16.msra.mxu1 %v14711_v5 }
0x9bc6   :  { %12382 = vmatprep.subr.bf16.mxu1 %v12981_v0 }
0x9bc9   :  { %12383 = vmatpush3.bf16.msra.mxu1 %v14724_v6 }
0x9bca   :  { %12398 = vmatprep.subr.bf16.mxu1 %v12981_v0 }
0x9c80   :  { %v8894_v2 = vpop.f32.mrf.mxu1 }
0x9c81   :  { %12873 = vtanh.f32 %v8894_v2 }
0x9c82   :  { %v12366_v3 = vpop.f32.mrf.mxu1 }
0x9c84   :  { %v8897_v7 = vpop.f32.mrf.mxu1 }
0x9c86   :  { %v12367_v8 = vpop.f32.mrf.mxu1 }
0x9c8e   :  { %v12874_v9 = vpop.eup %12873 }
0x9c8f   :  { %v8901_v10 = vmul.f32 0.01, %v12874_v9 }
0x9c91   :  { %v8902_v11 = vadd.f32 %v8901_v10, %v8855_v63 }
0x9c93   :  { %v8903_v12 = vpack.c.bf16 %v8902_v11, %v8902_v11 }
0x9c95   :  { %12375 = vmatmul.mubr.msk.bf16.vlgmr.msra.gmra.mxu0 %vm61_vm2, %v8903_v12 }
0x9c96   :  { %12389 = vmatpush3.bf16.msra.mxu0 %v13012_v4  ;;  %12394 = vmatprep.mubr.msk.bf16.mxu0 %vm12982_vm0, %v12981_v0 }
0x9c97   :  { %12390 = vmatprep.subr.bf16.mxu0 %v12981_v0 }
0x9c9a   :  { %12391 = vmatpush3.bf16.msra.mxu0 %v14711_v5 }
0x9c9b   :  { %12392 = vmatprep.subr.bf16.mxu0 %v12981_v0 }
0x9c9e   :  { %12393 = vmatpush3.bf16.msra.mxu0 %v14724_v6 }
0x9c9f   :  { %12408 = vmatprep.subr.bf16.mxu0 %v12981_v0 }
0x9d55   :  { %v8941_v13 = vpop.f32.mrf.mxu0 }
0x9d56   :  { %12875 = vtanh.f32 %v8941_v13 }
0x9d57   :  { %v12376_v14 = vpop.f32.mrf.mxu0 }
0x9d59   :  { %v8944_v15 = vpop.f32.mrf.mxu0 }
0x9d5b   :  { %v12377_v16 = vpop.f32.mrf.mxu0 }
0x9d63   :  { %v12876_v17 = vpop.eup %12875 }
0x9d64   :  { %v8948_v18 = vmul.f32 0.01, %v12876_v17 }
0x9d66   :  { %v8949_v19 = vadd.f32 %v8948_v18, %v8902_v11 }
0x9d68   :  { %v8950_v20 = vpack.c.bf16 %v8949_v19, %v8949_v19 }
0x9d6a   :  { %12385 = vmatmul.mubr.msk.bf16.vlgmr.msra.gmra.mxu1 %vm61_vm2, %v8950_v20 }
0x9d6b   :  { %12399 = vmatpush3.bf16.msra.mxu1 %v13012_v4  ;;  %12404 = vmatprep.mubr.msk.bf16.mxu1 %vm12982_vm0, %v12981_v0 }
0x9d6c   :  { %12400 = vmatprep.subr.bf16.mxu1 %v12981_v0 }
0x9d6f   :  { %12401 = vmatpush3.bf16.msra.mxu1 %v14711_v5 }
0x9d70   :  { %12402 = vmatprep.subr.bf16.mxu1 %v12981_v0 }
0x9d73   :  { %12403 = vmatpush3.bf16.msra.mxu1 %v14724_v6 }
0x9d74   :  { %12418 = vmatprep.subr.bf16.mxu1 %v12981_v0 }
0x9e2a   :  { %v8988_v21 = vpop.f32.mrf.mxu1 }
0x9e2b   :  { %12877 = vtanh.f32 %v8988_v21 }
0x9e2c   :  { %v12386_v22 = vpop.f32.mrf.mxu1 }
0x9e2e   :  { %v8991_v23 = vpop.f32.mrf.mxu1 }
0x9e30   :  { %v12387_v24 = vpop.f32.mrf.mxu1 }
0x9e38   :  { %v12878_v25 = vpop.eup %12877 }
0x9e39   :  { %v8995_v26 = vmul.f32 0.01, %v12878_v25 }
0x9e3b   :  { %v8996_v27 = vadd.f32 %v8995_v26, %v8949_v19 }
0x9e3d   :  { %v8997_v28 = vpack.c.bf16 %v8996_v27, %v8996_v27 }
0x9e3f   :  { %12395 = vmatmul.mubr.msk.bf16.vlgmr.msra.gmra.mxu0 %vm61_vm2, %v8997_v28 }
0x9e40   :  { %12409 = vmatpush3.bf16.msra.mxu0 %v13012_v4  ;;  %12414 = vmatprep.mubr.msk.bf16.mxu0 %vm12982_vm0, %v12981_v0 }
0x9e41   :  { %12410 = vmatprep.subr.bf16.mxu0 %v12981_v0 }
0x9e44   :  { %12411 = vmatpush3.bf16.msra.mxu0 %v14711_v5 }
0x9e45   :  { %12412 = vmatprep.subr.bf16.mxu0 %v12981_v0 }
0x9e48   :  { %12413 = vmatpush3.bf16.msra.mxu0 %v14724_v6 }
0x9e49   :  { %12428 = vmatprep.subr.bf16.mxu0 %v12981_v0 }
0x9eff   :  { %v9035_v29 = vpop.f32.mrf.mxu0 }
0x9f00   :  { %12879 = vtanh.f32 %v9035_v29 }
0x9f01   :  { %v12396_v30 = vpop.f32.mrf.mxu0 }
0x9f03   :  { %v9038_v31 = vpop.f32.mrf.mxu0 }
0x9f05   :  { %v12397_v32 = vpop.f32.mrf.mxu0 }
0x9f0d   :  { %v12880_v33 = vpop.eup %12879 }
0x9f0e   :  { %v9042_v34 = vmul.f32 0.01, %v12880_v33 }
0x9f10   :  { %v9043_v35 = vadd.f32 %v9042_v34, %v8996_v27 }
0x9f12   :  { %v9044_v36 = vpack.c.bf16 %v9043_v35, %v9043_v35 }
0x9f14   :  { %12405 = vmatmul.mubr.msk.bf16.vlgmr.msra.gmra.mxu1 %vm61_vm2, %v9044_v36 }
0x9f15   :  { %12419 = vmatpush3.bf16.msra.mxu1 %v13012_v4  ;;  %12424 = vmatprep.mubr.msk.bf16.mxu1 %vm12982_vm0, %v12981_v0 }
0x9f16   :  { %12420 = vmatprep.subr.bf16.mxu1 %v12981_v0 }
0x9f19   :  { %12421 = vmatpush3.bf16.msra.mxu1 %v14711_v5 }
0x9f1a   :  { %12422 = vmatprep.subr.bf16.mxu1 %v12981_v0 }
0x9f1d   :  { %12423 = vmatpush3.bf16.msra.mxu1 %v14724_v6 }
0x9f1e   :  { %12438 = vmatprep.subr.bf16.mxu1 %v12981_v0 }
0x9fd4   :  { %v9082_v37 = vpop.f32.mrf.mxu1 }
0x9fd5   :  { %12881 = vtanh.f32 %v9082_v37 }
0x9fd6   :  { %v12406_v38 = vpop.f32.mrf.mxu1 }
0x9fd8   :  { %v9085_v39 = vpop.f32.mrf.mxu1 }
0x9fda   :  { %v12407_v40 = vpop.f32.mrf.mxu1 }
0x9fe2   :  { %v12882_v41 = vpop.eup %12881 }
0x9fe3   :  { %v9089_v42 = vmul.f32 0.01, %v12882_v41 }
0x9fe5   :  { %v9090_v43 = vadd.f32 %v9089_v42, %v9043_v35 }
0x9fe7   :  { %v9091_v44 = vpack.c.bf16 %v9090_v43, %v9090_v43 }
0x9fe9   :  { %12415 = vmatmul.mubr.msk.bf16.vlgmr.msra.gmra.mxu0 %vm61_vm2, %v9091_v44 }
0x9fea   :  { %12429 = vmatpush3.bf16.msra.mxu0 %v13012_v4  ;;  %12434 = vmatprep.mubr.msk.bf16.mxu0 %vm12982_vm0, %v12981_v0 }
0x9feb   :  { %12430 = vmatprep.subr.bf16.mxu0 %v12981_v0 }
0x9fee   :  { %12431 = vmatpush3.bf16.msra.mxu0 %v14711_v5 }
0x9fef   :  { %12432 = vmatprep.subr.bf16.mxu0 %v12981_v0 }
0x9ff2   :  { %12433 = vmatpush3.bf16.msra.mxu0 %v14724_v6 }
0x9ff3   :  { %12448 = vmatprep.subr.bf16.mxu0 %v12981_v0 }
0xa0a9   :  { %v9129_v45 = vpop.f32.mrf.mxu0 }
0xa0aa   :  { %12883 = vtanh.f32 %v9129_v45 }
0xa0ab   :  { %v12416_v46 = vpop.f32.mrf.mxu0 }
0xa0ad   :  { %v9132_v47 = vpop.f32.mrf.mxu0 }
0xa0af   :  { %v12417_v48 = vpop.f32.mrf.mxu0 }
0xa0b7   :  { %v12884_v49 = vpop.eup %12883 }
0xa0b8   :  { %v9136_v50 = vmul.f32 0.01, %v12884_v49 }
0xa0ba   :  { %v9137_v51 = vadd.f32 %v9136_v50, %v9090_v43 }
0xa0bc   :  { %v9138_v52 = vpack.c.bf16 %v9137_v51, %v9137_v51 }
0xa0be   :  { %12425 = vmatmul.mubr.msk.bf16.vlgmr.msra.gmra.mxu1 %vm61_vm2, %v9138_v52 }
0xa0bf   :  { %12439 = vmatpush3.bf16.msra.mxu1 %v13012_v4  ;;  %12444 = vmatprep.mubr.msk.bf16.mxu1 %vm12982_vm0, %v12981_v0 }
0xa0c0   :  { %12440 = vmatprep.subr.bf16.mxu1 %v12981_v0 }
0xa0c3   :  { %12441 = vmatpush3.bf16.msra.mxu1 %v14711_v5 }
0xa0c4   :  { %12442 = vmatprep.subr.bf16.mxu1 %v12981_v0 }
0xa0c7   :  { %12443 = vmatpush3.bf16.msra.mxu1 %v14724_v6 }
0xa0c8   :  { %12458 = vmatprep.subr.bf16.mxu1 %v12981_v0 }
0xa17e   :  { %v9176_v53 = vpop.f32.mrf.mxu1 }
0xa17f   :  { %12885 = vtanh.f32 %v9176_v53 }
0xa180   :  { %v12426_v54 = vpop.f32.mrf.mxu1 }
0xa182   :  { %v9179_v55 = vpop.f32.mrf.mxu1 }
0xa184   :  { %v12427_v56 = vpop.f32.mrf.mxu1 }
0xa18c   :  { %v12886_v57 = vpop.eup %12885 }
0xa18d   :  { %v9183_v58 = vmul.f32 0.01, %v12886_v57 }
0xa18f   :  { %v9184_v59 = vadd.f32 %v9183_v58, %v9137_v51 }
0xa191   :  { %v9185_v60 = vpack.c.bf16 %v9184_v59, %v9184_v59 }
0xa193   :  { %12435 = vmatmul.mubr.msk.bf16.vlgmr.msra.gmra.mxu0 %vm61_vm2, %v9185_v60 }
0xa194   :  { %12449 = vmatpush3.bf16.msra.mxu0 %v13012_v4  ;;  %12454 = vmatprep.mubr.msk.bf16.mxu0 %vm12982_vm0, %v12981_v0 }
0xa195   :  { %12450 = vmatprep.subr.bf16.mxu0 %v12981_v0 }
0xa198   :  { %12451 = vmatpush3.bf16.msra.mxu0 %v14711_v5 }
0xa199   :  { %12452 = vmatprep.subr.bf16.mxu0 %v12981_v0 }
0xa19c   :  { %12453 = vmatpush3.bf16.msra.mxu0 %v14724_v6 }
0xa19d   :  { %12468 = vmatprep.subr.bf16.mxu0 %v12981_v0 }
0xa253   :  { %v9223_v61 = vpop.f32.mrf.mxu0 }
0xa254   :  { %12887 = vtanh.f32 %v9223_v61 }
0xa255   :  { %v12436_v62 = vpop.f32.mrf.mxu0 }
0xa257   :  { %v9226_v63 = vpop.f32.mrf.mxu0 }
0xa259   :  { %v12437_v1 = vpop.f32.mrf.mxu0 }
0xa261   :  { %v12888_v2 = vpop.eup %12887 }
0xa262   :  { %v9230_v3 = vmul.f32 0.01, %v12888_v2 }
0xa264   :  { %v9231_v7 = vadd.f32 %v9230_v3, %v9184_v59 }
0xa266   :  { %v9232_v8 = vpack.c.bf16 %v9231_v7, %v9231_v7 }
0xa268   :  { %12445 = vmatmul.mubr.msk.bf16.vlgmr.msra.gmra.mxu1 %vm61_vm2, %v9232_v8 }
0xa269   :  { %12459 = vmatpush3.bf16.msra.mxu1 %v13012_v4  ;;  %12464 = vmatprep.mubr.msk.bf16.mxu1 %vm12982_vm0, %v12981_v0 }
0xa26a   :  { %12460 = vmatprep.subr.bf16.mxu1 %v12981_v0 }
0xa26d   :  { %12461 = vmatpush3.bf16.msra.mxu1 %v14711_v5 }
0xa26e   :  { %12462 = vmatprep.subr.bf16.mxu1 %v12981_v0 }
0xa271   :  { %12463 = vmatpush3.bf16.msra.mxu1 %v14724_v6 }
0xa272   :  { %12478 = vmatprep.subr.bf16.mxu1 %v12981_v0 }
0xa328   :  { %v9270_v9 = vpop.f32.mrf.mxu1 }
0xa329   :  { %12889 = vtanh.f32 %v9270_v9 }
0xa32a   :  { %v12446_v10 = vpop.f32.mrf.mxu1 }
0xa32c   :  { %v9273_v11 = vpop.f32.mrf.mxu1 }
0xa32e   :  { %v12447_v12 = vpop.f32.mrf.mxu1 }
0xa336   :  { %v12890_v13 = vpop.eup %12889 }
0xa337   :  { %v9277_v14 = vmul.f32 0.01, %v12890_v13 }
0xa339   :  { %v9278_v15 = vadd.f32 %v9277_v14, %v9231_v7 }
0xa33b   :  { %v9279_v16 = vpack.c.bf16 %v9278_v15, %v9278_v15 }
0xa33d   :  { %12455 = vmatmul.mubr.msk.bf16.vlgmr.msra.gmra.mxu0 %vm61_vm2, %v9279_v16 }
0xa33e   :  { %12469 = vmatpush3.bf16.msra.mxu0 %v13012_v4  ;;  %12474 = vmatprep.mubr.msk.bf16.mxu0 %vm12982_vm0, %v12981_v0 }
0xa33f   :  { %12470 = vmatprep.subr.bf16.mxu0 %v12981_v0 }
0xa342   :  { %12471 = vmatpush3.bf16.msra.mxu0 %v14711_v5 }
0xa343   :  { %12472 = vmatprep.subr.bf16.mxu0 %v12981_v0 }
0xa346   :  { %12473 = vmatpush3.bf16.msra.mxu0 %v14724_v6 }
0xa3fd   :  { %v9317_v17 = vpop.f32.mrf.mxu0 }
0xa3fe   :  { %12891 = vtanh.f32 %v9317_v17 }
0xa3ff   :  { %v12456_v18 = vpop.f32.mrf.mxu0 }
0xa401   :  { %v9320_v19 = vpop.f32.mrf.mxu0 }
0xa403   :  { %v12457_v20 = vpop.f32.mrf.mxu0 }
0xa40b   :  { %v12892_v21 = vpop.eup %12891 }
0xa40c   :  { %v9324_v22 = vmul.f32 0.01, %v12892_v21 }
0xa40e   :  { %v9325_v23 = vadd.f32 %v9324_v22, %v9278_v15 }
0xa410   :  { %v9326_v24 = vpack.c.bf16 %v9325_v23, %v9325_v23 }
0xa412   :  { %12465 = vmatmul.mubr.msk.bf16.vlgmr.msra.gmra.mxu1 %vm61_vm2, %v9326_v24 }
0xa413   :  { %12479 = vmatpush3.bf16.msra.mxu1 %v13012_v4  ;;  %12484 = vmatprep.mubr.msk.bf16.mxu1 %vm12982_vm0, %v12981_v0 }
0xa414   :  { %12480 = vmatprep.subr.bf16.mxu1 %v12981_v0 }
0xa417   :  { %12481 = vmatpush3.bf16.msra.mxu1 %v14711_v5 }
0xa418   :  { %12482 = vmatprep.subr.bf16.mxu1 %v12981_v0 }
0xa41b   :  { %12483 = vmatpush3.bf16.msra.mxu1 %v14724_v6 }
0xa4d2   :  { %v9364_v25 = vpop.f32.mrf.mxu1 }
0xa4d3   :  { %12893 = vtanh.f32 %v9364_v25 }
0xa4d4   :  { %v12466_v26 = vpop.f32.mrf.mxu1 }
0xa4d6   :  { %v9367_v27 = vpop.f32.mrf.mxu1 }
0xa4d8   :  { %v12467_v28 = vpop.f32.mrf.mxu1 }
0xa4e0   :  { %v12894_v29 = vpop.eup %12893 }
0xa4e1   :  { %v9371_v30 = vmul.f32 0.01, %v12894_v29 }
0xa4e3   :  { %v9372_v31 = vadd.f32 %v9371_v30, %v9325_v23 }
0xa4e5   :  { %v9373_v4 = vpack.c.bf16 %v9372_v31, %v9372_v31 }
0xa4e7   :  { %12475 = vmatmul.mubr.msk.bf16.vlgmr.msra.gmra.mxu0 %vm61_vm2, %v9373_v4 }
0xa5a7   :  { %v9411_v32 = vpop.f32.mrf.mxu0 }
0xa5a8   :  { %12895 = vtanh.f32 %v9411_v32 }
0xa5a9   :  { %v12476_v33 = vpop.f32.mrf.mxu0 }
0xa5ab   :  { %v9414_v34 = vpop.f32.mrf.mxu0 }
0xa5ad   :  { %v12477_v5 = vpop.f32.mrf.mxu0 }
0xa5b5   :  { %v12896_v35 = vpop.eup %12895 }
0xa5b6   :  { %v9418_v0 = vmul.f32 0.01, %v12896_v35 }
0xa5b8   :  { %v9419_v36 = vadd.f32 %v9418_v0, %v9372_v31 }
0xa5ba   :  { %v9420_v6 = vpack.c.bf16 %v9419_v36, %v9419_v36 }
0xa5bc   :  { %12485 = vmatmul.mubr.msk.bf16.vlgmr.msra.gmra.mxu1 %vm61_vm2, %v9420_v6 }
0xa67c   :  { %v9458_v37 = vpop.f32.mrf.mxu1 }
0xa67d   :  { %12897 = vtanh.f32 %v9458_v37 }
0xa67e   :  { %v12486_v38 = vpop.f32.mrf.mxu1 }
0xa680   :  { %v9461_v39 = vpop.f32.mrf.mxu1 }
0xa682   :  { %v12487_v40 = vpop.f32.mrf.mxu1 }
0xa68a   :  { %v12898_v41 = vpop.eup %12897 }
0xa68b   :  { %v9465_v42 = vmul.f32 0.01, %v12898_v41 }
0xa68d   :  { %v9466_v43 = vadd.f32 %v9465_v42, %v9419_v36 }
0xa68f   :  { %9468 = vst.msk [vmem:[#allocation7] sm:$0x3] %vm9467_vm3, %v9466_v43 }
0xa690   :  { %12962 = shalt.err (!%p12959_p0)
}
0xa691   :  { %9478 = dma.vmem_to_hbm [thread:$0]  %s9476_s1, 32, %s14841_s2, [#allocation4]  }
0xa692   :  { %12975 = dma.done.wait [#allocation4], 32  }
0xa693   :  { %12976 = vsyncadd [#allocation4], 4294967264 }
0xa694   :  { %9482 = vsyncpa [#allocation3], 1 }
0xa695   :  { %9483 = vsyncpa [#allocation6], 1 }
0xa696   :  { %9484 = vsyncpa [#allocation4], 1 }

</bundles_post_ra>
